<compile_context>
chip_gen: v7x
topology: tpu7x:2x2x1
jax: 0.10.0
libtpu: 0.0.40
codegen_flags: <defaults>
</compile_context>

<pallas_src>
import jax
import jax.numpy as jnp
from jax.experimental import pallas as pl
from jax.experimental.pallas import tpu as pltpu

# ----------------------------- model dims ------------------------------------
VOCAB = 512          # vocab_size
EMB = 200            # embedding dim fixed by the module
EMB_PAD = 256        # zero-padded embedding dim (multiple of 128)
HID = 256            # lstm hidden / linear width fixed by the module
IMG_FEAT = 128       # image_feature
B = 2                # real batch
B_PAD = 8            # batch padded to a full sublane tile
T = 8                # caption sequence length


# ----------------------------- fused kernel ----------------------------------
def fused_kernel(ids_ref,                                   # VMEM (T*B_PAD, 1) int32, time-major
                 emb_ref, wih_ref, whh_ref, blstm_ref,      # embedding + LSTM weights
                 x2_ref, w1_ref, b1_ref,
                 w2_hbm, b2_ref, w3_hbm, b3_ref,
                 out_ref,                                   # (B_PAD, VOCAB) f32
                 gx_sc,                                     # VMEM (T*B_PAD, 4*HID) f32
                 w2_vmem, w3_vmem, sems):                   # deferred head weights
    f32 = jnp.float32
    bf16 = jnp.bfloat16

    # ---- 0. Kick off head-weight DMAs now; they are only needed after the
    #         recurrence, so they overlap the gather + projection + LSTM.
    w2_cp = pltpu.make_async_copy(w2_hbm, w2_vmem, sems.at[0])
    w3_cp = pltpu.make_async_copy(w3_hbm, w3_vmem, sems.at[1])
    w2_cp.start()
    w3_cp.start()

    # ---- 1. Embedding gather: vectorized one-hot (no scalar loop, no scratch)
    #         fed straight into an MXU matmul.  Row = t*B_PAD + b (time-major).
    ids = ids_ref[...]                                                 # (64, 1) i32
    col = jax.lax.broadcasted_iota(jnp.int32, (T * B_PAD, VOCAB), 1)
    onehot = (col == ids).astype(bf16)                                 # (64, 512)
    x_tm = jnp.dot(onehot, emb_ref[...], preferred_element_type=f32)   # (64, 256)
    # dropout1: eval mode -> identity

    # ---- 2. Hoisted input projection for ALL timesteps at once (one M=64 MXU
    #         pass), bias folded in.  Batch-padded layout means each per-step
    #         read below is an aligned full (8, 4*HID) f32 tile.
    gx_sc[...] = (jnp.dot(x_tm.astype(bf16), wih_ref[...],
                          preferred_element_type=f32)
                  + blstm_ref[...])                                    # (64, 1024)

    # ---- 3. Image-feature projection (linear1); independent of recurrence.
    # dropout2: eval mode -> identity
    x2p = (jnp.dot(x2_ref[...].astype(bf16), w1_ref[...],
                   preferred_element_type=f32) + b1_ref[...])          # (8, 256)

    # ---- 4. LSTM recurrence, fully unrolled (T=8). PyTorch gate order i,f,g,o.
    h = jnp.zeros((B_PAD, HID), f32)
    c = jnp.zeros((B_PAD, HID), f32)
    whh = whh_ref[...]
    for t in range(T):
        gates = (gx_sc[t * B_PAD:(t + 1) * B_PAD, :]                   # aligned (8,1024)
                 + jnp.dot(h.astype(bf16), whh, preferred_element_type=f32))
        i_g = jax.nn.sigmoid(gates[:, 0 * HID:1 * HID])
        f_g = jax.nn.sigmoid(gates[:, 1 * HID:2 * HID])
        g_g = jnp.tanh(gates[:, 2 * HID:3 * HID])
        o_g = jax.nn.sigmoid(gates[:, 3 * HID:4 * HID])
        c = f_g * c + i_g * g_g
        h = o_g * jnp.tanh(c)

    # ---- 5. Head: (h_last + linear1(x2)) -> linear2 -> linear3.
    x = h + x2p
    w2_cp.wait()
    x = (jnp.dot(x.astype(bf16), w2_vmem[...],
                 preferred_element_type=f32) + b2_ref[...])            # (8, 256)
    w3_cp.wait()
    out_ref[...] = (jnp.dot(x.astype(bf16), w3_vmem[...],
                            preferred_element_type=f32) + b3_ref[...]) # (8, 512)


# ----------------------------- wrapper ---------------------------------------
def _full(shape):
    return pl.BlockSpec(shape, lambda i: (0,) * len(shape))


@jax.jit
def caption_generator_forward(params, x1_tokens, x2_feats):
    # Pad batch 2 -> 8 sublanes; rearrange token ids time-major (row = t*B_PAD + b).
    ids_pad = jnp.zeros((B_PAD, T), jnp.int32).at[:B, :].set(x1_tokens)
    ids_tm = ids_pad.T.reshape(T * B_PAD, 1)
    x2_pad = jnp.zeros((B_PAD, IMG_FEAT), jnp.float32).at[:B, :].set(x2_feats)

    out_pad = pl.pallas_call(
        fused_kernel,
        out_shape=jax.ShapeDtypeStruct((B_PAD, VOCAB), jnp.float32),
        grid_spec=pltpu.PrefetchScalarGridSpec(
            num_scalar_prefetch=0,
            grid=(1,),
            in_specs=[
                _full((T * B_PAD, 1)),                      # token ids (int32)
                _full((VOCAB, EMB_PAD)),                    # embedding (bf16)
                _full((EMB_PAD, 4 * HID)),                  # w_ih (bf16)
                _full((HID, 4 * HID)),                      # w_hh (bf16)
                _full((1, 4 * HID)),                        # bias_ih + bias_hh (f32)
                _full((B_PAD, IMG_FEAT)),                   # x2 image features (f32)
                _full((IMG_FEAT, HID)), _full((1, HID)),    # linear1
                pl.BlockSpec(memory_space=pl.ANY),          # w2: HBM, DMA'd in-kernel
                _full((1, HID)),                            # b2
                pl.BlockSpec(memory_space=pl.ANY),          # w3: HBM, DMA'd in-kernel
                _full((1, VOCAB)),                          # b3
            ],
            out_specs=_full((B_PAD, VOCAB)),
            scratch_shapes=[
                pltpu.VMEM((T * B_PAD, 4 * HID), jnp.float32),  # hoisted gates_x
                pltpu.VMEM((HID, HID), jnp.bfloat16),           # w2 landing buffer
                pltpu.VMEM((HID, VOCAB), jnp.bfloat16),         # w3 landing buffer
                pltpu.SemaphoreType.DMA((2,)),
            ],
        ),
        compiler_params=pltpu.CompilerParams(
            dimension_semantics=("arbitrary",)),
    )(ids_tm,
      params["embedding"], params["w_ih"], params["w_hh"], params["b_lstm"],
      x2_pad,
      params["w1"], params["b1"], params["w2"], params["b2"],
      params["w3"], params["b3"])
    return out_pad[:B]


# ----------------------------- params ----------------------------------------
def init_params(key):
    ks = jax.random.split(key, 10)
    u = lambda k, shape, s: jax.random.uniform(k, shape, jnp.float32, -s, s)
    sh = (1.0 / HID) ** 0.5
    si = (1.0 / IMG_FEAT) ** 0.5

    emb = jnp.pad(u(ks[0], (VOCAB, EMB), 0.1), ((0, 0), (0, EMB_PAD - EMB)))
    w_ih = jnp.pad(u(ks[1], (EMB, 4 * HID), sh), ((0, EMB_PAD - EMB), (0, 0)))

    return {
        # matmul weights stored bf16 (right-multiply form: y = x @ W + b)
        "embedding": emb.astype(jnp.bfloat16),
        "w_ih": w_ih.astype(jnp.bfloat16),
        "w_hh": u(ks[2], (HID, 4 * HID), sh).astype(jnp.bfloat16),
        "b_lstm": u(ks[3], (1, 4 * HID), sh),          # combined bias_ih + bias_hh
        "w1": u(ks[4], (IMG_FEAT, HID), si).astype(jnp.bfloat16),
        "b1": u(ks[5], (1, HID), si),
        "w2": u(ks[6], (HID, HID), sh).astype(jnp.bfloat16),
        "b2": u(ks[7], (1, HID), sh),
        "w3": u(ks[8], (HID, VOCAB), sh).astype(jnp.bfloat16),
        "b3": u(ks[9], (1, VOCAB), sh),
    }


# ----------------------------- pure-JAX reference ----------------------------
def reference_forward(params, x1_tokens, x2_feats):
    """f32 reference using the same (bf16-stored) weights."""
    f32 = jnp.float32
    emb = params["embedding"].astype(f32)
    w_ih = params["w_ih"].astype(f32)
    w_hh = params["w_hh"].astype(f32)
    b = params["b_lstm"][0]
    x = emb[x1_tokens]                                  # (B, T, EMB_PAD)
    h = jnp.zeros((B, HID), f32)
    c = jnp.zeros((B, HID), f32)
    for t in range(T):
        g = x[:, t, :] @ w_ih + h @ w_hh + b
        i_g = jax.nn.sigmoid(g[:, :HID])
        f_g = jax.nn.sigmoid(g[:, HID:2 * HID])
        g_g = jnp.tanh(g[:, 2 * HID:3 * HID])
        o_g = jax.nn.sigmoid(g[:, 3 * HID:])
        c = f_g * c + i_g * g_g
        h = o_g * jnp.tanh(c)
    x2p = x2_feats @ params["w1"].astype(f32) + params["b1"][0]
    y = h + x2p
    y = y @ params["w2"].astype(f32) + params["b2"][0]
    return y @ params["w3"].astype(f32) + params["b3"][0]


if __name__ == "__main__":
    key = jax.random.PRNGKey(0)
    pkey, k1, k2 = jax.random.split(key, 3)
    params = init_params(pkey)

    x1 = jax.random.randint(k1, (B, T), 0, VOCAB, dtype=jnp.int32)    # token ids
    x2 = jax.random.normal(k2, (B, IMG_FEAT), dtype=jnp.float32)      # image features

    out = jax.block_until_ready(caption_generator_forward(params, x1, x2))
    assert out.shape == (B, VOCAB) and out.dtype == jnp.float32
    assert bool(jnp.all(jnp.isfinite(out)))

    ref = reference_forward(params, x1, x2)
    max_err = float(jnp.max(jnp.abs(out - ref)))
    assert max_err < 1e-1, f"max abs error vs f32 reference: {max_err}"
    # TODO(synk): training-mode dropout (p=0.3) not implemented; eval-mode identity used.
    print("KERNEL_OK")
</pallas_src>

<mosaic_0001>
module attributes {stable_mosaic.version = 11 : i64} {
  func.func @fused_kernel(%arg0: i32, %arg1: memref<64x1xi32, #tpu.memory_space<vmem>>, %arg2: memref<512x256xbf16, #tpu.memory_space<vmem>>, %arg3: memref<256x1024xbf16, #tpu.memory_space<vmem>>, %arg4: memref<256x1024xbf16, #tpu.memory_space<vmem>>, %arg5: memref<1x1024xf32, #tpu.memory_space<vmem>>, %arg6: memref<8x128xf32, #tpu.memory_space<vmem>>, %arg7: memref<128x256xbf16, #tpu.memory_space<vmem>>, %arg8: memref<1x256xf32, #tpu.memory_space<vmem>>, %arg9: memref<256x256xbf16, #tpu.memory_space<any>>, %arg10: memref<1x256xf32, #tpu.memory_space<vmem>>, %arg11: memref<256x512xbf16, #tpu.memory_space<any>>, %arg12: memref<1x512xf32, #tpu.memory_space<vmem>>, %arg13: memref<8x512xf32, #tpu.memory_space<vmem>>, %arg14: memref<64x1024xf32, #tpu.memory_space<vmem>>, %arg15: memref<256x256xbf16, #tpu.memory_space<vmem>>, %arg16: memref<256x512xbf16, #tpu.memory_space<vmem>>, %arg17: memref<2x!tpu.dma_semaphore, #tpu.memory_space<semaphore_mem>>) attributes {dimension_semantics = [#tpu.dimension_semantics<arbitrary>], iteration_bounds = array<i64: 1>, scalar_prefetch = 0 : i64, scratch_operands = 4 : i64, tpu.core_type = #tpu.core_type<tc>, window_params = [{pipeline_mode = #tpu.pipeline_mode<synchronous>, transform_indices = @transform_0, window_bounds = array<i64: 64, 1>}, {pipeline_mode = #tpu.pipeline_mode<synchronous>, transform_indices = @transform_1, window_bounds = array<i64: 512, 256>}, {pipeline_mode = #tpu.pipeline_mode<synchronous>, transform_indices = @transform_2, window_bounds = array<i64: 256, 1024>}, {pipeline_mode = #tpu.pipeline_mode<synchronous>, transform_indices = @transform_3, window_bounds = array<i64: 256, 1024>}, {pipeline_mode = #tpu.pipeline_mode<synchronous>, transform_indices = @transform_4, window_bounds = array<i64: 1, 1024>}, {pipeline_mode = #tpu.pipeline_mode<synchronous>, transform_indices = @transform_5, window_bounds = array<i64: 8, 128>}, {pipeline_mode = #tpu.pipeline_mode<synchronous>, transform_indices = @transform_6, window_bounds = array<i64: 128, 256>}, {pipeline_mode = #tpu.pipeline_mode<synchronous>, transform_indices = @transform_7, window_bounds = array<i64: 1, 256>}, {}, {pipeline_mode = #tpu.pipeline_mode<synchronous>, transform_indices = @transform_9, window_bounds = array<i64: 1, 256>}, {}, {pipeline_mode = #tpu.pipeline_mode<synchronous>, transform_indices = @transform_11, window_bounds = array<i64: 1, 512>}, {pipeline_mode = #tpu.pipeline_mode<synchronous>, transform_indices = @transform_12, window_bounds = array<i64: 8, 512>}]} {
    %c0_i32 = arith.constant 0 : i32
    %0 = tpu.memref_slice %arg17[%c0_i32] : memref<2x!tpu.dma_semaphore, #tpu.memory_space<semaphore_mem>> -> memref<1x!tpu.dma_semaphore, #tpu.memory_space<semaphore_mem>>
    %1 = tpu.memref_squeeze %0 : memref<1x!tpu.dma_semaphore, #tpu.memory_space<semaphore_mem>> -> memref<!tpu.dma_semaphore, #tpu.memory_space<semaphore_mem>>
    tpu.enqueue_dma source(%arg9 : memref<256x256xbf16, #tpu.memory_space<any>>) target(%arg15 : memref<256x256xbf16, #tpu.memory_space<vmem>>) target_semaphore(%1 : memref<!tpu.dma_semaphore, #tpu.memory_space<semaphore_mem>>)
    %c1_i32 = arith.constant 1 : i32
    %2 = tpu.memref_slice %arg17[%c1_i32] : memref<2x!tpu.dma_semaphore, #tpu.memory_space<semaphore_mem>> -> memref<1x!tpu.dma_semaphore, #tpu.memory_space<semaphore_mem>>
    %3 = tpu.memref_squeeze %2 : memref<1x!tpu.dma_semaphore, #tpu.memory_space<semaphore_mem>> -> memref<!tpu.dma_semaphore, #tpu.memory_space<semaphore_mem>>
    tpu.enqueue_dma source(%arg11 : memref<256x512xbf16, #tpu.memory_space<any>>) target(%arg16 : memref<256x512xbf16, #tpu.memory_space<vmem>>) target_semaphore(%3 : memref<!tpu.dma_semaphore, #tpu.memory_space<semaphore_mem>>)
    %c0 = arith.constant 0 : index
    %c0_0 = arith.constant 0 : index
    %4 = vector.load %arg1[%c0, %c0_0] : memref<64x1xi32, #tpu.memory_space<vmem>>, vector<64x1xi32>
    %5 = tpu.iota {dimensions = array<i32: 1>} : vector<64x512xi32>
    %6 = vector.broadcast %4 : vector<64x1xi32> to vector<64x512xi32>
    %7 = arith.cmpi eq, %5, %6 : vector<64x512xi32>
    %8 = arith.extui %7 : vector<64x512xi1> to vector<64x512xi32>
    %9 = arith.sitofp %8 : vector<64x512xi32> to vector<64x512xf32>
    %10 = arith.truncf %9 : vector<64x512xf32> to vector<64x512xbf16>
    %c0_1 = arith.constant 0 : index
    %c0_2 = arith.constant 0 : index
    %11 = vector.load %arg2[%c0_1, %c0_2] : memref<512x256xbf16, #tpu.memory_space<vmem>>, vector<512x256xbf16>
    %cst = arith.constant dense<0.000000e+00> : vector<64x256xf32>
    %12 = tpu.matmul %10, %11, %cst {dimension_numbers = #tpu.dot_dimension_numbers<[1], [0], [0], [1], [0, 0, 1, 1], [], []>} : vector<64x512xbf16>, vector<512x256xbf16>, vector<64x256xf32> -> vector<64x256xf32>
    %13 = arith.truncf %12 : vector<64x256xf32> to vector<64x256xbf16>
    %c0_3 = arith.constant 0 : index
    %c0_4 = arith.constant 0 : index
    %14 = vector.load %arg3[%c0_3, %c0_4] : memref<256x1024xbf16, #tpu.memory_space<vmem>>, vector<256x1024xbf16>
    %cst_5 = arith.constant dense<0.000000e+00> : vector<64x1024xf32>
    %15 = tpu.matmul %13, %14, %cst_5 {dimension_numbers = #tpu.dot_dimension_numbers<[1], [0], [0], [1], [0, 0, 1, 1], [], []>} : vector<64x256xbf16>, vector<256x1024xbf16>, vector<64x1024xf32> -> vector<64x1024xf32>
    %c0_6 = arith.constant 0 : index
    %c0_7 = arith.constant 0 : index
    %16 = vector.load %arg5[%c0_6, %c0_7] : memref<1x1024xf32, #tpu.memory_space<vmem>>, vector<1x1024xf32>
    %17 = vector.broadcast %16 : vector<1x1024xf32> to vector<64x1024xf32>
    %18 = arith.addf %15, %17 : vector<64x1024xf32>
    %c0_8 = arith.constant 0 : index
    %c0_9 = arith.constant 0 : index
    %19 = vector.load %arg14[%c0_8, %c0_9] : memref<64x1024xf32, #tpu.memory_space<vmem>>, vector<64x1024xf32>
    tpu.vector_store %arg14[%c0_8, %c0_9], %18 {strides = array<i32>} : memref<64x1024xf32, #tpu.memory_space<vmem>>, vector<64x1024xf32>,
    %c0_10 = arith.constant 0 : index
    %c0_11 = arith.constant 0 : index
    %20 = vector.load %arg6[%c0_10, %c0_11] : memref<8x128xf32, #tpu.memory_space<vmem>>, vector<8x128xf32>
    %21 = arith.truncf %20 : vector<8x128xf32> to vector<8x128xbf16>
    %c0_12 = arith.constant 0 : index
    %c0_13 = arith.constant 0 : index
    %22 = vector.load %arg7[%c0_12, %c0_13] : memref<128x256xbf16, #tpu.memory_space<vmem>>, vector<128x256xbf16>
    %cst_14 = arith.constant dense<0.000000e+00> : vector<8x256xf32>
    %23 = tpu.matmul %21, %22, %cst_14 {dimension_numbers = #tpu.dot_dimension_numbers<[1], [0], [0], [1], [0, 0, 1, 1], [], []>} : vector<8x128xbf16>, vector<128x256xbf16>, vector<8x256xf32> -> vector<8x256xf32>
    %c0_15 = arith.constant 0 : index
    %c0_16 = arith.constant 0 : index
    %24 = vector.load %arg8[%c0_15, %c0_16] : memref<1x256xf32, #tpu.memory_space<vmem>>, vector<1x256xf32>
    %25 = vector.broadcast %24 : vector<1x256xf32> to vector<8x256xf32>
    %26 = arith.addf %23, %25 : vector<8x256xf32>
    %cst_17 = arith.constant 0.000000e+00 : f32
    %27 = vector.broadcast %cst_17 : f32 to vector<8x256xf32>
    %cst_18 = arith.constant 0.000000e+00 : f32
    %28 = vector.broadcast %cst_18 : f32 to vector<8x256xf32>
    %c0_19 = arith.constant 0 : index
    %c0_20 = arith.constant 0 : index
    %29 = vector.load %arg4[%c0_19, %c0_20] : memref<256x1024xbf16, #tpu.memory_space<vmem>>, vector<256x1024xbf16>
    %c0_21 = arith.constant 0 : index
    %c0_22 = arith.constant 0 : index
    %30 = vector.load %arg14[%c0_21, %c0_22] : memref<64x1024xf32, #tpu.memory_space<vmem>>, vector<8x1024xf32>
    %31 = arith.truncf %27 : vector<8x256xf32> to vector<8x256xbf16>
    %cst_23 = arith.constant dense<0.000000e+00> : vector<8x1024xf32>
    %32 = tpu.matmul %31, %29, %cst_23 {dimension_numbers = #tpu.dot_dimension_numbers<[1], [0], [0], [1], [0, 0, 1, 1], [], []>} : vector<8x256xbf16>, vector<256x1024xbf16>, vector<8x1024xf32> -> vector<8x1024xf32>
    %33 = arith.addf %30, %32 : vector<8x1024xf32>
    %34 = vector.extract_strided_slice %33 {offsets = [0, 0], sizes = [8, 256], strides = [1, 1]} : vector<8x1024xf32> to vector<8x256xf32>
    %35 = arith.negf %34 : vector<8x256xf32>
    %36 = math.exp %35 : vector<8x256xf32>
    %cst_24 = arith.constant 1.000000e+00 : f32
    %37 = vector.broadcast %cst_24 : f32 to vector<8x256xf32>
    %38 = arith.addf %37, %36 : vector<8x256xf32>
    %39 = arith.divf %37, %38 : vector<8x256xf32>
    %40 = vector.extract_strided_slice %33 {offsets = [0, 256], sizes = [8, 256], strides = [1, 1]} : vector<8x1024xf32> to vector<8x256xf32>
    %41 = arith.negf %40 : vector<8x256xf32>
    %42 = math.exp %41 : vector<8x256xf32>
    %cst_25 = arith.constant 1.000000e+00 : f32
    %43 = vector.broadcast %cst_25 : f32 to vector<8x256xf32>
    %44 = arith.addf %43, %42 : vector<8x256xf32>
    %45 = arith.divf %43, %44 : vector<8x256xf32>
    %46 = vector.extract_strided_slice %33 {offsets = [0, 512], sizes = [8, 256], strides = [1, 1]} : vector<8x1024xf32> to vector<8x256xf32>
    %47 = math.tanh %46 : vector<8x256xf32>
    %48 = vector.extract_strided_slice %33 {offsets = [0, 768], sizes = [8, 256], strides = [1, 1]} : vector<8x1024xf32> to vector<8x256xf32>
    %49 = arith.negf %48 : vector<8x256xf32>
    %50 = math.exp %49 : vector<8x256xf32>
    %cst_26 = arith.constant 1.000000e+00 : f32
    %51 = vector.broadcast %cst_26 : f32 to vector<8x256xf32>
    %52 = arith.addf %51, %50 : vector<8x256xf32>
    %53 = arith.divf %51, %52 : vector<8x256xf32>
    %54 = arith.mulf %45, %28 : vector<8x256xf32>
    %55 = arith.mulf %39, %47 : vector<8x256xf32>
    %56 = arith.addf %54, %55 : vector<8x256xf32>
    %57 = math.tanh %56 : vector<8x256xf32>
    %58 = arith.mulf %53, %57 : vector<8x256xf32>
    %c8 = arith.constant 8 : index
    %c0_27 = arith.constant 0 : index
    %59 = vector.load %arg14[%c8, %c0_27] : memref<64x1024xf32, #tpu.memory_space<vmem>>, vector<8x1024xf32>
    %60 = arith.truncf %58 : vector<8x256xf32> to vector<8x256xbf16>
    %cst_28 = arith.constant dense<0.000000e+00> : vector<8x1024xf32>
    %61 = tpu.matmul %60, %29, %cst_28 {dimension_numbers = #tpu.dot_dimension_numbers<[1], [0], [0], [1], [0, 0, 1, 1], [], []>} : vector<8x256xbf16>, vector<256x1024xbf16>, vector<8x1024xf32> -> vector<8x1024xf32>
    %62 = arith.addf %59, %61 : vector<8x1024xf32>
    %63 = vector.extract_strided_slice %62 {offsets = [0, 0], sizes = [8, 256], strides = [1, 1]} : vector<8x1024xf32> to vector<8x256xf32>
    %64 = arith.negf %63 : vector<8x256xf32>
    %65 = math.exp %64 : vector<8x256xf32>
    %cst_29 = arith.constant 1.000000e+00 : f32
    %66 = vector.broadcast %cst_29 : f32 to vector<8x256xf32>
    %67 = arith.addf %66, %65 : vector<8x256xf32>
    %68 = arith.divf %66, %67 : vector<8x256xf32>
    %69 = vector.extract_strided_slice %62 {offsets = [0, 256], sizes = [8, 256], strides = [1, 1]} : vector<8x1024xf32> to vector<8x256xf32>
    %70 = arith.negf %69 : vector<8x256xf32>
    %71 = math.exp %70 : vector<8x256xf32>
    %cst_30 = arith.constant 1.000000e+00 : f32
    %72 = vector.broadcast %cst_30 : f32 to vector<8x256xf32>
    %73 = arith.addf %72, %71 : vector<8x256xf32>
    %74 = arith.divf %72, %73 : vector<8x256xf32>
    %75 = vector.extract_strided_slice %62 {offsets = [0, 512], sizes = [8, 256], strides = [1, 1]} : vector<8x1024xf32> to vector<8x256xf32>
    %76 = math.tanh %75 : vector<8x256xf32>
    %77 = vector.extract_strided_slice %62 {offsets = [0, 768], sizes = [8, 256], strides = [1, 1]} : vector<8x1024xf32> to vector<8x256xf32>
    %78 = arith.negf %77 : vector<8x256xf32>
    %79 = math.exp %78 : vector<8x256xf32>
    %cst_31 = arith.constant 1.000000e+00 : f32
    %80 = vector.broadcast %cst_31 : f32 to vector<8x256xf32>
    %81 = arith.addf %80, %79 : vector<8x256xf32>
    %82 = arith.divf %80, %81 : vector<8x256xf32>
    %83 = arith.mulf %74, %56 : vector<8x256xf32>
    %84 = arith.mulf %68, %76 : vector<8x256xf32>
    %85 = arith.addf %83, %84 : vector<8x256xf32>
    %86 = math.tanh %85 : vector<8x256xf32>
    %87 = arith.mulf %82, %86 : vector<8x256xf32>
    %c16 = arith.constant 16 : index
    %c0_32 = arith.constant 0 : index
    %88 = vector.load %arg14[%c16, %c0_32] : memref<64x1024xf32, #tpu.memory_space<vmem>>, vector<8x1024xf32>
    %89 = arith.truncf %87 : vector<8x256xf32> to vector<8x256xbf16>
    %cst_33 = arith.constant dense<0.000000e+00> : vector<8x1024xf32>
    %90 = tpu.matmul %89, %29, %cst_33 {dimension_numbers = #tpu.dot_dimension_numbers<[1], [0], [0], [1], [0, 0, 1, 1], [], []>} : vector<8x256xbf16>, vector<256x1024xbf16>, vector<8x1024xf32> -> vector<8x1024xf32>
    %91 = arith.addf %88, %90 : vector<8x1024xf32>
    %92 = vector.extract_strided_slice %91 {offsets = [0, 0], sizes = [8, 256], strides = [1, 1]} : vector<8x1024xf32> to vector<8x256xf32>
    %93 = arith.negf %92 : vector<8x256xf32>
    %94 = math.exp %93 : vector<8x256xf32>
    %cst_34 = arith.constant 1.000000e+00 : f32
    %95 = vector.broadcast %cst_34 : f32 to vector<8x256xf32>
    %96 = arith.addf %95, %94 : vector<8x256xf32>
    %97 = arith.divf %95, %96 : vector<8x256xf32>
    %98 = vector.extract_strided_slice %91 {offsets = [0, 256], sizes = [8, 256], strides = [1, 1]} : vector<8x1024xf32> to vector<8x256xf32>
    %99 = arith.negf %98 : vector<8x256xf32>
    %100 = math.exp %99 : vector<8x256xf32>
    %cst_35 = arith.constant 1.000000e+00 : f32
    %101 = vector.broadcast %cst_35 : f32 to vector<8x256xf32>
    %102 = arith.addf %101, %100 : vector<8x256xf32>
    %103 = arith.divf %101, %102 : vector<8x256xf32>
    %104 = vector.extract_strided_slice %91 {offsets = [0, 512], sizes = [8, 256], strides = [1, 1]} : vector<8x1024xf32> to vector<8x256xf32>
    %105 = math.tanh %104 : vector<8x256xf32>
    %106 = vector.extract_strided_slice %91 {offsets = [0, 768], sizes = [8, 256], strides = [1, 1]} : vector<8x1024xf32> to vector<8x256xf32>
    %107 = arith.negf %106 : vector<8x256xf32>
    %108 = math.exp %107 : vector<8x256xf32>
    %cst_36 = arith.constant 1.000000e+00 : f32
    %109 = vector.broadcast %cst_36 : f32 to vector<8x256xf32>
    %110 = arith.addf %109, %108 : vector<8x256xf32>
    %111 = arith.divf %109, %110 : vector<8x256xf32>
    %112 = arith.mulf %103, %85 : vector<8x256xf32>
    %113 = arith.mulf %97, %105 : vector<8x256xf32>
    %114 = arith.addf %112, %113 : vector<8x256xf32>
    %115 = math.tanh %114 : vector<8x256xf32>
    %116 = arith.mulf %111, %115 : vector<8x256xf32>
    %c24 = arith.constant 24 : index
    %c0_37 = arith.constant 0 : index
    %117 = vector.load %arg14[%c24, %c0_37] : memref<64x1024xf32, #tpu.memory_space<vmem>>, vector<8x1024xf32>
    %118 = arith.truncf %116 : vector<8x256xf32> to vector<8x256xbf16>
    %cst_38 = arith.constant dense<0.000000e+00> : vector<8x1024xf32>
    %119 = tpu.matmul %118, %29, %cst_38 {dimension_numbers = #tpu.dot_dimension_numbers<[1], [0], [0], [1], [0, 0, 1, 1], [], []>} : vector<8x256xbf16>, vector<256x1024xbf16>, vector<8x1024xf32> -> vector<8x1024xf32>
    %120 = arith.addf %117, %119 : vector<8x1024xf32>
    %121 = vector.extract_strided_slice %120 {offsets = [0, 0], sizes = [8, 256], strides = [1, 1]} : vector<8x1024xf32> to vector<8x256xf32>
    %122 = arith.negf %121 : vector<8x256xf32>
    %123 = math.exp %122 : vector<8x256xf32>
    %cst_39 = arith.constant 1.000000e+00 : f32
    %124 = vector.broadcast %cst_39 : f32 to vector<8x256xf32>
    %125 = arith.addf %124, %123 : vector<8x256xf32>
    %126 = arith.divf %124, %125 : vector<8x256xf32>
    %127 = vector.extract_strided_slice %120 {offsets = [0, 256], sizes = [8, 256], strides = [1, 1]} : vector<8x1024xf32> to vector<8x256xf32>
    %128 = arith.negf %127 : vector<8x256xf32>
    %129 = math.exp %128 : vector<8x256xf32>
    %cst_40 = arith.constant 1.000000e+00 : f32
    %130 = vector.broadcast %cst_40 : f32 to vector<8x256xf32>
    %131 = arith.addf %130, %129 : vector<8x256xf32>
    %132 = arith.divf %130, %131 : vector<8x256xf32>
    %133 = vector.extract_strided_slice %120 {offsets = [0, 512], sizes = [8, 256], strides = [1, 1]} : vector<8x1024xf32> to vector<8x256xf32>
    %134 = math.tanh %133 : vector<8x256xf32>
    %135 = vector.extract_strided_slice %120 {offsets = [0, 768], sizes = [8, 256], strides = [1, 1]} : vector<8x1024xf32> to vector<8x256xf32>
    %136 = arith.negf %135 : vector<8x256xf32>
    %137 = math.exp %136 : vector<8x256xf32>
    %cst_41 = arith.constant 1.000000e+00 : f32
    %138 = vector.broadcast %cst_41 : f32 to vector<8x256xf32>
    %139 = arith.addf %138, %137 : vector<8x256xf32>
    %140 = arith.divf %138, %139 : vector<8x256xf32>
    %141 = arith.mulf %132, %114 : vector<8x256xf32>
    %142 = arith.mulf %126, %134 : vector<8x256xf32>
    %143 = arith.addf %141, %142 : vector<8x256xf32>
    %144 = math.tanh %143 : vector<8x256xf32>
    %145 = arith.mulf %140, %144 : vector<8x256xf32>
    %c32 = arith.constant 32 : index
    %c0_42 = arith.constant 0 : index
    %146 = vector.load %arg14[%c32, %c0_42] : memref<64x1024xf32, #tpu.memory_space<vmem>>, vector<8x1024xf32>
    %147 = arith.truncf %145 : vector<8x256xf32> to vector<8x256xbf16>
    %cst_43 = arith.constant dense<0.000000e+00> : vector<8x1024xf32>
    %148 = tpu.matmul %147, %29, %cst_43 {dimension_numbers = #tpu.dot_dimension_numbers<[1], [0], [0], [1], [0, 0, 1, 1], [], []>} : vector<8x256xbf16>, vector<256x1024xbf16>, vector<8x1024xf32> -> vector<8x1024xf32>
    %149 = arith.addf %146, %148 : vector<8x1024xf32>
    %150 = vector.extract_strided_slice %149 {offsets = [0, 0], sizes = [8, 256], strides = [1, 1]} : vector<8x1024xf32> to vector<8x256xf32>
    %151 = arith.negf %150 : vector<8x256xf32>
    %152 = math.exp %151 : vector<8x256xf32>
    %cst_44 = arith.constant 1.000000e+00 : f32
    %153 = vector.broadcast %cst_44 : f32 to vector<8x256xf32>
    %154 = arith.addf %153, %152 : vector<8x256xf32>
    %155 = arith.divf %153, %154 : vector<8x256xf32>
    %156 = vector.extract_strided_slice %149 {offsets = [0, 256], sizes = [8, 256], strides = [1, 1]} : vector<8x1024xf32> to vector<8x256xf32>
    %157 = arith.negf %156 : vector<8x256xf32>
    %158 = math.exp %157 : vector<8x256xf32>
    %cst_45 = arith.constant 1.000000e+00 : f32
    %159 = vector.broadcast %cst_45 : f32 to vector<8x256xf32>
    %160 = arith.addf %159, %158 : vector<8x256xf32>
    %161 = arith.divf %159, %160 : vector<8x256xf32>
    %162 = vector.extract_strided_slice %149 {offsets = [0, 512], sizes = [8, 256], strides = [1, 1]} : vector<8x1024xf32> to vector<8x256xf32>
    %163 = math.tanh %162 : vector<8x256xf32>
    %164 = vector.extract_strided_slice %149 {offsets = [0, 768], sizes = [8, 256], strides = [1, 1]} : vector<8x1024xf32> to vector<8x256xf32>
    %165 = arith.negf %164 : vector<8x256xf32>
    %166 = math.exp %165 : vector<8x256xf32>
    %cst_46 = arith.constant 1.000000e+00 : f32
    %167 = vector.broadcast %cst_46 : f32 to vector<8x256xf32>
    %168 = arith.addf %167, %166 : vector<8x256xf32>
    %169 = arith.divf %167, %168 : vector<8x256xf32>
    %170 = arith.mulf %161, %143 : vector<8x256xf32>
    %171 = arith.mulf %155, %163 : vector<8x256xf32>
    %172 = arith.addf %170, %171 : vector<8x256xf32>
    %173 = math.tanh %172 : vector<8x256xf32>
    %174 = arith.mulf %169, %173 : vector<8x256xf32>
    %c40 = arith.constant 40 : index
    %c0_47 = arith.constant 0 : index
    %175 = vector.load %arg14[%c40, %c0_47] : memref<64x1024xf32, #tpu.memory_space<vmem>>, vector<8x1024xf32>
    %176 = arith.truncf %174 : vector<8x256xf32> to vector<8x256xbf16>
    %cst_48 = arith.constant dense<0.000000e+00> : vector<8x1024xf32>
    %177 = tpu.matmul %176, %29, %cst_48 {dimension_numbers = #tpu.dot_dimension_numbers<[1], [0], [0], [1], [0, 0, 1, 1], [], []>} : vector<8x256xbf16>, vector<256x1024xbf16>, vector<8x1024xf32> -> vector<8x1024xf32>
    %178 = arith.addf %175, %177 : vector<8x1024xf32>
    %179 = vector.extract_strided_slice %178 {offsets = [0, 0], sizes = [8, 256], strides = [1, 1]} : vector<8x1024xf32> to vector<8x256xf32>
    %180 = arith.negf %179 : vector<8x256xf32>
    %181 = math.exp %180 : vector<8x256xf32>
    %cst_49 = arith.constant 1.000000e+00 : f32
    %182 = vector.broadcast %cst_49 : f32 to vector<8x256xf32>
    %183 = arith.addf %182, %181 : vector<8x256xf32>
    %184 = arith.divf %182, %183 : vector<8x256xf32>
    %185 = vector.extract_strided_slice %178 {offsets = [0, 256], sizes = [8, 256], strides = [1, 1]} : vector<8x1024xf32> to vector<8x256xf32>
    %186 = arith.negf %185 : vector<8x256xf32>
    %187 = math.exp %186 : vector<8x256xf32>
    %cst_50 = arith.constant 1.000000e+00 : f32
    %188 = vector.broadcast %cst_50 : f32 to vector<8x256xf32>
    %189 = arith.addf %188, %187 : vector<8x256xf32>
    %190 = arith.divf %188, %189 : vector<8x256xf32>
    %191 = vector.extract_strided_slice %178 {offsets = [0, 512], sizes = [8, 256], strides = [1, 1]} : vector<8x1024xf32> to vector<8x256xf32>
    %192 = math.tanh %191 : vector<8x256xf32>
    %193 = vector.extract_strided_slice %178 {offsets = [0, 768], sizes = [8, 256], strides = [1, 1]} : vector<8x1024xf32> to vector<8x256xf32>
    %194 = arith.negf %193 : vector<8x256xf32>
    %195 = math.exp %194 : vector<8x256xf32>
    %cst_51 = arith.constant 1.000000e+00 : f32
    %196 = vector.broadcast %cst_51 : f32 to vector<8x256xf32>
    %197 = arith.addf %196, %195 : vector<8x256xf32>
    %198 = arith.divf %196, %197 : vector<8x256xf32>
    %199 = arith.mulf %190, %172 : vector<8x256xf32>
    %200 = arith.mulf %184, %192 : vector<8x256xf32>
    %201 = arith.addf %199, %200 : vector<8x256xf32>
    %202 = math.tanh %201 : vector<8x256xf32>
    %203 = arith.mulf %198, %202 : vector<8x256xf32>
    %c48 = arith.constant 48 : index
    %c0_52 = arith.constant 0 : index
    %204 = vector.load %arg14[%c48, %c0_52] : memref<64x1024xf32, #tpu.memory_space<vmem>>, vector<8x1024xf32>
    %205 = arith.truncf %203 : vector<8x256xf32> to vector<8x256xbf16>
    %cst_53 = arith.constant dense<0.000000e+00> : vector<8x1024xf32>
    %206 = tpu.matmul %205, %29, %cst_53 {dimension_numbers = #tpu.dot_dimension_numbers<[1], [0], [0], [1], [0, 0, 1, 1], [], []>} : vector<8x256xbf16>, vector<256x1024xbf16>, vector<8x1024xf32> -> vector<8x1024xf32>
    %207 = arith.addf %204, %206 : vector<8x1024xf32>
    %208 = vector.extract_strided_slice %207 {offsets = [0, 0], sizes = [8, 256], strides = [1, 1]} : vector<8x1024xf32> to vector<8x256xf32>
    %209 = arith.negf %208 : vector<8x256xf32>
    %210 = math.exp %209 : vector<8x256xf32>
    %cst_54 = arith.constant 1.000000e+00 : f32
    %211 = vector.broadcast %cst_54 : f32 to vector<8x256xf32>
    %212 = arith.addf %211, %210 : vector<8x256xf32>
    %213 = arith.divf %211, %212 : vector<8x256xf32>
    %214 = vector.extract_strided_slice %207 {offsets = [0, 256], sizes = [8, 256], strides = [1, 1]} : vector<8x1024xf32> to vector<8x256xf32>
    %215 = arith.negf %214 : vector<8x256xf32>
    %216 = math.exp %215 : vector<8x256xf32>
    %cst_55 = arith.constant 1.000000e+00 : f32
    %217 = vector.broadcast %cst_55 : f32 to vector<8x256xf32>
    %218 = arith.addf %217, %216 : vector<8x256xf32>
    %219 = arith.divf %217, %218 : vector<8x256xf32>
    %220 = vector.extract_strided_slice %207 {offsets = [0, 512], sizes = [8, 256], strides = [1, 1]} : vector<8x1024xf32> to vector<8x256xf32>
    %221 = math.tanh %220 : vector<8x256xf32>
    %222 = vector.extract_strided_slice %207 {offsets = [0, 768], sizes = [8, 256], strides = [1, 1]} : vector<8x1024xf32> to vector<8x256xf32>
    %223 = arith.negf %222 : vector<8x256xf32>
    %224 = math.exp %223 : vector<8x256xf32>
    %cst_56 = arith.constant 1.000000e+00 : f32
    %225 = vector.broadcast %cst_56 : f32 to vector<8x256xf32>
    %226 = arith.addf %225, %224 : vector<8x256xf32>
    %227 = arith.divf %225, %226 : vector<8x256xf32>
    %228 = arith.mulf %219, %201 : vector<8x256xf32>
    %229 = arith.mulf %213, %221 : vector<8x256xf32>
    %230 = arith.addf %228, %229 : vector<8x256xf32>
    %231 = math.tanh %230 : vector<8x256xf32>
    %232 = arith.mulf %227, %231 : vector<8x256xf32>
    %c56 = arith.constant 56 : index
    %c0_57 = arith.constant 0 : index
    %233 = vector.load %arg14[%c56, %c0_57] : memref<64x1024xf32, #tpu.memory_space<vmem>>, vector<8x1024xf32>
    %234 = arith.truncf %232 : vector<8x256xf32> to vector<8x256xbf16>
    %cst_58 = arith.constant dense<0.000000e+00> : vector<8x1024xf32>
    %235 = tpu.matmul %234, %29, %cst_58 {dimension_numbers = #tpu.dot_dimension_numbers<[1], [0], [0], [1], [0, 0, 1, 1], [], []>} : vector<8x256xbf16>, vector<256x1024xbf16>, vector<8x1024xf32> -> vector<8x1024xf32>
    %236 = arith.addf %233, %235 : vector<8x1024xf32>
    %237 = vector.extract_strided_slice %236 {offsets = [0, 0], sizes = [8, 256], strides = [1, 1]} : vector<8x1024xf32> to vector<8x256xf32>
    %238 = arith.negf %237 : vector<8x256xf32>
    %239 = math.exp %238 : vector<8x256xf32>
    %cst_59 = arith.constant 1.000000e+00 : f32
    %240 = vector.broadcast %cst_59 : f32 to vector<8x256xf32>
    %241 = arith.addf %240, %239 : vector<8x256xf32>
    %242 = arith.divf %240, %241 : vector<8x256xf32>
    %243 = vector.extract_strided_slice %236 {offsets = [0, 256], sizes = [8, 256], strides = [1, 1]} : vector<8x1024xf32> to vector<8x256xf32>
    %244 = arith.negf %243 : vector<8x256xf32>
    %245 = math.exp %244 : vector<8x256xf32>
    %cst_60 = arith.constant 1.000000e+00 : f32
    %246 = vector.broadcast %cst_60 : f32 to vector<8x256xf32>
    %247 = arith.addf %246, %245 : vector<8x256xf32>
    %248 = arith.divf %246, %247 : vector<8x256xf32>
    %249 = vector.extract_strided_slice %236 {offsets = [0, 512], sizes = [8, 256], strides = [1, 1]} : vector<8x1024xf32> to vector<8x256xf32>
    %250 = math.tanh %249 : vector<8x256xf32>
    %251 = vector.extract_strided_slice %236 {offsets = [0, 768], sizes = [8, 256], strides = [1, 1]} : vector<8x1024xf32> to vector<8x256xf32>
    %252 = arith.negf %251 : vector<8x256xf32>
    %253 = math.exp %252 : vector<8x256xf32>
    %cst_61 = arith.constant 1.000000e+00 : f32
    %254 = vector.broadcast %cst_61 : f32 to vector<8x256xf32>
    %255 = arith.addf %254, %253 : vector<8x256xf32>
    %256 = arith.divf %254, %255 : vector<8x256xf32>
    %257 = arith.mulf %248, %230 : vector<8x256xf32>
    %258 = arith.mulf %242, %250 : vector<8x256xf32>
    %259 = arith.addf %257, %258 : vector<8x256xf32>
    %260 = math.tanh %259 : vector<8x256xf32>
    %261 = arith.mulf %256, %260 : vector<8x256xf32>
    %262 = arith.addf %261, %26 : vector<8x256xf32>
    %c0_i32_62 = arith.constant 0 : i32
    %263 = tpu.memref_slice %arg17[%c0_i32_62] : memref<2x!tpu.dma_semaphore, #tpu.memory_space<semaphore_mem>> -> memref<1x!tpu.dma_semaphore, #tpu.memory_space<semaphore_mem>>
    %264 = tpu.memref_squeeze %263 : memref<1x!tpu.dma_semaphore, #tpu.memory_space<semaphore_mem>> -> memref<!tpu.dma_semaphore, #tpu.memory_space<semaphore_mem>>
    tpu.wait_dma2 semaphore(%264 : memref<!tpu.dma_semaphore, #tpu.memory_space<semaphore_mem>>) src(%arg9 : memref<256x256xbf16, #tpu.memory_space<any>>) dst(%arg15 : memref<256x256xbf16, #tpu.memory_space<vmem>>)
    %265 = arith.truncf %262 : vector<8x256xf32> to vector<8x256xbf16>
    %c0_63 = arith.constant 0 : index
    %c0_64 = arith.constant 0 : index
    %266 = vector.load %arg15[%c0_63, %c0_64] : memref<256x256xbf16, #tpu.memory_space<vmem>>, vector<256x256xbf16>
    %cst_65 = arith.constant dense<0.000000e+00> : vector<8x256xf32>
    %267 = tpu.matmul %265, %266, %cst_65 {dimension_numbers = #tpu.dot_dimension_numbers<[1], [0], [0], [1], [0, 0, 1, 1], [], []>} : vector<8x256xbf16>, vector<256x256xbf16>, vector<8x256xf32> -> vector<8x256xf32>
    %c0_66 = arith.constant 0 : index
    %c0_67 = arith.constant 0 : index
    %268 = vector.load %arg10[%c0_66, %c0_67] : memref<1x256xf32, #tpu.memory_space<vmem>>, vector<1x256xf32>
    %269 = vector.broadcast %268 : vector<1x256xf32> to vector<8x256xf32>
    %270 = arith.addf %267, %269 : vector<8x256xf32>
    %c1_i32_68 = arith.constant 1 : i32
    %271 = tpu.memref_slice %arg17[%c1_i32_68] : memref<2x!tpu.dma_semaphore, #tpu.memory_space<semaphore_mem>> -> memref<1x!tpu.dma_semaphore, #tpu.memory_space<semaphore_mem>>
    %272 = tpu.memref_squeeze %271 : memref<1x!tpu.dma_semaphore, #tpu.memory_space<semaphore_mem>> -> memref<!tpu.dma_semaphore, #tpu.memory_space<semaphore_mem>>
    tpu.wait_dma2 semaphore(%272 : memref<!tpu.dma_semaphore, #tpu.memory_space<semaphore_mem>>) src(%arg11 : memref<256x512xbf16, #tpu.memory_space<any>>) dst(%arg16 : memref<256x512xbf16, #tpu.memory_space<vmem>>)
    %273 = arith.truncf %270 : vector<8x256xf32> to vector<8x256xbf16>
    %c0_69 = arith.constant 0 : index
    %c0_70 = arith.constant 0 : index
    %274 = vector.load %arg16[%c0_69, %c0_70] : memref<256x512xbf16, #tpu.memory_space<vmem>>, vector<256x512xbf16>
    %cst_71 = arith.constant dense<0.000000e+00> : vector<8x512xf32>
    %275 = tpu.matmul %273, %274, %cst_71 {dimension_numbers = #tpu.dot_dimension_numbers<[1], [0], [0], [1], [0, 0, 1, 1], [], []>} : vector<8x256xbf16>, vector<256x512xbf16>, vector<8x512xf32> -> vector<8x512xf32>
    %c0_72 = arith.constant 0 : index
    %c0_73 = arith.constant 0 : index
    %276 = vector.load %arg12[%c0_72, %c0_73] : memref<1x512xf32, #tpu.memory_space<vmem>>, vector<1x512xf32>
    %277 = vector.broadcast %276 : vector<1x512xf32> to vector<8x512xf32>
    %278 = arith.addf %275, %277 : vector<8x512xf32>
    %c0_74 = arith.constant 0 : index
    %c0_75 = arith.constant 0 : index
    %279 = vector.load %arg13[%c0_74, %c0_75] : memref<8x512xf32, #tpu.memory_space<vmem>>, vector<8x512xf32>
    tpu.vector_store %arg13[%c0_74, %c0_75], %278 {strides = array<i32>} : memref<8x512xf32, #tpu.memory_space<vmem>>, vector<8x512xf32>,
    return
  }
  func.func @transform_0(%arg0: i32) -> (i32, i32) {
    %c0_i32 = arith.constant 0 : i32
    %c0_i32_0 = arith.constant 0 : i32
    %c0_i32_1 = arith.constant 0 : i32
    return %c0_i32, %c0_i32_0 : i32, i32
  }
  func.func @transform_1(%arg0: i32) -> (i32, i32) {
    %c0_i32 = arith.constant 0 : i32
    %c0_i32_0 = arith.constant 0 : i32
    %c0_i32_1 = arith.constant 0 : i32
    return %c0_i32, %c0_i32_0 : i32, i32
  }
  func.func @transform_2(%arg0: i32) -> (i32, i32) {
    %c0_i32 = arith.constant 0 : i32
    %c0_i32_0 = arith.constant 0 : i32
    %c0_i32_1 = arith.constant 0 : i32
    return %c0_i32, %c0_i32_0 : i32, i32
  }
  func.func @transform_3(%arg0: i32) -> (i32, i32) {
    %c0_i32 = arith.constant 0 : i32
    %c0_i32_0 = arith.constant 0 : i32
    %c0_i32_1 = arith.constant 0 : i32
    return %c0_i32, %c0_i32_0 : i32, i32
  }
  func.func @transform_4(%arg0: i32) -> (i32, i32) {
    %c0_i32 = arith.constant 0 : i32
    %c0_i32_0 = arith.constant 0 : i32
    %c0_i32_1 = arith.constant 0 : i32
    return %c0_i32, %c0_i32_0 : i32, i32
  }
  func.func @transform_5(%arg0: i32) -> (i32, i32) {
    %c0_i32 = arith.constant 0 : i32
    %c0_i32_0 = arith.constant 0 : i32
    %c0_i32_1 = arith.constant 0 : i32
    return %c0_i32, %c0_i32_0 : i32, i32
  }
  func.func @transform_6(%arg0: i32) -> (i32, i32) {
    %c0_i32 = arith.constant 0 : i32
    %c0_i32_0 = arith.constant 0 : i32
    %c0_i32_1 = arith.constant 0 : i32
    return %c0_i32, %c0_i32_0 : i32, i32
  }
  func.func @transform_7(%arg0: i32) -> (i32, i32) {
    %c0_i32 = arith.constant 0 : i32
    %c0_i32_0 = arith.constant 0 : i32
    %c0_i32_1 = arith.constant 0 : i32
    return %c0_i32, %c0_i32_0 : i32, i32
  }
  func.func @transform_9(%arg0: i32) -> (i32, i32) {
    %c0_i32 = arith.constant 0 : i32
    %c0_i32_0 = arith.constant 0 : i32
    %c0_i32_1 = arith.constant 0 : i32
    return %c0_i32, %c0_i32_0 : i32, i32
  }
  func.func @transform_11(%arg0: i32) -> (i32, i32) {
    %c0_i32 = arith.constant 0 : i32
    %c0_i32_0 = arith.constant 0 : i32
    %c0_i32_1 = arith.constant 0 : i32
    return %c0_i32, %c0_i32_0 : i32, i32
  }
  func.func @transform_12(%arg0: i32) -> (i32, i32) {
    %c0_i32 = arith.constant 0 : i32
    %c0_i32_0 = arith.constant 0 : i32
    %c0_i32_1 = arith.constant 0 : i32
    return %c0_i32, %c0_i32_0 : i32, i32
  }
}

</mosaic_0001>

<bundles_post_ra>
// kernel: caption_generator_forward.1
= control target key start
LH: loop header
LB: loop body
LE: loop exit
PB: predicated region body
PF: predicated region fallthrough
CT: control target
= control target key end

     0   :  { %17 = vsyncpa [#allocation7], 0  ;;  %s8156_s0 = inlined_call_operand.vmem [shape: s32[64,1], index: 0, kind: input, shape index: {}]   ;;  %s8157_s1 = inlined_call_operand.hbm [shape: bf16[512,256], index: 1, kind: input, shape index: {}]   ;;  %s8158_s2 = inlined_call_operand.hbm [shape: bf16[256,1024], index: 2, kind: input, shape index: {}]   ;;  %s8159_s3 = inlined_call_operand.hbm [shape: bf16[256,1024], index: 3, kind: input, shape index: {}]   ;;  %s8160_s4 = inlined_call_operand.vmem [shape: f32[1,1024], index: 4, kind: input, shape index: {}]   ;;  %s8161_s5 = inlined_call_operand.vmem [shape: f32[8,128], index: 5, kind: input, shape index: {}]   ;;  %s8162_s6 = inlined_call_operand.hbm [shape: bf16[128,256], index: 6, kind: input, shape index: {}]   ;;  %s8163_s7 = inlined_call_operand.vmem [shape: f32[1,256], index: 7, kind: input, shape index: {}]   ;;  %s8164_s8 = inlined_call_operand.hbm [shape: bf16[256,256], index: 8, kind: input, shape index: {}]   ;;  %s8165_s9 = inlined_call_operand.vmem [shape: f32[1,256], index: 9, kind: input, shape index: {}]   ;;  %s8166_s10 = inlined_call_operand.hbm [shape: bf16[256,512], index: 10, kind: input, shape index: {}]   ;;  %s8167_s11 = inlined_call_operand.vmem [shape: f32[1,512], index: 11, kind: input, shape index: {}]   ;;  %s8168_s12 = inlined_call_operand.vmem [shape: f32[8,512], index: 12, kind: output, shape index: {}]  }
   0x1   :  { %18 = vsyncpa [#allocation9], 0 }
   0x2   :  { %19 = vsyncpa [#allocation12], 0  ;;  %s6029_s21 = smov [#allocation8]   ;;  %s5931_s25 = scalar_lea.hbm %s8158_s2, 16384 }
   0x3   :  { %s39_s22 = sshll.u32 %s6029_s21, 4  ;;  %p5932_p0 = scmp.ne.s32.totalorder %s8158_s2, %s5931_s25  ;;  %s40_s22 = int_to_ptr.vmem [resolvable:$true] %s39_s22 }
   0x4   :  { %p5935_p1 = scmp.lt.u32.totalorder %s5931_s25, %s8158_s2 }
   0x6   :  { %p5937_p2 = pnand %p5935_p1, %p5932_p0 }
   0x8   :  { %5940 = shalt.err (!%p5937_p2)
}
   0x9   :  { %s5941_s30 = scalar_lea.vmem %s40_s22, 16384  ;;  %p5946_p4 = scmp.lt.s32.totalorder %s40_s22, %s40_s22 }
   0xa   :  { %p5942_p3 = scmp.ne.s32.totalorder %s40_s22, %s5941_s30  ;;  %p5947_p5 = scmp.lt.s32.totalorder %s5941_s30, %s5941_s30 }
   0xc   :  { %p5948_p6 = por %p5947_p5, %p5946_p4 }
   0xe   :  { %p5949_p7 = pnand %p5948_p6, %p5942_p3 }
  0x10   :  { %5952 = shalt.err (!%p5949_p7)
}
  0x11   :  { %s6030_s13 = smov 512   ;;  %s6031_s14 = smov 32  }
  0x12   :  { %45 = dma.hbm_to_vmem [thread:$0]  %s8158_s2, 16384, %s40_s22, [#allocation9], %s6030_s13, %s6030_s13, %s6031_s14  }
  0x13   :  { %s6032_s17 = smov [#allocation6]   ;;  %s5953_s21 = scalar_lea.hbm %s8157_s1, 8192 }
  0x14   :  { %s27_s18 = sshll.u32 %s6032_s17, 4  ;;  %p5954_p8 = scmp.ne.s32.totalorder %s8157_s1, %s5953_s21  ;;  %s28_s18 = int_to_ptr.vmem [resolvable:$true] %s27_s18 }
  0x15   :  { %p5957_p9 = scmp.lt.u32.totalorder %s5953_s21, %s8157_s1 }
  0x17   :  { %p5959_p10 = pnand %p5957_p9, %p5954_p8 }
  0x19   :  { %5962 = shalt.err (!%p5959_p10)
}
  0x1a   :  { %s5963_s27 = scalar_lea.vmem %s28_s18, 8192  ;;  %p5968_p12 = scmp.lt.s32.totalorder %s28_s18, %s28_s18 }
  0x1b   :  { %p5964_p11 = scmp.ne.s32.totalorder %s28_s18, %s5963_s27  ;;  %p5969_p13 = scmp.lt.s32.totalorder %s5963_s27, %s5963_s27 }
  0x1d   :  { %p5970_p0 = por %p5969_p13, %p5968_p12 }
  0x1f   :  { %p5971_p1 = pnand %p5970_p0, %p5964_p11 }
  0x21   :  { %5974 = shalt.err (!%p5971_p1)
}
  0x22   :  { %s6033_s2 = smov 128   ;;  %s6034_s22 = smov 8  }
  0x23   :  { %33 = dma.hbm_to_vmem [thread:$0]  %s8157_s1, 8192, %s28_s18, [#allocation7], %s6033_s2, %s6033_s2, %s6034_s22  }
  0x24   :  { %s6035_s30 = smov [#allocation10]   ;;  %s6036_s16 = smov [#allocation11]  }
  0x25   :  { %s51_s15 = sshll.u32 %s6035_s30, 4  ;;  %s67_s17 = sshll.u32 %s6036_s16, 4  ;;  %s52_s15 = int_to_ptr.vmem [resolvable:$true] %s51_s15  ;;  %s6144_s17 = int_to_ptr.vmem [resolvable:$true] %s67_s17 }
  0x26   :  { %s5975_s21 = scalar_lea.hbm %s8159_s3, 16384 }
  0x27   :  { %p5976_p2 = scmp.ne.s32.totalorder %s8159_s3, %s5975_s21  ;;  %p5979_p3 = scmp.lt.u32.totalorder %s5975_s21, %s8159_s3 }
  0x29   :  { %p5981_p4 = pnand %p5979_p3, %p5976_p2 }
  0x2b   :  { %5984 = shalt.err (!%p5981_p4)
}
  0x2c   :  { %s5985_s1 = scalar_lea.vmem %s52_s15, 16384  ;;  %p5990_p6 = scmp.lt.s32.totalorder %s52_s15, %s52_s15 }
  0x2d   :  { %p5986_p5 = scmp.ne.s32.totalorder %s52_s15, %s5985_s1  ;;  %p5991_p7 = scmp.lt.s32.totalorder %s5985_s1, %s5985_s1 }
  0x2f   :  { %p5992_p8 = por %p5991_p7, %p5990_p6 }
  0x31   :  { %p5993_p9 = pnand %p5992_p8, %p5986_p5 }
  0x33   :  { %5996 = shalt.err (!%p5993_p9)
}
  0x34   :  { %57 = dma.hbm_to_vmem [thread:$0]  %s8159_s3, 16384, %s52_s15, [#allocation9], %s6030_s13, %s6030_s13, %s6031_s14  }
  0x35   :  { %s5997_s30 = scalar_lea.hbm %s8162_s6, 2048 }
  0x36   :  { %p5998_p10 = scmp.ne.s32.totalorder %s8162_s6, %s5997_s30  ;;  %p6001_p11 = scmp.lt.u32.totalorder %s5997_s30, %s8162_s6 }
  0x38   :  { %p6003_p12 = pnand %p6001_p11, %p5998_p10 }
  0x3a   :  { %6006 = shalt.err (!%p6003_p12)
}
  0x3b   :  { %s6007_s23 = scalar_lea.vmem %s6144_s17, 2048  ;;  %p6012_p0 = scmp.lt.s32.totalorder %s6144_s17, %s6144_s17 }
  0x3c   :  { %p6008_p13 = scmp.ne.s32.totalorder %s6144_s17, %s6007_s23  ;;  %p6013_p1 = scmp.lt.s32.totalorder %s6007_s23, %s6007_s23 }
  0x3e   :  { %p6014_p2 = por %p6013_p1, %p6012_p0 }
  0x40   :  { %p6015_p3 = pnand %p6014_p2, %p6008_p13 }
  0x42   :  { %6018 = shalt.err (!%p6015_p3)
}
  0x43   :  { %73 = dma.hbm_to_vmem [thread:$0]  %s8162_s6, 2048, %s6144_s17, [#allocation12], %s6033_s2, %s6033_s2, %s6034_s22  }
  0x44   :  { %6019 = dma.done.wait [#allocation7], 8192  }
  0x45   :  { %6020 = vsyncadd [#allocation7], 4294959104 }
  0x46   :  { %6021 = dma.done.wait [#allocation9], 32768  }
  0x47   :  { %6022 = vsyncadd [#allocation9], 4294934528 }
  0x48   :  { %6023 = dma.done.wait [#allocation12], 2048  }
  0x49   :  { %6024 = vsyncadd [#allocation12], 4294965248  ;;  %s97_s15 = sld [smem:[#allocation0]]   ;;  %117 = sst [smem:[#allocation14 + $0x4]] %s6033_s2  ;;  %v8170_v0 = vmov 0  }
  0x4a   :  { %5554 = vset.pattern.permute.xlu1 %v8170_v0  ;;  %5553 = vset.pattern.permute.xlu0 %v8170_v0  ;;  %121 = sst [smem:[#allocation14 + $0x6]] %s6033_s2  ;;  %s6038_s24 = smov [#allocation3]  }
  0x4b   :  { %s105_s25 = sshll.u32 %s6038_s24, 4  ;;  %s6039_s6 = smov 256   ;;  %s106_s25 = int_to_ptr.vmem [resolvable:$true] %s105_s25 }
  0x4c   :  { %109 = sst [smem:[#allocation14]] %s6039_s6  ;;  %s6040_s22 = smov 2  }
  0x4d   :  { %111 = sst [smem:[#allocation14 + $0x1]] %s6039_s6  ;;  %s6041_s17 = smov 64  }
  0x4e   :  { %113 = sst [smem:[#allocation14 + $0x2]] %s6040_s22  ;;  %s6042_s18 = smov 4  }
  0x4f   :  { %115 = sst [smem:[#allocation14 + $0x3]] %s6041_s17  ;;  %s5063_s26 = sshll.u32 %s97_s15, 26 }
  0x50   :  { %119 = sst [smem:[#allocation14 + $0x5]] %s6040_s22  ;;  %s5064_s1 = sadd.s32 134217728, %s5063_s26 }
  0x51   :  { %123 = sst [smem:[#allocation14 + $0x7]] %s6041_s17  ;;  %s6043_s27 = smov [#allocation5]  }
  0x52   :  { %125 = sst [smem:[#allocation14 + $0x8]] %s6042_s18  ;;  %s6044_s28 = smov [#allocation13]  }
  0x53   :  { %127 = dma.general %s8164_s8, 4096, %s106_s25, %s6043_s27, %s6044_s28, [#allocation14], %s5064_s1, 0  }
  0x54   :  { %144 = sst [smem:[#allocation16]] %s6030_s13  ;;  %s6045_s16 = smov [#allocation4]  }
  0x55   :  { %146 = sst [smem:[#allocation16 + $0x1]] %s6030_s13  ;;  %s140_s19 = sshll.u32 %s6045_s16, 4  ;;  %s141_s19 = int_to_ptr.vmem [resolvable:$true] %s140_s19 }
  0x56   :  { %148 = sst [smem:[#allocation16 + $0x2]] %s6042_s18  ;;  %s6046_s20 = smov [#allocation5 + $0x1]  }
  0x57   :  { %150 = sst [smem:[#allocation16 + $0x3]] %s6041_s17  ;;  %s6047_s21 = smov [#allocation15]  }
  0x58   :  { %152 = sst [smem:[#allocation16 + $0x4]] %s6033_s2 }
  0x59   :  { %154 = sst [smem:[#allocation16 + $0x5]] %s6040_s22 }
  0x5a   :  { %156 = sst [smem:[#allocation16 + $0x6]] %s6039_s6 }
  0x5b   :  { %158 = sst [smem:[#allocation16 + $0x7]] %s6041_s17 }
  0x5c   :  { %160 = sst [smem:[#allocation16 + $0x8]] %s6042_s18 }
  0x5d   :  { %162 = dma.general %s8166_s10, 8192, %s141_s19, %s6046_s20, %s6047_s21, [#allocation16], %s5064_s1, 0  }
  0x5e   :  { %v165_v1 = vld [vmem:[%s8156_s0 + $0x10] sm:$0xff]  ;;  %v163_v2 = vld [vmem:[%s8156_s0] sm:$0xff]  ;;  %v166_v3 = vld [vmem:[%s8156_s0 + $0x18] sm:$0xff] }
  0x5f   :  { %183 = vperm.xlu1 %5554, %v165_v1   ;;  %177 = vperm.xlu0 %5553, %v163_v2   ;;  %v164_v4 = vld [vmem:[%s8156_s0 + $0x8] sm:$0xff]  ;;  %v5558_v7 = vld [vmem:[#allocation6 + $0x14] ss:$8 sps:$4 sm:$0xff]   ;;  %v167_v9 = vld [vmem:[%s8156_s0 + $0x20] sm:$0xff] }
  0x60   :  { %v5555_v5 = vld [vmem:[#allocation6 + $0x4] ss:$8 sps:$4 sm:$0xff]   ;;  %v5557_v6 = vld [vmem:[#allocation6] ss:$8 sps:$4 sm:$0xff]   ;;  %v5560_v10 = vld [vmem:[#allocation6 + $0x10] ss:$8 sps:$4 sm:$0xff]  }
  0x61   :  { %v168_v8 = vld [vmem:[%s8156_s0 + $0x28] sm:$0xff]  ;;  %696 = vmatprep.subr.bf16.mxu0 %v5555_v5  ;;  %v170_v12 = vld [vmem:[%s8156_s0 + $0x38] sm:$0xff]  ;;  %v169_v13 = vld [vmem:[%s8156_s0 + $0x30] sm:$0xff] }
  0x62   :  { %697 = vmatpush1.bf16.msra.mxu0 %v5557_v6  ;;  %v5561_v11 = vld [vmem:[#allocation6 + $0x24] ss:$8 sps:$4 sm:$0xff]   ;;  %v5563_v14 = vld [vmem:[#allocation6 + $0x20] ss:$8 sps:$4 sm:$0xff]   ;;  %v5564_v15 = vld [vmem:[#allocation6 + $0x34] ss:$8 sps:$4 sm:$0xff]  }
  0x63   :  { %186 = vperm.xlu1 %5554, %v166_v3   ;;  %180 = vperm.xlu0 %5553, %v164_v4   ;;  %v5566_v16 = vld [vmem:[#allocation6 + $0x30] ss:$8 sps:$4 sm:$0xff]   ;;  %v5567_v17 = vld [vmem:[#allocation6 + $0x44] ss:$8 sps:$4 sm:$0xff]   ;;  %v5569_v18 = vld [vmem:[#allocation6 + $0x40] ss:$8 sps:$4 sm:$0xff]  }
  0x64   :  { %698 = vmatprep.subr.bf16.mxu0 %v5558_v7  ;;  %v5570_v19 = vld [vmem:[#allocation6 + $0x54] ss:$8 sps:$4 sm:$0xff]   ;;  %v5572_v20 = vld [vmem:[#allocation6 + $0x50] ss:$8 sps:$4 sm:$0xff]   ;;  %v5573_v21 = vld [vmem:[#allocation6 + $0x64] ss:$8 sps:$4 sm:$0xff]  }
  0x65   :  { %v5575_v22 = vld [vmem:[#allocation6 + $0x60] ss:$8 sps:$4 sm:$0xff]   ;;  %v5576_v23 = vld [vmem:[#allocation6 + $0x74] ss:$8 sps:$4 sm:$0xff]   ;;  %v5578_v24 = vld [vmem:[#allocation6 + $0x70] ss:$8 sps:$4 sm:$0xff]  }
  0x66   :  { %699 = vmatpush1.bf16.msra.mxu0 %v5560_v10  ;;  %v5579_v25 = vld [vmem:[#allocation6 + $0x84] ss:$8 sps:$4 sm:$0xff]   ;;  %v5581_v26 = vld [vmem:[#allocation6 + $0x80] ss:$8 sps:$4 sm:$0xff]   ;;  %v5582_v27 = vld [vmem:[#allocation6 + $0x94] ss:$8 sps:$4 sm:$0xff]  }
  0x67   :  { %192 = vperm.xlu1 %5554, %v168_v8   ;;  %189 = vperm.xlu0 %5553, %v167_v9   ;;  %v5584_v28 = vld [vmem:[#allocation6 + $0x90] ss:$8 sps:$4 sm:$0xff]   ;;  %v5585_v29 = vld [vmem:[#allocation6 + $0xa4] ss:$8 sps:$4 sm:$0xff]   ;;  %v5587_v30 = vld [vmem:[#allocation6 + $0xa0] ss:$8 sps:$4 sm:$0xff]   ;;  %v8169_v8 = vlaneseq }
  0x68   :  { %700 = vmatprep.subr.bf16.mxu0 %v5561_v11  ;;  %v5588_v31 = vld [vmem:[#allocation6 + $0xb4] ss:$8 sps:$4 sm:$0xff]   ;;  %v5590_v32 = vld [vmem:[#allocation6 + $0xb0] ss:$8 sps:$4 sm:$0xff]   ;;  %v5591_v33 = vld [vmem:[#allocation6 + $0xc4] ss:$8 sps:$4 sm:$0xff]  }
  0x69   :  { %v5593_v34 = vld [vmem:[#allocation6 + $0xc0] ss:$8 sps:$4 sm:$0xff]   ;;  %v5594_v35 = vld [vmem:[#allocation6 + $0xd4] ss:$8 sps:$4 sm:$0xff]   ;;  %v5596_v36 = vld [vmem:[#allocation6 + $0xd0] ss:$8 sps:$4 sm:$0xff]  }
  0x6a   :  { %701 = vmatpush1.bf16.msra.mxu0 %v5563_v14  ;;  %v5597_v37 = vld [vmem:[#allocation6 + $0xe4] ss:$8 sps:$4 sm:$0xff]   ;;  %v5599_v38 = vld [vmem:[#allocation6 + $0xe0] ss:$8 sps:$4 sm:$0xff]   ;;  %v5600_v39 = vld [vmem:[#allocation6 + $0xf4] ss:$8 sps:$4 sm:$0xff]  }
  0x6b   :  { %198 = vperm.xlu1 %5554, %v170_v12   ;;  %195 = vperm.xlu0 %5553, %v169_v13   ;;  %v5602_v40 = vld [vmem:[#allocation6 + $0xf0] ss:$8 sps:$4 sm:$0xff]   ;;  %v5605_v41 = vld [vmem:[#allocation6 + $0x104] ss:$8 sps:$4 sm:$0xff]   ;;  %v6219_v13 = vand.u32 127, %v8169_v8 }
  0x6c   :  { %702 = vmatprep.subr.bf16.mxu0 %v5564_v15  ;;  %v850_v42 = vld [vmem:[#allocation8] sm:$0xff] }
  0x6d   :  { %v854_v43 = vld [vmem:[#allocation8 + $0x20] sm:$0xff] }
  0x6e   :  { %703 = vmatpush1.bf16.msra.mxu0 %v5566_v16  ;;  %v5196_v44 = vcombine.high %v850_v42, %v854_v43  ;;  %v5195_v45 = vcombine.low %v850_v42, %v854_v43  ;;  %v858_v46 = vld [vmem:[#allocation8 + $0x40] sm:$0xff]  ;;  %v876_v43 = vld [vmem:[#allocation8 + $0xd0] sm:$0xff] }
  0x6f   :  { %704 = vmatprep.subr.bf16.mxu0 %v5567_v17  ;;  %v862_v47 = vld [vmem:[#allocation8 + $0x60] sm:$0xff] }
  0x70   :  { %v5204_v48 = vcombine.high %v858_v46, %v862_v47  ;;  %v866_v49 = vld [vmem:[#allocation8 + $0x80] sm:$0xff]  ;;  %1660 = vmatprep.subr.bf16.mxu1 %v5196_v44  ;;  %v5203_v51 = vcombine.low %v858_v46, %v862_v47 }
  0x71   :  { %v870_v50 = vld [vmem:[#allocation8 + $0xa0] sm:$0xff]  ;;  %1661 = vmatpush1.bf16.msra.mxu1 %v5195_v45 }
  0x72   :  { %705 = vmatpush1.bf16.msra.mxu0 %v5569_v18  ;;  %1662 = vmatprep.subr.bf16.mxu1 %v5204_v48  ;;  %v5212_v52 = vcombine.high %v866_v49, %v870_v50  ;;  %v874_v53 = vld [vmem:[#allocation8 + $0xc0] sm:$0xff]  ;;  %v5211_v55 = vcombine.low %v866_v49, %v870_v50  ;;  %v5614_v50 = vld [vmem:[#allocation6 + $0x134] ss:$8 sps:$4 sm:$0xff]  }
  0x73   :  { %706 = vmatprep.subr.bf16.mxu0 %v5570_v19  ;;  %v878_v54 = vld [vmem:[#allocation8 + $0xe0] sm:$0xff] }
  0x74   :  { %v5220_v56 = vcombine.high %v874_v53, %v878_v54  ;;  %v882_v57 = vld [vmem:[#allocation8 + $0x100] sm:$0xff]  ;;  %v5219_v59 = vcombine.low %v874_v53, %v878_v54 }
  0x75   :  { %1663 = vmatpush1.bf16.msra.mxu1 %v5203_v51  ;;  %v886_v58 = vld [vmem:[#allocation8 + $0x120] sm:$0xff] }
  0x76   :  { %707 = vmatpush1.bf16.msra.mxu0 %v5572_v20  ;;  %1664 = vmatprep.subr.bf16.mxu1 %v5212_v52  ;;  %v5228_v60 = vcombine.high %v882_v57, %v886_v58  ;;  %v890_v61 = vld [vmem:[#allocation8 + $0x140] sm:$0xff]  ;;  %v5227_v63 = vcombine.low %v882_v57, %v886_v58  ;;  %v6226_v20 = vadd.s32 256, %v6219_v13 }
  0x77   :  { %708 = vmatprep.subr.bf16.mxu0 %v5573_v21  ;;  %v894_v62 = vld [vmem:[#allocation8 + $0x160] sm:$0xff] }
  0x78   :  { %v5236_v1 = vcombine.high %v890_v61, %v894_v62  ;;  %v898_v2 = vld [vmem:[#allocation8 + $0x180] sm:$0xff]  ;;  %v5235_v4 = vcombine.low %v890_v61, %v894_v62 }
  0x79   :  { %1665 = vmatpush1.bf16.msra.mxu1 %v5211_v55  ;;  %v902_v3 = vld [vmem:[#allocation8 + $0x1a0] sm:$0xff] }
  0x7a   :  { %709 = vmatpush1.bf16.msra.mxu0 %v5575_v22  ;;  %1666 = vmatprep.subr.bf16.mxu1 %v5220_v56  ;;  %v5244_v5 = vcombine.high %v898_v2, %v902_v3  ;;  %v906_v6 = vld [vmem:[#allocation8 + $0x1c0] sm:$0xff]  ;;  %v5243_v9 = vcombine.low %v898_v2, %v902_v3  ;;  %v6229_v22 = vadd.s32 128, %v6219_v13  ;;  %v5612_v56 = vld [vmem:[#allocation6 + $0x130] ss:$8 sps:$4 sm:$0xff]  }
  0x7b   :  { %710 = vmatprep.subr.bf16.mxu0 %v5576_v23  ;;  %v910_v7 = vld [vmem:[#allocation8 + $0x1e0] sm:$0xff] }
  0x7c   :  { %v5252_v10 = vcombine.high %v906_v6, %v910_v7  ;;  %v914_v11 = vld [vmem:[#allocation8 + $0x200] sm:$0xff]  ;;  %v5251_v14 = vcombine.low %v906_v6, %v910_v7  ;;  %v5618_v7 = vld [vmem:[#allocation6 + $0x150] ss:$8 sps:$4 sm:$0xff]  }
  0x7d   :  { %1667 = vmatpush1.bf16.msra.mxu1 %v5219_v59  ;;  %v918_v12 = vld [vmem:[#allocation8 + $0x220] sm:$0xff] }
  0x7e   :  { %711 = vmatpush1.bf16.msra.mxu0 %v5578_v24  ;;  %1668 = vmatprep.subr.bf16.mxu1 %v5228_v60  ;;  %v5260_v15 = vcombine.high %v914_v11, %v918_v12  ;;  %v922_v16 = vld [vmem:[#allocation8 + $0x240] sm:$0xff]  ;;  %v5259_v21 = vcombine.low %v914_v11, %v918_v12  ;;  %v5626_v12 = vld [vmem:[#allocation6 + $0x174] ss:$8 sps:$4 sm:$0xff]  }
  0x7f   :  { %712 = vmatprep.subr.bf16.mxu0 %v5579_v25  ;;  %v926_v17 = vld [vmem:[#allocation8 + $0x260] sm:$0xff] }
  0x80   :  { %v5268_v23 = vcombine.high %v922_v16, %v926_v17  ;;  %v946_v44 = vld [vmem:[#allocation8 + $0x300] sm:$0xff] }
  0x81   :  { %1669 = vmatpush1.bf16.msra.mxu1 %v5227_v63  ;;  %v950_v45 = vld [vmem:[#allocation8 + $0x320] sm:$0xff] }
  0x82   :  { %713 = vmatpush1.bf16.msra.mxu0 %v5581_v26  ;;  %1670 = vmatprep.subr.bf16.mxu1 %v5236_v1  ;;  %v930_v26 = vld [vmem:[#allocation8 + $0x280] sm:$0xff]  ;;  %v5292_v52 = vcombine.high %v946_v44, %v950_v45  ;;  %v5291_v60 = vcombine.low %v946_v44, %v950_v45  ;;  %v880_v44 = vld [vmem:[#allocation8 + $0xf0] sm:$0xff] }
  0x83   :  { %714 = vmatprep.subr.bf16.mxu0 %v5582_v27  ;;  %v934_v27 = vld [vmem:[#allocation8 + $0x2a0] sm:$0xff] }
  0x84   :  { %v5609_v48 = vld [vmem:[#allocation6 + $0x120] ss:$8 sps:$4 sm:$0xff]   ;;  %v5617_v58 = vld [vmem:[#allocation6 + $0x144] ss:$8 sps:$4 sm:$0xff]  }
  0x85   :  { %1671 = vmatpush1.bf16.msra.mxu1 %v5235_v4  ;;  %v954_v54 = vld [vmem:[#allocation8 + $0x340] sm:$0xff]  ;;  %v5620_v4 = vld [vmem:[#allocation6 + $0x154] ss:$8 sps:$4 sm:$0xff]  }
  0x86   :  { %715 = vmatpush1.bf16.msra.mxu0 %v5584_v28  ;;  %1672 = vmatprep.subr.bf16.mxu1 %v5244_v5  ;;  %v958_v55 = vld [vmem:[#allocation8 + $0x360] sm:$0xff]  ;;  %v5223_v28 = vcombine.low %v876_v43, %v880_v44 }
  0x87   :  { %716 = vmatprep.subr.bf16.mxu0 %v5585_v29  ;;  %v5603_v29 = vld [vmem:[#allocation6 + $0x100] ss:$8 sps:$4 sm:$0xff]   ;;  %v5300_v62 = vcombine.high %v954_v54, %v958_v55  ;;  %v5299_v5 = vcombine.low %v954_v54, %v958_v55  ;;  %v900_v55 = vld [vmem:[#allocation8 + $0x190] sm:$0xff] }
  0x88   :  { %v962_v1 = vld [vmem:[#allocation8 + $0x380] sm:$0xff] }
  0x89   :  { %1673 = vmatpush1.bf16.msra.mxu1 %v5243_v9  ;;  %v966_v2 = vld [vmem:[#allocation8 + $0x3a0] sm:$0xff] }
  0x8a   :  { %717 = vmatpush1.bf16.msra.mxu0 %v5587_v30  ;;  %1674 = vmatprep.subr.bf16.mxu1 %v5252_v10  ;;  %v5608_v30 = vld [vmem:[#allocation6 + $0x114] ss:$8 sps:$4 sm:$0xff]   ;;  %v5615_v3 = vld [vmem:[#allocation6 + $0x140] ss:$8 sps:$4 sm:$0xff]   ;;  %v5308_v6 = vcombine.high %v962_v1, %v966_v2  ;;  %v5623_v9 = vld [vmem:[#allocation6 + $0x164] ss:$8 sps:$4 sm:$0xff]   ;;  %v5307_v10 = vcombine.low %v962_v1, %v966_v2 }
  0x8b   :  { %718 = vmatprep.subr.bf16.mxu0 %v5588_v31  ;;  %v5267_v31 = vcombine.low %v922_v16, %v926_v17  ;;  %v5621_v11 = vld [vmem:[#allocation6 + $0x160] ss:$8 sps:$4 sm:$0xff]   ;;  %v5632_v16 = vld [vmem:[#allocation6 + $0x194] ss:$8 sps:$4 sm:$0xff]   ;;  %v5630_v17 = vld [vmem:[#allocation6 + $0x190] ss:$8 sps:$4 sm:$0xff]  }
  0x8c   :  { %v916_v2 = vld [vmem:[#allocation8 + $0x210] sm:$0xff] }
  0x8d   :  { %1675 = vmatpush1.bf16.msra.mxu1 %v5251_v14  ;;  %v5624_v14 = vld [vmem:[#allocation6 + $0x170] ss:$8 sps:$4 sm:$0xff]  }
  0x8e   :  { %719 = vmatpush1.bf16.msra.mxu0 %v5590_v32  ;;  %1676 = vmatprep.subr.bf16.mxu1 %v5260_v15  ;;  %v6048_v32 = vmov 1.0|1.0   ;;  %v5627_v15 = vld [vmem:[#allocation6 + $0x180] ss:$8 sps:$4 sm:$0xff]  }
  0x8f   :  { %720 = vmatprep.subr.bf16.mxu0 %v5591_v33 }
  0x91   :  { %1677 = vmatpush1.bf16.msra.mxu1 %v5259_v21  ;;  %v5636_v21 = vld [vmem:[#allocation6 + $0x1b0] ss:$8 sps:$4 sm:$0xff]  }
  0x92   :  { %721 = vmatpush1.bf16.msra.mxu0 %v5593_v34  ;;  %1678 = vmatprep.subr.bf16.mxu1 %v5268_v23  ;;  %v5639_v23 = vld [vmem:[#allocation6 + $0x1c0] ss:$8 sps:$4 sm:$0xff]  }
  0x93   :  { %722 = vmatprep.subr.bf16.mxu0 %v5594_v35  ;;  %v5276_v35 = vcombine.high %v930_v26, %v934_v27 }
  0x95   :  { %1679 = vmatpush1.bf16.msra.mxu1 %v5267_v31  ;;  %v856_v31 = vld [vmem:[#allocation8 + $0x30] sm:$0xff] }
  0x96   :  { %723 = vmatpush1.bf16.msra.mxu0 %v5596_v36  ;;  %v6265_v36 = vadd.s32 384, %v6219_v13  ;;  %1680 = vmatprep.subr.bf16.mxu1 %v5276_v35  ;;  %v860_v35 = vld [vmem:[#allocation8 + $0x50] sm:$0xff] }
  0x97   :  { %724 = vmatprep.subr.bf16.mxu0 %v5597_v37  ;;  %v938_v37 = vld [vmem:[#allocation8 + $0x2c0] sm:$0xff] }
  0x9a   :  { %725 = vmatpush1.bf16.msra.mxu0 %v5599_v38  ;;  %v942_v38 = vld [vmem:[#allocation8 + $0x2e0] sm:$0xff] }
  0x9b   :  { %726 = vmatprep.subr.bf16.mxu0 %v5600_v39  ;;  %v5606_v39 = vld [vmem:[#allocation6 + $0x110] ss:$8 sps:$4 sm:$0xff]   ;;  %v5284_v42 = vcombine.high %v938_v37, %v942_v38  ;;  %v5283_v51 = vcombine.low %v938_v37, %v942_v38 }
  0x9e   :  { %727 = vmatpush1.bf16.msra.mxu0 %v5602_v40  ;;  %v5611_v40 = vld [vmem:[#allocation6 + $0x124] ss:$8 sps:$4 sm:$0xff]  }
  0x9f   :  { %769 = vmatprep.subr.bf16.mxu0 %v5605_v41  ;;  %v5275_v41 = vcombine.low %v930_v26, %v934_v27  ;;  %v5647_v26 = vld [vmem:[#allocation6 + $0x1e4] ss:$8 sps:$4 sm:$0xff]   ;;  %v5645_v27 = vld [vmem:[#allocation6 + $0x1e0] ss:$8 sps:$4 sm:$0xff]  }
  0xa1   :  { %1681 = vmatpush1.bf16.msra.mxu1 %v5275_v41 }
  0xa2   :  { %1682 = vmatprep.subr.bf16.mxu1 %v5284_v42 }
  0xa5   :  { %1683 = vmatpush1.bf16.msra.mxu1 %v5283_v51  ;;  %v896_v51 = vld [vmem:[#allocation8 + $0x170] sm:$0xff] }
  0xa6   :  { %1684 = vmatprep.subr.bf16.mxu1 %v5292_v52 }
  0xa9   :  { %1685 = vmatpush1.bf16.msra.mxu1 %v5291_v60  ;;  %v912_v60 = vld [vmem:[#allocation8 + $0x1f0] sm:$0xff] }
  0xaa   :  { %1686 = vmatprep.subr.bf16.mxu1 %v5300_v62 }
  0xad   :  { %1687 = vmatpush1.bf16.msra.mxu1 %v5299_v5  ;;  %v928_v5 = vld [vmem:[#allocation8 + $0x270] sm:$0xff] }
  0xae   :  { %1688 = vmatprep.subr.bf16.mxu1 %v5308_v6 }
  0xb1   :  { %1689 = vmatpush1.bf16.msra.mxu1 %v5307_v10  ;;  %v936_v10 = vld [vmem:[#allocation8 + $0x2b0] sm:$0xff] }
  0xde   :  { %v6221_v18 = vpop.permute.xlu1 %183  ;;  %v6223_v19 = vpop.permute.xlu0 %177 }
  0xdf   :  { %vm202_vm0 = vcmp.eq.s32.totalorder %v6226_v20, %v6223_v19  ;;  %vm201_vm5 = vcmp.eq.s32.totalorder %v6229_v22, %v6223_v19  ;;  %vm209_vm6 = vcmp.eq.s32.totalorder %v6229_v22, %v6221_v18  ;;  %vm200_vm9 = vcmp.eq.s32.totalorder %v6219_v13, %v6223_v19 }
  0xe0   :  { %vm208_vm12 = vcmp.eq.s32.totalorder %v6219_v13, %v6221_v18  ;;  %vm211_vm14 = vcmp.eq.s32.totalorder %v6265_v36, %v6221_v18 }
  0xe2   :  { %v6231_v24 = vpop.permute.xlu1 %186  ;;  %v6233_v25 = vpop.permute.xlu0 %180 }
  0xe3   :  { %vm206_vm1 = vcmp.eq.s32.totalorder %v6226_v20, %v6233_v25  ;;  %vm205_vm2 = vcmp.eq.s32.totalorder %v6229_v22, %v6233_v25  ;;  %vm204_vm3 = vcmp.eq.s32.totalorder %v6219_v13, %v6233_v25  ;;  %vm213_vm7 = vcmp.eq.s32.totalorder %v6229_v22, %v6231_v24 }
  0xe4   :  { %vm6243_vm4 = vmpackc.low %vm206_vm1, %vm202_vm0  ;;  %vm212_vm13 = vcmp.eq.s32.totalorder %v6219_v13, %v6231_v24  ;;  %vm215_vm15 = vcmp.eq.s32.totalorder %v6265_v36, %v6231_v24 }
  0xe5   :  { %vm5163_vm8 = vmpackc.low %vm205_vm2, %vm201_vm5  ;;  %vm210_vm5 = vcmp.eq.s32.totalorder %v6226_v20, %v6221_v18  ;;  %v5635_v18 = vld [vmem:[#allocation6 + $0x1a4] ss:$8 sps:$4 sm:$0xff]  }
  0xe6   :  { %5164 = vmatprep.mubr.msk.bf16.mxu0 %vm5163_vm8, %v6048_v32  ;;  %v6256_v33 = vpop.permute.xlu1 %192  ;;  %vm5165_vm10 = vmpackc.low %vm204_vm3, %vm200_vm9  ;;  %v6261_v34 = vpop.permute.xlu0 %189 }
  0xe7   :  { %5166 = vmatmul.mubr.msk.bf16.vlgmr.msra.gmra.mrb[0].mxu0 %vm5165_vm10, %v6048_v32  ;;  %vm5167_vm11 = vmpackc.low %vm213_vm7, %vm209_vm6  ;;  %vm217_vm1 = vcmp.eq.s32.totalorder %v6229_v22, %v6261_v34  ;;  %vm221_vm2 = vcmp.eq.s32.totalorder %v6229_v22, %v6256_v33  ;;  %vm214_vm6 = vcmp.eq.s32.totalorder %v6226_v20, %v6231_v24  ;;  %vm219_vm7 = vcmp.eq.s32.totalorder %v6265_v36, %v6261_v34  ;;  %v5644_v24 = vld [vmem:[#allocation6 + $0x1d4] ss:$8 sps:$4 sm:$0xff]  }
  0xe8   :  { %770 = vmatpush1.bf16.msra.mxu0 %v5603_v29  ;;  %5168 = vmatprep.mubr.msk.bf16.mxu0 %vm5167_vm11, %v6048_v32  ;;  %vm6279_vm0 = vmpackc.low %vm212_vm13, %vm208_vm12  ;;  %vm223_vm8 = vcmp.eq.s32.totalorder %v6265_v36, %v6256_v33  ;;  %vm218_vm10 = vcmp.eq.s32.totalorder %v6226_v20, %v6261_v34  ;;  %vm222_vm11 = vcmp.eq.s32.totalorder %v6226_v20, %v6256_v33  ;;  %v5650_v29 = vld [vmem:[#allocation6 + $0x1f4] ss:$8 sps:$4 sm:$0xff]  }
  0xe9   :  { %771 = vmatprep.subr.bf16.mxu0 %v5608_v30  ;;  %vm6294_vm3 = vmpackc.low %vm215_vm15, %vm211_vm14  ;;  %v852_v30 = vld [vmem:[#allocation8 + $0x10] sm:$0xff] }
  0xea   :  { %v6287_v46 = vpop.permute.xlu1 %198  ;;  %v6289_v47 = vpop.permute.xlu0 %195  ;;  %vm5171_vm9 = vmpackc.low %vm221_vm2, %vm217_vm1  ;;  %v5199_v37 = vcombine.low %v852_v30, %v856_v31 }
  0xeb   :  { %vm231_vm12 = vcmp.eq.s32.totalorder %v6265_v36, %v6287_v46  ;;  %vm227_vm13 = vcmp.eq.s32.totalorder %v6265_v36, %v6289_v47  ;;  %vm6329_vm14 = vmpackc.low %vm214_vm6, %vm210_vm5  ;;  %vm230_vm15 = vcmp.eq.s32.totalorder %v6226_v20, %v6287_v46  ;;  %vm226_vm1 = vcmp.eq.s32.totalorder %v6226_v20, %v6289_v47  ;;  %v5633_v20 = vld [vmem:[#allocation6 + $0x1a0] ss:$8 sps:$4 sm:$0xff]  }
  0xec   :  { %772 = vmatpush1.bf16.msra.mxu0 %v5606_v39  ;;  %vm6354_vm2 = vmpackc.low %vm222_vm11, %vm218_vm10  ;;  %vm216_vm6 = vcmp.eq.s32.totalorder %v6219_v13, %v6261_v34  ;;  %vm225_vm10 = vcmp.eq.s32.totalorder %v6229_v22, %v6289_v47  ;;  %v5200_v34 = vcombine.high %v852_v30, %v856_v31  ;;  %v868_v39 = vld [vmem:[#allocation8 + $0x90] sm:$0xff]  ;;  %v974_v30 = vld [vmem:[#allocation8 + $0x3e0] sm:$0xff] }
  0xed   :  { %773 = vmatprep.subr.bf16.mxu0 %v5611_v40  ;;  %vm6364_vm5 = vmpackc.low %vm231_vm12, %vm227_vm13  ;;  %vm228_vm13 = vcmp.eq.s32.totalorder %v6219_v13, %v6287_v46  ;;  %v872_v40 = vld [vmem:[#allocation8 + $0xb0] sm:$0xff] }
  0xee   :  { %v5216_v42 = vcombine.high %v868_v39, %v872_v40  ;;  %v5215_v45 = vcombine.low %v868_v39, %v872_v40  ;;  %v972_v31 = vld [vmem:[#allocation8 + $0x3d0] sm:$0xff]  ;;  %v855_v39 = vld [vmem:[#allocation8 + $0x28] sm:$0xff] }
  0xef   :  { %5170 = vmatmul.mubr.msk.bf16.gmra.mrb[4].mxu0 %vm6279_vm0, %v6048_v32  ;;  %vm6344_vm0 = vmpackc.low %vm223_vm8, %vm219_vm7  ;;  %vm220_vm7 = vcmp.eq.s32.totalorder %v6219_v13, %v6256_v33  ;;  %v5648_v33 = vld [vmem:[#allocation6 + $0x1f0] ss:$8 sps:$4 sm:$0xff]  }
  0xf0   :  { %774 = vmatpush1.bf16.msra.mxu0 %v5609_v48  ;;  %5172 = vmatprep.mubr.msk.bf16.mxu0 %vm5171_vm9, %v6048_v32  ;;  %vm6378_vm8 = vmpackc.low %vm230_vm15, %vm226_vm1  ;;  %vm229_vm9 = vcmp.eq.s32.totalorder %v6229_v22, %v6287_v46  ;;  %vm224_vm15 = vcmp.eq.s32.totalorder %v6219_v13, %v6289_v47  ;;  %vm207_vm1 = vcmp.eq.s32.totalorder %v6265_v36, %v6233_v25  ;;  %v5629_v13 = vld [vmem:[#allocation6 + $0x184] ss:$8 sps:$4 sm:$0xff]   ;;  %v5642_v25 = vld [vmem:[#allocation6 + $0x1d0] ss:$8 sps:$4 sm:$0xff]  }
  0xf1   :  { %775 = vmatprep.subr.bf16.mxu0 %v5614_v50  ;;  %vm5173_vm11 = vmpackc.low %vm220_vm7, %vm216_vm6  ;;  %vm203_vm7 = vcmp.eq.s32.totalorder %v6265_v36, %v6223_v19  ;;  %v5638_v19 = vld [vmem:[#allocation6 + $0x1b4] ss:$8 sps:$4 sm:$0xff]   ;;  %v5641_v22 = vld [vmem:[#allocation6 + $0x1c4] ss:$8 sps:$4 sm:$0xff]   ;;  %v5224_v46 = vcombine.high %v876_v43, %v880_v44 }
  0xf2   :  { %vm5175_vm12 = vmpackc.low %vm229_vm9, %vm225_vm10  ;;  %v864_v36 = vld [vmem:[#allocation8 + $0x70] sm:$0xff] }
  0xf3   :  { %vm5177_vm6 = vmpackc.low %vm228_vm13, %vm224_vm15  ;;  %v5208_v38 = vcombine.high %v860_v35, %v864_v36  ;;  %v5207_v41 = vcombine.low %v860_v35, %v864_v36  ;;  %v884_v47 = vld [vmem:[#allocation8 + $0x110] sm:$0xff] }
  0xf4   :  { %776 = vmatpush1.bf16.msra.mxu0 %v5612_v56  ;;  %vm5179_vm9 = vmpackc.low %vm207_vm1, %vm203_vm7  ;;  %v888_v48 = vld [vmem:[#allocation8 + $0x130] sm:$0xff] }
  0xf5   :  { %777 = vmatprep.subr.bf16.mxu0 %v5617_v58  ;;  %v5232_v49 = vcombine.high %v884_v47, %v888_v48  ;;  %v892_v50 = vld [vmem:[#allocation8 + $0x150] sm:$0xff]  ;;  %v5231_v52 = vcombine.low %v884_v47, %v888_v48  ;;  %v863_v47 = vld [vmem:[#allocation8 + $0x68] sm:$0xff] }
  0xf6   :  { %v5240_v54 = vcombine.high %v892_v50, %v896_v51  ;;  %v904_v56 = vld [vmem:[#allocation8 + $0x1b0] sm:$0xff]  ;;  %v5239_v53 = vcombine.low %v892_v50, %v896_v51  ;;  %v5651_v50 = vld [vmem:[#allocation11] ss:$8 sps:$4 sm:$0xff]  }
  0xf7   :  { %5174 = vmatmul.mubr.msk.bf16.gmra.mrb[8].mxu0 %vm5173_vm11, %v6048_v32  ;;  %v5248_v57 = vcombine.high %v900_v55, %v904_v56  ;;  %v908_v58 = vld [vmem:[#allocation8 + $0x1d0] sm:$0xff]  ;;  %v5247_v62 = vcombine.low %v900_v55, %v904_v56  ;;  %v871_v55 = vld [vmem:[#allocation8 + $0xa8] sm:$0xff] }
  0xf8   :  { %778 = vmatpush1.bf16.msra.mxu0 %v5615_v3  ;;  %5176 = vmatprep.mubr.msk.bf16.mxu0 %vm5175_vm12, %v6048_v32  ;;  %v5256_v1 = vcombine.high %v908_v58, %v912_v60  ;;  %v920_v3 = vld [vmem:[#allocation8 + $0x230] sm:$0xff]  ;;  %v5255_v59 = vcombine.low %v908_v58, %v912_v60 }
  0xf9   :  { %779 = vmatprep.subr.bf16.mxu0 %v5620_v4  ;;  %v5264_v61 = vcombine.high %v916_v2, %v920_v3  ;;  %v924_v4 = vld [vmem:[#allocation8 + $0x250] sm:$0xff]  ;;  %v5263_v6 = vcombine.low %v916_v2, %v920_v3  ;;  %v875_v2 = vld [vmem:[#allocation8 + $0xc8] sm:$0xff] }
  0xfa   :  { %v879_v3 = vld [vmem:[#allocation8 + $0xe8] sm:$0xff] }
  0xfc   :  { %780 = vmatpush1.bf16.msra.mxu0 %v5618_v7  ;;  %v5272_v7 = vcombine.high %v924_v4, %v928_v5 }
  0xfd   :  { %781 = vmatprep.subr.bf16.mxu0 %v5623_v9  ;;  %v932_v9 = vld [vmem:[#allocation8 + $0x290] sm:$0xff] }
  0xff   :  { %5178 = vmatmul.mubr.msk.bf16.gmra.mrb[12].mxu0 %vm5177_vm6, %v6048_v32 }
 0x100   :  { %782 = vmatpush1.bf16.msra.mxu0 %v5621_v11  ;;  %5180 = vmatprep.mubr.msk.bf16.mxu0 %vm5179_vm9, %v6048_v32  ;;  %v5271_v11 = vcombine.low %v924_v4, %v928_v5 }
 0x101   :  { %783 = vmatprep.subr.bf16.mxu0 %v5626_v12  ;;  %v5280_v12 = vcombine.high %v932_v9, %v936_v10 }
 0x104   :  { %784 = vmatpush1.bf16.msra.mxu0 %v5624_v14  ;;  %v940_v14 = vld [vmem:[#allocation8 + $0x2d0] sm:$0xff] }
 0x105   :  { %785 = vmatprep.subr.bf16.mxu0 %v5629_v13  ;;  %v944_v13 = vld [vmem:[#allocation8 + $0x2f0] sm:$0xff] }
 0x106   :  { %v5288_v63 = vcombine.high %v940_v14, %v944_v13 }
 0x108   :  { %786 = vmatpush1.bf16.msra.mxu0 %v5627_v15  ;;  %v948_v15 = vld [vmem:[#allocation8 + $0x310] sm:$0xff] }
 0x109   :  { %787 = vmatprep.subr.bf16.mxu0 %v5632_v16  ;;  %v952_v16 = vld [vmem:[#allocation8 + $0x330] sm:$0xff] }
 0x10c   :  { %788 = vmatpush1.bf16.msra.mxu0 %v5630_v17  ;;  %v5287_v17 = vcombine.low %v940_v14, %v944_v13  ;;  %v5221_v14 = vcombine.low %v875_v2, %v879_v3  ;;  %v5660_v13 = vld [vmem:[#allocation11 + $0x30] ss:$8 sps:$4 sm:$0xff]  }
 0x10d   :  { %789 = vmatprep.subr.bf16.mxu0 %v5635_v18  ;;  %v5296_v18 = vcombine.high %v948_v15, %v952_v16 }
 0x110   :  { %790 = vmatpush1.bf16.msra.mxu0 %v5633_v20  ;;  %v956_v20 = vld [vmem:[#allocation8 + $0x350] sm:$0xff] }
 0x111   :  { %791 = vmatprep.subr.bf16.mxu0 %v5638_v19  ;;  %v960_v19 = vld [vmem:[#allocation8 + $0x370] sm:$0xff] }
 0x114   :  { %792 = vmatpush1.bf16.msra.mxu0 %v5636_v21  ;;  %v5295_v21 = vcombine.low %v948_v15, %v952_v16  ;;  %v5665_v15 = vld [vmem:[#allocation11 + $0x44] ss:$8 sps:$4 sm:$0xff]  }
 0x115   :  { %793 = vmatprep.subr.bf16.mxu0 %v5641_v22  ;;  %v5304_v22 = vcombine.high %v956_v20, %v960_v19 }
 0x118   :  { %794 = vmatpush1.bf16.msra.mxu0 %v5639_v23  ;;  %v964_v23 = vld [vmem:[#allocation8 + $0x390] sm:$0xff] }
 0x119   :  { %795 = vmatprep.subr.bf16.mxu0 %v5644_v24  ;;  %v968_v24 = vld [vmem:[#allocation8 + $0x3b0] sm:$0xff] }
 0x11c   :  { %796 = vmatpush1.bf16.msra.mxu0 %v5642_v25  ;;  %v5303_v25 = vcombine.low %v956_v20, %v960_v19 }
 0x11d   :  { %797 = vmatprep.subr.bf16.mxu0 %v5647_v26  ;;  %v5312_v26 = vcombine.high %v964_v23, %v968_v24 }
 0x120   :  { %798 = vmatpush1.bf16.msra.mxu0 %v5645_v27  ;;  %v5311_v27 = vcombine.low %v964_v23, %v968_v24  ;;  %v5663_v23 = vld [vmem:[#allocation11 + $0x40] ss:$8 sps:$4 sm:$0xff]  }
 0x121   :  { %799 = vmatprep.subr.bf16.mxu0 %v5650_v29  ;;  %v970_v29 = vld [vmem:[#allocation8 + $0x3c0] sm:$0xff] }
 0x122   :  { %v5315_v35 = vcombine.low %v970_v29, %v974_v30 }
 0x124   :  { %800 = vmatpush1.bf16.msra.mxu0 %v5648_v33  ;;  %v5316_v33 = vcombine.high %v970_v29, %v974_v30 }
 0x125   :  { %1806 = vmatprep.subr.bf16.mxu0 %v5200_v34  ;;  %v976_v34 = vld [vmem:[#allocation8 + $0x3f0] sm:$0xff] }
 0x126   :  { %v5319_v36 = vcombine.low %v972_v31, %v976_v34  ;;  %1690 = vmatprep.subr.bf16.mxu1 %v5316_v33 }
 0x127   :  { %5182 = vmatmul.mubr.msk.bf16.vlgmr.msra.gmra.mrb[0].mxu0 %vm6243_vm4, %v6048_v32  ;;  %1691 = vmatpush1.bf16.msra.mxu1 %v5315_v35  ;;  %v5671_v35 = vld [vmem:[#allocation11 + $0x64] ss:$8 sps:$4 sm:$0xff]  }
 0x128   :  { %5184 = vmatprep.mubr.msk.bf16.mxu0 %vm6294_vm3, %v6048_v32  ;;  %1807 = vmatpush1.bf16.msra.mxu0 %v5199_v37  ;;  %v5320_v37 = vcombine.high %v972_v31, %v976_v34  ;;  %v5666_v31 = vld [vmem:[#allocation11 + $0x50] ss:$8 sps:$4 sm:$0xff]  }
 0x129   :  { %1808 = vmatprep.subr.bf16.mxu0 %v5208_v38  ;;  %v851_v38 = vld [vmem:[#allocation8 + $0x8] sm:$0xff] }
 0x12a   :  { %v5197_v40 = vcombine.low %v851_v38, %v855_v39 }
 0x12c   :  { %1809 = vmatpush1.bf16.msra.mxu0 %v5207_v41  ;;  %v5198_v41 = vcombine.high %v851_v38, %v855_v39  ;;  %v911_v38 = vld [vmem:[#allocation8 + $0x1e8] sm:$0xff] }
 0x12d   :  { %1810 = vmatprep.subr.bf16.mxu0 %v5216_v42  ;;  %v5653_v42 = vld [vmem:[#allocation11 + $0x4] ss:$8 sps:$4 sm:$0xff]  }
 0x12e   :  { %1733 = vmatprep.subr.bf16.mxu1 %v5198_v41 }
 0x12f   :  { %5186 = vmatmul.mubr.msk.bf16.gmra.mrb[4].mxu0 %vm6329_vm14, %v6048_v32 }
 0x130   :  { %5188 = vmatprep.mubr.msk.bf16.mxu0 %vm6344_vm0, %v6048_v32  ;;  %1811 = vmatpush1.bf16.msra.mxu0 %v5215_v45 }
 0x131   :  { %1812 = vmatprep.subr.bf16.mxu0 %v5224_v46  ;;  %v859_v46 = vld [vmem:[#allocation8 + $0x48] sm:$0xff] }
 0x132   :  { %v5206_v51 = vcombine.high %v859_v46, %v863_v47 }
 0x134   :  { %1813 = vmatpush1.bf16.msra.mxu0 %v5223_v28 }
 0x135   :  { %1814 = vmatprep.subr.bf16.mxu0 %v5232_v49 }
 0x137   :  { %5190 = vmatmul.mubr.msk.bf16.gmra.mrb[8].mxu0 %vm6354_vm2, %v6048_v32 }
 0x138   :  { %5192 = vmatprep.mubr.msk.bf16.mxu0 %vm6364_vm5, %v6048_v32  ;;  %1815 = vmatpush1.bf16.msra.mxu0 %v5231_v52  ;;  %v5656_v52 = vld [vmem:[#allocation11 + $0x14] ss:$8 sps:$4 sm:$0xff]  }
 0x139   :  { %1816 = vmatprep.subr.bf16.mxu0 %v5240_v54  ;;  %v867_v54 = vld [vmem:[#allocation8 + $0x88] sm:$0xff] }
 0x13a   :  { %v5214_v60 = vcombine.high %v867_v54, %v871_v55  ;;  %v5213_v5 = vcombine.low %v867_v54, %v871_v55  ;;  %v2016_v54 = vld [vmem:[%s8161_s5] sm:$0xff] }
 0x13c   :  { %1817 = vmatpush1.bf16.msra.mxu0 %v5239_v53  ;;  %v5205_v53 = vcombine.low %v859_v46, %v863_v47  ;;  %v915_v46 = vld [vmem:[#allocation8 + $0x208] sm:$0xff] }
 0x13d   :  { %1818 = vmatprep.subr.bf16.mxu0 %v5248_v57  ;;  %v5654_v57 = vld [vmem:[#allocation11 + $0x10] ss:$8 sps:$4 sm:$0xff]   ;;  %v919_v47 = vld [vmem:[#allocation8 + $0x228] sm:$0xff] }
 0x13e   :  { %v5262_v55 = vcombine.high %v915_v46, %v919_v47 }
 0x13f   :  { %5194 = vmatmul.mubr.msk.bf16.gmra.mrb[12].mxu0 %vm6378_vm8, %v6048_v32  ;;  %v5279_v32 = vcombine.low %v932_v9, %v936_v10  ;;  %v5662_v9 = vld [vmem:[#allocation11 + $0x34] ss:$8 sps:$4 sm:$0xff]   ;;  %v883_v10 = vld [vmem:[#allocation8 + $0x108] sm:$0xff] }
 0x140   :  { %1819 = vmatpush1.bf16.msra.mxu0 %v5247_v62  ;;  %v5659_v62 = vld [vmem:[#allocation11 + $0x24] ss:$8 sps:$4 sm:$0xff]  }
 0x141   :  { %1820 = vmatprep.subr.bf16.mxu0 %v5256_v1 }
 0x144   :  { %1821 = vmatpush1.bf16.msra.mxu0 %v5255_v59 }
 0x145   :  { %1822 = vmatprep.subr.bf16.mxu0 %v5264_v61 }
 0x148   :  { %1823 = vmatpush1.bf16.msra.mxu0 %v5263_v6  ;;  %v5657_v6 = vld [vmem:[#allocation11 + $0x20] ss:$8 sps:$4 sm:$0xff]  }
 0x149   :  { %1824 = vmatprep.subr.bf16.mxu0 %v5272_v7  ;;  %v5222_v7 = vcombine.high %v875_v2, %v879_v3 }
 0x14c   :  { %1825 = vmatpush1.bf16.msra.mxu0 %v5271_v11  ;;  %v887_v11 = vld [vmem:[#allocation8 + $0x128] sm:$0xff] }
 0x14d   :  { %1826 = vmatprep.subr.bf16.mxu0 %v5280_v12 }
 0x150   :  { %1827 = vmatpush1.bf16.msra.mxu0 %v5279_v32 }
 0x151   :  { %1828 = vmatprep.subr.bf16.mxu0 %v5288_v63  ;;  %v5230_v63 = vcombine.high %v883_v10, %v887_v11 }
 0x154   :  { %1829 = vmatpush1.bf16.msra.mxu0 %v5287_v17  ;;  %v891_v17 = vld [vmem:[#allocation8 + $0x148] sm:$0xff] }
 0x155   :  { %1830 = vmatprep.subr.bf16.mxu0 %v5296_v18  ;;  %v895_v18 = vld [vmem:[#allocation8 + $0x168] sm:$0xff] }
 0x156   :  { %v5238_v24 = vcombine.high %v891_v17, %v895_v18  ;;  %v5237_v30 = vcombine.low %v891_v17, %v895_v18 }
 0x158   :  { %1831 = vmatpush1.bf16.msra.mxu0 %v5295_v21 }
 0x159   :  { %1832 = vmatprep.subr.bf16.mxu0 %v5304_v22  ;;  %v5229_v22 = vcombine.low %v883_v10, %v887_v11 }
 0x15c   :  { %1833 = vmatpush1.bf16.msra.mxu0 %v5303_v25  ;;  %v5668_v25 = vld [vmem:[#allocation11 + $0x54] ss:$8 sps:$4 sm:$0xff]  }
 0x15d   :  { %1834 = vmatprep.subr.bf16.mxu0 %v5312_v26  ;;  %v899_v26 = vld [vmem:[#allocation8 + $0x188] sm:$0xff] }
 0x160   :  { %1835 = vmatpush1.bf16.msra.mxu0 %v5311_v27  ;;  %v903_v27 = vld [vmem:[#allocation8 + $0x1a8] sm:$0xff] }
 0x161   :  { %1836 = vmatprep.subr.bf16.mxu0 %v5320_v37  ;;  %v5246_v34 = vcombine.high %v899_v26, %v903_v27  ;;  %v907_v37 = vld [vmem:[#allocation8 + $0x1c8] sm:$0xff] }
 0x164   :  { %1837 = vmatpush1.bf16.msra.mxu0 %v5319_v36 }
 0x165   :  { %2126 = vmatprep.subr.bf16.mxu0 %v5653_v42  ;;  %v5245_v42 = vcombine.low %v899_v26, %v903_v27 }
 0x1fa   :  { %v803_v43 = vpop.f32.mrb[0].mxu0 }
 0x1fb   :  { %v805_v44 = vpop.f32.mrb[1].mxu0 }
 0x1fc   :  { %v807_v45 = vpop.f32.mrb[2].mxu0 }
 0x1fd   :  { %v6419_v48 = vpack.c.bf16 %v807_v45, %v803_v43  ;;  %v809_v28 = vpop.f32.mrb[3].mxu0  ;;  %v5669_v43 = vld [vmem:[#allocation11 + $0x60] ss:$8 sps:$4 sm:$0xff]   ;;  %v5674_v45 = vld [vmem:[#allocation11 + $0x74] ss:$8 sps:$4 sm:$0xff]  }
 0x1fe   :  { %v6421_v49 = vpack.c.bf16 %v809_v28, %v805_v44  ;;  %v5254_v44 = vcombine.high %v907_v37, %v911_v38  ;;  %v2168_v28 = vld [vmem:[#allocation10 + $0x8] sm:$0xff] }
 0x200   :  { %1692 = vmatprep.mubr.bf16.mxu1 %v6421_v49  ;;  %1838 = vmatprep.mubr.bf16.mxu0 %v6421_v49 }
 0x201   :  { %1693 = vmatmul.mubr.bf16.vlgmr.msra.gmra.mrb[0].mxu1 %v6419_v48  ;;  %1839 = vmatmul.mubr.bf16.vlgmr.msra.gmra.mrb[16].mxu0 %v6419_v48 }
 0x202   :  { %1734 = vmatpush1.bf16.msra.mxu1 %v5197_v40  ;;  %2127 = vmatpush1.bf16.msra.mxu0 %v5651_v50  ;;  %v813_v56 = vpop.f32.mrb[4].mxu0  ;;  %v2172_v50 = vld [vmem:[#allocation10 + $0x28] sm:$0xff] }
 0x203   :  { %v815_v58 = vpop.f32.mrb[5].mxu0  ;;  %1735 = vmatprep.subr.bf16.mxu1 %v5206_v51  ;;  %2128 = vmatprep.subr.bf16.mxu0 %v5656_v52  ;;  %v5253_v51 = vcombine.low %v907_v37, %v911_v38  ;;  %v5672_v52 = vld [vmem:[#allocation11 + $0x70] ss:$8 sps:$4 sm:$0xff]   ;;  %v6458_v2 = vcombine.low %v2168_v28, %v2172_v50 }
 0x204   :  { %v817_v1 = vpop.f32.mrb[6].mxu0 }
 0x205   :  { %v6427_v59 = vpack.c.bf16 %v817_v1, %v813_v56  ;;  %v819_v61 = vpop.f32.mrb[7].mxu0  ;;  %v6455_v56 = vcombine.high %v2168_v28, %v2172_v50  ;;  %v5261_v1 = vcombine.low %v915_v46, %v919_v47  ;;  %8476 = vst [vmem:[#allocation23_spill] sm:$0xff] %v6458_v2 }
 0x206   :  { %v6429_v4 = vpack.c.bf16 %v819_v61, %v815_v58  ;;  %1736 = vmatpush1.bf16.msra.mxu1 %v5205_v53  ;;  %2129 = vmatpush1.bf16.msra.mxu0 %v5654_v57  ;;  %v923_v53 = vld [vmem:[#allocation8 + $0x248] sm:$0xff] }
 0x207   :  { %1737 = vmatprep.subr.bf16.mxu1 %v5214_v60  ;;  %2130 = vmatprep.subr.bf16.mxu0 %v5659_v62  ;;  %8475 = vst [vmem:[#allocation22_spill] sm:$0xff] %v6455_v56  ;;  %v927_v57 = vld [vmem:[#allocation8 + $0x268] sm:$0xff]  ;;  %v2017_v62 = vpack.c.bf16 %v2016_v54, %v2016_v54 }
 0x208   :  { %1702 = vmatprep.mubr.bf16.mxu1 %v6429_v4  ;;  %1848 = vmatprep.mubr.bf16.mxu0 %v6429_v4  ;;  %v2176_v58 = vld [vmem:[#allocation10 + $0x48] sm:$0xff]  ;;  %v5270_v3 = vcombine.high %v923_v53, %v927_v57  ;;  %v5269_v10 = vcombine.low %v923_v53, %v927_v57 }
 0x209   :  { %1703 = vmatmul.mubr.bf16.gmra.mrb[4].mxu1 %v6427_v59  ;;  %1849 = vmatmul.mubr.bf16.gmra.mrb[20].mxu0 %v6427_v59  ;;  %v2180_v60 = vld [vmem:[#allocation10 + $0x68] sm:$0xff] }
 0x20a   :  { %1738 = vmatpush1.bf16.msra.mxu1 %v5213_v5  ;;  %2131 = vmatpush1.bf16.msra.mxu0 %v5657_v6  ;;  %v823_v12 = vpop.f32.mrb[8].mxu0  ;;  %v6461_v61 = vcombine.high %v2176_v58, %v2180_v60  ;;  %v931_v5 = vld [vmem:[#allocation8 + $0x288] sm:$0xff]  ;;  %v6464_v11 = vcombine.low %v2176_v58, %v2180_v60 }
 0x20b   :  { %v825_v32 = vpop.f32.mrb[9].mxu0  ;;  %1739 = vmatprep.subr.bf16.mxu1 %v5222_v7  ;;  %2132 = vmatprep.subr.bf16.mxu0 %v5662_v9  ;;  %v935_v6 = vld [vmem:[#allocation8 + $0x2a8] sm:$0xff] }
 0x20c   :  { %v827_v16 = vpop.f32.mrb[10].mxu0  ;;  %8477 = vst [vmem:[#allocation24_spill] sm:$0xff] %v6461_v61  ;;  %v2184_v7 = vld [vmem:[#allocation10 + $0x88] sm:$0xff]  ;;  %8478 = vst [vmem:[#allocation25_spill] sm:$0xff] %v6464_v11 }
 0x20d   :  { %v6435_v20 = vpack.c.bf16 %v827_v16, %v823_v12  ;;  %v829_v19 = vpop.f32.mrb[11].mxu0  ;;  %v2188_v9 = vld [vmem:[#allocation10 + $0xa8] sm:$0xff]  ;;  %v5278_v12 = vcombine.high %v931_v5, %v935_v6  ;;  %v5277_v16 = vcombine.low %v931_v5, %v935_v6 }
 0x20e   :  { %v6437_v21 = vpack.c.bf16 %v829_v19, %v825_v32  ;;  %1740 = vmatpush1.bf16.msra.mxu1 %v5221_v14  ;;  %2133 = vmatpush1.bf16.msra.mxu0 %v5660_v13  ;;  %v6467_v14 = vcombine.high %v2184_v7, %v2188_v9  ;;  %v939_v13 = vld [vmem:[#allocation8 + $0x2c8] sm:$0xff]  ;;  %v6471_v17 = vcombine.low %v2184_v7, %v2188_v9 }
 0x20f   :  { %1741 = vmatprep.subr.bf16.mxu1 %v5230_v63  ;;  %2134 = vmatprep.subr.bf16.mxu0 %v5665_v15  ;;  %v943_v32 = vld [vmem:[#allocation8 + $0x2e8] sm:$0xff] }
 0x210   :  { %1712 = vmatprep.mubr.bf16.mxu1 %v6437_v21  ;;  %1858 = vmatprep.mubr.bf16.mxu0 %v6437_v21  ;;  %8479 = vst [vmem:[#allocation26_spill] sm:$0xff] %v6467_v14  ;;  %v2192_v63 = vld [vmem:[#allocation10 + $0xc8] sm:$0xff]  ;;  %8480 = vst [vmem:[#allocation27_spill] sm:$0xff] %v6471_v17  ;;  %v5286_v18 = vcombine.high %v939_v13, %v943_v32  ;;  %v5285_v26 = vcombine.low %v939_v13, %v943_v32  ;;  %v865_v13 = vld [vmem:[#allocation8 + $0x78] sm:$0xff] }
 0x211   :  { %1713 = vmatmul.mubr.bf16.gmra.mrb[8].mxu1 %v6435_v20  ;;  %1859 = vmatmul.mubr.bf16.gmra.mrb[24].mxu0 %v6435_v20  ;;  %v2196_v15 = vld [vmem:[#allocation10 + $0xe8] sm:$0xff] }
 0x212   :  { %1742 = vmatpush1.bf16.msra.mxu1 %v5229_v22  ;;  %2135 = vmatpush1.bf16.msra.mxu0 %v5663_v23  ;;  %v833_v29 = vpop.f32.mrb[12].mxu0  ;;  %v6474_v19 = vcombine.high %v2192_v63, %v2196_v15  ;;  %v947_v22 = vld [vmem:[#allocation8 + $0x308] sm:$0xff]  ;;  %v6477_v27 = vcombine.low %v2192_v63, %v2196_v15 }
 0x213   :  { %v835_v33 = vpop.f32.mrb[13].mxu0  ;;  %1743 = vmatprep.subr.bf16.mxu1 %v5238_v24  ;;  %2136 = vmatprep.subr.bf16.mxu0 %v5668_v25  ;;  %v951_v23 = vld [vmem:[#allocation8 + $0x328] sm:$0xff] }
 0x214   :  { %v837_v36 = vpop.f32.mrb[14].mxu0  ;;  %8481 = vst [vmem:[#allocation28_spill] sm:$0xff] %v6474_v19  ;;  %v2200_v24 = vld [vmem:[#allocation10 + $0x108] sm:$0xff]  ;;  %8482 = vst [vmem:[#allocation29_spill] sm:$0xff] %v6477_v27 }
 0x215   :  { %v6443_v39 = vpack.c.bf16 %v837_v36, %v833_v29  ;;  %v839_v40 = vpop.f32.mrb[15].mxu0  ;;  %v2204_v25 = vld [vmem:[#allocation10 + $0x128] sm:$0xff]  ;;  %v5294_v29 = vcombine.high %v947_v22, %v951_v23  ;;  %v5293_v36 = vcombine.low %v947_v22, %v951_v23  ;;  %v869_v23 = vld [vmem:[#allocation8 + $0x98] sm:$0xff] }
 0x216   :  { %v6445_v41 = vpack.c.bf16 %v839_v40, %v835_v33  ;;  %1744 = vmatpush1.bf16.msra.mxu1 %v5237_v30  ;;  %2137 = vmatpush1.bf16.msra.mxu0 %v5666_v31  ;;  %v6480_v30 = vcombine.high %v2200_v24, %v2204_v25  ;;  %v955_v31 = vld [vmem:[#allocation8 + $0x348] sm:$0xff]  ;;  %v6483_v37 = vcombine.low %v2200_v24, %v2204_v25  ;;  %v873_v24 = vld [vmem:[#allocation8 + $0xb8] sm:$0xff] }
 0x217   :  { %1745 = vmatprep.subr.bf16.mxu1 %v5246_v34  ;;  %2138 = vmatprep.subr.bf16.mxu0 %v5671_v35  ;;  %v959_v33 = vld [vmem:[#allocation8 + $0x368] sm:$0xff] }
 0x218   :  { %1722 = vmatprep.mubr.bf16.mxu1 %v6445_v41  ;;  %1868 = vmatprep.mubr.bf16.mxu0 %v6445_v41  ;;  %8483 = vst [vmem:[#allocation30_spill] sm:$0xff] %v6480_v30  ;;  %v2208_v34 = vld [vmem:[#allocation10 + $0x148] sm:$0xff]  ;;  %8484 = vst [vmem:[#allocation31_spill] sm:$0xff] %v6483_v37  ;;  %v5302_v38 = vcombine.high %v955_v31, %v959_v33  ;;  %v5301_v46 = vcombine.low %v955_v31, %v959_v33 }
 0x219   :  { %1723 = vmatmul.mubr.bf16.gmra.mrb[12].mxu1 %v6443_v39  ;;  %1869 = vmatmul.mubr.bf16.gmra.mrb[28].mxu0 %v6443_v39  ;;  %v2212_v35 = vld [vmem:[#allocation10 + $0x168] sm:$0xff]  ;;  %v5218_v33 = vcombine.high %v869_v23, %v873_v24 }
 0x21a   :  { %1746 = vmatpush1.bf16.msra.mxu1 %v5245_v42  ;;  %2139 = vmatpush1.bf16.msra.mxu0 %v5669_v43  ;;  %v6486_v40 = vcombine.high %v2208_v34, %v2212_v35  ;;  %v963_v42 = vld [vmem:[#allocation8 + $0x388] sm:$0xff]  ;;  %v6489_v47 = vcombine.low %v2208_v34, %v2212_v35  ;;  %v877_v35 = vld [vmem:[#allocation8 + $0xd8] sm:$0xff] }
 0x21b   :  { %1765 = vmatprep.mubr.bf16.mxu1 %v6421_v49  ;;  %1747 = vmatprep.subr.bf16.mxu1 %v5254_v44  ;;  %v967_v43 = vld [vmem:[#allocation8 + $0x3a8] sm:$0xff] }
 0x21c   :  { %2140 = vmatprep.subr.bf16.mxu0 %v5674_v45  ;;  %2158 = vmatprep.mubr.bf16.mxu0 %v8170_v0  ;;  %8485 = vst [vmem:[#allocation32_spill] sm:$0xff] %v6486_v40  ;;  %v2216_v44 = vld [vmem:[#allocation10 + $0x188] sm:$0xff]  ;;  %8486 = vst [vmem:[#allocation33_spill] sm:$0xff] %v6489_v47  ;;  %v5310_v28 = vcombine.high %v963_v42, %v967_v43  ;;  %v5309_v53 = vcombine.low %v963_v42, %v967_v43 }
 0x21d   :  { %v2220_v45 = vld [vmem:[#allocation10 + $0x1a8] sm:$0xff]  ;;  %v5217_v43 = vcombine.low %v869_v23, %v873_v24 }
 0x21e   :  { %1748 = vmatpush1.bf16.msra.mxu1 %v5253_v51  ;;  %2141 = vmatpush1.bf16.msra.mxu0 %v5672_v52  ;;  %v6492_v50 = vcombine.high %v2216_v44, %v2220_v45  ;;  %v971_v51 = vld [vmem:[#allocation8 + $0x3c8] sm:$0xff]  ;;  %v6495_v57 = vcombine.low %v2216_v44, %v2220_v45 }
 0x21f   :  { %1749 = vmatprep.subr.bf16.mxu1 %v5262_v55  ;;  %2984 = vmatprep.subr.bf16.mxu0 %v6455_v56  ;;  %v975_v52 = vld [vmem:[#allocation8 + $0x3e8] sm:$0xff] }
 0x220   :  { %8487 = vst [vmem:[#allocation34_spill] sm:$0xff] %v6492_v50  ;;  %v2224_v54 = vld [vmem:[#allocation10 + $0x1c8] sm:$0xff]  ;;  %8488 = vst [vmem:[#allocation35_spill] sm:$0xff] %v6495_v57  ;;  %v5318_v58 = vcombine.high %v971_v51, %v975_v52  ;;  %v5317_v6 = vcombine.low %v971_v51, %v975_v52  ;;  %v889_v51 = vld [vmem:[#allocation8 + $0x138] sm:$0xff] }
 0x221   :  { %2159 = vmatmul.mubr.bf16.vlgmr.msra.gmra.mrb[32].mxu0 %v2017_v62  ;;  %v2228_v55 = vld [vmem:[#allocation10 + $0x1e8] sm:$0xff]  ;;  %v853_v62 = vld [vmem:[#allocation8 + $0x18] sm:$0xff] }
 0x222   :  { %1750 = vmatpush1.bf16.msra.mxu1 %v5261_v1  ;;  %2985 = vmatpush1.bf16.msra.mxu0 %v6458_v2  ;;  %v6498_v60 = vcombine.high %v2224_v54, %v2228_v55  ;;  %v857_v1 = vld [vmem:[#allocation8 + $0x38] sm:$0xff]  ;;  %v2236_v5 = vld [vmem:[#allocation10 + $0x228] sm:$0xff]  ;;  %v6501_v7 = vcombine.low %v2224_v54, %v2228_v55 }
 0x223   :  { %1751 = vmatprep.subr.bf16.mxu1 %v5270_v3  ;;  %2986 = vmatprep.subr.bf16.mxu0 %v6461_v61  ;;  %v2232_v3 = vld [vmem:[#allocation10 + $0x208] sm:$0xff]  ;;  %v5202_v9 = vcombine.high %v853_v62, %v857_v1  ;;  %v5201_v15 = vcombine.low %v853_v62, %v857_v1  ;;  %v893_v1 = vld [vmem:[#allocation8 + $0x158] sm:$0xff] }
 0x224   :  { %3016 = vmatprep.mubr.bf16.mxu0 %v8170_v0  ;;  %8489 = vst [vmem:[#allocation36_spill] sm:$0xff] %v6498_v60  ;;  %8490 = vst [vmem:[#allocation37_spill] sm:$0xff] %v6501_v7  ;;  %v2240_v32 = vld [vmem:[#allocation10 + $0x248] sm:$0xff] }
 0x225   :  { %v2244_v63 = vld [vmem:[#allocation10 + $0x268] sm:$0xff] }
 0x226   :  { %1752 = vmatpush1.bf16.msra.mxu1 %v5269_v10  ;;  %2987 = vmatpush1.bf16.msra.mxu0 %v6464_v11  ;;  %v6504_v10 = vcombine.high %v2232_v3, %v2236_v5  ;;  %v6510_v22 = vcombine.high %v2240_v32, %v2244_v63  ;;  %v2248_v25 = vld [vmem:[#allocation10 + $0x288] sm:$0xff]  ;;  %v6515_v31 = vcombine.low %v2240_v32, %v2244_v63  ;;  %v901_v63 = vld [vmem:[#allocation8 + $0x198] sm:$0xff] }
 0x227   :  { %1753 = vmatprep.subr.bf16.mxu1 %v5278_v12  ;;  %2988 = vmatprep.subr.bf16.mxu0 %v6467_v14  ;;  %v861_v12 = vld [vmem:[#allocation8 + $0x58] sm:$0xff]  ;;  %v2260_v42 = vld [vmem:[#allocation10 + $0x2e8] sm:$0xff] }
 0x228   :  { %8491 = vst [vmem:[#allocation38_spill] sm:$0xff] %v6504_v10  ;;  %8493 = vst [vmem:[#allocation40_spill] sm:$0xff] %v6510_v22  ;;  %v2264_v52 = vld [vmem:[#allocation10 + $0x308] sm:$0xff] }
 0x229   :  { %8494 = vst [vmem:[#allocation41_spill] sm:$0xff] %v6515_v31  ;;  %v2268_v54 = vld [vmem:[#allocation10 + $0x328] sm:$0xff] }
 0x22a   :  { %1754 = vmatpush1.bf16.msra.mxu1 %v5277_v16  ;;  %2989 = vmatpush1.bf16.msra.mxu0 %v6471_v17  ;;  %v6508_v16 = vcombine.low %v2232_v3, %v2236_v5  ;;  %v6532_v62 = vcombine.high %v2264_v52, %v2268_v54  ;;  %v897_v3 = vld [vmem:[#allocation8 + $0x178] sm:$0xff]  ;;  %v2272_v5 = vld [vmem:[#allocation10 + $0x348] sm:$0xff] }
 0x22b   :  { %1755 = vmatprep.subr.bf16.mxu1 %v5286_v18  ;;  %2990 = vmatprep.subr.bf16.mxu0 %v6474_v19  ;;  %v5210_v18 = vcombine.high %v861_v12, %v865_v13  ;;  %v2284_v23 = vld [vmem:[#allocation10 + $0x3a8] sm:$0xff]  ;;  %v5241_v24 = vcombine.low %v893_v1, %v897_v3 }
 0x22c   :  { %8492 = vst [vmem:[#allocation39_spill] sm:$0xff] %v6508_v16  ;;  %8499 = vst [vmem:[#allocation46_spill] sm:$0xff] %v6532_v62 }
 0x22e   :  { %1756 = vmatpush1.bf16.msra.mxu1 %v5285_v26  ;;  %2991 = vmatpush1.bf16.msra.mxu0 %v6477_v27  ;;  %v2252_v26 = vld [vmem:[#allocation10 + $0x2a8] sm:$0xff] }
 0x22f   :  { %1757 = vmatprep.subr.bf16.mxu1 %v5294_v29  ;;  %2992 = vmatprep.subr.bf16.mxu0 %v6480_v30  ;;  %v5209_v29 = vcombine.low %v861_v12, %v865_v13  ;;  %v6518_v34 = vcombine.high %v2248_v25, %v2252_v26  ;;  %v6521_v44 = vcombine.low %v2248_v25, %v2252_v26 }
 0x230   :  { %v6535_v12 = vcombine.low %v2264_v52, %v2268_v54  ;;  %v5242_v13 = vcombine.high %v893_v1, %v897_v3  ;;  %v921_v52 = vld [vmem:[#allocation8 + $0x238] sm:$0xff] }
 0x231   :  { %8495 = vst [vmem:[#allocation42_spill] sm:$0xff] %v6518_v34  ;;  %8496 = vst [vmem:[#allocation43_spill] sm:$0xff] %v6521_v44  ;;  %v2170_v54 = vld [vmem:[#allocation10 + $0x18] sm:$0xff] }
 0x232   :  { %1758 = vmatpush1.bf16.msra.mxu1 %v5293_v36  ;;  %2993 = vmatpush1.bf16.msra.mxu0 %v6483_v37  ;;  %v881_v36 = vld [vmem:[#allocation8 + $0xf8] sm:$0xff]  ;;  %8500 = vst [vmem:[#allocation47_spill] sm:$0xff] %v6535_v12 }
 0x233   :  { %1759 = vmatprep.subr.bf16.mxu1 %v5302_v38  ;;  %2994 = vmatprep.subr.bf16.mxu0 %v6486_v40  ;;  %v2256_v38 = vld [vmem:[#allocation10 + $0x2c8] sm:$0xff]  ;;  %v5226_v45 = vcombine.high %v877_v35, %v881_v36  ;;  %v5225_v55 = vcombine.low %v877_v35, %v881_v36  ;;  %v913_v35 = vld [vmem:[#allocation8 + $0x1f8] sm:$0xff] }
 0x234   :  { %v2288_v36 = vld [vmem:[#allocation10 + $0x3c8] sm:$0xff] }
 0x236   :  { %1760 = vmatpush1.bf16.msra.mxu1 %v5301_v46  ;;  %2995 = vmatpush1.bf16.msra.mxu0 %v6489_v47  ;;  %v6524_v46 = vcombine.high %v2256_v38, %v2260_v42 }
 0x237   :  { %1761 = vmatprep.subr.bf16.mxu1 %v5310_v28  ;;  %2996 = vmatprep.subr.bf16.mxu0 %v6492_v50  ;;  %v885_v28 = vld [vmem:[#allocation8 + $0x118] sm:$0xff] }
 0x238   :  { %8497 = vst [vmem:[#allocation44_spill] sm:$0xff] %v6524_v46 }
 0x23a   :  { %1762 = vmatpush1.bf16.msra.mxu1 %v5309_v53  ;;  %2997 = vmatpush1.bf16.msra.mxu0 %v6495_v57  ;;  %v6529_v53 = vcombine.low %v2256_v38, %v2260_v42  ;;  %v2292_v38 = vld [vmem:[#allocation10 + $0x3e8] sm:$0xff] }
 0x23b   :  { %1763 = vmatprep.subr.bf16.mxu1 %v5318_v58  ;;  %2998 = vmatprep.subr.bf16.mxu0 %v6498_v60  ;;  %v5234_v58 = vcombine.high %v885_v28, %v889_v51  ;;  %v6557_v1 = vcombine.low %v2288_v36, %v2292_v38 }
 0x23c   :  { %8498 = vst [vmem:[#allocation45_spill] sm:$0xff] %v6529_v53 }
 0x23d   :  { %8506 = vst [vmem:[#allocation53_spill] sm:$0xff] %v6557_v1 }
 0x23e   :  { %1764 = vmatpush1.bf16.msra.mxu1 %v5317_v6  ;;  %2999 = vmatpush1.bf16.msra.mxu0 %v6501_v7  ;;  %v2276_v6 = vld [vmem:[#allocation10 + $0x368] sm:$0xff] }
 0x23f   :  { %1879 = vmatprep.subr.bf16.mxu1 %v5202_v9  ;;  %3000 = vmatprep.subr.bf16.mxu0 %v6504_v10  ;;  %v5233_v9 = vcombine.low %v885_v28, %v889_v51  ;;  %v6538_v32 = vcombine.high %v2272_v5, %v2276_v6  ;;  %v6543_v25 = vcombine.low %v2272_v5, %v2276_v6  ;;  %v917_v51 = vld [vmem:[#allocation8 + $0x218] sm:$0xff] }
 0x240   :  { %v6552_v28 = vcombine.high %v2288_v36, %v2292_v38  ;;  %v5266_v3 = vcombine.high %v917_v51, %v921_v52  ;;  %v925_v6 = vld [vmem:[#allocation8 + $0x258] sm:$0xff] }
 0x241   :  { %1766 = vmatmul.mubr.bf16.vlgmr.msra.gmra.mrb[16].mxu1 %v6419_v48  ;;  %8501 = vst [vmem:[#allocation48_spill] sm:$0xff] %v6538_v32  ;;  %8502 = vst [vmem:[#allocation49_spill] sm:$0xff] %v6543_v25 }
 0x242   :  { %1775 = vmatprep.mubr.bf16.mxu1 %v6429_v4  ;;  %1880 = vmatpush1.bf16.msra.mxu1 %v5201_v15  ;;  %v905_v15 = vld [vmem:[#allocation8 + $0x1b8] sm:$0xff]  ;;  %8505 = vst [vmem:[#allocation52_spill] sm:$0xff] %v6552_v28 }
 0x243   :  { %3001 = vmatpush1.bf16.msra.mxu0 %v6508_v16  ;;  %1881 = vmatprep.subr.bf16.mxu1 %v5210_v18  ;;  %v2280_v18 = vld [vmem:[#allocation10 + $0x388] sm:$0xff]  ;;  %v5250_v26 = vcombine.high %v901_v63, %v905_v15  ;;  %v5249_v42 = vcombine.low %v901_v63, %v905_v15  ;;  %v2182_v63 = vld [vmem:[#allocation10 + $0x78] sm:$0xff]  ;;  %v5265_v15 = vcombine.low %v917_v51, %v921_v52 }
 0x244   :  { %3002 = vmatprep.subr.bf16.mxu0 %v6510_v22  ;;  %v941_v51 = vld [vmem:[#allocation8 + $0x2d8] sm:$0xff] }
 0x245   :  { %v945_v52 = vld [vmem:[#allocation8 + $0x2f8] sm:$0xff] }
 0x246   :  { %1882 = vmatpush1.bf16.msra.mxu1 %v5209_v29  ;;  %v6546_v29 = vcombine.high %v2280_v18, %v2284_v23  ;;  %v5289_v8 = vcombine.low %v941_v51, %v945_v52 }
 0x247   :  { %3003 = vmatpush1.bf16.msra.mxu0 %v6515_v31  ;;  %1883 = vmatprep.subr.bf16.mxu1 %v5218_v33  ;;  %v909_v33 = vld [vmem:[#allocation8 + $0x1d8] sm:$0xff] }
 0x248   :  { %3004 = vmatprep.subr.bf16.mxu0 %v6518_v34  ;;  %8503 = vst [vmem:[#allocation50_spill] sm:$0xff] %v6546_v29 }
 0x249   :  { %1776 = vmatmul.mubr.bf16.gmra.mrb[20].mxu1 %v6427_v59 }
 0x24a   :  { %1785 = vmatprep.mubr.bf16.mxu1 %v6437_v21  ;;  %1884 = vmatpush1.bf16.msra.mxu1 %v5217_v43  ;;  %v6549_v43 = vcombine.low %v2280_v18, %v2284_v23 }
 0x24b   :  { %3005 = vmatpush1.bf16.msra.mxu0 %v6521_v44  ;;  %1885 = vmatprep.subr.bf16.mxu1 %v5226_v45  ;;  %v5258_v45 = vcombine.high %v909_v33, %v913_v35 }
 0x24c   :  { %3006 = vmatprep.subr.bf16.mxu0 %v6524_v46  ;;  %8504 = vst [vmem:[#allocation51_spill] sm:$0xff] %v6549_v43 }
 0x24e   :  { %1886 = vmatpush1.bf16.msra.mxu1 %v5225_v55  ;;  %v2174_v55 = vld [vmem:[#allocation10 + $0x38] sm:$0xff] }
 0x24f   :  { %3007 = vmatpush1.bf16.msra.mxu0 %v6529_v53  ;;  %1887 = vmatprep.subr.bf16.mxu1 %v5234_v58  ;;  %v5257_v58 = vcombine.low %v909_v33, %v913_v35  ;;  %v6560_v5 = vcombine.high %v2170_v54, %v2174_v55  ;;  %v2186_v33 = vld [vmem:[#allocation10 + $0x98] sm:$0xff] }
 0x250   :  { %3008 = vmatprep.subr.bf16.mxu0 %v6532_v62  ;;  %v2190_v35 = vld [vmem:[#allocation10 + $0xb8] sm:$0xff] }
 0x251   :  { %1786 = vmatmul.mubr.bf16.gmra.mrb[24].mxu1 %v6435_v20  ;;  %8507 = vst [vmem:[#allocation54_spill] sm:$0xff] %v6560_v5 }
 0x252   :  { %1795 = vmatprep.mubr.bf16.mxu1 %v6445_v41  ;;  %1888 = vmatpush1.bf16.msra.mxu1 %v5233_v9  ;;  %v929_v9 = vld [vmem:[#allocation8 + $0x278] sm:$0xff] }
 0x253   :  { %3009 = vmatpush1.bf16.msra.mxu0 %v6535_v12  ;;  %1889 = vmatprep.subr.bf16.mxu1 %v5242_v13  ;;  %v2178_v13 = vld [vmem:[#allocation10 + $0x58] sm:$0xff]  ;;  %v5274_v18 = vcombine.high %v925_v6, %v929_v9  ;;  %v5273_v36 = vcombine.low %v925_v6, %v929_v9  ;;  %v5290_v6 = vcombine.high %v941_v51, %v945_v52 }
 0x254   :  { %3010 = vmatprep.subr.bf16.mxu0 %v6538_v32  ;;  %v6566_v23 = vcombine.high %v2178_v13, %v2182_v63  ;;  %v6570_v38 = vcombine.low %v2178_v13, %v2182_v63  ;;  %v949_v13 = vld [vmem:[#allocation8 + $0x318] sm:$0xff] }
 0x255   :  { %v953_v63 = vld [vmem:[#allocation8 + $0x338] sm:$0xff] }
 0x256   :  { %1890 = vmatpush1.bf16.msra.mxu1 %v5241_v24  ;;  %8509 = vst [vmem:[#allocation56_spill] sm:$0xff] %v6566_v23  ;;  %v933_v24 = vld [vmem:[#allocation8 + $0x298] sm:$0xff]  ;;  %8510 = vst [vmem:[#allocation57_spill] sm:$0xff] %v6570_v38 }
 0x257   :  { %3011 = vmatpush1.bf16.msra.mxu0 %v6543_v25  ;;  %1891 = vmatprep.subr.bf16.mxu1 %v5250_v26  ;;  %v937_v26 = vld [vmem:[#allocation8 + $0x2b8] sm:$0xff] }
 0x258   :  { %3012 = vmatprep.subr.bf16.mxu0 %v6546_v29 }
 0x259   :  { %1796 = vmatmul.mubr.bf16.gmra.mrb[28].mxu1 %v6443_v39 }
 0x25a   :  { %1892 = vmatpush1.bf16.msra.mxu1 %v5249_v42  ;;  %1911 = vmatprep.mubr.bf16.mxu1 %v6421_v49  ;;  %v6563_v49 = vcombine.low %v2170_v54, %v2174_v55  ;;  %v5282_v42 = vcombine.high %v933_v24, %v937_v26  ;;  %v2194_v54 = vld [vmem:[#allocation10 + $0xd8] sm:$0xff] }
 0x25b   :  { %3013 = vmatpush1.bf16.msra.mxu0 %v6549_v43  ;;  %1893 = vmatprep.subr.bf16.mxu1 %v5258_v45  ;;  %v6573_v45 = vcombine.high %v2186_v33, %v2190_v35  ;;  %v2198_v55 = vld [vmem:[#allocation10 + $0xf8] sm:$0xff] }
 0x25c   :  { %3014 = vmatprep.subr.bf16.mxu0 %v6552_v28  ;;  %8508 = vst [vmem:[#allocation55_spill] sm:$0xff] %v6563_v49  ;;  %v6580_v9 = vcombine.high %v2194_v54, %v2198_v55 }
 0x25d   :  { %8511 = vst [vmem:[#allocation58_spill] sm:$0xff] %v6573_v45 }
 0x25e   :  { %1894 = vmatpush1.bf16.msra.mxu1 %v5257_v58  ;;  %v5281_v58 = vcombine.low %v933_v24, %v937_v26  ;;  %8513 = vst [vmem:[#allocation60_spill] sm:$0xff] %v6580_v9  ;;  %v6583_v24 = vcombine.low %v2194_v54, %v2198_v55  ;;  %v5298_v26 = vcombine.high %v949_v13, %v953_v63  ;;  %v965_v55 = vld [vmem:[#allocation8 + $0x398] sm:$0xff] }
 0x25f   :  { %3015 = vmatpush1.bf16.msra.mxu0 %v6557_v1  ;;  %1895 = vmatprep.subr.bf16.mxu1 %v5266_v3  ;;  %v6577_v3 = vcombine.low %v2186_v33, %v2190_v35  ;;  %v957_v35 = vld [vmem:[#allocation8 + $0x358] sm:$0xff] }
 0x260   :  { %3066 = vmatprep.subr.bf16.mxu0 %v6560_v5  ;;  %8514 = vst [vmem:[#allocation61_spill] sm:$0xff] %v6583_v24 }
 0x261   :  { %8512 = vst [vmem:[#allocation59_spill] sm:$0xff] %v6577_v3 }
 0x262   :  { %3017 = vmatmul.mubr.bf16.vlgmr.msra.gmra.mrb[36].mxu0 %v8170_v0  ;;  %1896 = vmatpush1.bf16.msra.mxu1 %v5265_v15  ;;  %v2202_v15 = vld [vmem:[#allocation10 + $0x118] sm:$0xff] }
 0x263   :  { %3067 = vmatpush1.bf16.msra.mxu0 %v6563_v49  ;;  %1897 = vmatprep.subr.bf16.mxu1 %v5274_v18  ;;  %v2206_v18 = vld [vmem:[#allocation10 + $0x138] sm:$0xff] }
 0x264   :  { %3068 = vmatprep.subr.bf16.mxu0 %v6566_v23  ;;  %3098 = vmatprep.mubr.bf16.mxu0 %v8170_v0  ;;  %v6586_v33 = vcombine.high %v2202_v15, %v2206_v18  ;;  %v2214_v0 = vld [vmem:[#allocation10 + $0x178] sm:$0xff]  ;;  %v6589_v51 = vcombine.low %v2202_v15, %v2206_v18 }
 0x265   :  { %v973_v15 = vld [vmem:[#allocation8 + $0x3d8] sm:$0xff] }
 0x266   :  { %1898 = vmatpush1.bf16.msra.mxu1 %v5273_v36  ;;  %8515 = vst [vmem:[#allocation62_spill] sm:$0xff] %v6586_v33  ;;  %v961_v36 = vld [vmem:[#allocation8 + $0x378] sm:$0xff]  ;;  %8516 = vst [vmem:[#allocation63_spill] sm:$0xff] %v6589_v51 }
 0x267   :  { %3069 = vmatpush1.bf16.msra.mxu0 %v6570_v38  ;;  %1899 = vmatprep.subr.bf16.mxu1 %v5282_v42  ;;  %v2210_v42 = vld [vmem:[#allocation10 + $0x158] sm:$0xff]  ;;  %v5306_v52 = vcombine.high %v957_v35, %v961_v36 }
 0x268   :  { %3070 = vmatprep.subr.bf16.mxu0 %v6573_v45  ;;  %v5297_v45 = vcombine.low %v949_v13, %v953_v63  ;;  %v6592_v54 = vcombine.high %v2210_v42, %v2214_v0  ;;  %v977_v18 = vld [vmem:[#allocation8 + $0x3f8] sm:$0xff] }
 0x269   :  { %v2282_v38 = vld [vmem:[#allocation10 + $0x398] sm:$0xff] }
 0x26a   :  { %1900 = vmatpush1.bf16.msra.mxu1 %v5281_v58  ;;  %8517 = vst [vmem:[#allocation64_spill] sm:$0xff] %v6592_v54  ;;  %v969_v58 = vld [vmem:[#allocation8 + $0x3b8] sm:$0xff] }
 0x26b   :  { %3071 = vmatpush1.bf16.msra.mxu0 %v6577_v3  ;;  %1901 = vmatprep.subr.bf16.mxu1 %v5290_v6  ;;  %v2218_v6 = vld [vmem:[#allocation10 + $0x198] sm:$0xff]  ;;  %v5305_v3 = vcombine.low %v957_v35, %v961_v36  ;;  %v5314_v13 = vcombine.high %v965_v55, %v969_v58  ;;  %v5322_v35 = vcombine.high %v973_v15, %v977_v18  ;;  %v2167_v36 = vld [vmem:[#allocation10] sm:$0xff] }
 0x26c   :  { %3072 = vmatprep.subr.bf16.mxu0 %v6580_v9  ;;  %v2222_v9 = vld [vmem:[#allocation10 + $0x1b8] sm:$0xff] }
 0x26d   :  { %v6598_v63 = vcombine.high %v2218_v6, %v2222_v9  ;;  %v2286_v23 = vld [vmem:[#allocation10 + $0x3b8] sm:$0xff] }
 0x26e   :  { %1902 = vmatpush1.bf16.msra.mxu1 %v5289_v8  ;;  %v6595_v8 = vcombine.low %v2210_v42, %v2214_v0  ;;  %v2171_v42 = vld [vmem:[#allocation10 + $0x20] sm:$0xff] }
 0x26f   :  { %3073 = vmatpush1.bf16.msra.mxu0 %v6583_v24  ;;  %1903 = vmatprep.subr.bf16.mxu1 %v5298_v26  ;;  %8519 = vst [vmem:[#allocation66_spill] sm:$0xff] %v6598_v63  ;;  %v2226_v26 = vld [vmem:[#allocation10 + $0x1d8] sm:$0xff]  ;;  %v5313_v24 = vcombine.low %v965_v55, %v969_v58  ;;  %v6609_v55 = vcombine.high %v2167_v36, %v2171_v42  ;;  %v2175_v58 = vld [vmem:[#allocation10 + $0x40] sm:$0xff] }
 0x270   :  { %3074 = vmatprep.subr.bf16.mxu0 %v6586_v33  ;;  %8518 = vst [vmem:[#allocation65_spill] sm:$0xff] %v6595_v8  ;;  %v2230_v33 = vld [vmem:[#allocation10 + $0x1f8] sm:$0xff] }
 0x271   :  { %v6604_v0 = vcombine.high %v2226_v26, %v2230_v33  ;;  %8523 = vst [vmem:[#allocation70_spill] sm:$0xff] %v6609_v55 }
 0x272   :  { %1904 = vmatpush1.bf16.msra.mxu1 %v5297_v45  ;;  %v6601_v45 = vcombine.low %v2218_v6, %v2222_v9  ;;  %v2179_v6 = vld [vmem:[#allocation10 + $0x60] sm:$0xff] }
 0x273   :  { %3075 = vmatpush1.bf16.msra.mxu0 %v6589_v51  ;;  %1905 = vmatprep.subr.bf16.mxu1 %v5306_v52  ;;  %8521 = vst [vmem:[#allocation68_spill] sm:$0xff] %v6604_v0  ;;  %v2234_v52 = vld [vmem:[#allocation10 + $0x218] sm:$0xff]  ;;  %v5321_v51 = vcombine.low %v973_v15, %v977_v18  ;;  %v2183_v18 = vld [vmem:[#allocation10 + $0x80] sm:$0xff] }
 0x274   :  { %3076 = vmatprep.subr.bf16.mxu0 %v6592_v54  ;;  %8520 = vst [vmem:[#allocation67_spill] sm:$0xff] %v6601_v45  ;;  %v2238_v54 = vld [vmem:[#allocation10 + $0x238] sm:$0xff] }
 0x275   :  { %v6612_v9 = vcombine.high %v2234_v52, %v2238_v54 }
 0x276   :  { %1906 = vmatpush1.bf16.msra.mxu1 %v5305_v3  ;;  %v6607_v3 = vcombine.low %v2226_v26, %v2230_v33  ;;  %v6620_v33 = vcombine.high %v2175_v58, %v2179_v6  ;;  %v2187_v26 = vld [vmem:[#allocation10 + $0xa0] sm:$0xff] }
 0x277   :  { %3077 = vmatpush1.bf16.msra.mxu0 %v6595_v8  ;;  %1907 = vmatprep.subr.bf16.mxu1 %v5314_v13  ;;  %8524 = vst [vmem:[#allocation71_spill] sm:$0xff] %v6612_v9  ;;  %v2242_v13 = vld [vmem:[#allocation10 + $0x258] sm:$0xff]  ;;  %v6614_v8 = vcombine.low %v2167_v36, %v2171_v42  ;;  %v6628_v36 = vcombine.low %v2175_v58, %v2179_v6 }
 0x278   :  { %3078 = vmatprep.subr.bf16.mxu0 %v6598_v63  ;;  %8522 = vst [vmem:[#allocation69_spill] sm:$0xff] %v6607_v3  ;;  %v2246_v63 = vld [vmem:[#allocation10 + $0x278] sm:$0xff]  ;;  %8527 = vst [vmem:[#allocation74_spill] sm:$0xff] %v6620_v33  ;;  %v6634_v42 = vcombine.high %v2183_v18, %v2187_v26  ;;  %v6640_v58 = vcombine.low %v2183_v18, %v2187_v26 }
 0x279   :  { %8525 = vst [vmem:[#allocation72_spill] sm:$0xff] %v6614_v8  ;;  %v6623_v15 = vcombine.high %v2242_v13, %v2246_v63  ;;  %8529 = vst [vmem:[#allocation76_spill] sm:$0xff] %v6628_v36 }
 0x27a   :  { %1908 = vmatpush1.bf16.msra.mxu1 %v5313_v24  ;;  %v6618_v24 = vcombine.low %v2234_v52, %v2238_v54  ;;  %v6632_v54 = vcombine.low %v2242_v13, %v2246_v63  ;;  %8531 = vst [vmem:[#allocation78_spill] sm:$0xff] %v6634_v42  ;;  %8533 = vst [vmem:[#allocation80_spill] sm:$0xff] %v6640_v58 }
 0x27b   :  { %3079 = vmatpush1.bf16.msra.mxu0 %v6601_v45  ;;  %1909 = vmatprep.subr.bf16.mxu1 %v5322_v35  ;;  %8528 = vst [vmem:[#allocation75_spill] sm:$0xff] %v6623_v15  ;;  %v2250_v35 = vld [vmem:[#allocation10 + $0x298] sm:$0xff] }
 0x27c   :  { %3080 = vmatprep.subr.bf16.mxu0 %v6604_v0  ;;  %8526 = vst [vmem:[#allocation73_spill] sm:$0xff] %v6618_v24  ;;  %8530 = vst [vmem:[#allocation77_spill] sm:$0xff] %v6632_v54  ;;  %v2266_v0 = vld [vmem:[#allocation10 + $0x318] sm:$0xff] }
 0x27d   :  { %v2270_v45 = vld [vmem:[#allocation10 + $0x338] sm:$0xff] }
 0x27e   :  { %1910 = vmatpush1.bf16.msra.mxu1 %v5321_v51  ;;  %v2254_v51 = vld [vmem:[#allocation10 + $0x2b8] sm:$0xff] }
 0x27f   :  { %3081 = vmatpush1.bf16.msra.mxu0 %v6607_v3  ;;  %2943 = vmatprep.subr.bf16.mxu1 %v6609_v55  ;;  %v6637_v52 = vcombine.high %v2250_v35, %v2254_v51  ;;  %v2258_v3 = vld [vmem:[#allocation10 + $0x2d8] sm:$0xff]  ;;  %v6644_v63 = vcombine.low %v2250_v35, %v2254_v51  ;;  %v6663_v51 = vcombine.high %v2266_v0, %v2270_v45 }
 0x280   :  { %3082 = vmatprep.subr.bf16.mxu0 %v6612_v9  ;;  %v2195_v9 = vld [vmem:[#allocation10 + $0xe0] sm:$0xff] }
 0x281   :  { %1912 = vmatmul.mubr.bf16.vlgmr.msra.gmra.mrb[32].mxu1 %v6419_v48  ;;  %8532 = vst [vmem:[#allocation79_spill] sm:$0xff] %v6637_v52  ;;  %v2191_v48 = vld [vmem:[#allocation10 + $0xc0] sm:$0xff]  ;;  %8534 = vst [vmem:[#allocation81_spill] sm:$0xff] %v6644_v63 }
 0x282   :  { %1921 = vmatprep.mubr.bf16.mxu1 %v6429_v4  ;;  %2944 = vmatpush1.bf16.msra.mxu1 %v6614_v8  ;;  %v2262_v4 = vld [vmem:[#allocation10 + $0x2f8] sm:$0xff]  ;;  %v6646_v6 = vcombine.high %v2191_v48, %v2195_v9  ;;  %v6654_v18 = vcombine.low %v2191_v48, %v2195_v9  ;;  %8540 = vst [vmem:[#allocation87_spill] sm:$0xff] %v6663_v51 }
 0x283   :  { %3083 = vmatpush1.bf16.msra.mxu0 %v6618_v24  ;;  %2945 = vmatprep.subr.bf16.mxu1 %v6620_v33  ;;  %v6649_v13 = vcombine.high %v2258_v3, %v2262_v4  ;;  %v2203_v24 = vld [vmem:[#allocation10 + $0x120] sm:$0xff]  ;;  %v6658_v26 = vcombine.low %v2258_v3, %v2262_v4  ;;  %v6670_v3 = vcombine.low %v2266_v0, %v2270_v45 }
 0x284   :  { %3084 = vmatprep.subr.bf16.mxu0 %v6623_v15  ;;  %8535 = vst [vmem:[#allocation82_spill] sm:$0xff] %v6646_v6  ;;  %v2199_v15 = vld [vmem:[#allocation10 + $0x100] sm:$0xff]  ;;  %8537 = vst [vmem:[#allocation84_spill] sm:$0xff] %v6654_v18 }
 0x285   :  { %8536 = vst [vmem:[#allocation83_spill] sm:$0xff] %v6649_v13  ;;  %8538 = vst [vmem:[#allocation85_spill] sm:$0xff] %v6658_v26  ;;  %v6660_v35 = vcombine.high %v2199_v15, %v2203_v24  ;;  %v6666_v9 = vcombine.low %v2199_v15, %v2203_v24  ;;  %v6689_v15 = vcombine.high %v2282_v38, %v2286_v23 }
 0x286   :  { %2946 = vmatpush1.bf16.msra.mxu1 %v6628_v36  ;;  %8542 = vst [vmem:[#allocation89_spill] sm:$0xff] %v6670_v3 }
 0x287   :  { %3085 = vmatpush1.bf16.msra.mxu0 %v6632_v54  ;;  %2947 = vmatprep.subr.bf16.mxu1 %v6634_v42  ;;  %8539 = vst [vmem:[#allocation86_spill] sm:$0xff] %v6660_v35  ;;  %v2274_v54 = vld [vmem:[#allocation10 + $0x358] sm:$0xff]  ;;  %8541 = vst [vmem:[#allocation88_spill] sm:$0xff] %v6666_v9 }
 0x288   :  { %3086 = vmatprep.subr.bf16.mxu0 %v6637_v52  ;;  %v2211_v52 = vld [vmem:[#allocation10 + $0x160] sm:$0xff]  ;;  %8548 = vst [vmem:[#allocation95_spill] sm:$0xff] %v6689_v15 }
 0x289   :  { %1922 = vmatmul.mubr.bf16.gmra.mrb[36].mxu1 %v6427_v59  ;;  %v2207_v59 = vld [vmem:[#allocation10 + $0x140] sm:$0xff] }
 0x28a   :  { %1931 = vmatprep.mubr.bf16.mxu1 %v6437_v21  ;;  %2948 = vmatpush1.bf16.msra.mxu1 %v6640_v58  ;;  %v2278_v21 = vld [vmem:[#allocation10 + $0x378] sm:$0xff]  ;;  %v6672_v48 = vcombine.high %v2207_v59, %v2211_v52  ;;  %v6680_v24 = vcombine.low %v2207_v59, %v2211_v52 }
 0x28b   :  { %3087 = vmatpush1.bf16.msra.mxu0 %v6644_v63  ;;  %2949 = vmatprep.subr.bf16.mxu1 %v6646_v6  ;;  %v6675_v4 = vcombine.high %v2274_v54, %v2278_v21  ;;  %v2219_v63 = vld [vmem:[#allocation10 + $0x1a0] sm:$0xff]  ;;  %v6684_v45 = vcombine.low %v2274_v54, %v2278_v21  ;;  %v6696_v54 = vcombine.low %v2282_v38, %v2286_v23 }
 0x28c   :  { %3088 = vmatprep.subr.bf16.mxu0 %v6649_v13  ;;  %8543 = vst [vmem:[#allocation90_spill] sm:$0xff] %v6672_v48  ;;  %v2215_v13 = vld [vmem:[#allocation10 + $0x180] sm:$0xff]  ;;  %8545 = vst [vmem:[#allocation92_spill] sm:$0xff] %v6680_v24 }
 0x28d   :  { %8544 = vst [vmem:[#allocation91_spill] sm:$0xff] %v6675_v4  ;;  %8546 = vst [vmem:[#allocation93_spill] sm:$0xff] %v6684_v45  ;;  %v6686_v0 = vcombine.high %v2215_v13, %v2219_v63  ;;  %v6692_v52 = vcombine.low %v2215_v13, %v2219_v63  ;;  %v8554_v13 = vmov 0  }
 0x28e   :  { %2950 = vmatpush1.bf16.msra.mxu1 %v6654_v18  ;;  %8550 = vst [vmem:[#allocation97_spill] sm:$0xff] %v6696_v54 }
 0x28f   :  { %3089 = vmatpush1.bf16.msra.mxu0 %v6658_v26  ;;  %2951 = vmatprep.subr.bf16.mxu1 %v6660_v35  ;;  %8547 = vst [vmem:[#allocation94_spill] sm:$0xff] %v6686_v0  ;;  %v2290_v26 = vld [vmem:[#allocation10 + $0x3d8] sm:$0xff]  ;;  %8549 = vst [vmem:[#allocation96_spill] sm:$0xff] %v6692_v52 }
 0x290   :  { %3090 = vmatprep.subr.bf16.mxu0 %v6663_v51  ;;  %v2227_v51 = vld [vmem:[#allocation10 + $0x1e0] sm:$0xff] }
 0x291   :  { %1932 = vmatmul.mubr.bf16.gmra.mrb[40].mxu1 %v6435_v20  ;;  %v2223_v20 = vld [vmem:[#allocation10 + $0x1c0] sm:$0xff] }
 0x292   :  { %1941 = vmatprep.mubr.bf16.mxu1 %v6445_v41  ;;  %2952 = vmatpush1.bf16.msra.mxu1 %v6666_v9  ;;  %v2294_v41 = vld [vmem:[#allocation10 + $0x3f8] sm:$0xff]  ;;  %v6698_v59 = vcombine.high %v2223_v20, %v2227_v51  ;;  %v6705_v63 = vcombine.low %v2223_v20, %v2227_v51  ;;  %v2247_v20 = vld [vmem:[#allocation10 + $0x280] sm:$0xff] }
 0x293   :  { %3091 = vmatpush1.bf16.msra.mxu0 %v6670_v3  ;;  %2953 = vmatprep.subr.bf16.mxu1 %v6672_v48  ;;  %v6701_v21 = vcombine.high %v2290_v26, %v2294_v41  ;;  %v2235_v3 = vld [vmem:[#allocation10 + $0x220] sm:$0xff]  ;;  %v6710_v23 = vcombine.low %v2290_v26, %v2294_v41 }
 0x294   :  { %3092 = vmatprep.subr.bf16.mxu0 %v6675_v4  ;;  %8551 = vst [vmem:[#allocation98_spill] sm:$0xff] %v6698_v59  ;;  %v2231_v4 = vld [vmem:[#allocation10 + $0x200] sm:$0xff]  ;;  %8553 = vst [vmem:[#allocation100_spill] sm:$0xff] %v6705_v63 }
 0x295   :  { %8552 = vst [vmem:[#allocation99_spill] sm:$0xff] %v6701_v21  ;;  %8555 = vst [vmem:[#allocation101_spill] sm:$0xff] %v6710_v23  ;;  %v6712_v38 = vcombine.high %v2231_v4, %v2235_v3  ;;  %v2259_v41 = vld [vmem:[#allocation10 + $0x2e0] sm:$0xff] }
 0x296   :  { %2954 = vmatpush1.bf16.msra.mxu1 %v6680_v24 }
 0x297   :  { %3093 = vmatpush1.bf16.msra.mxu0 %v6684_v45  ;;  %2955 = vmatprep.subr.bf16.mxu1 %v6686_v0  ;;  %8556 = vst [vmem:[#allocation102_spill] sm:$0xff] %v6712_v38  ;;  %v2243_v45 = vld [vmem:[#allocation10 + $0x260] sm:$0xff] }
 0x298   :  { %3094 = vmatprep.subr.bf16.mxu0 %v6689_v15  ;;  %v2239_v15 = vld [vmem:[#allocation10 + $0x240] sm:$0xff] }
 0x299   :  { %1942 = vmatmul.mubr.bf16.gmra.mrb[44].mxu1 %v6443_v39  ;;  %v6716_v39 = vcombine.low %v2231_v4, %v2235_v3  ;;  %v6720_v51 = vcombine.high %v2239_v15, %v2243_v45  ;;  %v6725_v26 = vcombine.low %v2239_v15, %v2243_v45  ;;  %v2255_v4 = vld [vmem:[#allocation10 + $0x2c0] sm:$0xff] }
 0x29a   :  { %2956 = vmatpush1.bf16.msra.mxu1 %v6692_v52  ;;  %2975 = vmatprep.mubr.bf16.mxu1 %v8554_v13  ;;  %v2263_v45 = vld [vmem:[#allocation10 + $0x300] sm:$0xff] }
 0x29b   :  { %3095 = vmatpush1.bf16.msra.mxu0 %v6696_v54  ;;  %2957 = vmatprep.subr.bf16.mxu1 %v6698_v59  ;;  %8557 = vst [vmem:[#allocation103_spill] sm:$0xff] %v6716_v39  ;;  %8558 = vst [vmem:[#allocation104_spill] sm:$0xff] %v6720_v51  ;;  %v2251_v54 = vld [vmem:[#allocation10 + $0x2a0] sm:$0xff] }
 0x29c   :  { %3096 = vmatprep.subr.bf16.mxu0 %v6701_v21  ;;  %8559 = vst [vmem:[#allocation105_spill] sm:$0xff] %v6725_v26  ;;  %v6728_v3 = vcombine.high %v2247_v20, %v2251_v54  ;;  %v2267_v15 = vld [vmem:[#allocation10 + $0x320] sm:$0xff]  ;;  %v8581_v21 = vlaneseq }
 0x29e   :  { %2958 = vmatpush1.bf16.msra.mxu1 %v6705_v63  ;;  %8560 = vst [vmem:[#allocation106_spill] sm:$0xff] %v6728_v3 }
 0x29f   :  { %3097 = vmatpush1.bf16.msra.mxu0 %v6710_v23  ;;  %2959 = vmatprep.subr.bf16.mxu1 %v6712_v38  ;;  %v6733_v23 = vcombine.low %v2247_v20, %v2251_v54  ;;  %v2271_v54 = vld [vmem:[#allocation10 + $0x340] sm:$0xff] }
 0x2a0   :  { %3214 = vmatprep.subr.bf16.mxu0 %v6455_v56  ;;  %v6736_v56 = vcombine.high %v2255_v4, %v2259_v41  ;;  %v2275_v20 = vld [vmem:[#allocation10 + $0x360] sm:$0xff] }
 0x2a1   :  { %8561 = vst [vmem:[#allocation107_spill] sm:$0xff] %v6733_v23 }
 0x2a2   :  { %3099 = vmatmul.mubr.bf16.vlgmr.msra.gmra.mrb[40].mxu0 %v8554_v13  ;;  %2960 = vmatpush1.bf16.msra.mxu1 %v6716_v39  ;;  %8562 = vst [vmem:[#allocation108_spill] sm:$0xff] %v6736_v56 }
 0x2a3   :  { %2961 = vmatprep.subr.bf16.mxu1 %v6720_v51  ;;  %3215 = vmatpush1.bf16.msra.mxu0 %v6458_v2  ;;  %v6741_v2 = vcombine.low %v2255_v4, %v2259_v41  ;;  %v2279_v4 = vld [vmem:[#allocation10 + $0x380] sm:$0xff] }
 0x2a4   :  { %3216 = vmatprep.subr.bf16.mxu0 %v6461_v61  ;;  %v6744_v61 = vcombine.high %v2263_v45, %v2267_v15  ;;  %v2283_v41 = vld [vmem:[#allocation10 + $0x3a0] sm:$0xff] }
 0x2a5   :  { %8563 = vst [vmem:[#allocation109_spill] sm:$0xff] %v6741_v2 }
 0x2a6   :  { %2962 = vmatpush1.bf16.msra.mxu1 %v6725_v26  ;;  %8564 = vst [vmem:[#allocation110_spill] sm:$0xff] %v6744_v61 }
 0x2a7   :  { %2963 = vmatprep.subr.bf16.mxu1 %v6728_v3  ;;  %3217 = vmatpush1.bf16.msra.mxu0 %v6464_v11  ;;  %v6749_v11 = vcombine.low %v2263_v45, %v2267_v15  ;;  %v2287_v45 = vld [vmem:[#allocation10 + $0x3c0] sm:$0xff] }
 0x2a8   :  { %3218 = vmatprep.subr.bf16.mxu0 %v6467_v14  ;;  %v6752_v14 = vcombine.high %v2271_v54, %v2275_v20  ;;  %v2291_v15 = vld [vmem:[#allocation10 + $0x3e0] sm:$0xff] }
 0x2a9   :  { %8565 = vst [vmem:[#allocation111_spill] sm:$0xff] %v6749_v11 }
 0x2aa   :  { %2964 = vmatpush1.bf16.msra.mxu1 %v6733_v23  ;;  %8566 = vst [vmem:[#allocation112_spill] sm:$0xff] %v6752_v14 }
 0x2ab   :  { %2965 = vmatprep.subr.bf16.mxu1 %v6736_v56  ;;  %3219 = vmatpush1.bf16.msra.mxu0 %v6471_v17  ;;  %v6757_v17 = vcombine.low %v2271_v54, %v2275_v20  ;;  %v2169_v54 = vld [vmem:[#allocation10 + $0x10] sm:$0xff] }
 0x2ac   :  { %3220 = vmatprep.subr.bf16.mxu0 %v6474_v19  ;;  %v6760_v19 = vcombine.high %v2279_v4, %v2283_v41  ;;  %v2173_v20 = vld [vmem:[#allocation10 + $0x30] sm:$0xff] }
 0x2ad   :  { %8567 = vst [vmem:[#allocation113_spill] sm:$0xff] %v6757_v17 }
 0x2ae   :  { %2966 = vmatpush1.bf16.msra.mxu1 %v6741_v2  ;;  %8568 = vst [vmem:[#allocation114_spill] sm:$0xff] %v6760_v19 }
 0x2af   :  { %2967 = vmatprep.subr.bf16.mxu1 %v6744_v61  ;;  %3221 = vmatpush1.bf16.msra.mxu0 %v6477_v27  ;;  %v6765_v27 = vcombine.low %v2279_v4, %v2283_v41  ;;  %v2177_v4 = vld [vmem:[#allocation10 + $0x50] sm:$0xff] }
 0x2b0   :  { %3222 = vmatprep.subr.bf16.mxu0 %v6480_v30  ;;  %v6768_v30 = vcombine.high %v2287_v45, %v2291_v15  ;;  %v2181_v41 = vld [vmem:[#allocation10 + $0x70] sm:$0xff] }
 0x2b1   :  { %8569 = vst [vmem:[#allocation115_spill] sm:$0xff] %v6765_v27 }
 0x2b2   :  { %2968 = vmatpush1.bf16.msra.mxu1 %v6749_v11  ;;  %8570 = vst [vmem:[#allocation116_spill] sm:$0xff] %v6768_v30 }
 0x2b3   :  { %2969 = vmatprep.subr.bf16.mxu1 %v6752_v14  ;;  %3223 = vmatpush1.bf16.msra.mxu0 %v6483_v37  ;;  %v6773_v37 = vcombine.low %v2287_v45, %v2291_v15  ;;  %v2185_v45 = vld [vmem:[#allocation10 + $0x90] sm:$0xff] }
 0x2b4   :  { %3224 = vmatprep.subr.bf16.mxu0 %v6486_v40  ;;  %v6776_v40 = vcombine.high %v2169_v54, %v2173_v20  ;;  %v2189_v15 = vld [vmem:[#allocation10 + $0xb0] sm:$0xff] }
 0x2b5   :  { %8571 = vst [vmem:[#allocation117_spill] sm:$0xff] %v6773_v37 }
 0x2b6   :  { %2970 = vmatpush1.bf16.msra.mxu1 %v6757_v17  ;;  %8572 = vst [vmem:[#allocation118_spill] sm:$0xff] %v6776_v40 }
 0x2b7   :  { %2971 = vmatprep.subr.bf16.mxu1 %v6760_v19  ;;  %3225 = vmatpush1.bf16.msra.mxu0 %v6489_v47  ;;  %v6781_v47 = vcombine.low %v2169_v54, %v2173_v20  ;;  %v6794_v54 = vcombine.high %v2185_v45, %v2189_v15  ;;  %v2193_v20 = vld [vmem:[#allocation10 + $0xd0] sm:$0xff] }
 0x2b8   :  { %3226 = vmatprep.subr.bf16.mxu0 %v6492_v50  ;;  %v6784_v50 = vcombine.high %v2177_v4, %v2181_v41 }
 0x2b9   :  { %8573 = vst [vmem:[#allocation119_spill] sm:$0xff] %v6781_v47  ;;  %8576 = vst [vmem:[#allocation122_spill] sm:$0xff] %v6794_v54 }
 0x2ba   :  { %2972 = vmatpush1.bf16.msra.mxu1 %v6765_v27  ;;  %8574 = vst [vmem:[#allocation120_spill] sm:$0xff] %v6784_v50 }
 0x2bb   :  { %2973 = vmatprep.subr.bf16.mxu1 %v6768_v30  ;;  %3227 = vmatpush1.bf16.msra.mxu0 %v6495_v57  ;;  %v6790_v57 = vcombine.low %v2177_v4, %v2181_v41  ;;  %v2201_v41 = vld [vmem:[#allocation10 + $0x110] sm:$0xff] }
 0x2bc   :  { %3228 = vmatprep.subr.bf16.mxu0 %v6498_v60  ;;  %v2205_v60 = vld [vmem:[#allocation10 + $0x130] sm:$0xff] }
 0x2bd   :  { %8575 = vst [vmem:[#allocation121_spill] sm:$0xff] %v6790_v57 }
 0x2be   :  { %2974 = vmatpush1.bf16.msra.mxu1 %v6773_v37 }
 0x2bf   :  { %3025 = vmatprep.subr.bf16.mxu1 %v6776_v40  ;;  %3229 = vmatpush1.bf16.msra.mxu0 %v6501_v7  ;;  %v2197_v7 = vld [vmem:[#allocation10 + $0xf0] sm:$0xff] }
 0x2c0   :  { %3230 = vmatprep.subr.bf16.mxu0 %v6504_v10  ;;  %v6799_v10 = vcombine.low %v2185_v45, %v2189_v15  ;;  %v6802_v4 = vcombine.high %v2193_v20, %v2197_v7  ;;  %v2209_v45 = vld [vmem:[#allocation10 + $0x150] sm:$0xff] }
 0x2c1   :  { %2976 = vmatmul.mubr.bf16.vlgmr.msra.gmra.mrb[48].mxu1 %v8554_v13  ;;  %v2213_v15 = vld [vmem:[#allocation10 + $0x170] sm:$0xff] }
 0x2c2   :  { %3026 = vmatpush1.bf16.msra.mxu1 %v6781_v47  ;;  %3057 = vmatprep.mubr.bf16.mxu1 %v8554_v13  ;;  %8577 = vst [vmem:[#allocation123_spill] sm:$0xff] %v6799_v10  ;;  %8578 = vst [vmem:[#allocation124_spill] sm:$0xff] %v6802_v4 }
 0x2c3   :  { %3027 = vmatprep.subr.bf16.mxu1 %v6784_v50  ;;  %3231 = vmatpush1.bf16.msra.mxu0 %v6508_v16  ;;  %v6807_v16 = vcombine.low %v2193_v20, %v2197_v7  ;;  %v6821_v7 = vcombine.high %v2209_v45, %v2213_v15  ;;  %v2217_v20 = vld [vmem:[#allocation10 + $0x190] sm:$0xff] }
 0x2c4   :  { %3232 = vmatprep.subr.bf16.mxu0 %v6510_v22  ;;  %v6810_v22 = vcombine.high %v2201_v41, %v2205_v60 }
 0x2c5   :  { %8579 = vst [vmem:[#allocation125_spill] sm:$0xff] %v6807_v16  ;;  %8584 = vst [vmem:[#allocation129_spill] sm:$0xff] %v6821_v7 }
 0x2c6   :  { %3028 = vmatpush1.bf16.msra.mxu1 %v6790_v57  ;;  %8580 = vst [vmem:[#allocation126_spill] sm:$0xff] %v6810_v22 }
 0x2c7   :  { %3029 = vmatprep.subr.bf16.mxu1 %v6794_v54  ;;  %3233 = vmatpush1.bf16.msra.mxu0 %v6515_v31  ;;  %v6815_v31 = vshrl.u32 %v8581_v21, 7 }
 0x2c8   :  { %3234 = vmatprep.subr.bf16.mxu0 %v6518_v34  ;;  %v6818_v34 = vcombine.low %v2201_v41, %v2205_v60  ;;  %v6833_v60 = vld [vmem:[%s8160_s4] sm:$0xff] }
 0x2c9   :  { %8582 = vst [vmem:[#allocation127_spill] sm:$0xff] %v6815_v31  ;;  %v998_v21 = vsub.s32 4, %v6815_v31  ;;  %v6836_v41 = vsub.s32 1, %v6815_v31 }
 0x2ca   :  { %3030 = vmatpush1.bf16.msra.mxu1 %v6799_v10  ;;  %8583 = vst [vmem:[#allocation128_spill] sm:$0xff] %v6818_v34  ;;  %v2229_v10 = vld [vmem:[#allocation10 + $0x1f0] sm:$0xff] }
 0x2cb   :  { %3031 = vmatprep.subr.bf16.mxu1 %v6802_v4  ;;  %3235 = vmatpush1.bf16.msra.mxu0 %v6521_v44  ;;  %v2221_v4 = vld [vmem:[#allocation10 + $0x1b0] sm:$0xff]  ;;  %v6826_v44 = vsub.s32 0, %v6815_v31  ;;  %8586 = vst [vmem:[#allocation131_spill] sm:$0xff] %v6836_v41 }
 0x2cc   :  { %3236 = vmatprep.subr.bf16.mxu0 %v6524_v46  ;;  %v6839_v46 = vcombine.low %v2209_v45, %v2213_v15  ;;  %v6855_v45 = vrot.slane %v6833_v60, %v998_v21 }
 0x2cd   :  { %8585 = vst [vmem:[#allocation130_spill] sm:$0xff] %v6826_v44  ;;  %v6852_v54 = vrot.slane %v6833_v60, %v6826_v44  ;;  %v6869_v44 = vcombine.low %v2217_v20, %v2221_v4 }
 0x2ce   :  { %3032 = vmatpush1.bf16.msra.mxu1 %v6807_v16  ;;  %8587 = vst [vmem:[#allocation132_spill] sm:$0xff] %v6839_v46  ;;  %v2225_v16 = vld [vmem:[#allocation10 + $0x1d0] sm:$0xff] }
 0x2cf   :  { %3033 = vmatprep.subr.bf16.mxu1 %v6810_v22  ;;  %3237 = vmatpush1.bf16.msra.mxu0 %v6529_v53  ;;  %v1002_v53 = vsub.s32 5, %v6815_v31  ;;  %8590 = vst [vmem:[#allocation135_spill] sm:$0xff] %v6869_v44 }
 0x2d0   :  { %3238 = vmatprep.subr.bf16.mxu0 %v6532_v62  ;;  %v6842_v62 = vcombine.high %v2217_v20, %v2221_v4  ;;  %v2233_v20 = vld [vmem:[#allocation10 + $0x210] sm:$0xff] }
 0x2d1   :  { %v6866_v57 = vrot.slane %v6833_v60, %v1002_v53 }
 0x2d2   :  { %3034 = vmatpush1.bf16.msra.mxu1 %v6818_v34  ;;  %8588 = vst [vmem:[#allocation133_spill] sm:$0xff] %v6842_v62 }
 0x2d3   :  { %3035 = vmatprep.subr.bf16.mxu1 %v6821_v7  ;;  %3239 = vmatpush1.bf16.msra.mxu0 %v6535_v12  ;;  %v6863_v12 = vrot.slane %v6833_v60, %v6836_v41  ;;  %v6878_v41 = vcombine.high %v2225_v16, %v2229_v10 }
 0x2d4   :  { %v6845_v22 = vpop.f32.mrb[0].mxu1  ;;  %v6847_v34 = vpop.f32.mrb[16].mxu0  ;;  %3240 = vmatprep.subr.bf16.mxu0 %v6538_v32 }
 0x2d5   :  { %v6857_v15 = vpop.f32.mrb[1].mxu1  ;;  %v6859_v7 = vpop.f32.mrb[17].mxu0  ;;  %8593 = vst [vmem:[#allocation138_spill] sm:$0xff] %v6878_v41 }
 0x2d6   :  { %8589 = vst [vmem:[#allocation134_spill] sm:$0xff] %v6859_v7  ;;  %3036 = vmatpush1.bf16.msra.mxu1 %v6839_v46  ;;  %v1698_v32 = vpop.f32.mrb[2].mxu1  ;;  %v1844_v50 = vpop.f32.mrb[18].mxu0 }
 0x2d7   :  { %v6872_v21 = vadd.f32 %v1698_v32, %v6852_v54  ;;  %v6875_v49 = vadd.f32 %v1844_v50, %v6855_v45  ;;  %v1700_v47 = vpop.f32.mrb[3].mxu1  ;;  %v1846_v7 = vpop.f32.mrb[19].mxu0  ;;  %3037 = vmatprep.subr.bf16.mxu1 %v6842_v62  ;;  %3241 = vmatpush1.bf16.msra.mxu0 %v6543_v25  ;;  %v2237_v32 = vld [vmem:[#allocation10 + $0x230] sm:$0xff]  ;;  %v6889_v50 = vcombine.low %v2225_v16, %v2229_v10 }
 0x2d8   :  { %v6882_v53 = vadd.f32 %v1700_v47, %v6863_v12  ;;  %v6885_v4 = vadd.f32 %v1846_v7, %v6866_v57  ;;  %3242 = vmatprep.subr.bf16.mxu0 %v6546_v29  ;;  %v2245_v25 = vld [vmem:[#allocation10 + $0x270] sm:$0xff]  ;;  %v6909_v62 = vcombine.low %v2233_v20, %v2237_v32 }
 0x2d9   :  { %8591 = vst [vmem:[#allocation136_spill] sm:$0xff] %v6872_v21  ;;  %8592 = vst [vmem:[#allocation137_spill] sm:$0xff] %v6875_v49  ;;  %v6892_v49 = vcombine.high %v2233_v20, %v2237_v32  ;;  %v2249_v32 = vld [vmem:[#allocation10 + $0x290] sm:$0xff] }
 0x2da   :  { %8594 = vst [vmem:[#allocation139_spill] sm:$0xff] %v6882_v53  ;;  %8595 = vst [vmem:[#allocation140_spill] sm:$0xff] %v6885_v4  ;;  %3038 = vmatpush1.bf16.msra.mxu1 %v6869_v44  ;;  %v2241_v53 = vld [vmem:[#allocation10 + $0x250] sm:$0xff] }
 0x2db   :  { %8596 = vst [vmem:[#allocation141_spill] sm:$0xff] %v6889_v50  ;;  %3039 = vmatprep.subr.bf16.mxu1 %v6878_v41  ;;  %8597 = vst [vmem:[#allocation142_spill] sm:$0xff] %v6892_v49  ;;  %3243 = vmatpush1.bf16.msra.mxu0 %v6549_v43 }
 0x2dc   :  { %v1704_v21 = vpop.f32.mrb[4].mxu1  ;;  %v1850_v47 = vpop.f32.mrb[20].mxu0  ;;  %3244 = vmatprep.subr.bf16.mxu0 %v6552_v28  ;;  %8602 = vst [vmem:[#allocation147_spill] sm:$0xff] %v6909_v62 }
 0x2dd   :  { %v6897_v7 = vadd.f32 %v1704_v21, %v6852_v54  ;;  %v6900_v4 = vadd.f32 %v1850_v47, %v6855_v45  ;;  %v1706_v10 = vpop.f32.mrb[5].mxu1  ;;  %v1852_v16 = vpop.f32.mrb[21].mxu0 }
 0x2de   :  { %v6903_v29 = vadd.f32 %v1706_v10, %v6863_v12  ;;  %v6906_v41 = vadd.f32 %v1852_v16, %v6866_v57  ;;  %3040 = vmatpush1.bf16.msra.mxu1 %v6889_v50  ;;  %v1708_v43 = vpop.f32.mrb[6].mxu1  ;;  %v1854_v44 = vpop.f32.mrb[22].mxu0  ;;  %v6918_v10 = vcombine.high %v2241_v53, %v2245_v25 }
 0x2df   :  { %8598 = vst [vmem:[#allocation143_spill] sm:$0xff] %v6897_v7  ;;  %8599 = vst [vmem:[#allocation144_spill] sm:$0xff] %v6900_v4  ;;  %v6912_v21 = vadd.f32 %v1708_v43, %v6852_v54  ;;  %v6915_v47 = vadd.f32 %v1854_v44, %v6855_v45  ;;  %v1710_v4 = vpop.f32.mrb[7].mxu1  ;;  %v1856_v7 = vpop.f32.mrb[23].mxu0  ;;  %3041 = vmatprep.subr.bf16.mxu1 %v6892_v49  ;;  %3245 = vmatpush1.bf16.msra.mxu0 %v6557_v1  ;;  %v2253_v43 = vld [vmem:[#allocation10 + $0x2b0] sm:$0xff] }
 0x2e0   :  { %8600 = vst [vmem:[#allocation145_spill] sm:$0xff] %v6903_v29  ;;  %8601 = vst [vmem:[#allocation146_spill] sm:$0xff] %v6906_v41  ;;  %v6922_v16 = vadd.f32 %v1710_v4, %v6863_v12  ;;  %v6925_v20 = vadd.f32 %v1856_v7, %v6866_v57  ;;  %3296 = vmatprep.subr.bf16.mxu0 %v6560_v5  ;;  %v6929_v44 = vcombine.low %v2241_v53, %v2245_v25  ;;  %v2257_v29 = vld [vmem:[#allocation10 + $0x2d0] sm:$0xff] }
 0x2e1   :  { %8603 = vst [vmem:[#allocation148_spill] sm:$0xff] %v6912_v21  ;;  %8604 = vst [vmem:[#allocation149_spill] sm:$0xff] %v6915_v47  ;;  %v6932_v47 = vcombine.high %v2249_v32, %v2253_v43  ;;  %v2261_v4 = vld [vmem:[#allocation10 + $0x2f0] sm:$0xff] }
 0x2e2   :  { %8605 = vst [vmem:[#allocation150_spill] sm:$0xff] %v6918_v10  ;;  %8606 = vst [vmem:[#allocation151_spill] sm:$0xff] %v6922_v16  ;;  %3042 = vmatpush1.bf16.msra.mxu1 %v6909_v62 }
 0x2e3   :  { %8607 = vst [vmem:[#allocation152_spill] sm:$0xff] %v6925_v20  ;;  %8608 = vst [vmem:[#allocation153_spill] sm:$0xff] %v6929_v44  ;;  %3043 = vmatprep.subr.bf16.mxu1 %v6918_v10  ;;  %v6947_v10 = vcombine.low %v2249_v32, %v2253_v43  ;;  %v2265_v32 = vld [vmem:[#allocation10 + $0x310] sm:$0xff] }
 0x2e4   :  { %8609 = vst [vmem:[#allocation154_spill] sm:$0xff] %v6932_v47  ;;  %v1714_v21 = vpop.f32.mrb[8].mxu1  ;;  %v1860_v41 = vpop.f32.mrb[24].mxu0  ;;  %v2269_v43 = vld [vmem:[#allocation10 + $0x330] sm:$0xff] }
 0x2e5   :  { %v6935_v16 = vadd.f32 %v1714_v21, %v6852_v54  ;;  %v6938_v7 = vadd.f32 %v1860_v41, %v6855_v45  ;;  %v1716_v20 = vpop.f32.mrb[9].mxu1  ;;  %v1862_v5 = vpop.f32.mrb[25].mxu0  ;;  %8614 = vst [vmem:[#allocation159_spill] sm:$0xff] %v6947_v10 }
 0x2e6   :  { %v6941_v1 = vadd.f32 %v1716_v20, %v6863_v12  ;;  %v6944_v25 = vadd.f32 %v1862_v5, %v6866_v57  ;;  %3044 = vmatpush1.bf16.msra.mxu1 %v6929_v44  ;;  %v1718_v53 = vpop.f32.mrb[10].mxu1  ;;  %v1864_v28 = vpop.f32.mrb[26].mxu0  ;;  %v6956_v20 = vcombine.high %v2257_v29, %v2261_v4  ;;  %v6983_v44 = vcombine.low %v2265_v32, %v2269_v43 }
 0x2e7   :  { %8610 = vst [vmem:[#allocation155_spill] sm:$0xff] %v6935_v16  ;;  %8611 = vst [vmem:[#allocation156_spill] sm:$0xff] %v6938_v7  ;;  %v6950_v21 = vadd.f32 %v1718_v53, %v6852_v54  ;;  %v6953_v41 = vadd.f32 %v1864_v28, %v6855_v45  ;;  %v1720_v7 = vpop.f32.mrb[11].mxu1  ;;  %v1866_v16 = vpop.f32.mrb[27].mxu0  ;;  %3045 = vmatprep.subr.bf16.mxu1 %v6932_v47  ;;  %v6965_v53 = vcombine.low %v2257_v29, %v2261_v4  ;;  %v2277_v47 = vld [vmem:[#allocation10 + $0x370] sm:$0xff] }
 0x2e8   :  { %8612 = vst [vmem:[#allocation157_spill] sm:$0xff] %v6941_v1  ;;  %8613 = vst [vmem:[#allocation158_spill] sm:$0xff] %v6944_v25  ;;  %v6959_v5 = vadd.f32 %v1720_v7, %v6863_v12  ;;  %v6962_v25 = vadd.f32 %v1866_v16, %v6866_v57  ;;  %v6968_v28 = vcombine.high %v2265_v32, %v2269_v43  ;;  %v2273_v1 = vld [vmem:[#allocation10 + $0x350] sm:$0xff] }
 0x2e9   :  { %8615 = vst [vmem:[#allocation160_spill] sm:$0xff] %v6950_v21  ;;  %8616 = vst [vmem:[#allocation161_spill] sm:$0xff] %v6953_v41  ;;  %v2281_v32 = vld [vmem:[#allocation10 + $0x390] sm:$0xff] }
 0x2ea   :  { %8617 = vst [vmem:[#allocation162_spill] sm:$0xff] %v6956_v20  ;;  %8618 = vst [vmem:[#allocation163_spill] sm:$0xff] %v6959_v5  ;;  %3046 = vmatpush1.bf16.msra.mxu1 %v6947_v10  ;;  %v2285_v43 = vld [vmem:[#allocation10 + $0x3b0] sm:$0xff] }
 0x2eb   :  { %8619 = vst [vmem:[#allocation164_spill] sm:$0xff] %v6962_v25  ;;  %8620 = vst [vmem:[#allocation165_spill] sm:$0xff] %v6965_v53  ;;  %3047 = vmatprep.subr.bf16.mxu1 %v6956_v20 }
 0x2ec   :  { %8621 = vst [vmem:[#allocation166_spill] sm:$0xff] %v6968_v28  ;;  %v1724_v41 = vpop.f32.mrb[12].mxu1  ;;  %v1870_v21 = vpop.f32.mrb[28].mxu0  ;;  %8626 = vst [vmem:[#allocation171_spill] sm:$0xff] %v6983_v44 }
 0x2ed   :  { %v6971_v7 = vadd.f32 %v1724_v41, %v6852_v54  ;;  %v6974_v16 = vadd.f32 %v1870_v21, %v6855_v45  ;;  %v1726_v25 = vpop.f32.mrb[13].mxu1  ;;  %v1872_v5 = vpop.f32.mrb[29].mxu0 }
 0x2ee   :  { %v6977_v10 = vadd.f32 %v1726_v25, %v6863_v12  ;;  %v6980_v29 = vadd.f32 %v1872_v5, %v6866_v57  ;;  %3048 = vmatpush1.bf16.msra.mxu1 %v6965_v53  ;;  %v1728_v4 = vpop.f32.mrb[14].mxu1  ;;  %v1874_v20 = vpop.f32.mrb[30].mxu0  ;;  %v6992_v25 = vcombine.high %v2273_v1, %v2277_v47 }
 0x2ef   :  { %8622 = vst [vmem:[#allocation167_spill] sm:$0xff] %v6971_v7  ;;  %8623 = vst [vmem:[#allocation168_spill] sm:$0xff] %v6974_v16  ;;  %v6986_v41 = vadd.f32 %v1728_v4, %v6852_v54  ;;  %v6989_v21 = vadd.f32 %v1874_v20, %v6855_v45  ;;  %v1730_v16 = vpop.f32.mrb[15].mxu1  ;;  %v1876_v7 = vpop.f32.mrb[31].mxu0  ;;  %3049 = vmatprep.subr.bf16.mxu1 %v6968_v28  ;;  %v7001_v4 = vcombine.low %v2273_v1, %v2277_v47 }
 0x2f0   :  { %8624 = vst [vmem:[#allocation169_spill] sm:$0xff] %v6977_v10  ;;  %8625 = vst [vmem:[#allocation170_spill] sm:$0xff] %v6980_v29  ;;  %v6995_v5 = vadd.f32 %v1730_v16, %v6863_v12  ;;  %v6998_v29 = vadd.f32 %v1876_v7, %v6866_v57  ;;  %v7004_v20 = vcombine.high %v2281_v32, %v2285_v43 }
 0x2f1   :  { %8627 = vst [vmem:[#allocation172_spill] sm:$0xff] %v6986_v41  ;;  %8628 = vst [vmem:[#allocation173_spill] sm:$0xff] %v6989_v21  ;;  %v2289_v21 = vld [vmem:[#allocation10 + $0x3d0] sm:$0xff]  ;;  %v7011_v7 = vcombine.low %v2281_v32, %v2285_v43 }
 0x2f2   :  { %8629 = vst [vmem:[#allocation174_spill] sm:$0xff] %v6992_v25  ;;  %8630 = vst [vmem:[#allocation175_spill] sm:$0xff] %v6995_v5  ;;  %3050 = vmatpush1.bf16.msra.mxu1 %v6983_v44  ;;  %v2293_v41 = vld [vmem:[#allocation10 + $0x3f0] sm:$0xff] }
 0x2f3   :  { %8631 = vst [vmem:[#allocation176_spill] sm:$0xff] %v6998_v29  ;;  %8632 = vst [vmem:[#allocation177_spill] sm:$0xff] %v7001_v4  ;;  %3051 = vmatprep.subr.bf16.mxu1 %v6992_v25  ;;  %v7014_v29 = vcombine.high %v2289_v21, %v2293_v41  ;;  %v7017_v47 = vcombine.low %v2289_v21, %v2293_v41  ;;  %v8342_v41 = vsub.s32 2, %v6815_v31 }
 0x2f4   :  { %8633 = vst [vmem:[#allocation178_spill] sm:$0xff] %v7004_v20  ;;  %v7006_v10 = vpop.f32.mrb[32].mxu0  ;;  %8636 = vst [vmem:[#allocation181_spill] sm:$0xff] %v7011_v7 }
 0x2f5   :  { %8634 = vst [vmem:[#allocation179_spill] sm:$0xff] %v7006_v10  ;;  %v7008_v28 = vpop.f32.mrb[33].mxu0  ;;  %8637 = vst [vmem:[#allocation182_spill] sm:$0xff] %v7014_v29  ;;  %v991_v32 = vrot.slane %v6833_v60, %v8342_v41 }
 0x2f6   :  { %8635 = vst [vmem:[#allocation180_spill] sm:$0xff] %v7008_v28  ;;  %3052 = vmatpush1.bf16.msra.mxu1 %v7001_v4  ;;  %v2164_v16 = vpop.f32.mrb[34].mxu0  ;;  %8638 = vst [vmem:[#allocation183_spill] sm:$0xff] %v7017_v47 }
 0x2f7   :  { %3053 = vmatprep.subr.bf16.mxu1 %v7004_v20  ;;  %v2165_v1 = vpop.f32.mrb[35].mxu0 }
 0x2fa   :  { %3054 = vmatpush1.bf16.msra.mxu1 %v7011_v7 }
 0x2fb   :  { %3055 = vmatprep.subr.bf16.mxu1 %v7014_v29 }
 0x2fe   :  { %3056 = vmatpush1.bf16.msra.mxu1 %v7017_v47 }
 0x2ff   :  { %3173 = vmatprep.subr.bf16.mxu1 %v6609_v55 }
 0x301   :  { %3058 = vmatmul.mubr.bf16.vlgmr.msra.gmra.mrb[52].mxu1 %v8554_v13  ;;  %v8349_v13 = vsub.s32 3, %v6815_v31 }
 0x302   :  { %3174 = vmatpush1.bf16.msra.mxu1 %v6614_v8 }
 0x303   :  { %3175 = vmatprep.subr.bf16.mxu1 %v6620_v33  ;;  %v995_v16 = vrot.slane %v6833_v60, %v8349_v13 }
 0x306   :  { %3176 = vmatpush1.bf16.msra.mxu1 %v6628_v36 }
 0x307   :  { %3177 = vmatprep.subr.bf16.mxu1 %v6634_v42 }
 0x30a   :  { %3178 = vmatpush1.bf16.msra.mxu1 %v6640_v58 }
 0x30b   :  { %3179 = vmatprep.subr.bf16.mxu1 %v6646_v6 }
 0x30e   :  { %3180 = vmatpush1.bf16.msra.mxu1 %v6654_v18 }
 0x30f   :  { %3181 = vmatprep.subr.bf16.mxu1 %v6660_v35 }
 0x312   :  { %3182 = vmatpush1.bf16.msra.mxu1 %v6666_v9 }
 0x313   :  { %3183 = vmatprep.subr.bf16.mxu1 %v6672_v48 }
 0x314   :  { %v1767_v21 = vpop.f32.mrb[16].mxu1 }
 0x315   :  { %v1769_v43 = vpop.f32.mrb[17].mxu1 }
 0x316   :  { %v1771_v1 = vpop.f32.mrb[18].mxu1  ;;  %3184 = vmatpush1.bf16.msra.mxu1 %v6680_v24 }
 0x317   :  { %v7042_v28 = vadd.f32 %v1771_v1, %v991_v32  ;;  %v1773_v10 = vpop.f32.mrb[19].mxu1  ;;  %3185 = vmatprep.subr.bf16.mxu1 %v6686_v0 }
 0x318   :  { %v7045_v5 = vadd.f32 %v1773_v10, %v995_v16 }
 0x319   :  { %8639 = vst [vmem:[#allocation184_spill] sm:$0xff] %v7042_v28 }
 0x31a   :  { %8640 = vst [vmem:[#allocation185_spill] sm:$0xff] %v7045_v5  ;;  %3186 = vmatpush1.bf16.msra.mxu1 %v6692_v52 }
 0x31b   :  { %3187 = vmatprep.subr.bf16.mxu1 %v6698_v59 }
 0x31c   :  { %v1777_v41 = vpop.f32.mrb[20].mxu1 }
 0x31d   :  { %v7049_v48 = vadd.f32 %v1777_v41, %v991_v32  ;;  %v1779_v9 = vpop.f32.mrb[21].mxu1 }
 0x31e   :  { %v7051_v35 = vadd.f32 %v1779_v9, %v995_v16  ;;  %v1781_v13 = vpop.f32.mrb[22].mxu1  ;;  %3188 = vmatpush1.bf16.msra.mxu1 %v6705_v63 }
 0x31f   :  { %8641 = vst [vmem:[#allocation186_spill] sm:$0xff] %v7049_v48  ;;  %v7054_v1 = vadd.f32 %v1781_v13, %v991_v32  ;;  %v1783_v28 = vpop.f32.mrb[23].mxu1  ;;  %3189 = vmatprep.subr.bf16.mxu1 %v6712_v38 }
 0x320   :  { %8642 = vst [vmem:[#allocation187_spill] sm:$0xff] %v7051_v35  ;;  %v7057_v10 = vadd.f32 %v1783_v28, %v995_v16 }
 0x321   :  { %8643 = vst [vmem:[#allocation188_spill] sm:$0xff] %v7054_v1 }
 0x322   :  { %8644 = vst [vmem:[#allocation189_spill] sm:$0xff] %v7057_v10  ;;  %3190 = vmatpush1.bf16.msra.mxu1 %v6716_v39 }
 0x323   :  { %3191 = vmatprep.subr.bf16.mxu1 %v6720_v51 }
 0x324   :  { %v1787_v5 = vpop.f32.mrb[24].mxu1 }
 0x325   :  { %v7061_v41 = vadd.f32 %v1787_v5, %v991_v32  ;;  %v1789_v48 = vpop.f32.mrb[25].mxu1 }
 0x326   :  { %v7063_v9 = vadd.f32 %v1789_v48, %v995_v16  ;;  %v1791_v35 = vpop.f32.mrb[26].mxu1  ;;  %3192 = vmatpush1.bf16.msra.mxu1 %v6725_v26 }
 0x327   :  { %8645 = vst [vmem:[#allocation190_spill] sm:$0xff] %v7061_v41  ;;  %v7066_v13 = vadd.f32 %v1791_v35, %v991_v32  ;;  %v1793_v1 = vpop.f32.mrb[27].mxu1  ;;  %3193 = vmatprep.subr.bf16.mxu1 %v6728_v3 }
 0x328   :  { %8646 = vst [vmem:[#allocation191_spill] sm:$0xff] %v7063_v9  ;;  %v7069_v28 = vadd.f32 %v1793_v1, %v995_v16 }
 0x329   :  { %8647 = vst [vmem:[#allocation192_spill] sm:$0xff] %v7066_v13 }
 0x32a   :  { %8648 = vst [vmem:[#allocation193_spill] sm:$0xff] %v7069_v28  ;;  %3194 = vmatpush1.bf16.msra.mxu1 %v6733_v23  ;;  %v1768_v28 = vadd.f32 %v1767_v21, %v991_v32  ;;  %v1006_v21 = vsub.s32 6, %v6815_v31 }
 0x32b   :  { %3195 = vmatprep.subr.bf16.mxu1 %v6736_v56 }
 0x32c   :  { %v1797_v10 = vpop.f32.mrb[28].mxu1 }
 0x32d   :  { %v7073_v5 = vadd.f32 %v1797_v10, %v991_v32  ;;  %v1799_v41 = vpop.f32.mrb[29].mxu1  ;;  %v1770_v10 = vadd.f32 %v1769_v43, %v995_v16 }
 0x32e   :  { %v7075_v48 = vadd.f32 %v1799_v41, %v995_v16  ;;  %v1801_v9 = vpop.f32.mrb[30].mxu1  ;;  %3196 = vmatpush1.bf16.msra.mxu1 %v6741_v2 }
 0x32f   :  { %8649 = vst [vmem:[#allocation194_spill] sm:$0xff] %v7073_v5  ;;  %v7078_v35 = vadd.f32 %v1801_v9, %v991_v32  ;;  %v1803_v13 = vpop.f32.mrb[31].mxu1  ;;  %3197 = vmatprep.subr.bf16.mxu1 %v6744_v61  ;;  %v1010_v32 = vsub.s32 7, %v6815_v31 }
 0x330   :  { %8650 = vst [vmem:[#allocation195_spill] sm:$0xff] %v7075_v48  ;;  %v7081_v1 = vadd.f32 %v1803_v13, %v995_v16  ;;  %v1007_v16 = vrot.slane %v6833_v60, %v1006_v21 }
 0x331   :  { %8651 = vst [vmem:[#allocation196_spill] sm:$0xff] %v7078_v35 }
 0x332   :  { %8652 = vst [vmem:[#allocation197_spill] sm:$0xff] %v7081_v1  ;;  %3198 = vmatpush1.bf16.msra.mxu1 %v6749_v11 }
 0x333   :  { %3199 = vmatprep.subr.bf16.mxu1 %v6752_v14 }
 0x335   :  { %v3018_v5 = vpop.f32.mrb[36].mxu0 }
 0x336   :  { %v3109_v56 = vadd.f32 %v3018_v5, %v1768_v28  ;;  %v3020_v41 = vpop.f32.mrb[37].mxu0  ;;  %3200 = vmatpush1.bf16.msra.mxu1 %v6757_v17 }
 0x337   :  { %v3110_v48 = vadd.f32 %v3020_v41, %v1770_v10  ;;  %v3022_v2 = vpop.f32.mrb[38].mxu0  ;;  %3201 = vmatprep.subr.bf16.mxu1 %v6760_v19 }
 0x338   :  { %v3023_v9 = vpop.f32.mrb[39].mxu0  ;;  %v1011_v2 = vrot.slane %v6833_v60, %v1010_v32 }
 0x33a   :  { %3202 = vmatpush1.bf16.msra.mxu1 %v6765_v27 }
 0x33b   :  { %3203 = vmatprep.subr.bf16.mxu1 %v6768_v30 }
 0x33e   :  { %3204 = vmatpush1.bf16.msra.mxu1 %v6773_v37 }
 0x33f   :  { %3255 = vmatprep.subr.bf16.mxu1 %v6776_v40 }
 0x354   :  { %v1913_v43 = vpop.f32.mrb[32].mxu1 }
 0x355   :  { %v1915_v13 = vpop.f32.mrb[33].mxu1 }
 0x356   :  { %v1917_v28 = vpop.f32.mrb[34].mxu1 }
 0x357   :  { %v7095_v5 = vadd.f32 %v1917_v28, %v1007_v16  ;;  %v1919_v10 = vpop.f32.mrb[35].mxu1 }
 0x358   :  { %v7097_v41 = vadd.f32 %v1919_v10, %v1011_v2 }
 0x359   :  { %8653 = vst [vmem:[#allocation198_spill] sm:$0xff] %v7095_v5 }
 0x35a   :  { %8654 = vst [vmem:[#allocation199_spill] sm:$0xff] %v7097_v41 }
 0x35c   :  { %v1923_v9 = vpop.f32.mrb[36].mxu1 }
 0x35d   :  { %v7099_v1 = vadd.f32 %v1923_v9, %v1007_v16  ;;  %v1925_v35 = vpop.f32.mrb[37].mxu1 }
 0x35e   :  { %v7101_v40 = vadd.f32 %v1925_v35, %v1011_v2  ;;  %v1927_v37 = vpop.f32.mrb[38].mxu1 }
 0x35f   :  { %8655 = vst [vmem:[#allocation200_spill] sm:$0xff] %v7099_v1  ;;  %v7103_v31 = vadd.f32 %v1927_v37, %v1007_v16  ;;  %v1929_v30 = vpop.f32.mrb[39].mxu1 }
 0x360   :  { %8656 = vst [vmem:[#allocation201_spill] sm:$0xff] %v7101_v40  ;;  %v7105_v21 = vadd.f32 %v1929_v30, %v1011_v2 }
 0x361   :  { %8657 = vst [vmem:[#allocation202_spill] sm:$0xff] %v7103_v31 }
 0x362   :  { %8658 = vst [vmem:[#allocation203_spill] sm:$0xff] %v7105_v21 }
 0x364   :  { %v1933_v27 = vpop.f32.mrb[40].mxu1 }
 0x365   :  { %v7107_v60 = vadd.f32 %v1933_v27, %v1007_v16  ;;  %v1935_v32 = vpop.f32.mrb[41].mxu1 }
 0x366   :  { %v7109_v28 = vadd.f32 %v1935_v32, %v1011_v2  ;;  %v1937_v10 = vpop.f32.mrb[42].mxu1  ;;  %v1914_v32 = vadd.f32 %v1913_v43, %v1007_v16  ;;  %v5469_v43 = vmul.f32 -1.442695, %v3109_v56  ;;  %v1841_v56 = vadd.f32 %v6847_v34, %v6855_v45 }
 0x367   :  { %8659 = vst [vmem:[#allocation204_spill] sm:$0xff] %v7107_v60  ;;  %v7111_v41 = vadd.f32 %v1937_v10, %v1007_v16  ;;  %v1939_v9 = vpop.f32.mrb[43].mxu1 }
 0x368   :  { %8660 = vst [vmem:[#allocation205_spill] sm:$0xff] %v7109_v28  ;;  %v7113_v1 = vadd.f32 %v1939_v9, %v1011_v2  ;;  %v1916_v28 = vadd.f32 %v1915_v13, %v1011_v2  ;;  %5675 = vpow2.f32 %v5469_v43 }
 0x369   :  { %8661 = vst [vmem:[#allocation206_spill] sm:$0xff] %v7111_v41 }
 0x36a   :  { %8662 = vst [vmem:[#allocation207_spill] sm:$0xff] %v7113_v1 }
 0x36c   :  { %v1943_v35 = vpop.f32.mrb[44].mxu1 }
 0x36d   :  { %v7115_v40 = vadd.f32 %v1943_v35, %v1007_v16  ;;  %v1945_v37 = vpop.f32.mrb[45].mxu1  ;;  %v1695_v35 = vadd.f32 %v6845_v22, %v6852_v54 }
 0x36e   :  { %v7117_v31 = vadd.f32 %v1945_v37, %v1011_v2  ;;  %v1947_v30 = vpop.f32.mrb[46].mxu1  ;;  %v1697_v37 = vadd.f32 %v6857_v15, %v6863_v12 }
 0x36f   :  { %8663 = vst [vmem:[#allocation208_spill] sm:$0xff] %v7115_v40  ;;  %v7119_v21 = vadd.f32 %v1947_v30, %v1007_v16  ;;  %v1949_v27 = vpop.f32.mrb[47].mxu1  ;;  %v5470_v16 = vmul.f32 -1.442695, %v3110_v48 }
 0x370   :  { %8664 = vst [vmem:[#allocation209_spill] sm:$0xff] %v7117_v31  ;;  %v7121_v60 = vadd.f32 %v1949_v27, %v1011_v2 }
 0x371   :  { %8665 = vst [vmem:[#allocation210_spill] sm:$0xff] %v7119_v21  ;;  %5677 = vpow2.f32 %v5470_v16 }
 0x372   :  { %8666 = vst [vmem:[#allocation211_spill] sm:$0xff] %v7121_v60 }
 0x375   :  { %v3100_v5 = vpop.f32.mrb[40].mxu0 }
 0x376   :  { %v3113_v10 = vadd.f32 %v3100_v5, %v1914_v32  ;;  %v3102_v41 = vpop.f32.mrb[41].mxu0 }
 0x377   :  { %v3114_v19 = vadd.f32 %v3102_v41, %v1916_v28  ;;  %v3104_v9 = vpop.f32.mrb[42].mxu0 }
 0x378   :  { %v3105_v1 = vpop.f32.mrb[43].mxu0  ;;  %v5471_v15 = vmul.f32 -1.442695, %v3113_v10 }
 0x379   :  { %v5676_v1 = vpop.eup %5675 }
 0x37a   :  { %v3133_v22 = vadd.f32 1.0, %v5676_v1 }
 0x37b   :  { %v5678_v5 = vpop.eup %5677 }
 0x37c   :  { %v3134_v41 = vadd.f32 1.0, %v5678_v5 }
 0x394   :  { %v2977_v31 = vpop.f32.mrb[48].mxu1 }
 0x395   :  { %v3107_v30 = vadd.f32 %v2977_v31, %v1695_v35  ;;  %v2979_v21 = vpop.f32.mrb[49].mxu1  ;;  %v5472_v31 = vmul.f32 -1.442695, %v3114_v19 }
 0x396   :  { %v3108_v40 = vadd.f32 %v2979_v21, %v1697_v37  ;;  %v2981_v27 = vpop.f32.mrb[50].mxu1 }
 0x397   :  { %v2982_v60 = vpop.f32.mrb[51].mxu1  ;;  %v5467_v13 = vmul.f32 -1.442695, %v3107_v30 }
 0x398   :  { %v5468_v2 = vmul.f32 -1.442695, %v3108_v40  ;;  %v8667_v40 = vld [vmem:[#allocation134_spill] sm:$0xff] }
 0x399   :  { %5679 = vpow2.f32 %v5467_v13  ;;  %v1843_v48 = vadd.f32 %v8667_v40, %v6866_v57 }
 0x39a   :  { %5681 = vpow2.f32 %v5468_v2 }
 0x39b   :  { %5683 = vrcp.f32 %v3133_v22 }
 0x39c   :  { %5685 = vrcp.f32 %v3134_v41 }
 0x39d   :  { %5687 = vpow2.f32 %v5471_v15 }
 0x39e   :  { %5689 = vpow2.f32 %v5472_v31 }
 0x3a3   :  { %v5680_v54 = vpop.eup %5679 }
 0x3a4   :  { %v5682_v12 = vpop.eup %5681  ;;  %v3121_v21 = vadd.f32 1.0, %v5680_v54 }
 0x3a5   :  { %v3122_v60 = vadd.f32 1.0, %v5682_v12  ;;  %v5684_v37 = vpop.eup %5683 }
 0x3a6   :  { %5691 = vrcp.f32 %v3121_v21  ;;  %v5686_v30 = vpop.eup %5685  ;;  %v3153_v1 = vmul.f32 0.0, %v5684_v37  ;;  %v8673_v37 = vld [vmem:[#allocation57_spill] sm:$0xff] }
 0x3a7   :  { %5693 = vrcp.f32 %v3122_v60  ;;  %v5688_v27 = vpop.eup %5687  ;;  %v3154_v22 = vmul.f32 0.0, %v5686_v30  ;;  %v8674_v30 = vld [vmem:[#allocation122_spill] sm:$0xff] }
 0x3a8   :  { %v5690_v43 = vpop.eup %5689  ;;  %v3147_v16 = vadd.f32 1.0, %v5688_v27  ;;  %v8675_v27 = vld [vmem:[#allocation58_spill] sm:$0xff] }
 0x3a9   :  { %v3148_v57 = vadd.f32 1.0, %v5690_v43  ;;  %v8676_v43 = vld [vmem:[#allocation123_spill] sm:$0xff] }
 0x3b0   :  { %v5692_v34 = vpop.eup %5691 }
 0x3b1   :  { %v5694_v45 = vpop.eup %5693 }
 0x3d4   :  { %v3059_v28 = vpop.f32.mrb[52].mxu1 }
 0x3d5   :  { %v3111_v32 = vadd.f32 %v3059_v28, %v1841_v56  ;;  %v3061_v9 = vpop.f32.mrb[53].mxu1 }
 0x3d6   :  { %v3112_v35 = vadd.f32 %v3061_v9, %v1843_v48  ;;  %v3063_v10 = vpop.f32.mrb[54].mxu1  ;;  %v8669_v9 = vld [vmem:[#allocation55_spill] sm:$0xff] }
 0x3d7   :  { %5695 = vtanh.f32 %v3111_v32  ;;  %v3064_v19 = vpop.f32.mrb[55].mxu1  ;;  %v8668_v32 = vld [vmem:[#allocation119_spill] sm:$0xff]  ;;  %v8671_v10 = vld [vmem:[#allocation56_spill] sm:$0xff] }
 0x3d8   :  { %5697 = vtanh.f32 %v3112_v35  ;;  %v8670_v35 = vld [vmem:[#allocation120_spill] sm:$0xff]  ;;  %v8672_v19 = vld [vmem:[#allocation121_spill] sm:$0xff] }
 0x3d9   :  { %5699 = vrcp.f32 %v3147_v16  ;;  %v8679_v16 = vld [vmem:[#allocation60_spill] sm:$0xff] }
 0x3da   :  { %5701 = vrcp.f32 %v3148_v57  ;;  %v8681_v57 = vld [vmem:[#allocation61_spill] sm:$0xff] }
 0x3e1   :  { %v5696_v13 = vpop.eup %5695 }
 0x3e2   :  { %v5698_v2 = vpop.eup %5697  ;;  %v3155_v5 = vmul.f32 %v5696_v13, %v5692_v34  ;;  %v8677_v34 = vld [vmem:[#allocation59_spill] sm:$0xff]  ;;  %v8680_v13 = vld [vmem:[#allocation125_spill] sm:$0xff] }
 0x3e3   :  { %v3156_v54 = vmul.f32 %v5698_v2, %v5694_v45  ;;  %v5700_v15 = vpop.eup %5699  ;;  %v8678_v45 = vld [vmem:[#allocation124_spill] sm:$0xff]  ;;  %v8682_v2 = vld [vmem:[#allocation126_spill] sm:$0xff] }
 0x3e4   :  { %v7131_v41 = vadd.f32 %v3155_v5, %v3153_v1  ;;  %v5702_v31 = vpop.eup %5701  ;;  %v8683_v1 = vld [vmem:[#allocation62_spill] sm:$0xff]  ;;  %v8684_v5 = vld [vmem:[#allocation128_spill] sm:$0xff] }
 0x3e5   :  { %v7133_v12 = vadd.f32 %v3156_v54, %v3154_v22  ;;  %v8685_v22 = vld [vmem:[#allocation63_spill] sm:$0xff]  ;;  %v8686_v54 = vld [vmem:[#allocation129_spill] sm:$0xff] }
 0x3e6   :  { %5703 = vtanh.f32 %v7131_v41 }
 0x3e7   :  { %5705 = vtanh.f32 %v7133_v12 }
 0x3f0   :  { %v5704_v21 = vpop.eup %5703 }
 0x3f1   :  { %v5706_v60 = vpop.eup %5705  ;;  %v3161_v56 = vmul.f32 %v5704_v21, %v5700_v15  ;;  %v8687_v15 = vld [vmem:[#allocation64_spill] sm:$0xff]  ;;  %v8689_v21 = vld [vmem:[#allocation133_spill] sm:$0xff] }
 0x3f2   :  { %v3162_v40 = vmul.f32 %v5706_v60, %v5702_v31  ;;  %v8688_v31 = vld [vmem:[#allocation65_spill] sm:$0xff]  ;;  %v8690_v60 = vld [vmem:[#allocation66_spill] sm:$0xff] }
 0x3f3   :  { %v7137_v28 = vpack.c.bf16 %v3161_v56, %v3161_v56  ;;  %v8691_v56 = vld [vmem:[#allocation135_spill] sm:$0xff] }
 0x3f4   :  { %v3172_v48 = vpack.c.bf16 %v3162_v40, %v3162_v40  ;;  %v8692_v40 = vld [vmem:[#allocation67_spill] sm:$0xff] }
 0x3f6   :  { %3205 = vmatprep.mubr.bf16.mxu1 %v3172_v48  ;;  %3246 = vmatprep.mubr.bf16.mxu0 %v3172_v48 }
 0x3f7   :  { %3206 = vmatmul.mubr.bf16.vlgmr.msra.gmra.mrb[56].mxu1 %v7137_v28  ;;  %3247 = vmatmul.mubr.bf16.vlgmr.msra.gmra.mrb[44].mxu0 %v7137_v28 }
 0x3f8   :  { %3256 = vmatpush1.bf16.msra.mxu1 %v8668_v32  ;;  %3297 = vmatpush1.bf16.msra.mxu0 %v8669_v9 }
 0x3f9   :  { %3287 = vmatprep.mubr.bf16.mxu1 %v3172_v48  ;;  %3328 = vmatprep.mubr.bf16.mxu0 %v3172_v48  ;;  %v8693_v48 = vld [vmem:[#allocation138_spill] sm:$0xff] }
 0x3fa   :  { %3257 = vmatprep.subr.bf16.mxu1 %v8670_v35  ;;  %3298 = vmatprep.subr.bf16.mxu0 %v8671_v10 }
 0x3fc   :  { %3258 = vmatpush1.bf16.msra.mxu1 %v8672_v19  ;;  %3299 = vmatpush1.bf16.msra.mxu0 %v8673_v37 }
 0x3fd   :  { %3259 = vmatprep.subr.bf16.mxu1 %v8674_v30  ;;  %3300 = vmatprep.subr.bf16.mxu0 %v8675_v27 }
 0x400   :  { %3260 = vmatpush1.bf16.msra.mxu1 %v8676_v43  ;;  %3301 = vmatpush1.bf16.msra.mxu0 %v8677_v34 }
 0x401   :  { %3261 = vmatprep.subr.bf16.mxu1 %v8678_v45  ;;  %3302 = vmatprep.subr.bf16.mxu0 %v8679_v16 }
 0x404   :  { %3262 = vmatpush1.bf16.msra.mxu1 %v8680_v13  ;;  %3303 = vmatpush1.bf16.msra.mxu0 %v8681_v57 }
 0x405   :  { %3263 = vmatprep.subr.bf16.mxu1 %v8682_v2  ;;  %3304 = vmatprep.subr.bf16.mxu0 %v8683_v1 }
 0x408   :  { %3264 = vmatpush1.bf16.msra.mxu1 %v8684_v5  ;;  %3305 = vmatpush1.bf16.msra.mxu0 %v8685_v22  ;;  %v8694_v5 = vld [vmem:[#allocation68_spill] sm:$0xff] }
 0x409   :  { %3265 = vmatprep.subr.bf16.mxu1 %v8686_v54  ;;  %3306 = vmatprep.subr.bf16.mxu0 %v8687_v15  ;;  %v8695_v54 = vld [vmem:[#allocation69_spill] sm:$0xff] }
 0x40c   :  { %3266 = vmatpush1.bf16.msra.mxu1 %v6839_v46  ;;  %3307 = vmatpush1.bf16.msra.mxu0 %v8688_v31  ;;  %v8696_v46 = vld [vmem:[#allocation71_spill] sm:$0xff] }
 0x40d   :  { %3267 = vmatprep.subr.bf16.mxu1 %v8689_v21  ;;  %3308 = vmatprep.subr.bf16.mxu0 %v8690_v60  ;;  %v8697_v21 = vld [vmem:[#allocation73_spill] sm:$0xff]  ;;  %v8698_v60 = vld [vmem:[#allocation150_spill] sm:$0xff] }
 0x410   :  { %3268 = vmatpush1.bf16.msra.mxu1 %v8691_v56  ;;  %3309 = vmatpush1.bf16.msra.mxu0 %v8692_v40  ;;  %v8699_v56 = vld [vmem:[#allocation75_spill] sm:$0xff]  ;;  %v8700_v40 = vld [vmem:[#allocation153_spill] sm:$0xff] }
 0x411   :  { %3269 = vmatprep.subr.bf16.mxu1 %v8693_v48  ;;  %3310 = vmatprep.subr.bf16.mxu0 %v8694_v5  ;;  %v8701_v48 = vld [vmem:[#allocation77_spill] sm:$0xff]  ;;  %v8702_v5 = vld [vmem:[#allocation154_spill] sm:$0xff] }
 0x414   :  { %3270 = vmatpush1.bf16.msra.mxu1 %v6889_v50  ;;  %3311 = vmatpush1.bf16.msra.mxu0 %v8695_v54  ;;  %v8703_v50 = vld [vmem:[#allocation79_spill] sm:$0xff] }
 0x415   :  { %3271 = vmatprep.subr.bf16.mxu1 %v6892_v49  ;;  %3312 = vmatprep.subr.bf16.mxu0 %v8696_v46  ;;  %v8704_v54 = vld [vmem:[#allocation159_spill] sm:$0xff]  ;;  %v8705_v49 = vld [vmem:[#allocation81_spill] sm:$0xff]  ;;  %v8706_v46 = vld [vmem:[#allocation162_spill] sm:$0xff] }
 0x418   :  { %3272 = vmatpush1.bf16.msra.mxu1 %v6909_v62  ;;  %3313 = vmatpush1.bf16.msra.mxu0 %v8697_v21  ;;  %v8707_v62 = vld [vmem:[#allocation83_spill] sm:$0xff] }
 0x419   :  { %3273 = vmatprep.subr.bf16.mxu1 %v8698_v60  ;;  %3314 = vmatprep.subr.bf16.mxu0 %v8699_v56  ;;  %v8708_v60 = vld [vmem:[#allocation85_spill] sm:$0xff]  ;;  %v8709_v56 = vld [vmem:[#allocation166_spill] sm:$0xff] }
 0x41c   :  { %3274 = vmatpush1.bf16.msra.mxu1 %v8700_v40  ;;  %3315 = vmatpush1.bf16.msra.mxu0 %v8701_v48  ;;  %v8710_v40 = vld [vmem:[#allocation87_spill] sm:$0xff] }
 0x41d   :  { %3275 = vmatprep.subr.bf16.mxu1 %v8702_v5  ;;  %3316 = vmatprep.subr.bf16.mxu0 %v8703_v50  ;;  %v8711_v5 = vld [vmem:[#allocation89_spill] sm:$0xff] }
 0x420   :  { %3276 = vmatpush1.bf16.msra.mxu1 %v8704_v54  ;;  %3317 = vmatpush1.bf16.msra.mxu0 %v8705_v49  ;;  %v8712_v54 = vld [vmem:[#allocation91_spill] sm:$0xff] }
 0x421   :  { %3277 = vmatprep.subr.bf16.mxu1 %v8706_v46  ;;  %3318 = vmatprep.subr.bf16.mxu0 %v8707_v62  ;;  %v8713_v46 = vld [vmem:[#allocation93_spill] sm:$0xff] }
 0x424   :  { %3278 = vmatpush1.bf16.msra.mxu1 %v6965_v53  ;;  %3319 = vmatpush1.bf16.msra.mxu0 %v8708_v60  ;;  %v8714_v53 = vld [vmem:[#allocation95_spill] sm:$0xff] }
 0x425   :  { %3279 = vmatprep.subr.bf16.mxu1 %v8709_v56  ;;  %3320 = vmatprep.subr.bf16.mxu0 %v8710_v40  ;;  %v8715_v56 = vld [vmem:[#allocation97_spill] sm:$0xff] }
 0x428   :  { %3280 = vmatpush1.bf16.msra.mxu1 %v6983_v44  ;;  %3321 = vmatpush1.bf16.msra.mxu0 %v8711_v5  ;;  %v8716_v44 = vld [vmem:[#allocation99_spill] sm:$0xff] }
 0x429   :  { %3281 = vmatprep.subr.bf16.mxu1 %v6992_v25  ;;  %3322 = vmatprep.subr.bf16.mxu0 %v8712_v54  ;;  %v8717_v25 = vld [vmem:[#allocation101_spill] sm:$0xff] }
 0x42c   :  { %3282 = vmatpush1.bf16.msra.mxu1 %v7001_v4  ;;  %3323 = vmatpush1.bf16.msra.mxu0 %v8713_v46  ;;  %v8718_v4 = vld [vmem:[#allocation22_spill] sm:$0xff] }
 0x42d   :  { %3283 = vmatprep.subr.bf16.mxu1 %v7004_v20  ;;  %3324 = vmatprep.subr.bf16.mxu0 %v8714_v53 }
 0x430   :  { %3284 = vmatpush1.bf16.msra.mxu1 %v7011_v7  ;;  %3325 = vmatpush1.bf16.msra.mxu0 %v8715_v56  ;;  %v8719_v7 = vld [vmem:[#allocation23_spill] sm:$0xff] }
 0x431   :  { %3285 = vmatprep.subr.bf16.mxu1 %v7014_v29  ;;  %3326 = vmatprep.subr.bf16.mxu0 %v8716_v44  ;;  %v8720_v29 = vld [vmem:[#allocation24_spill] sm:$0xff] }
 0x434   :  { %3286 = vmatpush1.bf16.msra.mxu1 %v7017_v47  ;;  %3327 = vmatpush1.bf16.msra.mxu0 %v8717_v25  ;;  %v8721_v47 = vld [vmem:[#allocation25_spill] sm:$0xff] }
 0x435   :  { %3403 = vmatprep.subr.bf16.mxu1 %v6609_v55  ;;  %3444 = vmatprep.subr.bf16.mxu0 %v8718_v4  ;;  %v8722_v55 = vld [vmem:[#allocation26_spill] sm:$0xff]  ;;  %v8723_v4 = vld [vmem:[#allocation27_spill] sm:$0xff] }
 0x437   :  { %3288 = vmatmul.mubr.bf16.vlgmr.msra.gmra.mrb[60].mxu1 %v7137_v28  ;;  %3329 = vmatmul.mubr.bf16.vlgmr.msra.gmra.mrb[48].mxu0 %v7137_v28  ;;  %v8724_v28 = vld [vmem:[#allocation28_spill] sm:$0xff] }
 0x438   :  { %3404 = vmatpush1.bf16.msra.mxu1 %v6614_v8  ;;  %3445 = vmatpush1.bf16.msra.mxu0 %v8719_v7 }
 0x439   :  { %3405 = vmatprep.subr.bf16.mxu1 %v6620_v33  ;;  %3446 = vmatprep.subr.bf16.mxu0 %v8720_v29  ;;  %v8725_v33 = vld [vmem:[#allocation29_spill] sm:$0xff]  ;;  %v8726_v29 = vld [vmem:[#allocation86_spill] sm:$0xff] }
 0x43c   :  { %3406 = vmatpush1.bf16.msra.mxu1 %v6628_v36  ;;  %3447 = vmatpush1.bf16.msra.mxu0 %v8721_v47  ;;  %v8727_v36 = vld [vmem:[#allocation30_spill] sm:$0xff]  ;;  %v8728_v47 = vld [vmem:[#allocation88_spill] sm:$0xff] }
 0x43d   :  { %3407 = vmatprep.subr.bf16.mxu1 %v6634_v42  ;;  %3448 = vmatprep.subr.bf16.mxu0 %v8722_v55  ;;  %v8729_v42 = vld [vmem:[#allocation31_spill] sm:$0xff]  ;;  %v8730_v55 = vld [vmem:[#allocation90_spill] sm:$0xff] }
 0x440   :  { %3408 = vmatpush1.bf16.msra.mxu1 %v6640_v58  ;;  %3449 = vmatpush1.bf16.msra.mxu0 %v8723_v4  ;;  %v8731_v58 = vld [vmem:[#allocation32_spill] sm:$0xff] }
 0x441   :  { %3409 = vmatprep.subr.bf16.mxu1 %v6646_v6  ;;  %3450 = vmatprep.subr.bf16.mxu0 %v8724_v28  ;;  %v8732_v6 = vld [vmem:[#allocation33_spill] sm:$0xff] }
 0x444   :  { %3410 = vmatpush1.bf16.msra.mxu1 %v6654_v18  ;;  %3451 = vmatpush1.bf16.msra.mxu0 %v8725_v33  ;;  %v8733_v18 = vld [vmem:[#allocation34_spill] sm:$0xff] }
 0x445   :  { %3411 = vmatprep.subr.bf16.mxu1 %v8726_v29  ;;  %3452 = vmatprep.subr.bf16.mxu0 %v8727_v36  ;;  %v8734_v29 = vld [vmem:[#allocation35_spill] sm:$0xff] }
 0x448   :  { %3412 = vmatpush1.bf16.msra.mxu1 %v8728_v47  ;;  %3453 = vmatpush1.bf16.msra.mxu0 %v8729_v42  ;;  %v8735_v47 = vld [vmem:[#allocation36_spill] sm:$0xff] }
 0x449   :  { %3413 = vmatprep.subr.bf16.mxu1 %v8730_v55  ;;  %3454 = vmatprep.subr.bf16.mxu0 %v8731_v58  ;;  %v8736_v55 = vld [vmem:[#allocation37_spill] sm:$0xff] }
 0x44c   :  { %3414 = vmatpush1.bf16.msra.mxu1 %v6680_v24  ;;  %3455 = vmatpush1.bf16.msra.mxu0 %v8732_v6  ;;  %v8737_v24 = vld [vmem:[#allocation38_spill] sm:$0xff] }
 0x44d   :  { %3415 = vmatprep.subr.bf16.mxu1 %v6686_v0  ;;  %3456 = vmatprep.subr.bf16.mxu0 %v8733_v18  ;;  %v8738_v0 = vld [vmem:[#allocation39_spill] sm:$0xff] }
 0x450   :  { %3416 = vmatpush1.bf16.msra.mxu1 %v6692_v52  ;;  %3457 = vmatpush1.bf16.msra.mxu0 %v8734_v29  ;;  %v8739_v52 = vld [vmem:[#allocation40_spill] sm:$0xff] }
 0x451   :  { %3417 = vmatprep.subr.bf16.mxu1 %v6698_v59  ;;  %3458 = vmatprep.subr.bf16.mxu0 %v8735_v47  ;;  %v8740_v59 = vld [vmem:[#allocation41_spill] sm:$0xff] }
 0x454   :  { %3418 = vmatpush1.bf16.msra.mxu1 %v6705_v63  ;;  %3459 = vmatpush1.bf16.msra.mxu0 %v8736_v55  ;;  %v8741_v63 = vld [vmem:[#allocation42_spill] sm:$0xff]  ;;  %v8764_v55 = vld [vmem:[#allocation185_spill] sm:$0xff] }
 0x455   :  { %3419 = vmatprep.subr.bf16.mxu1 %v6712_v38  ;;  %3460 = vmatprep.subr.bf16.mxu0 %v8737_v24  ;;  %v8742_v38 = vld [vmem:[#allocation43_spill] sm:$0xff]  ;;  %v8743_v24 = vld [vmem:[#allocation108_spill] sm:$0xff] }
 0x458   :  { %3420 = vmatpush1.bf16.msra.mxu1 %v6716_v39  ;;  %3461 = vmatpush1.bf16.msra.mxu0 %v8738_v0  ;;  %v8744_v39 = vld [vmem:[#allocation44_spill] sm:$0xff]  ;;  %v8745_v0 = vld [vmem:[#allocation109_spill] sm:$0xff] }
 0x459   :  { %3421 = vmatprep.subr.bf16.mxu1 %v6720_v51  ;;  %3462 = vmatprep.subr.bf16.mxu0 %v8739_v52  ;;  %v8746_v51 = vld [vmem:[#allocation45_spill] sm:$0xff]  ;;  %v8763_v52 = vld [vmem:[#allocation139_spill] sm:$0xff] }
 0x45c   :  { %3422 = vmatpush1.bf16.msra.mxu1 %v6725_v26  ;;  %3463 = vmatpush1.bf16.msra.mxu0 %v8740_v59  ;;  %v8747_v26 = vld [vmem:[#allocation46_spill] sm:$0xff] }
 0x45d   :  { %3423 = vmatprep.subr.bf16.mxu1 %v6728_v3  ;;  %3464 = vmatprep.subr.bf16.mxu0 %v8741_v63  ;;  %v8748_v3 = vld [vmem:[#allocation47_spill] sm:$0xff]  ;;  %v8762_v63 = vld [vmem:[#allocation184_spill] sm:$0xff] }
 0x460   :  { %3424 = vmatpush1.bf16.msra.mxu1 %v6733_v23  ;;  %3465 = vmatpush1.bf16.msra.mxu0 %v8742_v38  ;;  %v8749_v23 = vld [vmem:[#allocation48_spill] sm:$0xff] }
 0x461   :  { %3425 = vmatprep.subr.bf16.mxu1 %v8743_v24  ;;  %3466 = vmatprep.subr.bf16.mxu0 %v8744_v39  ;;  %v8750_v24 = vld [vmem:[#allocation49_spill] sm:$0xff]  ;;  %v8751_v39 = vld [vmem:[#allocation114_spill] sm:$0xff]  ;;  %v8761_v38 = vld [vmem:[#allocation136_spill] sm:$0xff] }
 0x464   :  { %3426 = vmatpush1.bf16.msra.mxu1 %v8745_v0  ;;  %3467 = vmatpush1.bf16.msra.mxu0 %v8746_v51  ;;  %v8752_v0 = vld [vmem:[#allocation50_spill] sm:$0xff]  ;;  %v8753_v51 = vld [vmem:[#allocation115_spill] sm:$0xff] }
 0x465   :  { %3427 = vmatprep.subr.bf16.mxu1 %v6744_v61  ;;  %3468 = vmatprep.subr.bf16.mxu0 %v8747_v26  ;;  %v8754_v61 = vld [vmem:[#allocation51_spill] sm:$0xff]  ;;  %v8755_v26 = vld [vmem:[#allocation116_spill] sm:$0xff] }
 0x468   :  { %3428 = vmatpush1.bf16.msra.mxu1 %v6749_v11  ;;  %3469 = vmatpush1.bf16.msra.mxu0 %v8748_v3  ;;  %v8756_v11 = vld [vmem:[#allocation52_spill] sm:$0xff]  ;;  %v8757_v3 = vld [vmem:[#allocation117_spill] sm:$0xff] }
 0x469   :  { %3429 = vmatprep.subr.bf16.mxu1 %v6752_v14  ;;  %3470 = vmatprep.subr.bf16.mxu0 %v8749_v23  ;;  %v8758_v14 = vld [vmem:[#allocation53_spill] sm:$0xff]  ;;  %v8759_v23 = vld [vmem:[#allocation118_spill] sm:$0xff] }
 0x46c   :  { %3430 = vmatpush1.bf16.msra.mxu1 %v6757_v17  ;;  %3471 = vmatpush1.bf16.msra.mxu0 %v8750_v24  ;;  %v8760_v17 = vld [vmem:[#allocation54_spill] sm:$0xff] }
 0x46d   :  { %3431 = vmatprep.subr.bf16.mxu1 %v8751_v39  ;;  %3472 = vmatprep.subr.bf16.mxu0 %v8752_v0 }
 0x470   :  { %3432 = vmatpush1.bf16.msra.mxu1 %v8753_v51  ;;  %3473 = vmatpush1.bf16.msra.mxu0 %v8754_v61 }
 0x471   :  { %3433 = vmatprep.subr.bf16.mxu1 %v8755_v26  ;;  %3474 = vmatprep.subr.bf16.mxu0 %v8756_v11 }
 0x474   :  { %3434 = vmatpush1.bf16.msra.mxu1 %v8757_v3  ;;  %3475 = vmatpush1.bf16.msra.mxu0 %v8758_v14 }
 0x475   :  { %3485 = vmatprep.subr.bf16.mxu1 %v8759_v23  ;;  %3526 = vmatprep.subr.bf16.mxu0 %v8760_v17 }
 0x4ca   :  { %v3207_v24 = vpop.f32.mrb[56].mxu1  ;;  %v3248_v39 = vpop.f32.mrb[44].mxu0 }
 0x4cb   :  { %v3337_v0 = vadd.f32 %v3207_v24, %v8761_v38  ;;  %v3339_v51 = vadd.f32 %v3248_v39, %v8762_v63  ;;  %v3209_v59 = vpop.f32.mrb[57].mxu1  ;;  %v3250_v61 = vpop.f32.mrb[45].mxu0 }
 0x4cc   :  { %v3338_v26 = vadd.f32 %v3209_v59, %v8763_v52  ;;  %v3340_v11 = vadd.f32 %v3250_v61, %v8764_v55  ;;  %v3211_v47 = vpop.f32.mrb[58].mxu1  ;;  %v3252_v3 = vpop.f32.mrb[46].mxu0 }
 0x4cd   :  { %v3212_v29 = vpop.f32.mrb[59].mxu1  ;;  %v3253_v14 = vpop.f32.mrb[47].mxu0  ;;  %v5473_v18 = vmul.f32 -1.442695, %v3337_v0  ;;  %v5475_v23 = vmul.f32 -1.442695, %v3339_v51 }
 0x4ce   :  { %v5474_v6 = vmul.f32 -1.442695, %v3338_v26  ;;  %v5476_v17 = vmul.f32 -1.442695, %v3340_v11  ;;  %v8765_v0 = vld [vmem:[#allocation137_spill] sm:$0xff]  ;;  %v8766_v11 = vld [vmem:[#allocation198_spill] sm:$0xff] }
 0x4cf   :  { %5707 = vpow2.f32 %v5473_v18  ;;  %v8768_v3 = vld [vmem:[#allocation199_spill] sm:$0xff] }
 0x4d0   :  { %5709 = vpow2.f32 %v5475_v23 }
 0x4d1   :  { %5711 = vpow2.f32 %v5474_v6 }
 0x4d2   :  { %5713 = vpow2.f32 %v5476_v17  ;;  %v8767_v17 = vld [vmem:[#allocation140_spill] sm:$0xff] }
 0x4d9   :  { %v5708_v24 = vpop.eup %5707 }
 0x4da   :  { %v5710_v63 = vpop.eup %5709  ;;  %v3351_v58 = vadd.f32 1.0, %v5708_v24 }
 0x4db   :  { %v5712_v38 = vpop.eup %5711  ;;  %v3363_v52 = vadd.f32 1.0, %v5710_v63 }
 0x4dc   :  { %v5714_v39 = vpop.eup %5713  ;;  %v3352_v59 = vadd.f32 1.0, %v5712_v38  ;;  %5715 = vrcp.f32 %v3351_v58 }
 0x4dd   :  { %v3364_v61 = vadd.f32 1.0, %v5714_v39  ;;  %5717 = vrcp.f32 %v3363_v52 }
 0x4de   :  { %5719 = vrcp.f32 %v3352_v59 }
 0x4df   :  { %5721 = vrcp.f32 %v3364_v61 }
 0x4e6   :  { %v5716_v52 = vpop.eup %5715 }
 0x4e7   :  { %v5718_v59 = vpop.eup %5717 }
 0x50a   :  { %v3289_v55 = vpop.f32.mrb[60].mxu1  ;;  %v3330_v14 = vpop.f32.mrb[48].mxu0 }
 0x50b   :  { %v3341_v51 = vadd.f32 %v3289_v55, %v8765_v0  ;;  %v3343_v18 = vadd.f32 %v3330_v14, %v8766_v11  ;;  %v3291_v23 = vpop.f32.mrb[61].mxu1  ;;  %v3332_v6 = vpop.f32.mrb[49].mxu0  ;;  %v3383_v11 = vmul.f32 %v5718_v59, %v7131_v41  ;;  %v8769_v59 = vld [vmem:[#allocation128_spill] sm:$0xff] }
 0x50c   :  { %v3342_v26 = vadd.f32 %v3291_v23, %v8767_v17  ;;  %v3344_v29 = vadd.f32 %v3332_v6, %v8768_v3  ;;  %v3293_v47 = vpop.f32.mrb[62].mxu1  ;;  %v3334_v24 = vpop.f32.mrb[50].mxu0 }
 0x50d   :  { %5723 = vtanh.f32 %v3341_v51  ;;  %v5477_v63 = vmul.f32 -1.442695, %v3343_v18  ;;  %v3294_v58 = vpop.f32.mrb[63].mxu1  ;;  %v3335_v38 = vpop.f32.mrb[51].mxu0 }
 0x50e   :  { %5725 = vtanh.f32 %v3342_v26  ;;  %v5478_v39 = vmul.f32 -1.442695, %v3344_v29  ;;  %v5720_v55 = vpop.eup %5719 }
 0x50f   :  { %5727 = vpow2.f32 %v5477_v63  ;;  %v5722_v14 = vpop.eup %5721 }
 0x510   :  { %5729 = vpow2.f32 %v5478_v39  ;;  %v3384_v17 = vmul.f32 %v5722_v14, %v7133_v12  ;;  %v8771_v14 = vld [vmem:[#allocation132_spill] sm:$0xff] }
 0x517   :  { %v5724_v0 = vpop.eup %5723 }
 0x518   :  { %v5726_v61 = vpop.eup %5725  ;;  %v3385_v23 = vmul.f32 %v5724_v0, %v5716_v52  ;;  %v8772_v0 = vld [vmem:[#allocation133_spill] sm:$0xff] }
 0x519   :  { %v5728_v6 = vpop.eup %5727  ;;  %v3386_v51 = vmul.f32 %v5726_v61, %v5720_v55  ;;  %v8770_v55 = vld [vmem:[#allocation129_spill] sm:$0xff]  ;;  %v8773_v61 = vld [vmem:[#allocation66_spill] sm:$0xff] }
 0x51a   :  { %v5730_v18 = vpop.eup %5729  ;;  %v7281_v3 = vadd.f32 %v3385_v23, %v3383_v11  ;;  %v3377_v26 = vadd.f32 1.0, %v5728_v6  ;;  %v8774_v11 = vld [vmem:[#allocation135_spill] sm:$0xff]  ;;  %v8776_v6 = vld [vmem:[#allocation138_spill] sm:$0xff] }
 0x51b   :  { %v7283_v29 = vadd.f32 %v3386_v51, %v3384_v17  ;;  %v3378_v47 = vadd.f32 1.0, %v5730_v18  ;;  %v8775_v23 = vld [vmem:[#allocation67_spill] sm:$0xff]  ;;  %v8777_v17 = vld [vmem:[#allocation68_spill] sm:$0xff]  ;;  %v8778_v51 = vld [vmem:[#allocation141_spill] sm:$0xff] }
 0x51c   :  { %5731 = vtanh.f32 %v7281_v3  ;;  %v8779_v18 = vld [vmem:[#allocation69_spill] sm:$0xff] }
 0x51d   :  { %5733 = vrcp.f32 %v3377_v26  ;;  %v8780_v26 = vld [vmem:[#allocation142_spill] sm:$0xff] }
 0x51e   :  { %5735 = vtanh.f32 %v7283_v29 }
 0x51f   :  { %5737 = vrcp.f32 %v3378_v47  ;;  %v8781_v47 = vld [vmem:[#allocation71_spill] sm:$0xff] }
 0x526   :  { %v5732_v24 = vpop.eup %5731 }
 0x527   :  { %v5734_v41 = vpop.eup %5733 }
 0x528   :  { %v5736_v63 = vpop.eup %5735  ;;  %v3391_v38 = vmul.f32 %v5734_v41, %v5732_v24  ;;  %v8782_v24 = vld [vmem:[#allocation147_spill] sm:$0xff]  ;;  %v8783_v41 = vld [vmem:[#allocation150_spill] sm:$0xff] }
 0x529   :  { %v5738_v58 = vpop.eup %5737 }
 0x52a   :  { %v3392_v12 = vmul.f32 %v5738_v58, %v5736_v63  ;;  %v7287_v52 = vpack.c.bf16 %v3391_v38, %v3391_v38  ;;  %v8784_v63 = vld [vmem:[#allocation75_spill] sm:$0xff]  ;;  %v8785_v58 = vld [vmem:[#allocation153_spill] sm:$0xff]  ;;  %v8786_v38 = vld [vmem:[#allocation154_spill] sm:$0xff] }
 0x52c   :  { %v3402_v39 = vpack.c.bf16 %v3392_v12, %v3392_v12  ;;  %v8787_v12 = vld [vmem:[#allocation159_spill] sm:$0xff] }
 0x52e   :  { %3435 = vmatprep.mubr.bf16.mxu1 %v3402_v39  ;;  %3476 = vmatprep.mubr.bf16.mxu0 %v3402_v39 }
 0x52f   :  { %3436 = vmatmul.mubr.bf16.vlgmr.msra.gmra.mrb[64].mxu1 %v7287_v52  ;;  %3477 = vmatmul.mubr.bf16.vlgmr.msra.gmra.mrb[52].mxu0 %v7287_v52 }
 0x530   :  { %3486 = vmatpush1.bf16.msra.mxu1 %v8668_v32  ;;  %3527 = vmatpush1.bf16.msra.mxu0 %v8669_v9 }
 0x531   :  { %3517 = vmatprep.mubr.bf16.mxu1 %v3402_v39  ;;  %3558 = vmatprep.mubr.bf16.mxu0 %v3402_v39  ;;  %v8788_v39 = vld [vmem:[#allocation162_spill] sm:$0xff] }
 0x532   :  { %3487 = vmatprep.subr.bf16.mxu1 %v8670_v35  ;;  %3528 = vmatprep.subr.bf16.mxu0 %v8671_v10 }
 0x534   :  { %3488 = vmatpush1.bf16.msra.mxu1 %v8672_v19  ;;  %3529 = vmatpush1.bf16.msra.mxu0 %v8673_v37 }
 0x535   :  { %3489 = vmatprep.subr.bf16.mxu1 %v8674_v30  ;;  %3530 = vmatprep.subr.bf16.mxu0 %v8675_v27 }
 0x538   :  { %3490 = vmatpush1.bf16.msra.mxu1 %v8676_v43  ;;  %3531 = vmatpush1.bf16.msra.mxu0 %v8677_v34 }
 0x539   :  { %3491 = vmatprep.subr.bf16.mxu1 %v8678_v45  ;;  %3532 = vmatprep.subr.bf16.mxu0 %v8679_v16 }
 0x53c   :  { %3492 = vmatpush1.bf16.msra.mxu1 %v8680_v13  ;;  %3533 = vmatpush1.bf16.msra.mxu0 %v8681_v57 }
 0x53d   :  { %3493 = vmatprep.subr.bf16.mxu1 %v8682_v2  ;;  %3534 = vmatprep.subr.bf16.mxu0 %v8683_v1 }
 0x540   :  { %3494 = vmatpush1.bf16.msra.mxu1 %v8769_v59  ;;  %3535 = vmatpush1.bf16.msra.mxu0 %v8685_v22 }
 0x541   :  { %3495 = vmatprep.subr.bf16.mxu1 %v8770_v55  ;;  %3536 = vmatprep.subr.bf16.mxu0 %v8687_v15 }
 0x544   :  { %3496 = vmatpush1.bf16.msra.mxu1 %v8771_v14  ;;  %3537 = vmatpush1.bf16.msra.mxu0 %v8688_v31 }
 0x545   :  { %3497 = vmatprep.subr.bf16.mxu1 %v8772_v0  ;;  %3538 = vmatprep.subr.bf16.mxu0 %v8773_v61 }
 0x548   :  { %3498 = vmatpush1.bf16.msra.mxu1 %v8774_v11  ;;  %3539 = vmatpush1.bf16.msra.mxu0 %v8775_v23 }
 0x549   :  { %3499 = vmatprep.subr.bf16.mxu1 %v8776_v6  ;;  %3540 = vmatprep.subr.bf16.mxu0 %v8777_v17 }
 0x54c   :  { %3500 = vmatpush1.bf16.msra.mxu1 %v8778_v51  ;;  %3541 = vmatpush1.bf16.msra.mxu0 %v8779_v18 }
 0x54d   :  { %3501 = vmatprep.subr.bf16.mxu1 %v8780_v26  ;;  %3542 = vmatprep.subr.bf16.mxu0 %v8781_v47 }
 0x550   :  { %3502 = vmatpush1.bf16.msra.mxu1 %v8782_v24  ;;  %3543 = vmatpush1.bf16.msra.mxu0 %v8697_v21  ;;  %v8789_v21 = vld [vmem:[#allocation165_spill] sm:$0xff] }
 0x551   :  { %3503 = vmatprep.subr.bf16.mxu1 %v8783_v41  ;;  %3544 = vmatprep.subr.bf16.mxu0 %v8784_v63  ;;  %v8790_v63 = vld [vmem:[#allocation166_spill] sm:$0xff] }
 0x554   :  { %3504 = vmatpush1.bf16.msra.mxu1 %v8785_v58  ;;  %3545 = vmatpush1.bf16.msra.mxu0 %v8701_v48  ;;  %v8791_v48 = vld [vmem:[#allocation171_spill] sm:$0xff] }
 0x555   :  { %3505 = vmatprep.subr.bf16.mxu1 %v8786_v38  ;;  %3546 = vmatprep.subr.bf16.mxu0 %v8703_v50  ;;  %v8792_v50 = vld [vmem:[#allocation174_spill] sm:$0xff] }
 0x558   :  { %3506 = vmatpush1.bf16.msra.mxu1 %v8787_v12  ;;  %3547 = vmatpush1.bf16.msra.mxu0 %v8705_v49  ;;  %v8793_v49 = vld [vmem:[#allocation177_spill] sm:$0xff] }
 0x559   :  { %3507 = vmatprep.subr.bf16.mxu1 %v8788_v39  ;;  %3548 = vmatprep.subr.bf16.mxu0 %v8707_v62 }
 0x55c   :  { %3508 = vmatpush1.bf16.msra.mxu1 %v8789_v21  ;;  %3549 = vmatpush1.bf16.msra.mxu0 %v8708_v60  ;;  %v8794_v60 = vld [vmem:[#allocation181_spill] sm:$0xff] }
 0x55d   :  { %3509 = vmatprep.subr.bf16.mxu1 %v8790_v63  ;;  %3550 = vmatprep.subr.bf16.mxu0 %v8710_v40  ;;  %v8795_v40 = vld [vmem:[#allocation182_spill] sm:$0xff] }
 0x560   :  { %3510 = vmatpush1.bf16.msra.mxu1 %v8791_v48  ;;  %3551 = vmatpush1.bf16.msra.mxu0 %v8711_v5  ;;  %v8796_v5 = vld [vmem:[#allocation183_spill] sm:$0xff] }
 0x561   :  { %3511 = vmatprep.subr.bf16.mxu1 %v8792_v50  ;;  %3552 = vmatprep.subr.bf16.mxu0 %v8712_v54  ;;  %v8797_v54 = vld [vmem:[#allocation70_spill] sm:$0xff] }
 0x564   :  { %3512 = vmatpush1.bf16.msra.mxu1 %v8793_v49  ;;  %3553 = vmatpush1.bf16.msra.mxu0 %v8713_v46  ;;  %v8798_v49 = vld [vmem:[#allocation22_spill] sm:$0xff] }
 0x565   :  { %3513 = vmatprep.subr.bf16.mxu1 %v7004_v20  ;;  %3554 = vmatprep.subr.bf16.mxu0 %v8714_v53 }
 0x568   :  { %3514 = vmatpush1.bf16.msra.mxu1 %v8794_v60  ;;  %3555 = vmatpush1.bf16.msra.mxu0 %v8715_v56  ;;  %v8799_v56 = vld [vmem:[#allocation74_spill] sm:$0xff]  ;;  %v8859_v60 = vld [vmem:[#allocation187_spill] sm:$0xff] }
 0x569   :  { %3515 = vmatprep.subr.bf16.mxu1 %v8795_v40  ;;  %3556 = vmatprep.subr.bf16.mxu0 %v8716_v44  ;;  %v8800_v40 = vld [vmem:[#allocation24_spill] sm:$0xff] }
 0x56a   :  { %v8801_v44 = vld [vmem:[#allocation76_spill] sm:$0xff] }
 0x56c   :  { %3516 = vmatpush1.bf16.msra.mxu1 %v8796_v5  ;;  %3557 = vmatpush1.bf16.msra.mxu0 %v8717_v25  ;;  %v8802_v5 = vld [vmem:[#allocation25_spill] sm:$0xff]  ;;  %v8803_v25 = vld [vmem:[#allocation78_spill] sm:$0xff] }
 0x56d   :  { %3633 = vmatprep.subr.bf16.mxu1 %v8797_v54  ;;  %3674 = vmatprep.subr.bf16.mxu0 %v8798_v49  ;;  %v8804_v54 = vld [vmem:[#allocation26_spill] sm:$0xff]  ;;  %v8805_v49 = vld [vmem:[#allocation80_spill] sm:$0xff] }
 0x56f   :  { %3518 = vmatmul.mubr.bf16.vlgmr.msra.gmra.mrb[68].mxu1 %v7287_v52  ;;  %3559 = vmatmul.mubr.bf16.vlgmr.msra.gmra.mrb[56].mxu0 %v7287_v52  ;;  %v8806_v52 = vld [vmem:[#allocation82_spill] sm:$0xff] }
 0x570   :  { %3634 = vmatpush1.bf16.msra.mxu1 %v6614_v8  ;;  %3675 = vmatpush1.bf16.msra.mxu0 %v8719_v7  ;;  %v8807_v7 = vld [vmem:[#allocation84_spill] sm:$0xff]  ;;  %v8858_v8 = vld [vmem:[#allocation145_spill] sm:$0xff] }
 0x571   :  { %3635 = vmatprep.subr.bf16.mxu1 %v8799_v56  ;;  %3676 = vmatprep.subr.bf16.mxu0 %v8800_v40  ;;  %v8808_v40 = vld [vmem:[#allocation86_spill] sm:$0xff] }
 0x574   :  { %3636 = vmatpush1.bf16.msra.mxu1 %v8801_v44  ;;  %3677 = vmatpush1.bf16.msra.mxu0 %v8802_v5  ;;  %v8809_v5 = vld [vmem:[#allocation88_spill] sm:$0xff]  ;;  %v8857_v44 = vld [vmem:[#allocation186_spill] sm:$0xff] }
 0x575   :  { %3637 = vmatprep.subr.bf16.mxu1 %v8803_v25  ;;  %3678 = vmatprep.subr.bf16.mxu0 %v8804_v54  ;;  %v8810_v54 = vld [vmem:[#allocation90_spill] sm:$0xff]  ;;  %v8856_v25 = vld [vmem:[#allocation143_spill] sm:$0xff] }
 0x578   :  { %3638 = vmatpush1.bf16.msra.mxu1 %v8805_v49  ;;  %3679 = vmatpush1.bf16.msra.mxu0 %v8723_v4  ;;  %v8811_v49 = vld [vmem:[#allocation32_spill] sm:$0xff] }
 0x579   :  { %3639 = vmatprep.subr.bf16.mxu1 %v8806_v52  ;;  %3680 = vmatprep.subr.bf16.mxu0 %v8724_v28  ;;  %v8812_v4 = vld [vmem:[#allocation92_spill] sm:$0xff]  ;;  %v8813_v52 = vld [vmem:[#allocation33_spill] sm:$0xff]  ;;  %v8814_v28 = vld [vmem:[#allocation94_spill] sm:$0xff] }
 0x57c   :  { %3640 = vmatpush1.bf16.msra.mxu1 %v8807_v7  ;;  %3681 = vmatpush1.bf16.msra.mxu0 %v8725_v33  ;;  %v8815_v7 = vld [vmem:[#allocation34_spill] sm:$0xff]  ;;  %v8816_v33 = vld [vmem:[#allocation96_spill] sm:$0xff] }
 0x57d   :  { %3641 = vmatprep.subr.bf16.mxu1 %v8808_v40  ;;  %3682 = vmatprep.subr.bf16.mxu0 %v8727_v36  ;;  %v8817_v40 = vld [vmem:[#allocation35_spill] sm:$0xff]  ;;  %v8818_v36 = vld [vmem:[#allocation98_spill] sm:$0xff] }
 0x580   :  { %3642 = vmatpush1.bf16.msra.mxu1 %v8809_v5  ;;  %3683 = vmatpush1.bf16.msra.mxu0 %v8729_v42  ;;  %v8819_v5 = vld [vmem:[#allocation36_spill] sm:$0xff] }
 0x581   :  { %3643 = vmatprep.subr.bf16.mxu1 %v8810_v54  ;;  %3684 = vmatprep.subr.bf16.mxu0 %v8811_v49  ;;  %v8820_v42 = vld [vmem:[#allocation100_spill] sm:$0xff]  ;;  %v8821_v54 = vld [vmem:[#allocation37_spill] sm:$0xff]  ;;  %v8822_v49 = vld [vmem:[#allocation102_spill] sm:$0xff] }
 0x584   :  { %3644 = vmatpush1.bf16.msra.mxu1 %v8812_v4  ;;  %3685 = vmatpush1.bf16.msra.mxu0 %v8813_v52  ;;  %v8823_v4 = vld [vmem:[#allocation38_spill] sm:$0xff]  ;;  %v8824_v52 = vld [vmem:[#allocation103_spill] sm:$0xff] }
 0x585   :  { %3645 = vmatprep.subr.bf16.mxu1 %v8814_v28  ;;  %3686 = vmatprep.subr.bf16.mxu0 %v8815_v7  ;;  %v8825_v28 = vld [vmem:[#allocation39_spill] sm:$0xff]  ;;  %v8826_v7 = vld [vmem:[#allocation104_spill] sm:$0xff] }
 0x588   :  { %3646 = vmatpush1.bf16.msra.mxu1 %v8816_v33  ;;  %3687 = vmatpush1.bf16.msra.mxu0 %v8817_v40  ;;  %v8827_v33 = vld [vmem:[#allocation40_spill] sm:$0xff]  ;;  %v8828_v40 = vld [vmem:[#allocation105_spill] sm:$0xff] }
 0x589   :  { %3647 = vmatprep.subr.bf16.mxu1 %v8818_v36  ;;  %3688 = vmatprep.subr.bf16.mxu0 %v8819_v5  ;;  %v8829_v36 = vld [vmem:[#allocation41_spill] sm:$0xff]  ;;  %v8830_v5 = vld [vmem:[#allocation106_spill] sm:$0xff] }
 0x58c   :  { %3648 = vmatpush1.bf16.msra.mxu1 %v8820_v42  ;;  %3689 = vmatpush1.bf16.msra.mxu0 %v8821_v54  ;;  %v8831_v42 = vld [vmem:[#allocation42_spill] sm:$0xff]  ;;  %v8832_v54 = vld [vmem:[#allocation107_spill] sm:$0xff] }
 0x58d   :  { %3649 = vmatprep.subr.bf16.mxu1 %v8822_v49  ;;  %3690 = vmatprep.subr.bf16.mxu0 %v8823_v4  ;;  %v8833_v49 = vld [vmem:[#allocation43_spill] sm:$0xff]  ;;  %v8834_v4 = vld [vmem:[#allocation108_spill] sm:$0xff] }
 0x590   :  { %3650 = vmatpush1.bf16.msra.mxu1 %v8824_v52  ;;  %3691 = vmatpush1.bf16.msra.mxu0 %v8825_v28  ;;  %v8835_v52 = vld [vmem:[#allocation44_spill] sm:$0xff]  ;;  %v8836_v28 = vld [vmem:[#allocation109_spill] sm:$0xff] }
 0x591   :  { %3651 = vmatprep.subr.bf16.mxu1 %v8826_v7  ;;  %3692 = vmatprep.subr.bf16.mxu0 %v8827_v33  ;;  %v8837_v7 = vld [vmem:[#allocation45_spill] sm:$0xff]  ;;  %v8838_v33 = vld [vmem:[#allocation110_spill] sm:$0xff] }
 0x594   :  { %3652 = vmatpush1.bf16.msra.mxu1 %v8828_v40  ;;  %3693 = vmatpush1.bf16.msra.mxu0 %v8829_v36  ;;  %v8839_v40 = vld [vmem:[#allocation46_spill] sm:$0xff]  ;;  %v8840_v36 = vld [vmem:[#allocation111_spill] sm:$0xff] }
 0x595   :  { %3653 = vmatprep.subr.bf16.mxu1 %v8830_v5  ;;  %3694 = vmatprep.subr.bf16.mxu0 %v8831_v42  ;;  %v8841_v5 = vld [vmem:[#allocation47_spill] sm:$0xff]  ;;  %v8842_v42 = vld [vmem:[#allocation112_spill] sm:$0xff] }
 0x598   :  { %3654 = vmatpush1.bf16.msra.mxu1 %v8832_v54  ;;  %3695 = vmatpush1.bf16.msra.mxu0 %v8833_v49  ;;  %v8843_v54 = vld [vmem:[#allocation48_spill] sm:$0xff]  ;;  %v8844_v49 = vld [vmem:[#allocation113_spill] sm:$0xff] }
 0x599   :  { %3655 = vmatprep.subr.bf16.mxu1 %v8834_v4  ;;  %3696 = vmatprep.subr.bf16.mxu0 %v8835_v52  ;;  %v8845_v4 = vld [vmem:[#allocation49_spill] sm:$0xff]  ;;  %v8846_v52 = vld [vmem:[#allocation114_spill] sm:$0xff] }
 0x59c   :  { %3656 = vmatpush1.bf16.msra.mxu1 %v8836_v28  ;;  %3697 = vmatpush1.bf16.msra.mxu0 %v8837_v7  ;;  %v8847_v28 = vld [vmem:[#allocation50_spill] sm:$0xff]  ;;  %v8848_v7 = vld [vmem:[#allocation115_spill] sm:$0xff] }
 0x59d   :  { %3657 = vmatprep.subr.bf16.mxu1 %v8838_v33  ;;  %3698 = vmatprep.subr.bf16.mxu0 %v8839_v40  ;;  %v8849_v33 = vld [vmem:[#allocation51_spill] sm:$0xff]  ;;  %v8850_v40 = vld [vmem:[#allocation116_spill] sm:$0xff] }
 0x5a0   :  { %3658 = vmatpush1.bf16.msra.mxu1 %v8840_v36  ;;  %3699 = vmatpush1.bf16.msra.mxu0 %v8841_v5  ;;  %v8851_v36 = vld [vmem:[#allocation52_spill] sm:$0xff]  ;;  %v8852_v5 = vld [vmem:[#allocation117_spill] sm:$0xff] }
 0x5a1   :  { %3659 = vmatprep.subr.bf16.mxu1 %v8842_v42  ;;  %3700 = vmatprep.subr.bf16.mxu0 %v8843_v54  ;;  %v8853_v42 = vld [vmem:[#allocation53_spill] sm:$0xff]  ;;  %v8854_v54 = vld [vmem:[#allocation118_spill] sm:$0xff] }
 0x5a4   :  { %3660 = vmatpush1.bf16.msra.mxu1 %v8844_v49  ;;  %3701 = vmatpush1.bf16.msra.mxu0 %v8845_v4  ;;  %v8855_v49 = vld [vmem:[#allocation54_spill] sm:$0xff] }
 0x5a5   :  { %3661 = vmatprep.subr.bf16.mxu1 %v8846_v52  ;;  %3702 = vmatprep.subr.bf16.mxu0 %v8847_v28 }
 0x5a8   :  { %3662 = vmatpush1.bf16.msra.mxu1 %v8848_v7  ;;  %3703 = vmatpush1.bf16.msra.mxu0 %v8849_v33 }
 0x5a9   :  { %3663 = vmatprep.subr.bf16.mxu1 %v8850_v40  ;;  %3704 = vmatprep.subr.bf16.mxu0 %v8851_v36 }
 0x5ac   :  { %3664 = vmatpush1.bf16.msra.mxu1 %v8852_v5  ;;  %3705 = vmatpush1.bf16.msra.mxu0 %v8853_v42 }
 0x5ad   :  { %3715 = vmatprep.subr.bf16.mxu1 %v8854_v54  ;;  %3756 = vmatprep.subr.bf16.mxu0 %v8855_v49 }
 0x602   :  { %v3437_v4 = vpop.f32.mrb[64].mxu1  ;;  %v3478_v52 = vpop.f32.mrb[52].mxu0 }
 0x603   :  { %v3567_v28 = vadd.f32 %v3437_v4, %v8856_v25  ;;  %v3569_v7 = vadd.f32 %v3478_v52, %v8857_v44  ;;  %v3439_v56 = vpop.f32.mrb[65].mxu1  ;;  %v3480_v33 = vpop.f32.mrb[53].mxu0 }
 0x604   :  { %v3568_v40 = vadd.f32 %v3439_v56, %v8858_v8  ;;  %v3570_v36 = vadd.f32 %v3480_v33, %v8859_v60  ;;  %v3441_v53 = vpop.f32.mrb[66].mxu1  ;;  %v3482_v5 = vpop.f32.mrb[54].mxu0  ;;  %v8863_v60 = vld [vmem:[#allocation201_spill] sm:$0xff] }
 0x605   :  { %v3442_v20 = vpop.f32.mrb[67].mxu1  ;;  %v3483_v42 = vpop.f32.mrb[55].mxu0  ;;  %v5479_v46 = vmul.f32 -1.442695, %v3567_v28  ;;  %v5481_v54 = vmul.f32 -1.442695, %v3569_v7 }
 0x606   :  { %v5480_v50 = vmul.f32 -1.442695, %v3568_v40  ;;  %v5482_v49 = vmul.f32 -1.442695, %v3570_v36  ;;  %v8860_v20 = vld [vmem:[#allocation144_spill] sm:$0xff] }
 0x607   :  { %5739 = vpow2.f32 %v5479_v46  ;;  %v8861_v36 = vld [vmem:[#allocation200_spill] sm:$0xff] }
 0x608   :  { %5741 = vpow2.f32 %v5481_v54 }
 0x609   :  { %5743 = vpow2.f32 %v5480_v50 }
 0x60a   :  { %5745 = vpow2.f32 %v5482_v49  ;;  %v8862_v49 = vld [vmem:[#allocation146_spill] sm:$0xff] }
 0x611   :  { %v5740_v25 = vpop.eup %5739 }
 0x612   :  { %v5742_v44 = vpop.eup %5741  ;;  %v3581_v48 = vadd.f32 1.0, %v5740_v25 }
 0x613   :  { %v5744_v4 = vpop.eup %5743  ;;  %v3593_v8 = vadd.f32 1.0, %v5742_v44 }
 0x614   :  { %v5746_v52 = vpop.eup %5745  ;;  %v3582_v56 = vadd.f32 1.0, %v5744_v4  ;;  %5747 = vrcp.f32 %v3581_v48 }
 0x615   :  { %v3594_v33 = vadd.f32 1.0, %v5746_v52  ;;  %5749 = vrcp.f32 %v3593_v8 }
 0x616   :  { %5751 = vrcp.f32 %v3582_v56 }
 0x617   :  { %5753 = vrcp.f32 %v3594_v33 }
 0x61e   :  { %v5748_v8 = vpop.eup %5747 }
 0x61f   :  { %v5750_v56 = vpop.eup %5749 }
 0x642   :  { %v3519_v53 = vpop.f32.mrb[68].mxu1  ;;  %v3560_v42 = vpop.f32.mrb[56].mxu0 }
 0x643   :  { %v3571_v7 = vadd.f32 %v3519_v53, %v8860_v20  ;;  %v3573_v46 = vadd.f32 %v3560_v42, %v8861_v36  ;;  %v3521_v5 = vpop.f32.mrb[69].mxu1  ;;  %v3562_v50 = vpop.f32.mrb[57].mxu0  ;;  %v3613_v36 = vmul.f32 %v5750_v56, %v7281_v3  ;;  %v8864_v56 = vld [vmem:[#allocation73_spill] sm:$0xff] }
 0x644   :  { %v3572_v54 = vadd.f32 %v3521_v5, %v8862_v49  ;;  %v3574_v40 = vadd.f32 %v3562_v50, %v8863_v60  ;;  %v3523_v28 = vpop.f32.mrb[70].mxu1  ;;  %v3564_v25 = vpop.f32.mrb[58].mxu0 }
 0x645   :  { %5755 = vtanh.f32 %v3571_v7  ;;  %v5483_v44 = vmul.f32 -1.442695, %v3573_v46  ;;  %v3524_v48 = vpop.f32.mrb[71].mxu1  ;;  %v3565_v4 = vpop.f32.mrb[59].mxu0 }
 0x646   :  { %5757 = vtanh.f32 %v3572_v54  ;;  %v5484_v52 = vmul.f32 -1.442695, %v3574_v40  ;;  %v5752_v53 = vpop.eup %5751 }
 0x647   :  { %5759 = vpow2.f32 %v5483_v44  ;;  %v5754_v42 = vpop.eup %5753 }
 0x648   :  { %5761 = vpow2.f32 %v5484_v52  ;;  %v3614_v49 = vmul.f32 %v5754_v42, %v7283_v29  ;;  %v8866_v42 = vld [vmem:[#allocation77_spill] sm:$0xff] }
 0x64f   :  { %v5756_v20 = vpop.eup %5755 }
 0x650   :  { %v5758_v33 = vpop.eup %5757  ;;  %v3615_v5 = vmul.f32 %v5756_v20, %v5748_v8  ;;  %v8867_v20 = vld [vmem:[#allocation79_spill] sm:$0xff] }
 0x651   :  { %v5760_v50 = vpop.eup %5759  ;;  %v3616_v7 = vmul.f32 %v5758_v33, %v5752_v53  ;;  %v8865_v53 = vld [vmem:[#allocation75_spill] sm:$0xff]  ;;  %v8868_v33 = vld [vmem:[#allocation81_spill] sm:$0xff] }
 0x652   :  { %v5762_v46 = vpop.eup %5761  ;;  %v7431_v60 = vadd.f32 %v3615_v5, %v3613_v36  ;;  %v3607_v54 = vadd.f32 1.0, %v5760_v50  ;;  %v8869_v36 = vld [vmem:[#allocation85_spill] sm:$0xff]  ;;  %v8870_v5 = vld [vmem:[#allocation87_spill] sm:$0xff] }
 0x653   :  { %v7433_v40 = vadd.f32 %v3616_v7, %v3614_v49  ;;  %v3608_v28 = vadd.f32 1.0, %v5762_v46  ;;  %v8871_v50 = vld [vmem:[#allocation171_spill] sm:$0xff]  ;;  %v8872_v49 = vld [vmem:[#allocation89_spill] sm:$0xff]  ;;  %v8873_v7 = vld [vmem:[#allocation174_spill] sm:$0xff] }
 0x654   :  { %5763 = vtanh.f32 %v7431_v60  ;;  %v8874_v46 = vld [vmem:[#allocation91_spill] sm:$0xff] }
 0x655   :  { %5765 = vrcp.f32 %v3607_v54  ;;  %v8875_v54 = vld [vmem:[#allocation177_spill] sm:$0xff] }
 0x656   :  { %5767 = vtanh.f32 %v7433_v40 }
 0x657   :  { %5769 = vrcp.f32 %v3608_v28  ;;  %v8876_v28 = vld [vmem:[#allocation93_spill] sm:$0xff] }
 0x65e   :  { %v5764_v25 = vpop.eup %5763 }
 0x65f   :  { %v5766_v3 = vpop.eup %5765 }
 0x660   :  { %v5768_v44 = vpop.eup %5767  ;;  %v3621_v4 = vmul.f32 %v5766_v3, %v5764_v25  ;;  %v8877_v25 = vld [vmem:[#allocation178_spill] sm:$0xff]  ;;  %v8878_v3 = vld [vmem:[#allocation95_spill] sm:$0xff] }
 0x661   :  { %v5770_v48 = vpop.eup %5769 }
 0x662   :  { %v3622_v29 = vmul.f32 %v5770_v48, %v5768_v44  ;;  %v7437_v8 = vpack.c.bf16 %v3621_v4, %v3621_v4  ;;  %v8879_v44 = vld [vmem:[#allocation181_spill] sm:$0xff]  ;;  %v8881_v4 = vld [vmem:[#allocation182_spill] sm:$0xff] }
 0x663   :  { %v8880_v48 = vld [vmem:[#allocation97_spill] sm:$0xff] }
 0x664   :  { %v3632_v52 = vpack.c.bf16 %v3622_v29, %v3622_v29  ;;  %v8882_v29 = vld [vmem:[#allocation99_spill] sm:$0xff] }
 0x666   :  { %3665 = vmatprep.mubr.bf16.mxu1 %v3632_v52  ;;  %3706 = vmatprep.mubr.bf16.mxu0 %v3632_v52 }
 0x667   :  { %3666 = vmatmul.mubr.bf16.vlgmr.msra.gmra.mrb[72].mxu1 %v7437_v8  ;;  %3707 = vmatmul.mubr.bf16.vlgmr.msra.gmra.mrb[60].mxu0 %v7437_v8 }
 0x668   :  { %3716 = vmatpush1.bf16.msra.mxu1 %v8668_v32  ;;  %3757 = vmatpush1.bf16.msra.mxu0 %v8669_v9 }
 0x669   :  { %3747 = vmatprep.mubr.bf16.mxu1 %v3632_v52  ;;  %3788 = vmatprep.mubr.bf16.mxu0 %v3632_v52  ;;  %v8883_v52 = vld [vmem:[#allocation183_spill] sm:$0xff] }
 0x66a   :  { %3717 = vmatprep.subr.bf16.mxu1 %v8670_v35  ;;  %3758 = vmatprep.subr.bf16.mxu0 %v8671_v10 }
 0x66c   :  { %3718 = vmatpush1.bf16.msra.mxu1 %v8672_v19  ;;  %3759 = vmatpush1.bf16.msra.mxu0 %v8673_v37 }
 0x66d   :  { %3719 = vmatprep.subr.bf16.mxu1 %v8674_v30  ;;  %3760 = vmatprep.subr.bf16.mxu0 %v8675_v27 }
 0x670   :  { %3720 = vmatpush1.bf16.msra.mxu1 %v8676_v43  ;;  %3761 = vmatpush1.bf16.msra.mxu0 %v8677_v34 }
 0x671   :  { %3721 = vmatprep.subr.bf16.mxu1 %v8678_v45  ;;  %3762 = vmatprep.subr.bf16.mxu0 %v8679_v16 }
 0x674   :  { %3722 = vmatpush1.bf16.msra.mxu1 %v8680_v13  ;;  %3763 = vmatpush1.bf16.msra.mxu0 %v8681_v57 }
 0x675   :  { %3723 = vmatprep.subr.bf16.mxu1 %v8682_v2  ;;  %3764 = vmatprep.subr.bf16.mxu0 %v8683_v1 }
 0x678   :  { %3724 = vmatpush1.bf16.msra.mxu1 %v8769_v59  ;;  %3765 = vmatpush1.bf16.msra.mxu0 %v8685_v22 }
 0x679   :  { %3725 = vmatprep.subr.bf16.mxu1 %v8770_v55  ;;  %3766 = vmatprep.subr.bf16.mxu0 %v8687_v15 }
 0x67c   :  { %3726 = vmatpush1.bf16.msra.mxu1 %v8771_v14  ;;  %3767 = vmatpush1.bf16.msra.mxu0 %v8688_v31 }
 0x67d   :  { %3727 = vmatprep.subr.bf16.mxu1 %v8772_v0  ;;  %3768 = vmatprep.subr.bf16.mxu0 %v8773_v61 }
 0x680   :  { %3728 = vmatpush1.bf16.msra.mxu1 %v8774_v11  ;;  %3769 = vmatpush1.bf16.msra.mxu0 %v8775_v23 }
 0x681   :  { %3729 = vmatprep.subr.bf16.mxu1 %v8776_v6  ;;  %3770 = vmatprep.subr.bf16.mxu0 %v8777_v17 }
 0x684   :  { %3730 = vmatpush1.bf16.msra.mxu1 %v8778_v51  ;;  %3771 = vmatpush1.bf16.msra.mxu0 %v8779_v18 }
 0x685   :  { %3731 = vmatprep.subr.bf16.mxu1 %v8780_v26  ;;  %3772 = vmatprep.subr.bf16.mxu0 %v8781_v47 }
 0x688   :  { %3732 = vmatpush1.bf16.msra.mxu1 %v8782_v24  ;;  %3773 = vmatpush1.bf16.msra.mxu0 %v8864_v56 }
 0x689   :  { %3733 = vmatprep.subr.bf16.mxu1 %v8783_v41  ;;  %3774 = vmatprep.subr.bf16.mxu0 %v8865_v53 }
 0x68c   :  { %3734 = vmatpush1.bf16.msra.mxu1 %v8785_v58  ;;  %3775 = vmatpush1.bf16.msra.mxu0 %v8866_v42 }
 0x68d   :  { %3735 = vmatprep.subr.bf16.mxu1 %v8786_v38  ;;  %3776 = vmatprep.subr.bf16.mxu0 %v8867_v20 }
 0x690   :  { %3736 = vmatpush1.bf16.msra.mxu1 %v8787_v12  ;;  %3777 = vmatpush1.bf16.msra.mxu0 %v8868_v33 }
 0x691   :  { %3737 = vmatprep.subr.bf16.mxu1 %v8788_v39  ;;  %3778 = vmatprep.subr.bf16.mxu0 %v8707_v62 }
 0x694   :  { %3738 = vmatpush1.bf16.msra.mxu1 %v8789_v21  ;;  %3779 = vmatpush1.bf16.msra.mxu0 %v8869_v36 }
 0x695   :  { %3739 = vmatprep.subr.bf16.mxu1 %v8790_v63  ;;  %3780 = vmatprep.subr.bf16.mxu0 %v8870_v5  ;;  %v8953_v5 = vld [vmem:[#allocation151_spill] sm:$0xff]  ;;  %v8954_v63 = vld [vmem:[#allocation189_spill] sm:$0xff] }
 0x698   :  { %3740 = vmatpush1.bf16.msra.mxu1 %v8871_v50  ;;  %3781 = vmatpush1.bf16.msra.mxu0 %v8872_v49  ;;  %v8952_v49 = vld [vmem:[#allocation188_spill] sm:$0xff] }
 0x699   :  { %3741 = vmatprep.subr.bf16.mxu1 %v8873_v7  ;;  %3782 = vmatprep.subr.bf16.mxu0 %v8874_v46  ;;  %v8884_v7 = vld [vmem:[#allocation101_spill] sm:$0xff]  ;;  %v8885_v46 = vld [vmem:[#allocation70_spill] sm:$0xff] }
 0x69c   :  { %3742 = vmatpush1.bf16.msra.mxu1 %v8875_v54  ;;  %3783 = vmatpush1.bf16.msra.mxu0 %v8876_v28  ;;  %v8886_v54 = vld [vmem:[#allocation22_spill] sm:$0xff]  ;;  %v8951_v28 = vld [vmem:[#allocation148_spill] sm:$0xff] }
 0x69d   :  { %3743 = vmatprep.subr.bf16.mxu1 %v8877_v25  ;;  %3784 = vmatprep.subr.bf16.mxu0 %v8878_v3  ;;  %v8887_v3 = vld [vmem:[#allocation72_spill] sm:$0xff]  ;;  %v8896_v25 = vld [vmem:[#allocation27_spill] sm:$0xff] }
 0x6a0   :  { %3744 = vmatpush1.bf16.msra.mxu1 %v8879_v44  ;;  %3785 = vmatpush1.bf16.msra.mxu0 %v8880_v48  ;;  %v8888_v44 = vld [vmem:[#allocation23_spill] sm:$0xff]  ;;  %v8889_v48 = vld [vmem:[#allocation74_spill] sm:$0xff] }
 0x6a1   :  { %3745 = vmatprep.subr.bf16.mxu1 %v8881_v4  ;;  %3786 = vmatprep.subr.bf16.mxu0 %v8882_v29  ;;  %v8890_v4 = vld [vmem:[#allocation24_spill] sm:$0xff] }
 0x6a2   :  { %v8891_v29 = vld [vmem:[#allocation76_spill] sm:$0xff] }
 0x6a4   :  { %3746 = vmatpush1.bf16.msra.mxu1 %v8883_v52  ;;  %3787 = vmatpush1.bf16.msra.mxu0 %v8884_v7  ;;  %v8892_v52 = vld [vmem:[#allocation25_spill] sm:$0xff]  ;;  %v8893_v7 = vld [vmem:[#allocation78_spill] sm:$0xff] }
 0x6a5   :  { %3863 = vmatprep.subr.bf16.mxu1 %v8885_v46  ;;  %3904 = vmatprep.subr.bf16.mxu0 %v8886_v54  ;;  %v8894_v46 = vld [vmem:[#allocation26_spill] sm:$0xff]  ;;  %v8895_v54 = vld [vmem:[#allocation80_spill] sm:$0xff] }
 0x6a7   :  { %3748 = vmatmul.mubr.bf16.vlgmr.msra.gmra.mrb[76].mxu1 %v7437_v8  ;;  %3789 = vmatmul.mubr.bf16.vlgmr.msra.gmra.mrb[64].mxu0 %v7437_v8  ;;  %v8897_v8 = vld [vmem:[#allocation82_spill] sm:$0xff] }
 0x6a8   :  { %3864 = vmatpush1.bf16.msra.mxu1 %v8887_v3  ;;  %3905 = vmatpush1.bf16.msra.mxu0 %v8888_v44  ;;  %v8898_v3 = vld [vmem:[#allocation28_spill] sm:$0xff] }
 0x6a9   :  { %3865 = vmatprep.subr.bf16.mxu1 %v8889_v48  ;;  %3906 = vmatprep.subr.bf16.mxu0 %v8890_v4  ;;  %v8899_v44 = vld [vmem:[#allocation84_spill] sm:$0xff]  ;;  %v8900_v48 = vld [vmem:[#allocation29_spill] sm:$0xff]  ;;  %v8901_v4 = vld [vmem:[#allocation86_spill] sm:$0xff] }
 0x6ac   :  { %3866 = vmatpush1.bf16.msra.mxu1 %v8891_v29  ;;  %3907 = vmatpush1.bf16.msra.mxu0 %v8892_v52  ;;  %v8902_v29 = vld [vmem:[#allocation30_spill] sm:$0xff]  ;;  %v8903_v52 = vld [vmem:[#allocation88_spill] sm:$0xff] }
 0x6ad   :  { %3867 = vmatprep.subr.bf16.mxu1 %v8893_v7  ;;  %3908 = vmatprep.subr.bf16.mxu0 %v8894_v46  ;;  %v8904_v7 = vld [vmem:[#allocation31_spill] sm:$0xff]  ;;  %v8905_v46 = vld [vmem:[#allocation90_spill] sm:$0xff] }
 0x6b0   :  { %3868 = vmatpush1.bf16.msra.mxu1 %v8895_v54  ;;  %3909 = vmatpush1.bf16.msra.mxu0 %v8896_v25  ;;  %v8906_v54 = vld [vmem:[#allocation32_spill] sm:$0xff] }
 0x6b1   :  { %3869 = vmatprep.subr.bf16.mxu1 %v8897_v8  ;;  %3910 = vmatprep.subr.bf16.mxu0 %v8898_v3  ;;  %v8907_v25 = vld [vmem:[#allocation92_spill] sm:$0xff]  ;;  %v8908_v8 = vld [vmem:[#allocation33_spill] sm:$0xff]  ;;  %v8909_v3 = vld [vmem:[#allocation94_spill] sm:$0xff] }
 0x6b4   :  { %3870 = vmatpush1.bf16.msra.mxu1 %v8899_v44  ;;  %3911 = vmatpush1.bf16.msra.mxu0 %v8900_v48  ;;  %v8910_v44 = vld [vmem:[#allocation34_spill] sm:$0xff]  ;;  %v8911_v48 = vld [vmem:[#allocation96_spill] sm:$0xff] }
 0x6b5   :  { %3871 = vmatprep.subr.bf16.mxu1 %v8901_v4  ;;  %3912 = vmatprep.subr.bf16.mxu0 %v8902_v29  ;;  %v8912_v4 = vld [vmem:[#allocation35_spill] sm:$0xff]  ;;  %v8913_v29 = vld [vmem:[#allocation98_spill] sm:$0xff] }
 0x6b8   :  { %3872 = vmatpush1.bf16.msra.mxu1 %v8903_v52  ;;  %3913 = vmatpush1.bf16.msra.mxu0 %v8904_v7  ;;  %v8914_v52 = vld [vmem:[#allocation36_spill] sm:$0xff] }
 0x6b9   :  { %3873 = vmatprep.subr.bf16.mxu1 %v8905_v46  ;;  %3914 = vmatprep.subr.bf16.mxu0 %v8906_v54  ;;  %v8915_v7 = vld [vmem:[#allocation100_spill] sm:$0xff]  ;;  %v8916_v46 = vld [vmem:[#allocation37_spill] sm:$0xff]  ;;  %v8917_v54 = vld [vmem:[#allocation102_spill] sm:$0xff] }
 0x6bc   :  { %3874 = vmatpush1.bf16.msra.mxu1 %v8907_v25  ;;  %3915 = vmatpush1.bf16.msra.mxu0 %v8908_v8  ;;  %v8918_v25 = vld [vmem:[#allocation38_spill] sm:$0xff]  ;;  %v8919_v8 = vld [vmem:[#allocation103_spill] sm:$0xff] }
 0x6bd   :  { %3875 = vmatprep.subr.bf16.mxu1 %v8909_v3  ;;  %3916 = vmatprep.subr.bf16.mxu0 %v8910_v44  ;;  %v8920_v3 = vld [vmem:[#allocation39_spill] sm:$0xff]  ;;  %v8921_v44 = vld [vmem:[#allocation104_spill] sm:$0xff] }
 0x6c0   :  { %3876 = vmatpush1.bf16.msra.mxu1 %v8911_v48  ;;  %3917 = vmatpush1.bf16.msra.mxu0 %v8912_v4  ;;  %v8922_v48 = vld [vmem:[#allocation40_spill] sm:$0xff]  ;;  %v8923_v4 = vld [vmem:[#allocation105_spill] sm:$0xff] }
 0x6c1   :  { %3877 = vmatprep.subr.bf16.mxu1 %v8913_v29  ;;  %3918 = vmatprep.subr.bf16.mxu0 %v8914_v52  ;;  %v8924_v29 = vld [vmem:[#allocation41_spill] sm:$0xff]  ;;  %v8925_v52 = vld [vmem:[#allocation106_spill] sm:$0xff] }
 0x6c4   :  { %3878 = vmatpush1.bf16.msra.mxu1 %v8915_v7  ;;  %3919 = vmatpush1.bf16.msra.mxu0 %v8916_v46  ;;  %v8926_v7 = vld [vmem:[#allocation42_spill] sm:$0xff]  ;;  %v8927_v46 = vld [vmem:[#allocation107_spill] sm:$0xff] }
 0x6c5   :  { %3879 = vmatprep.subr.bf16.mxu1 %v8917_v54  ;;  %3920 = vmatprep.subr.bf16.mxu0 %v8918_v25  ;;  %v8928_v54 = vld [vmem:[#allocation43_spill] sm:$0xff]  ;;  %v8929_v25 = vld [vmem:[#allocation108_spill] sm:$0xff] }
 0x6c8   :  { %3880 = vmatpush1.bf16.msra.mxu1 %v8919_v8  ;;  %3921 = vmatpush1.bf16.msra.mxu0 %v8920_v3  ;;  %v8930_v8 = vld [vmem:[#allocation44_spill] sm:$0xff]  ;;  %v8931_v3 = vld [vmem:[#allocation109_spill] sm:$0xff] }
 0x6c9   :  { %3881 = vmatprep.subr.bf16.mxu1 %v8921_v44  ;;  %3922 = vmatprep.subr.bf16.mxu0 %v8922_v48  ;;  %v8932_v44 = vld [vmem:[#allocation45_spill] sm:$0xff]  ;;  %v8933_v48 = vld [vmem:[#allocation110_spill] sm:$0xff] }
 0x6cc   :  { %3882 = vmatpush1.bf16.msra.mxu1 %v8923_v4  ;;  %3923 = vmatpush1.bf16.msra.mxu0 %v8924_v29  ;;  %v8934_v4 = vld [vmem:[#allocation46_spill] sm:$0xff]  ;;  %v8935_v29 = vld [vmem:[#allocation111_spill] sm:$0xff] }
 0x6cd   :  { %3883 = vmatprep.subr.bf16.mxu1 %v8925_v52  ;;  %3924 = vmatprep.subr.bf16.mxu0 %v8926_v7  ;;  %v8936_v52 = vld [vmem:[#allocation47_spill] sm:$0xff]  ;;  %v8937_v7 = vld [vmem:[#allocation112_spill] sm:$0xff] }
 0x6d0   :  { %3884 = vmatpush1.bf16.msra.mxu1 %v8927_v46  ;;  %3925 = vmatpush1.bf16.msra.mxu0 %v8928_v54  ;;  %v8938_v46 = vld [vmem:[#allocation48_spill] sm:$0xff]  ;;  %v8939_v54 = vld [vmem:[#allocation113_spill] sm:$0xff] }
 0x6d1   :  { %3885 = vmatprep.subr.bf16.mxu1 %v8929_v25  ;;  %3926 = vmatprep.subr.bf16.mxu0 %v8930_v8  ;;  %v8940_v25 = vld [vmem:[#allocation49_spill] sm:$0xff]  ;;  %v8941_v8 = vld [vmem:[#allocation114_spill] sm:$0xff] }
 0x6d4   :  { %3886 = vmatpush1.bf16.msra.mxu1 %v8931_v3  ;;  %3927 = vmatpush1.bf16.msra.mxu0 %v8932_v44  ;;  %v8942_v3 = vld [vmem:[#allocation50_spill] sm:$0xff]  ;;  %v8943_v44 = vld [vmem:[#allocation115_spill] sm:$0xff] }
 0x6d5   :  { %3887 = vmatprep.subr.bf16.mxu1 %v8933_v48  ;;  %3928 = vmatprep.subr.bf16.mxu0 %v8934_v4  ;;  %v8944_v48 = vld [vmem:[#allocation51_spill] sm:$0xff]  ;;  %v8945_v4 = vld [vmem:[#allocation116_spill] sm:$0xff] }
 0x6d8   :  { %3888 = vmatpush1.bf16.msra.mxu1 %v8935_v29  ;;  %3929 = vmatpush1.bf16.msra.mxu0 %v8936_v52  ;;  %v8946_v29 = vld [vmem:[#allocation52_spill] sm:$0xff]  ;;  %v8947_v52 = vld [vmem:[#allocation117_spill] sm:$0xff] }
 0x6d9   :  { %3889 = vmatprep.subr.bf16.mxu1 %v8937_v7  ;;  %3930 = vmatprep.subr.bf16.mxu0 %v8938_v46  ;;  %v8948_v7 = vld [vmem:[#allocation53_spill] sm:$0xff]  ;;  %v8949_v46 = vld [vmem:[#allocation118_spill] sm:$0xff] }
 0x6dc   :  { %3890 = vmatpush1.bf16.msra.mxu1 %v8939_v54  ;;  %3931 = vmatpush1.bf16.msra.mxu0 %v8940_v25  ;;  %v8950_v54 = vld [vmem:[#allocation54_spill] sm:$0xff] }
 0x6dd   :  { %3891 = vmatprep.subr.bf16.mxu1 %v8941_v8  ;;  %3932 = vmatprep.subr.bf16.mxu0 %v8942_v3 }
 0x6e0   :  { %3892 = vmatpush1.bf16.msra.mxu1 %v8943_v44  ;;  %3933 = vmatpush1.bf16.msra.mxu0 %v8944_v48 }
 0x6e1   :  { %3893 = vmatprep.subr.bf16.mxu1 %v8945_v4  ;;  %3934 = vmatprep.subr.bf16.mxu0 %v8946_v29 }
 0x6e4   :  { %3894 = vmatpush1.bf16.msra.mxu1 %v8947_v52  ;;  %3935 = vmatpush1.bf16.msra.mxu0 %v8948_v7 }
 0x6e5   :  { %3945 = vmatprep.subr.bf16.mxu1 %v8949_v46  ;;  %3986 = vmatprep.subr.bf16.mxu0 %v8950_v54 }
 0x73a   :  { %v3667_v25 = vpop.f32.mrb[72].mxu1  ;;  %v3708_v8 = vpop.f32.mrb[60].mxu0 }
 0x73b   :  { %v3797_v3 = vadd.f32 %v3667_v25, %v8951_v28  ;;  %v3799_v44 = vadd.f32 %v3708_v8, %v8952_v49  ;;  %v3669_v50 = vpop.f32.mrb[73].mxu1  ;;  %v3710_v48 = vpop.f32.mrb[61].mxu0 }
 0x73c   :  { %v3798_v4 = vadd.f32 %v3669_v50, %v8953_v5  ;;  %v3800_v29 = vadd.f32 %v3710_v48, %v8954_v63  ;;  %v3671_v36 = vpop.f32.mrb[74].mxu1  ;;  %v3712_v52 = vpop.f32.mrb[62].mxu0 }
 0x73d   :  { %v3672_v21 = vpop.f32.mrb[75].mxu1  ;;  %v3713_v7 = vpop.f32.mrb[63].mxu0  ;;  %v5485_v62 = vmul.f32 -1.442695, %v3797_v3  ;;  %v5487_v46 = vmul.f32 -1.442695, %v3799_v44 }
 0x73e   :  { %v5486_v39 = vmul.f32 -1.442695, %v3798_v4  ;;  %v5488_v54 = vmul.f32 -1.442695, %v3800_v29  ;;  %v8955_v7 = vld [vmem:[#allocation149_spill] sm:$0xff]  ;;  %v8956_v44 = vld [vmem:[#allocation202_spill] sm:$0xff] }
 0x73f   :  { %5771 = vpow2.f32 %v5485_v62  ;;  %v8958_v4 = vld [vmem:[#allocation203_spill] sm:$0xff] }
 0x740   :  { %5773 = vpow2.f32 %v5487_v46 }
 0x741   :  { %5775 = vpow2.f32 %v5486_v39 }
 0x742   :  { %5777 = vpow2.f32 %v5488_v54  ;;  %v8957_v54 = vld [vmem:[#allocation152_spill] sm:$0xff] }
 0x749   :  { %v5772_v28 = vpop.eup %5771 }
 0x74a   :  { %v5774_v49 = vpop.eup %5773  ;;  %v3811_v33 = vadd.f32 1.0, %v5772_v28 }
 0x74b   :  { %v5776_v25 = vpop.eup %5775  ;;  %v3823_v5 = vadd.f32 1.0, %v5774_v49 }
 0x74c   :  { %v5778_v8 = vpop.eup %5777  ;;  %v3812_v50 = vadd.f32 1.0, %v5776_v25  ;;  %5779 = vrcp.f32 %v3811_v33 }
 0x74d   :  { %v3824_v63 = vadd.f32 1.0, %v5778_v8  ;;  %5781 = vrcp.f32 %v3823_v5 }
 0x74e   :  { %5783 = vrcp.f32 %v3812_v50 }
 0x74f   :  { %5785 = vrcp.f32 %v3824_v63 }
 0x756   :  { %v5780_v5 = vpop.eup %5779 }
 0x757   :  { %v5782_v50 = vpop.eup %5781 }
 0x77a   :  { %v3749_v21 = vpop.f32.mrb[76].mxu1  ;;  %v3790_v36 = vpop.f32.mrb[64].mxu0 }
 0x77b   :  { %v3801_v3 = vadd.f32 %v3749_v21, %v8955_v7  ;;  %v3803_v62 = vadd.f32 %v3790_v36, %v8956_v44  ;;  %v3751_v46 = vpop.f32.mrb[77].mxu1  ;;  %v3792_v39 = vpop.f32.mrb[65].mxu0  ;;  %v3843_v44 = vmul.f32 %v5782_v50, %v7431_v60  ;;  %v8959_v50 = vld [vmem:[#allocation81_spill] sm:$0xff] }
 0x77c   :  { %v3802_v48 = vadd.f32 %v3751_v46, %v8957_v54  ;;  %v3804_v29 = vadd.f32 %v3792_v39, %v8958_v4  ;;  %v3753_v52 = vpop.f32.mrb[78].mxu1  ;;  %v3794_v28 = vpop.f32.mrb[66].mxu0 }
 0x77d   :  { %5787 = vtanh.f32 %v3801_v3  ;;  %v5489_v49 = vmul.f32 -1.442695, %v3803_v62  ;;  %v3754_v33 = vpop.f32.mrb[79].mxu1  ;;  %v3795_v25 = vpop.f32.mrb[67].mxu0 }
 0x77e   :  { %5789 = vtanh.f32 %v3802_v48  ;;  %v5490_v8 = vmul.f32 -1.442695, %v3804_v29  ;;  %v5784_v21 = vpop.eup %5783 }
 0x77f   :  { %5791 = vpow2.f32 %v5489_v49  ;;  %v5786_v36 = vpop.eup %5785 }
 0x780   :  { %5793 = vpow2.f32 %v5490_v8  ;;  %v3844_v54 = vmul.f32 %v5786_v36, %v7433_v40  ;;  %v8961_v36 = vld [vmem:[#allocation83_spill] sm:$0xff] }
 0x787   :  { %v5788_v7 = vpop.eup %5787 }
 0x788   :  { %v5790_v63 = vpop.eup %5789  ;;  %v3845_v46 = vmul.f32 %v5788_v7, %v5780_v5  ;;  %v8962_v7 = vld [vmem:[#allocation165_spill] sm:$0xff] }
 0x789   :  { %v5792_v39 = vpop.eup %5791  ;;  %v3846_v3 = vmul.f32 %v5790_v63, %v5784_v21  ;;  %v8960_v21 = vld [vmem:[#allocation162_spill] sm:$0xff]  ;;  %v8963_v63 = vld [vmem:[#allocation85_spill] sm:$0xff] }
 0x78a   :  { %v5794_v62 = vpop.eup %5793  ;;  %v7581_v4 = vadd.f32 %v3845_v46, %v3843_v44  ;;  %v3837_v48 = vadd.f32 1.0, %v5792_v39  ;;  %v8964_v44 = vld [vmem:[#allocation166_spill] sm:$0xff]  ;;  %v8965_v46 = vld [vmem:[#allocation87_spill] sm:$0xff] }
 0x78b   :  { %v7583_v29 = vadd.f32 %v3846_v3, %v3844_v54  ;;  %v3838_v52 = vadd.f32 1.0, %v5794_v62  ;;  %v8966_v39 = vld [vmem:[#allocation171_spill] sm:$0xff]  ;;  %v8967_v54 = vld [vmem:[#allocation89_spill] sm:$0xff]  ;;  %v8968_v3 = vld [vmem:[#allocation174_spill] sm:$0xff] }
 0x78c   :  { %5795 = vtanh.f32 %v7581_v4  ;;  %v8969_v62 = vld [vmem:[#allocation91_spill] sm:$0xff] }
 0x78d   :  { %5797 = vrcp.f32 %v3837_v48  ;;  %v8970_v48 = vld [vmem:[#allocation177_spill] sm:$0xff] }
 0x78e   :  { %5799 = vtanh.f32 %v7583_v29 }
 0x78f   :  { %5801 = vrcp.f32 %v3838_v52  ;;  %v8971_v52 = vld [vmem:[#allocation93_spill] sm:$0xff] }
 0x796   :  { %v5796_v28 = vpop.eup %5795 }
 0x797   :  { %v5798_v60 = vpop.eup %5797 }
 0x798   :  { %v5800_v49 = vpop.eup %5799  ;;  %v3851_v25 = vmul.f32 %v5798_v60, %v5796_v28  ;;  %v8972_v28 = vld [vmem:[#allocation178_spill] sm:$0xff]  ;;  %v8973_v60 = vld [vmem:[#allocation95_spill] sm:$0xff] }
 0x799   :  { %v5802_v33 = vpop.eup %5801 }
 0x79a   :  { %v3852_v40 = vmul.f32 %v5802_v33, %v5800_v49  ;;  %v7587_v5 = vpack.c.bf16 %v3851_v25, %v3851_v25  ;;  %v8974_v49 = vld [vmem:[#allocation181_spill] sm:$0xff]  ;;  %v8976_v25 = vld [vmem:[#allocation182_spill] sm:$0xff] }
 0x79b   :  { %v8975_v33 = vld [vmem:[#allocation97_spill] sm:$0xff] }
 0x79c   :  { %v3862_v8 = vpack.c.bf16 %v3852_v40, %v3852_v40  ;;  %v8977_v40 = vld [vmem:[#allocation99_spill] sm:$0xff] }
 0x79e   :  { %3895 = vmatprep.mubr.bf16.mxu1 %v3862_v8  ;;  %3936 = vmatprep.mubr.bf16.mxu0 %v3862_v8 }
 0x79f   :  { %3896 = vmatmul.mubr.bf16.vlgmr.msra.gmra.mrb[80].mxu1 %v7587_v5  ;;  %3937 = vmatmul.mubr.bf16.vlgmr.msra.gmra.mrb[68].mxu0 %v7587_v5 }
 0x7a0   :  { %3946 = vmatpush1.bf16.msra.mxu1 %v8668_v32  ;;  %3987 = vmatpush1.bf16.msra.mxu0 %v8669_v9 }
 0x7a1   :  { %3977 = vmatprep.mubr.bf16.mxu1 %v3862_v8  ;;  %4018 = vmatprep.mubr.bf16.mxu0 %v3862_v8  ;;  %v8978_v8 = vld [vmem:[#allocation183_spill] sm:$0xff] }
 0x7a2   :  { %3947 = vmatprep.subr.bf16.mxu1 %v8670_v35  ;;  %3988 = vmatprep.subr.bf16.mxu0 %v8671_v10 }
 0x7a4   :  { %3948 = vmatpush1.bf16.msra.mxu1 %v8672_v19  ;;  %3989 = vmatpush1.bf16.msra.mxu0 %v8673_v37 }
 0x7a5   :  { %3949 = vmatprep.subr.bf16.mxu1 %v8674_v30  ;;  %3990 = vmatprep.subr.bf16.mxu0 %v8675_v27 }
 0x7a8   :  { %3950 = vmatpush1.bf16.msra.mxu1 %v8676_v43  ;;  %3991 = vmatpush1.bf16.msra.mxu0 %v8677_v34 }
 0x7a9   :  { %3951 = vmatprep.subr.bf16.mxu1 %v8678_v45  ;;  %3992 = vmatprep.subr.bf16.mxu0 %v8679_v16 }
 0x7ac   :  { %3952 = vmatpush1.bf16.msra.mxu1 %v8680_v13  ;;  %3993 = vmatpush1.bf16.msra.mxu0 %v8681_v57 }
 0x7ad   :  { %3953 = vmatprep.subr.bf16.mxu1 %v8682_v2  ;;  %3994 = vmatprep.subr.bf16.mxu0 %v8683_v1 }
 0x7b0   :  { %3954 = vmatpush1.bf16.msra.mxu1 %v8769_v59  ;;  %3995 = vmatpush1.bf16.msra.mxu0 %v8685_v22 }
 0x7b1   :  { %3955 = vmatprep.subr.bf16.mxu1 %v8770_v55  ;;  %3996 = vmatprep.subr.bf16.mxu0 %v8687_v15 }
 0x7b4   :  { %3956 = vmatpush1.bf16.msra.mxu1 %v8771_v14  ;;  %3997 = vmatpush1.bf16.msra.mxu0 %v8688_v31 }
 0x7b5   :  { %3957 = vmatprep.subr.bf16.mxu1 %v8772_v0  ;;  %3998 = vmatprep.subr.bf16.mxu0 %v8773_v61 }
 0x7b8   :  { %3958 = vmatpush1.bf16.msra.mxu1 %v8774_v11  ;;  %3999 = vmatpush1.bf16.msra.mxu0 %v8775_v23 }
 0x7b9   :  { %3959 = vmatprep.subr.bf16.mxu1 %v8776_v6  ;;  %4000 = vmatprep.subr.bf16.mxu0 %v8777_v17 }
 0x7bc   :  { %3960 = vmatpush1.bf16.msra.mxu1 %v8778_v51  ;;  %4001 = vmatpush1.bf16.msra.mxu0 %v8779_v18 }
 0x7bd   :  { %3961 = vmatprep.subr.bf16.mxu1 %v8780_v26  ;;  %4002 = vmatprep.subr.bf16.mxu0 %v8781_v47 }
 0x7c0   :  { %3962 = vmatpush1.bf16.msra.mxu1 %v8782_v24  ;;  %4003 = vmatpush1.bf16.msra.mxu0 %v8864_v56 }
 0x7c1   :  { %3963 = vmatprep.subr.bf16.mxu1 %v8783_v41  ;;  %4004 = vmatprep.subr.bf16.mxu0 %v8865_v53 }
 0x7c4   :  { %3964 = vmatpush1.bf16.msra.mxu1 %v8785_v58  ;;  %4005 = vmatpush1.bf16.msra.mxu0 %v8866_v42 }
 0x7c5   :  { %3965 = vmatprep.subr.bf16.mxu1 %v8786_v38  ;;  %4006 = vmatprep.subr.bf16.mxu0 %v8867_v20 }
 0x7c8   :  { %3966 = vmatpush1.bf16.msra.mxu1 %v8787_v12  ;;  %4007 = vmatpush1.bf16.msra.mxu0 %v8959_v50 }
 0x7c9   :  { %3967 = vmatprep.subr.bf16.mxu1 %v8960_v21  ;;  %4008 = vmatprep.subr.bf16.mxu0 %v8961_v36 }
 0x7cc   :  { %3968 = vmatpush1.bf16.msra.mxu1 %v8962_v7  ;;  %4009 = vmatpush1.bf16.msra.mxu0 %v8963_v63 }
 0x7cd   :  { %3969 = vmatprep.subr.bf16.mxu1 %v8964_v44  ;;  %4010 = vmatprep.subr.bf16.mxu0 %v8965_v46  ;;  %v9048_v46 = vld [vmem:[#allocation157_spill] sm:$0xff]  ;;  %v9049_v44 = vld [vmem:[#allocation191_spill] sm:$0xff] }
 0x7d0   :  { %3970 = vmatpush1.bf16.msra.mxu1 %v8966_v39  ;;  %4011 = vmatpush1.bf16.msra.mxu0 %v8967_v54  ;;  %v9047_v54 = vld [vmem:[#allocation190_spill] sm:$0xff] }
 0x7d1   :  { %3971 = vmatprep.subr.bf16.mxu1 %v8968_v3  ;;  %4012 = vmatprep.subr.bf16.mxu0 %v8969_v62  ;;  %v8979_v3 = vld [vmem:[#allocation101_spill] sm:$0xff]  ;;  %v8980_v62 = vld [vmem:[#allocation70_spill] sm:$0xff] }
 0x7d4   :  { %3972 = vmatpush1.bf16.msra.mxu1 %v8970_v48  ;;  %4013 = vmatpush1.bf16.msra.mxu0 %v8971_v52  ;;  %v8981_v48 = vld [vmem:[#allocation22_spill] sm:$0xff]  ;;  %v9046_v52 = vld [vmem:[#allocation155_spill] sm:$0xff] }
 0x7d5   :  { %3973 = vmatprep.subr.bf16.mxu1 %v8972_v28  ;;  %4014 = vmatprep.subr.bf16.mxu0 %v8973_v60  ;;  %v8982_v60 = vld [vmem:[#allocation72_spill] sm:$0xff]  ;;  %v8991_v28 = vld [vmem:[#allocation27_spill] sm:$0xff] }
 0x7d8   :  { %3974 = vmatpush1.bf16.msra.mxu1 %v8974_v49  ;;  %4015 = vmatpush1.bf16.msra.mxu0 %v8975_v33  ;;  %v8983_v49 = vld [vmem:[#allocation23_spill] sm:$0xff]  ;;  %v8984_v33 = vld [vmem:[#allocation74_spill] sm:$0xff] }
 0x7d9   :  { %3975 = vmatprep.subr.bf16.mxu1 %v8976_v25  ;;  %4016 = vmatprep.subr.bf16.mxu0 %v8977_v40  ;;  %v8985_v25 = vld [vmem:[#allocation24_spill] sm:$0xff] }
 0x7da   :  { %v8986_v40 = vld [vmem:[#allocation76_spill] sm:$0xff] }
 0x7dc   :  { %3976 = vmatpush1.bf16.msra.mxu1 %v8978_v8  ;;  %4017 = vmatpush1.bf16.msra.mxu0 %v8979_v3  ;;  %v8987_v8 = vld [vmem:[#allocation25_spill] sm:$0xff]  ;;  %v8988_v3 = vld [vmem:[#allocation78_spill] sm:$0xff] }
 0x7dd   :  { %4093 = vmatprep.subr.bf16.mxu1 %v8980_v62  ;;  %4134 = vmatprep.subr.bf16.mxu0 %v8981_v48  ;;  %v8989_v62 = vld [vmem:[#allocation26_spill] sm:$0xff]  ;;  %v8990_v48 = vld [vmem:[#allocation80_spill] sm:$0xff] }
 0x7df   :  { %3978 = vmatmul.mubr.bf16.vlgmr.msra.gmra.mrb[84].mxu1 %v7587_v5  ;;  %4019 = vmatmul.mubr.bf16.vlgmr.msra.gmra.mrb[72].mxu0 %v7587_v5  ;;  %v8992_v5 = vld [vmem:[#allocation82_spill] sm:$0xff] }
 0x7e0   :  { %4094 = vmatpush1.bf16.msra.mxu1 %v8982_v60  ;;  %4135 = vmatpush1.bf16.msra.mxu0 %v8983_v49  ;;  %v8993_v60 = vld [vmem:[#allocation28_spill] sm:$0xff] }
 0x7e1   :  { %4095 = vmatprep.subr.bf16.mxu1 %v8984_v33  ;;  %4136 = vmatprep.subr.bf16.mxu0 %v8985_v25  ;;  %v8994_v49 = vld [vmem:[#allocation84_spill] sm:$0xff]  ;;  %v8995_v33 = vld [vmem:[#allocation29_spill] sm:$0xff]  ;;  %v8996_v25 = vld [vmem:[#allocation86_spill] sm:$0xff] }
 0x7e4   :  { %4096 = vmatpush1.bf16.msra.mxu1 %v8986_v40  ;;  %4137 = vmatpush1.bf16.msra.mxu0 %v8987_v8  ;;  %v8997_v40 = vld [vmem:[#allocation30_spill] sm:$0xff]  ;;  %v8998_v8 = vld [vmem:[#allocation88_spill] sm:$0xff] }
 0x7e5   :  { %4097 = vmatprep.subr.bf16.mxu1 %v8988_v3  ;;  %4138 = vmatprep.subr.bf16.mxu0 %v8989_v62  ;;  %v8999_v3 = vld [vmem:[#allocation31_spill] sm:$0xff]  ;;  %v9000_v62 = vld [vmem:[#allocation90_spill] sm:$0xff] }
 0x7e8   :  { %4098 = vmatpush1.bf16.msra.mxu1 %v8990_v48  ;;  %4139 = vmatpush1.bf16.msra.mxu0 %v8991_v28  ;;  %v9001_v48 = vld [vmem:[#allocation32_spill] sm:$0xff] }
 0x7e9   :  { %4099 = vmatprep.subr.bf16.mxu1 %v8992_v5  ;;  %4140 = vmatprep.subr.bf16.mxu0 %v8993_v60  ;;  %v9002_v28 = vld [vmem:[#allocation92_spill] sm:$0xff]  ;;  %v9003_v5 = vld [vmem:[#allocation33_spill] sm:$0xff]  ;;  %v9004_v60 = vld [vmem:[#allocation94_spill] sm:$0xff] }
 0x7ec   :  { %4100 = vmatpush1.bf16.msra.mxu1 %v8994_v49  ;;  %4141 = vmatpush1.bf16.msra.mxu0 %v8995_v33  ;;  %v9005_v49 = vld [vmem:[#allocation34_spill] sm:$0xff]  ;;  %v9006_v33 = vld [vmem:[#allocation96_spill] sm:$0xff] }
 0x7ed   :  { %4101 = vmatprep.subr.bf16.mxu1 %v8996_v25  ;;  %4142 = vmatprep.subr.bf16.mxu0 %v8997_v40  ;;  %v9007_v25 = vld [vmem:[#allocation35_spill] sm:$0xff]  ;;  %v9008_v40 = vld [vmem:[#allocation98_spill] sm:$0xff] }
 0x7f0   :  { %4102 = vmatpush1.bf16.msra.mxu1 %v8998_v8  ;;  %4143 = vmatpush1.bf16.msra.mxu0 %v8999_v3  ;;  %v9009_v8 = vld [vmem:[#allocation36_spill] sm:$0xff] }
 0x7f1   :  { %4103 = vmatprep.subr.bf16.mxu1 %v9000_v62  ;;  %4144 = vmatprep.subr.bf16.mxu0 %v9001_v48  ;;  %v9010_v3 = vld [vmem:[#allocation100_spill] sm:$0xff]  ;;  %v9011_v62 = vld [vmem:[#allocation37_spill] sm:$0xff]  ;;  %v9012_v48 = vld [vmem:[#allocation102_spill] sm:$0xff] }
 0x7f4   :  { %4104 = vmatpush1.bf16.msra.mxu1 %v9002_v28  ;;  %4145 = vmatpush1.bf16.msra.mxu0 %v9003_v5  ;;  %v9013_v28 = vld [vmem:[#allocation38_spill] sm:$0xff]  ;;  %v9014_v5 = vld [vmem:[#allocation103_spill] sm:$0xff] }
 0x7f5   :  { %4105 = vmatprep.subr.bf16.mxu1 %v9004_v60  ;;  %4146 = vmatprep.subr.bf16.mxu0 %v9005_v49  ;;  %v9015_v60 = vld [vmem:[#allocation39_spill] sm:$0xff]  ;;  %v9016_v49 = vld [vmem:[#allocation104_spill] sm:$0xff] }
 0x7f8   :  { %4106 = vmatpush1.bf16.msra.mxu1 %v9006_v33  ;;  %4147 = vmatpush1.bf16.msra.mxu0 %v9007_v25  ;;  %v9017_v33 = vld [vmem:[#allocation40_spill] sm:$0xff]  ;;  %v9018_v25 = vld [vmem:[#allocation105_spill] sm:$0xff] }
 0x7f9   :  { %4107 = vmatprep.subr.bf16.mxu1 %v9008_v40  ;;  %4148 = vmatprep.subr.bf16.mxu0 %v9009_v8  ;;  %v9019_v40 = vld [vmem:[#allocation41_spill] sm:$0xff]  ;;  %v9020_v8 = vld [vmem:[#allocation106_spill] sm:$0xff] }
 0x7fc   :  { %4108 = vmatpush1.bf16.msra.mxu1 %v9010_v3  ;;  %4149 = vmatpush1.bf16.msra.mxu0 %v9011_v62  ;;  %v9021_v3 = vld [vmem:[#allocation42_spill] sm:$0xff]  ;;  %v9022_v62 = vld [vmem:[#allocation107_spill] sm:$0xff] }
 0x7fd   :  { %4109 = vmatprep.subr.bf16.mxu1 %v9012_v48  ;;  %4150 = vmatprep.subr.bf16.mxu0 %v9013_v28  ;;  %v9023_v48 = vld [vmem:[#allocation43_spill] sm:$0xff]  ;;  %v9024_v28 = vld [vmem:[#allocation108_spill] sm:$0xff] }
 0x800   :  { %4110 = vmatpush1.bf16.msra.mxu1 %v9014_v5  ;;  %4151 = vmatpush1.bf16.msra.mxu0 %v9015_v60  ;;  %v9025_v5 = vld [vmem:[#allocation44_spill] sm:$0xff]  ;;  %v9026_v60 = vld [vmem:[#allocation109_spill] sm:$0xff] }
 0x801   :  { %4111 = vmatprep.subr.bf16.mxu1 %v9016_v49  ;;  %4152 = vmatprep.subr.bf16.mxu0 %v9017_v33  ;;  %v9027_v49 = vld [vmem:[#allocation45_spill] sm:$0xff]  ;;  %v9028_v33 = vld [vmem:[#allocation110_spill] sm:$0xff] }
 0x804   :  { %4112 = vmatpush1.bf16.msra.mxu1 %v9018_v25  ;;  %4153 = vmatpush1.bf16.msra.mxu0 %v9019_v40  ;;  %v9029_v25 = vld [vmem:[#allocation46_spill] sm:$0xff]  ;;  %v9030_v40 = vld [vmem:[#allocation111_spill] sm:$0xff] }
 0x805   :  { %4113 = vmatprep.subr.bf16.mxu1 %v9020_v8  ;;  %4154 = vmatprep.subr.bf16.mxu0 %v9021_v3  ;;  %v9031_v8 = vld [vmem:[#allocation47_spill] sm:$0xff]  ;;  %v9032_v3 = vld [vmem:[#allocation112_spill] sm:$0xff] }
 0x808   :  { %4114 = vmatpush1.bf16.msra.mxu1 %v9022_v62  ;;  %4155 = vmatpush1.bf16.msra.mxu0 %v9023_v48  ;;  %v9033_v62 = vld [vmem:[#allocation48_spill] sm:$0xff]  ;;  %v9034_v48 = vld [vmem:[#allocation113_spill] sm:$0xff] }
 0x809   :  { %4115 = vmatprep.subr.bf16.mxu1 %v9024_v28  ;;  %4156 = vmatprep.subr.bf16.mxu0 %v9025_v5  ;;  %v9035_v28 = vld [vmem:[#allocation49_spill] sm:$0xff]  ;;  %v9036_v5 = vld [vmem:[#allocation114_spill] sm:$0xff] }
 0x80c   :  { %4116 = vmatpush1.bf16.msra.mxu1 %v9026_v60  ;;  %4157 = vmatpush1.bf16.msra.mxu0 %v9027_v49  ;;  %v9037_v60 = vld [vmem:[#allocation50_spill] sm:$0xff]  ;;  %v9038_v49 = vld [vmem:[#allocation115_spill] sm:$0xff] }
 0x80d   :  { %4117 = vmatprep.subr.bf16.mxu1 %v9028_v33  ;;  %4158 = vmatprep.subr.bf16.mxu0 %v9029_v25  ;;  %v9039_v33 = vld [vmem:[#allocation51_spill] sm:$0xff]  ;;  %v9040_v25 = vld [vmem:[#allocation116_spill] sm:$0xff] }
 0x810   :  { %4118 = vmatpush1.bf16.msra.mxu1 %v9030_v40  ;;  %4159 = vmatpush1.bf16.msra.mxu0 %v9031_v8  ;;  %v9041_v40 = vld [vmem:[#allocation52_spill] sm:$0xff]  ;;  %v9042_v8 = vld [vmem:[#allocation117_spill] sm:$0xff] }
 0x811   :  { %4119 = vmatprep.subr.bf16.mxu1 %v9032_v3  ;;  %4160 = vmatprep.subr.bf16.mxu0 %v9033_v62  ;;  %v9043_v3 = vld [vmem:[#allocation53_spill] sm:$0xff]  ;;  %v9044_v62 = vld [vmem:[#allocation118_spill] sm:$0xff] }
 0x814   :  { %4120 = vmatpush1.bf16.msra.mxu1 %v9034_v48  ;;  %4161 = vmatpush1.bf16.msra.mxu0 %v9035_v28  ;;  %v9045_v48 = vld [vmem:[#allocation54_spill] sm:$0xff] }
 0x815   :  { %4121 = vmatprep.subr.bf16.mxu1 %v9036_v5  ;;  %4162 = vmatprep.subr.bf16.mxu0 %v9037_v60 }
 0x818   :  { %4122 = vmatpush1.bf16.msra.mxu1 %v9038_v49  ;;  %4163 = vmatpush1.bf16.msra.mxu0 %v9039_v33 }
 0x819   :  { %4123 = vmatprep.subr.bf16.mxu1 %v9040_v25  ;;  %4164 = vmatprep.subr.bf16.mxu0 %v9041_v40 }
 0x81c   :  { %4124 = vmatpush1.bf16.msra.mxu1 %v9042_v8  ;;  %4165 = vmatpush1.bf16.msra.mxu0 %v9043_v3 }
 0x81d   :  { %4175 = vmatprep.subr.bf16.mxu1 %v9044_v62  ;;  %4216 = vmatprep.subr.bf16.mxu0 %v9045_v48 }
 0x872   :  { %v3897_v28 = vpop.f32.mrb[80].mxu1  ;;  %v3938_v5 = vpop.f32.mrb[68].mxu0 }
 0x873   :  { %v4027_v60 = vadd.f32 %v3897_v28, %v9046_v52  ;;  %v4029_v49 = vadd.f32 %v3938_v5, %v9047_v54  ;;  %v3899_v39 = vpop.f32.mrb[81].mxu1  ;;  %v3940_v33 = vpop.f32.mrb[69].mxu0 }
 0x874   :  { %v4028_v25 = vadd.f32 %v3899_v39, %v9048_v46  ;;  %v4030_v40 = vadd.f32 %v3940_v33, %v9049_v44  ;;  %v3901_v63 = vpop.f32.mrb[82].mxu1  ;;  %v3942_v8 = vpop.f32.mrb[70].mxu0 }
 0x875   :  { %v3902_v7 = vpop.f32.mrb[83].mxu1  ;;  %v3943_v3 = vpop.f32.mrb[71].mxu0  ;;  %v5491_v36 = vmul.f32 -1.442695, %v4027_v60  ;;  %v5493_v62 = vmul.f32 -1.442695, %v4029_v49 }
 0x876   :  { %v5492_v21 = vmul.f32 -1.442695, %v4028_v25  ;;  %v5494_v48 = vmul.f32 -1.442695, %v4030_v40  ;;  %v9050_v3 = vld [vmem:[#allocation156_spill] sm:$0xff]  ;;  %v9053_v25 = vld [vmem:[#allocation205_spill] sm:$0xff] }
 0x877   :  { %5803 = vpow2.f32 %v5491_v36  ;;  %v9051_v49 = vld [vmem:[#allocation204_spill] sm:$0xff] }
 0x878   :  { %5805 = vpow2.f32 %v5493_v62 }
 0x879   :  { %5807 = vpow2.f32 %v5492_v21 }
 0x87a   :  { %5809 = vpow2.f32 %v5494_v48  ;;  %v9052_v48 = vld [vmem:[#allocation158_spill] sm:$0xff] }
 0x881   :  { %v5804_v52 = vpop.eup %5803 }
 0x882   :  { %v5806_v54 = vpop.eup %5805  ;;  %v4041_v50 = vadd.f32 1.0, %v5804_v52 }
 0x883   :  { %v5808_v28 = vpop.eup %5807  ;;  %v4053_v46 = vadd.f32 1.0, %v5806_v54 }
 0x884   :  { %v5810_v5 = vpop.eup %5809  ;;  %v4042_v39 = vadd.f32 1.0, %v5808_v28  ;;  %5811 = vrcp.f32 %v4041_v50 }
 0x885   :  { %v4054_v44 = vadd.f32 1.0, %v5810_v5  ;;  %5813 = vrcp.f32 %v4053_v46 }
 0x886   :  { %5815 = vrcp.f32 %v4042_v39 }
 0x887   :  { %5817 = vrcp.f32 %v4054_v44 }
 0x88e   :  { %v5812_v46 = vpop.eup %5811 }
 0x88f   :  { %v5814_v39 = vpop.eup %5813 }
 0x8b2   :  { %v3979_v7 = vpop.f32.mrb[84].mxu1  ;;  %v4020_v63 = vpop.f32.mrb[72].mxu0 }
 0x8b3   :  { %v4031_v60 = vadd.f32 %v3979_v7, %v9050_v3  ;;  %v4033_v36 = vadd.f32 %v4020_v63, %v9051_v49  ;;  %v3981_v62 = vpop.f32.mrb[85].mxu1  ;;  %v4022_v21 = vpop.f32.mrb[73].mxu0  ;;  %v4073_v49 = vmul.f32 %v5814_v39, %v7581_v4  ;;  %v9054_v39 = vld [vmem:[#allocation81_spill] sm:$0xff] }
 0x8b4   :  { %v4032_v33 = vadd.f32 %v3981_v62, %v9052_v48  ;;  %v4034_v40 = vadd.f32 %v4022_v21, %v9053_v25  ;;  %v3983_v8 = vpop.f32.mrb[86].mxu1  ;;  %v4024_v52 = vpop.f32.mrb[74].mxu0 }
 0x8b5   :  { %5819 = vtanh.f32 %v4031_v60  ;;  %v5495_v54 = vmul.f32 -1.442695, %v4033_v36  ;;  %v3984_v50 = vpop.f32.mrb[87].mxu1  ;;  %v4025_v28 = vpop.f32.mrb[75].mxu0 }
 0x8b6   :  { %5821 = vtanh.f32 %v4032_v33  ;;  %v5496_v5 = vmul.f32 -1.442695, %v4034_v40  ;;  %v5816_v7 = vpop.eup %5815 }
 0x8b7   :  { %5823 = vpow2.f32 %v5495_v54  ;;  %v5818_v63 = vpop.eup %5817 }
 0x8b8   :  { %5825 = vpow2.f32 %v5496_v5  ;;  %v4074_v48 = vmul.f32 %v5818_v63, %v7583_v29  ;;  %v9056_v63 = vld [vmem:[#allocation83_spill] sm:$0xff] }
 0x8bf   :  { %v5820_v3 = vpop.eup %5819 }
 0x8c0   :  { %v5822_v44 = vpop.eup %5821  ;;  %v4075_v62 = vmul.f32 %v5820_v3, %v5812_v46  ;;  %v9057_v3 = vld [vmem:[#allocation165_spill] sm:$0xff] }
 0x8c1   :  { %v5824_v21 = vpop.eup %5823  ;;  %v4076_v60 = vmul.f32 %v5822_v44, %v5816_v7  ;;  %v9055_v7 = vld [vmem:[#allocation162_spill] sm:$0xff]  ;;  %v9058_v44 = vld [vmem:[#allocation85_spill] sm:$0xff] }
 0x8c2   :  { %v5826_v36 = vpop.eup %5825  ;;  %v7731_v25 = vadd.f32 %v4075_v62, %v4073_v49  ;;  %v4067_v33 = vadd.f32 1.0, %v5824_v21  ;;  %v9059_v49 = vld [vmem:[#allocation166_spill] sm:$0xff]  ;;  %v9060_v62 = vld [vmem:[#allocation87_spill] sm:$0xff] }
 0x8c3   :  { %v7733_v40 = vadd.f32 %v4076_v60, %v4074_v48  ;;  %v4068_v8 = vadd.f32 1.0, %v5826_v36  ;;  %v9061_v21 = vld [vmem:[#allocation171_spill] sm:$0xff]  ;;  %v9062_v48 = vld [vmem:[#allocation89_spill] sm:$0xff]  ;;  %v9063_v60 = vld [vmem:[#allocation174_spill] sm:$0xff] }
 0x8c4   :  { %5827 = vtanh.f32 %v7731_v25  ;;  %v9064_v36 = vld [vmem:[#allocation91_spill] sm:$0xff] }
 0x8c5   :  { %5829 = vrcp.f32 %v4067_v33  ;;  %v9065_v33 = vld [vmem:[#allocation177_spill] sm:$0xff] }
 0x8c6   :  { %5831 = vtanh.f32 %v7733_v40 }
 0x8c7   :  { %5833 = vrcp.f32 %v4068_v8  ;;  %v9066_v8 = vld [vmem:[#allocation93_spill] sm:$0xff] }
 0x8ce   :  { %v5828_v52 = vpop.eup %5827 }
 0x8cf   :  { %v5830_v4 = vpop.eup %5829 }
 0x8d0   :  { %v5832_v54 = vpop.eup %5831  ;;  %v4081_v28 = vmul.f32 %v5830_v4, %v5828_v52  ;;  %v9067_v52 = vld [vmem:[#allocation178_spill] sm:$0xff]  ;;  %v9068_v4 = vld [vmem:[#allocation95_spill] sm:$0xff] }
 0x8d1   :  { %v5834_v50 = vpop.eup %5833 }
 0x8d2   :  { %v4082_v29 = vmul.f32 %v5834_v50, %v5832_v54  ;;  %v7737_v46 = vpack.c.bf16 %v4081_v28, %v4081_v28  ;;  %v9069_v54 = vld [vmem:[#allocation181_spill] sm:$0xff]  ;;  %v9071_v28 = vld [vmem:[#allocation182_spill] sm:$0xff] }
 0x8d3   :  { %v9070_v50 = vld [vmem:[#allocation97_spill] sm:$0xff] }
 0x8d4   :  { %v4092_v5 = vpack.c.bf16 %v4082_v29, %v4082_v29  ;;  %v9072_v29 = vld [vmem:[#allocation99_spill] sm:$0xff] }
 0x8d6   :  { %4125 = vmatprep.mubr.bf16.mxu1 %v4092_v5  ;;  %4166 = vmatprep.mubr.bf16.mxu0 %v4092_v5 }
 0x8d7   :  { %4126 = vmatmul.mubr.bf16.vlgmr.msra.gmra.mrb[88].mxu1 %v7737_v46  ;;  %4167 = vmatmul.mubr.bf16.vlgmr.msra.gmra.mrb[76].mxu0 %v7737_v46 }
 0x8d8   :  { %4176 = vmatpush1.bf16.msra.mxu1 %v8668_v32  ;;  %4217 = vmatpush1.bf16.msra.mxu0 %v8669_v9 }
 0x8d9   :  { %4207 = vmatprep.mubr.bf16.mxu1 %v4092_v5  ;;  %4248 = vmatprep.mubr.bf16.mxu0 %v4092_v5  ;;  %v9073_v5 = vld [vmem:[#allocation183_spill] sm:$0xff] }
 0x8da   :  { %4177 = vmatprep.subr.bf16.mxu1 %v8670_v35  ;;  %4218 = vmatprep.subr.bf16.mxu0 %v8671_v10 }
 0x8dc   :  { %4178 = vmatpush1.bf16.msra.mxu1 %v8672_v19  ;;  %4219 = vmatpush1.bf16.msra.mxu0 %v8673_v37 }
 0x8dd   :  { %4179 = vmatprep.subr.bf16.mxu1 %v8674_v30  ;;  %4220 = vmatprep.subr.bf16.mxu0 %v8675_v27 }
 0x8e0   :  { %4180 = vmatpush1.bf16.msra.mxu1 %v8676_v43  ;;  %4221 = vmatpush1.bf16.msra.mxu0 %v8677_v34 }
 0x8e1   :  { %4181 = vmatprep.subr.bf16.mxu1 %v8678_v45  ;;  %4222 = vmatprep.subr.bf16.mxu0 %v8679_v16 }
 0x8e4   :  { %4182 = vmatpush1.bf16.msra.mxu1 %v8680_v13  ;;  %4223 = vmatpush1.bf16.msra.mxu0 %v8681_v57 }
 0x8e5   :  { %4183 = vmatprep.subr.bf16.mxu1 %v8682_v2  ;;  %4224 = vmatprep.subr.bf16.mxu0 %v8683_v1 }
 0x8e8   :  { %4184 = vmatpush1.bf16.msra.mxu1 %v8769_v59  ;;  %4225 = vmatpush1.bf16.msra.mxu0 %v8685_v22 }
 0x8e9   :  { %4185 = vmatprep.subr.bf16.mxu1 %v8770_v55  ;;  %4226 = vmatprep.subr.bf16.mxu0 %v8687_v15 }
 0x8ec   :  { %4186 = vmatpush1.bf16.msra.mxu1 %v8771_v14  ;;  %4227 = vmatpush1.bf16.msra.mxu0 %v8688_v31 }
 0x8ed   :  { %4187 = vmatprep.subr.bf16.mxu1 %v8772_v0  ;;  %4228 = vmatprep.subr.bf16.mxu0 %v8773_v61 }
 0x8f0   :  { %4188 = vmatpush1.bf16.msra.mxu1 %v8774_v11  ;;  %4229 = vmatpush1.bf16.msra.mxu0 %v8775_v23 }
 0x8f1   :  { %4189 = vmatprep.subr.bf16.mxu1 %v8776_v6  ;;  %4230 = vmatprep.subr.bf16.mxu0 %v8777_v17 }
 0x8f4   :  { %4190 = vmatpush1.bf16.msra.mxu1 %v8778_v51  ;;  %4231 = vmatpush1.bf16.msra.mxu0 %v8779_v18 }
 0x8f5   :  { %4191 = vmatprep.subr.bf16.mxu1 %v8780_v26  ;;  %4232 = vmatprep.subr.bf16.mxu0 %v8781_v47 }
 0x8f8   :  { %4192 = vmatpush1.bf16.msra.mxu1 %v8782_v24  ;;  %4233 = vmatpush1.bf16.msra.mxu0 %v8864_v56 }
 0x8f9   :  { %4193 = vmatprep.subr.bf16.mxu1 %v8783_v41  ;;  %4234 = vmatprep.subr.bf16.mxu0 %v8865_v53 }
 0x8fc   :  { %4194 = vmatpush1.bf16.msra.mxu1 %v8785_v58  ;;  %4235 = vmatpush1.bf16.msra.mxu0 %v8866_v42 }
 0x8fd   :  { %4195 = vmatprep.subr.bf16.mxu1 %v8786_v38  ;;  %4236 = vmatprep.subr.bf16.mxu0 %v8867_v20 }
 0x900   :  { %4196 = vmatpush1.bf16.msra.mxu1 %v8787_v12  ;;  %4237 = vmatpush1.bf16.msra.mxu0 %v9054_v39 }
 0x901   :  { %4197 = vmatprep.subr.bf16.mxu1 %v9055_v7  ;;  %4238 = vmatprep.subr.bf16.mxu0 %v9056_v63 }
 0x904   :  { %4198 = vmatpush1.bf16.msra.mxu1 %v9057_v3  ;;  %4239 = vmatpush1.bf16.msra.mxu0 %v9058_v44 }
 0x905   :  { %4199 = vmatprep.subr.bf16.mxu1 %v9059_v49  ;;  %4240 = vmatprep.subr.bf16.mxu0 %v9060_v62  ;;  %v9143_v62 = vld [vmem:[#allocation163_spill] sm:$0xff]  ;;  %v9144_v49 = vld [vmem:[#allocation193_spill] sm:$0xff] }
 0x908   :  { %4200 = vmatpush1.bf16.msra.mxu1 %v9061_v21  ;;  %4241 = vmatpush1.bf16.msra.mxu0 %v9062_v48  ;;  %v9142_v48 = vld [vmem:[#allocation192_spill] sm:$0xff] }
 0x909   :  { %4201 = vmatprep.subr.bf16.mxu1 %v9063_v60  ;;  %4242 = vmatprep.subr.bf16.mxu0 %v9064_v36  ;;  %v9074_v60 = vld [vmem:[#allocation101_spill] sm:$0xff]  ;;  %v9075_v36 = vld [vmem:[#allocation70_spill] sm:$0xff] }
 0x90c   :  { %4202 = vmatpush1.bf16.msra.mxu1 %v9065_v33  ;;  %4243 = vmatpush1.bf16.msra.mxu0 %v9066_v8  ;;  %v9076_v33 = vld [vmem:[#allocation22_spill] sm:$0xff]  ;;  %v9141_v8 = vld [vmem:[#allocation160_spill] sm:$0xff] }
 0x90d   :  { %4203 = vmatprep.subr.bf16.mxu1 %v9067_v52  ;;  %4244 = vmatprep.subr.bf16.mxu0 %v9068_v4  ;;  %v9077_v4 = vld [vmem:[#allocation72_spill] sm:$0xff]  ;;  %v9086_v52 = vld [vmem:[#allocation27_spill] sm:$0xff] }
 0x910   :  { %4204 = vmatpush1.bf16.msra.mxu1 %v9069_v54  ;;  %4245 = vmatpush1.bf16.msra.mxu0 %v9070_v50  ;;  %v9078_v54 = vld [vmem:[#allocation23_spill] sm:$0xff]  ;;  %v9079_v50 = vld [vmem:[#allocation74_spill] sm:$0xff] }
 0x911   :  { %4205 = vmatprep.subr.bf16.mxu1 %v9071_v28  ;;  %4246 = vmatprep.subr.bf16.mxu0 %v9072_v29  ;;  %v9080_v28 = vld [vmem:[#allocation24_spill] sm:$0xff] }
 0x912   :  { %v9081_v29 = vld [vmem:[#allocation76_spill] sm:$0xff] }
 0x914   :  { %4206 = vmatpush1.bf16.msra.mxu1 %v9073_v5  ;;  %4247 = vmatpush1.bf16.msra.mxu0 %v9074_v60  ;;  %v9082_v5 = vld [vmem:[#allocation25_spill] sm:$0xff]  ;;  %v9083_v60 = vld [vmem:[#allocation78_spill] sm:$0xff] }
 0x915   :  { %4323 = vmatprep.subr.bf16.mxu1 %v9075_v36  ;;  %4364 = vmatprep.subr.bf16.mxu0 %v9076_v33  ;;  %v9084_v36 = vld [vmem:[#allocation26_spill] sm:$0xff]  ;;  %v9085_v33 = vld [vmem:[#allocation80_spill] sm:$0xff] }
 0x917   :  { %4208 = vmatmul.mubr.bf16.vlgmr.msra.gmra.mrb[92].mxu1 %v7737_v46  ;;  %4249 = vmatmul.mubr.bf16.vlgmr.msra.gmra.mrb[80].mxu0 %v7737_v46  ;;  %v9087_v46 = vld [vmem:[#allocation82_spill] sm:$0xff] }
 0x918   :  { %4324 = vmatpush1.bf16.msra.mxu1 %v9077_v4  ;;  %4365 = vmatpush1.bf16.msra.mxu0 %v9078_v54  ;;  %v9088_v4 = vld [vmem:[#allocation28_spill] sm:$0xff] }
 0x919   :  { %4325 = vmatprep.subr.bf16.mxu1 %v9079_v50  ;;  %4366 = vmatprep.subr.bf16.mxu0 %v9080_v28  ;;  %v9089_v54 = vld [vmem:[#allocation84_spill] sm:$0xff]  ;;  %v9090_v50 = vld [vmem:[#allocation29_spill] sm:$0xff]  ;;  %v9091_v28 = vld [vmem:[#allocation86_spill] sm:$0xff] }
 0x91c   :  { %4326 = vmatpush1.bf16.msra.mxu1 %v9081_v29  ;;  %4367 = vmatpush1.bf16.msra.mxu0 %v9082_v5  ;;  %v9092_v29 = vld [vmem:[#allocation30_spill] sm:$0xff]  ;;  %v9093_v5 = vld [vmem:[#allocation88_spill] sm:$0xff] }
 0x91d   :  { %4327 = vmatprep.subr.bf16.mxu1 %v9083_v60  ;;  %4368 = vmatprep.subr.bf16.mxu0 %v9084_v36  ;;  %v9094_v60 = vld [vmem:[#allocation31_spill] sm:$0xff]  ;;  %v9095_v36 = vld [vmem:[#allocation90_spill] sm:$0xff] }
 0x920   :  { %4328 = vmatpush1.bf16.msra.mxu1 %v9085_v33  ;;  %4369 = vmatpush1.bf16.msra.mxu0 %v9086_v52  ;;  %v9096_v33 = vld [vmem:[#allocation32_spill] sm:$0xff] }
 0x921   :  { %4329 = vmatprep.subr.bf16.mxu1 %v9087_v46  ;;  %4370 = vmatprep.subr.bf16.mxu0 %v9088_v4  ;;  %v9097_v52 = vld [vmem:[#allocation92_spill] sm:$0xff]  ;;  %v9098_v46 = vld [vmem:[#allocation33_spill] sm:$0xff]  ;;  %v9099_v4 = vld [vmem:[#allocation94_spill] sm:$0xff] }
 0x924   :  { %4330 = vmatpush1.bf16.msra.mxu1 %v9089_v54  ;;  %4371 = vmatpush1.bf16.msra.mxu0 %v9090_v50  ;;  %v9100_v54 = vld [vmem:[#allocation34_spill] sm:$0xff]  ;;  %v9101_v50 = vld [vmem:[#allocation96_spill] sm:$0xff] }
 0x925   :  { %4331 = vmatprep.subr.bf16.mxu1 %v9091_v28  ;;  %4372 = vmatprep.subr.bf16.mxu0 %v9092_v29  ;;  %v9102_v28 = vld [vmem:[#allocation35_spill] sm:$0xff]  ;;  %v9103_v29 = vld [vmem:[#allocation98_spill] sm:$0xff] }
 0x928   :  { %4332 = vmatpush1.bf16.msra.mxu1 %v9093_v5  ;;  %4373 = vmatpush1.bf16.msra.mxu0 %v9094_v60  ;;  %v9104_v5 = vld [vmem:[#allocation36_spill] sm:$0xff] }
 0x929   :  { %4333 = vmatprep.subr.bf16.mxu1 %v9095_v36  ;;  %4374 = vmatprep.subr.bf16.mxu0 %v9096_v33  ;;  %v9105_v60 = vld [vmem:[#allocation100_spill] sm:$0xff]  ;;  %v9106_v36 = vld [vmem:[#allocation37_spill] sm:$0xff]  ;;  %v9107_v33 = vld [vmem:[#allocation102_spill] sm:$0xff] }
 0x92c   :  { %4334 = vmatpush1.bf16.msra.mxu1 %v9097_v52  ;;  %4375 = vmatpush1.bf16.msra.mxu0 %v9098_v46  ;;  %v9108_v52 = vld [vmem:[#allocation38_spill] sm:$0xff]  ;;  %v9109_v46 = vld [vmem:[#allocation103_spill] sm:$0xff] }
 0x92d   :  { %4335 = vmatprep.subr.bf16.mxu1 %v9099_v4  ;;  %4376 = vmatprep.subr.bf16.mxu0 %v9100_v54  ;;  %v9110_v4 = vld [vmem:[#allocation39_spill] sm:$0xff]  ;;  %v9111_v54 = vld [vmem:[#allocation104_spill] sm:$0xff] }
 0x930   :  { %4336 = vmatpush1.bf16.msra.mxu1 %v9101_v50  ;;  %4377 = vmatpush1.bf16.msra.mxu0 %v9102_v28  ;;  %v9112_v50 = vld [vmem:[#allocation40_spill] sm:$0xff]  ;;  %v9113_v28 = vld [vmem:[#allocation105_spill] sm:$0xff] }
 0x931   :  { %4337 = vmatprep.subr.bf16.mxu1 %v9103_v29  ;;  %4378 = vmatprep.subr.bf16.mxu0 %v9104_v5  ;;  %v9114_v29 = vld [vmem:[#allocation41_spill] sm:$0xff]  ;;  %v9115_v5 = vld [vmem:[#allocation106_spill] sm:$0xff] }
 0x934   :  { %4338 = vmatpush1.bf16.msra.mxu1 %v9105_v60  ;;  %4379 = vmatpush1.bf16.msra.mxu0 %v9106_v36  ;;  %v9116_v60 = vld [vmem:[#allocation42_spill] sm:$0xff]  ;;  %v9117_v36 = vld [vmem:[#allocation107_spill] sm:$0xff] }
 0x935   :  { %4339 = vmatprep.subr.bf16.mxu1 %v9107_v33  ;;  %4380 = vmatprep.subr.bf16.mxu0 %v9108_v52  ;;  %v9118_v33 = vld [vmem:[#allocation43_spill] sm:$0xff]  ;;  %v9119_v52 = vld [vmem:[#allocation108_spill] sm:$0xff] }
 0x938   :  { %4340 = vmatpush1.bf16.msra.mxu1 %v9109_v46  ;;  %4381 = vmatpush1.bf16.msra.mxu0 %v9110_v4  ;;  %v9120_v46 = vld [vmem:[#allocation44_spill] sm:$0xff]  ;;  %v9121_v4 = vld [vmem:[#allocation109_spill] sm:$0xff] }
 0x939   :  { %4341 = vmatprep.subr.bf16.mxu1 %v9111_v54  ;;  %4382 = vmatprep.subr.bf16.mxu0 %v9112_v50  ;;  %v9122_v54 = vld [vmem:[#allocation45_spill] sm:$0xff]  ;;  %v9123_v50 = vld [vmem:[#allocation110_spill] sm:$0xff] }
 0x93c   :  { %4342 = vmatpush1.bf16.msra.mxu1 %v9113_v28  ;;  %4383 = vmatpush1.bf16.msra.mxu0 %v9114_v29  ;;  %v9124_v28 = vld [vmem:[#allocation46_spill] sm:$0xff]  ;;  %v9125_v29 = vld [vmem:[#allocation111_spill] sm:$0xff] }
 0x93d   :  { %4343 = vmatprep.subr.bf16.mxu1 %v9115_v5  ;;  %4384 = vmatprep.subr.bf16.mxu0 %v9116_v60  ;;  %v9126_v5 = vld [vmem:[#allocation47_spill] sm:$0xff]  ;;  %v9127_v60 = vld [vmem:[#allocation112_spill] sm:$0xff] }
 0x940   :  { %4344 = vmatpush1.bf16.msra.mxu1 %v9117_v36  ;;  %4385 = vmatpush1.bf16.msra.mxu0 %v9118_v33  ;;  %v9128_v36 = vld [vmem:[#allocation48_spill] sm:$0xff]  ;;  %v9129_v33 = vld [vmem:[#allocation113_spill] sm:$0xff] }
 0x941   :  { %4345 = vmatprep.subr.bf16.mxu1 %v9119_v52  ;;  %4386 = vmatprep.subr.bf16.mxu0 %v9120_v46  ;;  %v9130_v52 = vld [vmem:[#allocation49_spill] sm:$0xff]  ;;  %v9131_v46 = vld [vmem:[#allocation114_spill] sm:$0xff] }
 0x944   :  { %4346 = vmatpush1.bf16.msra.mxu1 %v9121_v4  ;;  %4387 = vmatpush1.bf16.msra.mxu0 %v9122_v54  ;;  %v9132_v4 = vld [vmem:[#allocation50_spill] sm:$0xff]  ;;  %v9133_v54 = vld [vmem:[#allocation115_spill] sm:$0xff] }
 0x945   :  { %4347 = vmatprep.subr.bf16.mxu1 %v9123_v50  ;;  %4388 = vmatprep.subr.bf16.mxu0 %v9124_v28  ;;  %v9134_v50 = vld [vmem:[#allocation51_spill] sm:$0xff]  ;;  %v9135_v28 = vld [vmem:[#allocation116_spill] sm:$0xff] }
 0x948   :  { %4348 = vmatpush1.bf16.msra.mxu1 %v9125_v29  ;;  %4389 = vmatpush1.bf16.msra.mxu0 %v9126_v5  ;;  %v9136_v29 = vld [vmem:[#allocation52_spill] sm:$0xff]  ;;  %v9137_v5 = vld [vmem:[#allocation117_spill] sm:$0xff] }
 0x949   :  { %4349 = vmatprep.subr.bf16.mxu1 %v9127_v60  ;;  %4390 = vmatprep.subr.bf16.mxu0 %v9128_v36  ;;  %v9138_v60 = vld [vmem:[#allocation53_spill] sm:$0xff]  ;;  %v9139_v36 = vld [vmem:[#allocation118_spill] sm:$0xff] }
 0x94c   :  { %4350 = vmatpush1.bf16.msra.mxu1 %v9129_v33  ;;  %4391 = vmatpush1.bf16.msra.mxu0 %v9130_v52  ;;  %v9140_v33 = vld [vmem:[#allocation54_spill] sm:$0xff] }
 0x94d   :  { %4351 = vmatprep.subr.bf16.mxu1 %v9131_v46  ;;  %4392 = vmatprep.subr.bf16.mxu0 %v9132_v4 }
 0x950   :  { %4352 = vmatpush1.bf16.msra.mxu1 %v9133_v54  ;;  %4393 = vmatpush1.bf16.msra.mxu0 %v9134_v50 }
 0x951   :  { %4353 = vmatprep.subr.bf16.mxu1 %v9135_v28  ;;  %4394 = vmatprep.subr.bf16.mxu0 %v9136_v29 }
 0x954   :  { %4354 = vmatpush1.bf16.msra.mxu1 %v9137_v5  ;;  %4395 = vmatpush1.bf16.msra.mxu0 %v9138_v60 }
 0x955   :  { %4405 = vmatprep.subr.bf16.mxu1 %v9139_v36  ;;  %4446 = vmatprep.subr.bf16.mxu0 %v9140_v33 }
 0x9aa   :  { %v4127_v52 = vpop.f32.mrb[88].mxu1  ;;  %v4168_v46 = vpop.f32.mrb[76].mxu0 }
 0x9ab   :  { %v4257_v4 = vadd.f32 %v4127_v52, %v9141_v8  ;;  %v4259_v54 = vadd.f32 %v4168_v46, %v9142_v48  ;;  %v4129_v21 = vpop.f32.mrb[89].mxu1  ;;  %v4170_v50 = vpop.f32.mrb[77].mxu0 }
 0x9ac   :  { %v4258_v28 = vadd.f32 %v4129_v21, %v9143_v62  ;;  %v4260_v29 = vadd.f32 %v4170_v50, %v9144_v49  ;;  %v4131_v44 = vpop.f32.mrb[90].mxu1  ;;  %v4172_v5 = vpop.f32.mrb[78].mxu0 }
 0x9ad   :  { %v4132_v3 = vpop.f32.mrb[91].mxu1  ;;  %v4173_v60 = vpop.f32.mrb[79].mxu0  ;;  %v5497_v63 = vmul.f32 -1.442695, %v4257_v4  ;;  %v5499_v36 = vmul.f32 -1.442695, %v4259_v54 }
 0x9ae   :  { %v5498_v7 = vmul.f32 -1.442695, %v4258_v28  ;;  %v5500_v33 = vmul.f32 -1.442695, %v4260_v29  ;;  %v9145_v60 = vld [vmem:[#allocation161_spill] sm:$0xff]  ;;  %v9146_v54 = vld [vmem:[#allocation206_spill] sm:$0xff] }
 0x9af   :  { %5835 = vpow2.f32 %v5497_v63  ;;  %v9148_v28 = vld [vmem:[#allocation207_spill] sm:$0xff] }
 0x9b0   :  { %5837 = vpow2.f32 %v5499_v36 }
 0x9b1   :  { %5839 = vpow2.f32 %v5498_v7 }
 0x9b2   :  { %5841 = vpow2.f32 %v5500_v33  ;;  %v9147_v33 = vld [vmem:[#allocation164_spill] sm:$0xff] }
 0x9b9   :  { %v5836_v8 = vpop.eup %5835 }
 0x9ba   :  { %v5838_v48 = vpop.eup %5837  ;;  %v4271_v39 = vadd.f32 1.0, %v5836_v8 }
 0x9bb   :  { %v5840_v52 = vpop.eup %5839  ;;  %v4283_v62 = vadd.f32 1.0, %v5838_v48 }
 0x9bc   :  { %v5842_v46 = vpop.eup %5841  ;;  %v4272_v21 = vadd.f32 1.0, %v5840_v52  ;;  %5843 = vrcp.f32 %v4271_v39 }
 0x9bd   :  { %v4284_v49 = vadd.f32 1.0, %v5842_v46  ;;  %5845 = vrcp.f32 %v4283_v62 }
 0x9be   :  { %5847 = vrcp.f32 %v4272_v21 }
 0x9bf   :  { %5849 = vrcp.f32 %v4284_v49 }
 0x9c6   :  { %v5844_v62 = vpop.eup %5843 }
 0x9c7   :  { %v5846_v21 = vpop.eup %5845 }
 0x9ea   :  { %v4209_v3 = vpop.f32.mrb[92].mxu1  ;;  %v4250_v44 = vpop.f32.mrb[80].mxu0 }
 0x9eb   :  { %v4261_v4 = vadd.f32 %v4209_v3, %v9145_v60  ;;  %v4263_v63 = vadd.f32 %v4250_v44, %v9146_v54  ;;  %v4211_v36 = vpop.f32.mrb[93].mxu1  ;;  %v4252_v7 = vpop.f32.mrb[81].mxu0  ;;  %v4303_v54 = vmul.f32 %v5846_v21, %v7731_v25  ;;  %v9149_v21 = vld [vmem:[#allocation81_spill] sm:$0xff] }
 0x9ec   :  { %v4262_v50 = vadd.f32 %v4211_v36, %v9147_v33  ;;  %v4264_v29 = vadd.f32 %v4252_v7, %v9148_v28  ;;  %v4213_v5 = vpop.f32.mrb[94].mxu1  ;;  %v4254_v8 = vpop.f32.mrb[82].mxu0 }
 0x9ed   :  { %5851 = vtanh.f32 %v4261_v4  ;;  %v5501_v48 = vmul.f32 -1.442695, %v4263_v63  ;;  %v4214_v39 = vpop.f32.mrb[95].mxu1  ;;  %v4255_v52 = vpop.f32.mrb[83].mxu0 }
 0x9ee   :  { %5853 = vtanh.f32 %v4262_v50  ;;  %v5502_v46 = vmul.f32 -1.442695, %v4264_v29  ;;  %v5848_v3 = vpop.eup %5847 }
 0x9ef   :  { %5855 = vpow2.f32 %v5501_v48  ;;  %v5850_v44 = vpop.eup %5849 }
 0x9f0   :  { %5857 = vpow2.f32 %v5502_v46  ;;  %v4304_v33 = vmul.f32 %v5850_v44, %v7733_v40  ;;  %v9151_v44 = vld [vmem:[#allocation83_spill] sm:$0xff] }
 0x9f7   :  { %v5852_v60 = vpop.eup %5851 }
 0x9f8   :  { %v5854_v49 = vpop.eup %5853  ;;  %v4305_v36 = vmul.f32 %v5852_v60, %v5844_v62  ;;  %v9152_v60 = vld [vmem:[#allocation165_spill] sm:$0xff] }
 0x9f9   :  { %v5856_v7 = vpop.eup %5855  ;;  %v4306_v4 = vmul.f32 %v5854_v49, %v5848_v3  ;;  %v9150_v3 = vld [vmem:[#allocation162_spill] sm:$0xff]  ;;  %v9153_v49 = vld [vmem:[#allocation85_spill] sm:$0xff] }
 0x9fa   :  { %v5858_v63 = vpop.eup %5857  ;;  %v7881_v28 = vadd.f32 %v4305_v36, %v4303_v54  ;;  %v4297_v50 = vadd.f32 1.0, %v5856_v7  ;;  %v9154_v54 = vld [vmem:[#allocation166_spill] sm:$0xff]  ;;  %v9155_v36 = vld [vmem:[#allocation87_spill] sm:$0xff] }
 0x9fb   :  { %v7883_v29 = vadd.f32 %v4306_v4, %v4304_v33  ;;  %v4298_v5 = vadd.f32 1.0, %v5858_v63  ;;  %v9156_v7 = vld [vmem:[#allocation171_spill] sm:$0xff]  ;;  %v9157_v33 = vld [vmem:[#allocation89_spill] sm:$0xff]  ;;  %v9158_v4 = vld [vmem:[#allocation174_spill] sm:$0xff] }
 0x9fc   :  { %5859 = vtanh.f32 %v7881_v28  ;;  %v9159_v63 = vld [vmem:[#allocation91_spill] sm:$0xff] }
 0x9fd   :  { %5861 = vrcp.f32 %v4297_v50  ;;  %v9160_v50 = vld [vmem:[#allocation177_spill] sm:$0xff] }
 0x9fe   :  { %5863 = vtanh.f32 %v7883_v29 }
 0x9ff   :  { %5865 = vrcp.f32 %v4298_v5  ;;  %v9161_v5 = vld [vmem:[#allocation93_spill] sm:$0xff] }
 0xa06   :  { %v5860_v8 = vpop.eup %5859 }
 0xa07   :  { %v5862_v25 = vpop.eup %5861 }
 0xa08   :  { %v5864_v48 = vpop.eup %5863  ;;  %v4311_v52 = vmul.f32 %v5862_v25, %v5860_v8  ;;  %v9162_v8 = vld [vmem:[#allocation178_spill] sm:$0xff]  ;;  %v9163_v25 = vld [vmem:[#allocation95_spill] sm:$0xff] }
 0xa09   :  { %v5866_v39 = vpop.eup %5865 }
 0xa0a   :  { %v4312_v40 = vmul.f32 %v5866_v39, %v5864_v48  ;;  %v7887_v62 = vpack.c.bf16 %v4311_v52, %v4311_v52  ;;  %v9164_v48 = vld [vmem:[#allocation181_spill] sm:$0xff]  ;;  %v9166_v52 = vld [vmem:[#allocation182_spill] sm:$0xff] }
 0xa0b   :  { %v9165_v39 = vld [vmem:[#allocation97_spill] sm:$0xff] }
 0xa0c   :  { %v4322_v46 = vpack.c.bf16 %v4312_v40, %v4312_v40  ;;  %v9167_v40 = vld [vmem:[#allocation99_spill] sm:$0xff] }
 0xa0e   :  { %4355 = vmatprep.mubr.bf16.mxu1 %v4322_v46  ;;  %4396 = vmatprep.mubr.bf16.mxu0 %v4322_v46 }
 0xa0f   :  { %4356 = vmatmul.mubr.bf16.vlgmr.msra.gmra.mrb[96].mxu1 %v7887_v62  ;;  %4397 = vmatmul.mubr.bf16.vlgmr.msra.gmra.mrb[84].mxu0 %v7887_v62 }
 0xa10   :  { %4406 = vmatpush1.bf16.msra.mxu1 %v8668_v32  ;;  %4447 = vmatpush1.bf16.msra.mxu0 %v8669_v9 }
 0xa11   :  { %4437 = vmatprep.mubr.bf16.mxu1 %v4322_v46  ;;  %4478 = vmatprep.mubr.bf16.mxu0 %v4322_v46  ;;  %v9168_v46 = vld [vmem:[#allocation183_spill] sm:$0xff] }
 0xa12   :  { %4407 = vmatprep.subr.bf16.mxu1 %v8670_v35  ;;  %4448 = vmatprep.subr.bf16.mxu0 %v8671_v10 }
 0xa14   :  { %4408 = vmatpush1.bf16.msra.mxu1 %v8672_v19  ;;  %4449 = vmatpush1.bf16.msra.mxu0 %v8673_v37 }
 0xa15   :  { %4409 = vmatprep.subr.bf16.mxu1 %v8674_v30  ;;  %4450 = vmatprep.subr.bf16.mxu0 %v8675_v27 }
 0xa18   :  { %4410 = vmatpush1.bf16.msra.mxu1 %v8676_v43  ;;  %4451 = vmatpush1.bf16.msra.mxu0 %v8677_v34 }
 0xa19   :  { %4411 = vmatprep.subr.bf16.mxu1 %v8678_v45  ;;  %4452 = vmatprep.subr.bf16.mxu0 %v8679_v16 }
 0xa1c   :  { %4412 = vmatpush1.bf16.msra.mxu1 %v8680_v13  ;;  %4453 = vmatpush1.bf16.msra.mxu0 %v8681_v57 }
 0xa1d   :  { %4413 = vmatprep.subr.bf16.mxu1 %v8682_v2  ;;  %4454 = vmatprep.subr.bf16.mxu0 %v8683_v1 }
 0xa20   :  { %4414 = vmatpush1.bf16.msra.mxu1 %v8769_v59  ;;  %4455 = vmatpush1.bf16.msra.mxu0 %v8685_v22 }
 0xa21   :  { %4415 = vmatprep.subr.bf16.mxu1 %v8770_v55  ;;  %4456 = vmatprep.subr.bf16.mxu0 %v8687_v15 }
 0xa24   :  { %4416 = vmatpush1.bf16.msra.mxu1 %v8771_v14  ;;  %4457 = vmatpush1.bf16.msra.mxu0 %v8688_v31 }
 0xa25   :  { %4417 = vmatprep.subr.bf16.mxu1 %v8772_v0  ;;  %4458 = vmatprep.subr.bf16.mxu0 %v8773_v61 }
 0xa28   :  { %4418 = vmatpush1.bf16.msra.mxu1 %v8774_v11  ;;  %4459 = vmatpush1.bf16.msra.mxu0 %v8775_v23 }
 0xa29   :  { %4419 = vmatprep.subr.bf16.mxu1 %v8776_v6  ;;  %4460 = vmatprep.subr.bf16.mxu0 %v8777_v17 }
 0xa2c   :  { %4420 = vmatpush1.bf16.msra.mxu1 %v8778_v51  ;;  %4461 = vmatpush1.bf16.msra.mxu0 %v8779_v18 }
 0xa2d   :  { %4421 = vmatprep.subr.bf16.mxu1 %v8780_v26  ;;  %4462 = vmatprep.subr.bf16.mxu0 %v8781_v47 }
 0xa30   :  { %4422 = vmatpush1.bf16.msra.mxu1 %v8782_v24  ;;  %4463 = vmatpush1.bf16.msra.mxu0 %v8864_v56 }
 0xa31   :  { %4423 = vmatprep.subr.bf16.mxu1 %v8783_v41  ;;  %4464 = vmatprep.subr.bf16.mxu0 %v8865_v53 }
 0xa34   :  { %4424 = vmatpush1.bf16.msra.mxu1 %v8785_v58  ;;  %4465 = vmatpush1.bf16.msra.mxu0 %v8866_v42 }
 0xa35   :  { %4425 = vmatprep.subr.bf16.mxu1 %v8786_v38  ;;  %4466 = vmatprep.subr.bf16.mxu0 %v8867_v20 }
 0xa38   :  { %4426 = vmatpush1.bf16.msra.mxu1 %v8787_v12  ;;  %4467 = vmatpush1.bf16.msra.mxu0 %v9149_v21 }
 0xa39   :  { %4427 = vmatprep.subr.bf16.mxu1 %v9150_v3  ;;  %4468 = vmatprep.subr.bf16.mxu0 %v9151_v44 }
 0xa3c   :  { %4428 = vmatpush1.bf16.msra.mxu1 %v9152_v60  ;;  %4469 = vmatpush1.bf16.msra.mxu0 %v9153_v49 }
 0xa3d   :  { %4429 = vmatprep.subr.bf16.mxu1 %v9154_v54  ;;  %4470 = vmatprep.subr.bf16.mxu0 %v9155_v36  ;;  %v9238_v36 = vld [vmem:[#allocation169_spill] sm:$0xff]  ;;  %v9239_v54 = vld [vmem:[#allocation195_spill] sm:$0xff] }
 0xa40   :  { %4430 = vmatpush1.bf16.msra.mxu1 %v9156_v7  ;;  %4471 = vmatpush1.bf16.msra.mxu0 %v9157_v33  ;;  %v9237_v33 = vld [vmem:[#allocation194_spill] sm:$0xff] }
 0xa41   :  { %4431 = vmatprep.subr.bf16.mxu1 %v9158_v4  ;;  %4472 = vmatprep.subr.bf16.mxu0 %v9159_v63  ;;  %v9169_v4 = vld [vmem:[#allocation101_spill] sm:$0xff]  ;;  %v9170_v63 = vld [vmem:[#allocation70_spill] sm:$0xff] }
 0xa44   :  { %4432 = vmatpush1.bf16.msra.mxu1 %v9160_v50  ;;  %4473 = vmatpush1.bf16.msra.mxu0 %v9161_v5  ;;  %v9171_v50 = vld [vmem:[#allocation22_spill] sm:$0xff]  ;;  %v9236_v5 = vld [vmem:[#allocation167_spill] sm:$0xff] }
 0xa45   :  { %4433 = vmatprep.subr.bf16.mxu1 %v9162_v8  ;;  %4474 = vmatprep.subr.bf16.mxu0 %v9163_v25  ;;  %v9172_v25 = vld [vmem:[#allocation72_spill] sm:$0xff]  ;;  %v9181_v8 = vld [vmem:[#allocation27_spill] sm:$0xff] }
 0xa48   :  { %4434 = vmatpush1.bf16.msra.mxu1 %v9164_v48  ;;  %4475 = vmatpush1.bf16.msra.mxu0 %v9165_v39  ;;  %v9173_v48 = vld [vmem:[#allocation23_spill] sm:$0xff]  ;;  %v9174_v39 = vld [vmem:[#allocation74_spill] sm:$0xff] }
 0xa49   :  { %4435 = vmatprep.subr.bf16.mxu1 %v9166_v52  ;;  %4476 = vmatprep.subr.bf16.mxu0 %v9167_v40  ;;  %v9175_v52 = vld [vmem:[#allocation24_spill] sm:$0xff] }
 0xa4a   :  { %v9176_v40 = vld [vmem:[#allocation76_spill] sm:$0xff] }
 0xa4c   :  { %4436 = vmatpush1.bf16.msra.mxu1 %v9168_v46  ;;  %4477 = vmatpush1.bf16.msra.mxu0 %v9169_v4  ;;  %v9177_v46 = vld [vmem:[#allocation25_spill] sm:$0xff]  ;;  %v9178_v4 = vld [vmem:[#allocation78_spill] sm:$0xff] }
 0xa4d   :  { %4553 = vmatprep.subr.bf16.mxu1 %v9170_v63  ;;  %4594 = vmatprep.subr.bf16.mxu0 %v9171_v50  ;;  %v9179_v63 = vld [vmem:[#allocation26_spill] sm:$0xff]  ;;  %v9180_v50 = vld [vmem:[#allocation80_spill] sm:$0xff] }
 0xa4f   :  { %4438 = vmatmul.mubr.bf16.vlgmr.msra.gmra.mrb[100].mxu1 %v7887_v62  ;;  %4479 = vmatmul.mubr.bf16.vlgmr.msra.gmra.mrb[88].mxu0 %v7887_v62  ;;  %v9182_v62 = vld [vmem:[#allocation82_spill] sm:$0xff] }
 0xa50   :  { %4554 = vmatpush1.bf16.msra.mxu1 %v9172_v25  ;;  %4595 = vmatpush1.bf16.msra.mxu0 %v9173_v48  ;;  %v9183_v25 = vld [vmem:[#allocation28_spill] sm:$0xff] }
 0xa51   :  { %4555 = vmatprep.subr.bf16.mxu1 %v9174_v39  ;;  %4596 = vmatprep.subr.bf16.mxu0 %v9175_v52  ;;  %v9184_v48 = vld [vmem:[#allocation84_spill] sm:$0xff]  ;;  %v9185_v39 = vld [vmem:[#allocation29_spill] sm:$0xff]  ;;  %v9186_v52 = vld [vmem:[#allocation86_spill] sm:$0xff] }
 0xa54   :  { %4556 = vmatpush1.bf16.msra.mxu1 %v9176_v40  ;;  %4597 = vmatpush1.bf16.msra.mxu0 %v9177_v46  ;;  %v9187_v40 = vld [vmem:[#allocation30_spill] sm:$0xff]  ;;  %v9188_v46 = vld [vmem:[#allocation88_spill] sm:$0xff] }
 0xa55   :  { %4557 = vmatprep.subr.bf16.mxu1 %v9178_v4  ;;  %4598 = vmatprep.subr.bf16.mxu0 %v9179_v63  ;;  %v9189_v4 = vld [vmem:[#allocation31_spill] sm:$0xff]  ;;  %v9190_v63 = vld [vmem:[#allocation90_spill] sm:$0xff] }
 0xa58   :  { %4558 = vmatpush1.bf16.msra.mxu1 %v9180_v50  ;;  %4599 = vmatpush1.bf16.msra.mxu0 %v9181_v8  ;;  %v9191_v50 = vld [vmem:[#allocation32_spill] sm:$0xff] }
 0xa59   :  { %4559 = vmatprep.subr.bf16.mxu1 %v9182_v62  ;;  %4600 = vmatprep.subr.bf16.mxu0 %v9183_v25  ;;  %v9192_v8 = vld [vmem:[#allocation92_spill] sm:$0xff]  ;;  %v9193_v62 = vld [vmem:[#allocation33_spill] sm:$0xff]  ;;  %v9194_v25 = vld [vmem:[#allocation94_spill] sm:$0xff] }
 0xa5c   :  { %4560 = vmatpush1.bf16.msra.mxu1 %v9184_v48  ;;  %4601 = vmatpush1.bf16.msra.mxu0 %v9185_v39  ;;  %v9195_v48 = vld [vmem:[#allocation34_spill] sm:$0xff]  ;;  %v9196_v39 = vld [vmem:[#allocation96_spill] sm:$0xff] }
 0xa5d   :  { %4561 = vmatprep.subr.bf16.mxu1 %v9186_v52  ;;  %4602 = vmatprep.subr.bf16.mxu0 %v9187_v40  ;;  %v9197_v52 = vld [vmem:[#allocation35_spill] sm:$0xff]  ;;  %v9198_v40 = vld [vmem:[#allocation98_spill] sm:$0xff] }
 0xa60   :  { %4562 = vmatpush1.bf16.msra.mxu1 %v9188_v46  ;;  %4603 = vmatpush1.bf16.msra.mxu0 %v9189_v4  ;;  %v9199_v46 = vld [vmem:[#allocation36_spill] sm:$0xff] }
 0xa61   :  { %4563 = vmatprep.subr.bf16.mxu1 %v9190_v63  ;;  %4604 = vmatprep.subr.bf16.mxu0 %v9191_v50  ;;  %v9200_v4 = vld [vmem:[#allocation100_spill] sm:$0xff]  ;;  %v9201_v63 = vld [vmem:[#allocation37_spill] sm:$0xff]  ;;  %v9202_v50 = vld [vmem:[#allocation102_spill] sm:$0xff] }
 0xa64   :  { %4564 = vmatpush1.bf16.msra.mxu1 %v9192_v8  ;;  %4605 = vmatpush1.bf16.msra.mxu0 %v9193_v62  ;;  %v9203_v8 = vld [vmem:[#allocation38_spill] sm:$0xff]  ;;  %v9204_v62 = vld [vmem:[#allocation103_spill] sm:$0xff] }
 0xa65   :  { %4565 = vmatprep.subr.bf16.mxu1 %v9194_v25  ;;  %4606 = vmatprep.subr.bf16.mxu0 %v9195_v48  ;;  %v9205_v25 = vld [vmem:[#allocation39_spill] sm:$0xff]  ;;  %v9206_v48 = vld [vmem:[#allocation104_spill] sm:$0xff] }
 0xa68   :  { %4566 = vmatpush1.bf16.msra.mxu1 %v9196_v39  ;;  %4607 = vmatpush1.bf16.msra.mxu0 %v9197_v52  ;;  %v9207_v39 = vld [vmem:[#allocation40_spill] sm:$0xff]  ;;  %v9208_v52 = vld [vmem:[#allocation105_spill] sm:$0xff] }
 0xa69   :  { %4567 = vmatprep.subr.bf16.mxu1 %v9198_v40  ;;  %4608 = vmatprep.subr.bf16.mxu0 %v9199_v46  ;;  %v9209_v40 = vld [vmem:[#allocation41_spill] sm:$0xff]  ;;  %v9210_v46 = vld [vmem:[#allocation106_spill] sm:$0xff] }
 0xa6c   :  { %4568 = vmatpush1.bf16.msra.mxu1 %v9200_v4  ;;  %4609 = vmatpush1.bf16.msra.mxu0 %v9201_v63  ;;  %v9211_v4 = vld [vmem:[#allocation42_spill] sm:$0xff]  ;;  %v9212_v63 = vld [vmem:[#allocation107_spill] sm:$0xff] }
 0xa6d   :  { %4569 = vmatprep.subr.bf16.mxu1 %v9202_v50  ;;  %4610 = vmatprep.subr.bf16.mxu0 %v9203_v8  ;;  %v9213_v50 = vld [vmem:[#allocation43_spill] sm:$0xff]  ;;  %v9214_v8 = vld [vmem:[#allocation108_spill] sm:$0xff] }
 0xa70   :  { %4570 = vmatpush1.bf16.msra.mxu1 %v9204_v62  ;;  %4611 = vmatpush1.bf16.msra.mxu0 %v9205_v25  ;;  %v9215_v62 = vld [vmem:[#allocation44_spill] sm:$0xff]  ;;  %v9216_v25 = vld [vmem:[#allocation109_spill] sm:$0xff] }
 0xa71   :  { %4571 = vmatprep.subr.bf16.mxu1 %v9206_v48  ;;  %4612 = vmatprep.subr.bf16.mxu0 %v9207_v39  ;;  %v9217_v48 = vld [vmem:[#allocation45_spill] sm:$0xff]  ;;  %v9218_v39 = vld [vmem:[#allocation110_spill] sm:$0xff] }
 0xa74   :  { %4572 = vmatpush1.bf16.msra.mxu1 %v9208_v52  ;;  %4613 = vmatpush1.bf16.msra.mxu0 %v9209_v40  ;;  %v9219_v52 = vld [vmem:[#allocation46_spill] sm:$0xff]  ;;  %v9220_v40 = vld [vmem:[#allocation111_spill] sm:$0xff] }
 0xa75   :  { %4573 = vmatprep.subr.bf16.mxu1 %v9210_v46  ;;  %4614 = vmatprep.subr.bf16.mxu0 %v9211_v4  ;;  %v9221_v46 = vld [vmem:[#allocation47_spill] sm:$0xff]  ;;  %v9222_v4 = vld [vmem:[#allocation112_spill] sm:$0xff] }
 0xa78   :  { %4574 = vmatpush1.bf16.msra.mxu1 %v9212_v63  ;;  %4615 = vmatpush1.bf16.msra.mxu0 %v9213_v50  ;;  %v9223_v63 = vld [vmem:[#allocation48_spill] sm:$0xff]  ;;  %v9224_v50 = vld [vmem:[#allocation113_spill] sm:$0xff] }
 0xa79   :  { %4575 = vmatprep.subr.bf16.mxu1 %v9214_v8  ;;  %4616 = vmatprep.subr.bf16.mxu0 %v9215_v62  ;;  %v9225_v8 = vld [vmem:[#allocation49_spill] sm:$0xff]  ;;  %v9226_v62 = vld [vmem:[#allocation114_spill] sm:$0xff] }
 0xa7c   :  { %4576 = vmatpush1.bf16.msra.mxu1 %v9216_v25  ;;  %4617 = vmatpush1.bf16.msra.mxu0 %v9217_v48  ;;  %v9227_v25 = vld [vmem:[#allocation50_spill] sm:$0xff]  ;;  %v9228_v48 = vld [vmem:[#allocation115_spill] sm:$0xff] }
 0xa7d   :  { %4577 = vmatprep.subr.bf16.mxu1 %v9218_v39  ;;  %4618 = vmatprep.subr.bf16.mxu0 %v9219_v52  ;;  %v9229_v39 = vld [vmem:[#allocation51_spill] sm:$0xff]  ;;  %v9230_v52 = vld [vmem:[#allocation116_spill] sm:$0xff] }
 0xa80   :  { %4578 = vmatpush1.bf16.msra.mxu1 %v9220_v40  ;;  %4619 = vmatpush1.bf16.msra.mxu0 %v9221_v46  ;;  %v9231_v40 = vld [vmem:[#allocation52_spill] sm:$0xff]  ;;  %v9232_v46 = vld [vmem:[#allocation117_spill] sm:$0xff] }
 0xa81   :  { %4579 = vmatprep.subr.bf16.mxu1 %v9222_v4  ;;  %4620 = vmatprep.subr.bf16.mxu0 %v9223_v63  ;;  %v9233_v4 = vld [vmem:[#allocation53_spill] sm:$0xff]  ;;  %v9234_v63 = vld [vmem:[#allocation118_spill] sm:$0xff] }
 0xa84   :  { %4580 = vmatpush1.bf16.msra.mxu1 %v9224_v50  ;;  %4621 = vmatpush1.bf16.msra.mxu0 %v9225_v8  ;;  %v9235_v50 = vld [vmem:[#allocation54_spill] sm:$0xff] }
 0xa85   :  { %4581 = vmatprep.subr.bf16.mxu1 %v9226_v62  ;;  %4622 = vmatprep.subr.bf16.mxu0 %v9227_v25 }
 0xa88   :  { %4582 = vmatpush1.bf16.msra.mxu1 %v9228_v48  ;;  %4623 = vmatpush1.bf16.msra.mxu0 %v9229_v39 }
 0xa89   :  { %4583 = vmatprep.subr.bf16.mxu1 %v9230_v52  ;;  %4624 = vmatprep.subr.bf16.mxu0 %v9231_v40 }
 0xa8c   :  { %4584 = vmatpush1.bf16.msra.mxu1 %v9232_v46  ;;  %4625 = vmatpush1.bf16.msra.mxu0 %v9233_v4 }
 0xa8d   :  { %4635 = vmatprep.subr.bf16.mxu1 %v9234_v63  ;;  %4676 = vmatprep.subr.bf16.mxu0 %v9235_v50 }
 0xae2   :  { %v4357_v8 = vpop.f32.mrb[96].mxu1  ;;  %v4398_v62 = vpop.f32.mrb[84].mxu0 }
 0xae3   :  { %v4487_v25 = vadd.f32 %v4357_v8, %v9236_v5  ;;  %v4489_v48 = vadd.f32 %v4398_v62, %v9237_v33  ;;  %v4359_v7 = vpop.f32.mrb[97].mxu1  ;;  %v4400_v39 = vpop.f32.mrb[85].mxu0 }
 0xae4   :  { %v4488_v52 = vadd.f32 %v4359_v7, %v9238_v36  ;;  %v4490_v40 = vadd.f32 %v4400_v39, %v9239_v54  ;;  %v4361_v49 = vpop.f32.mrb[98].mxu1  ;;  %v4402_v46 = vpop.f32.mrb[86].mxu0  ;;  %v9241_v39 = vld [vmem:[#allocation208_spill] sm:$0xff] }
 0xae5   :  { %v4362_v60 = vpop.f32.mrb[99].mxu1  ;;  %v4403_v4 = vpop.f32.mrb[87].mxu0  ;;  %v5503_v44 = vmul.f32 -1.442695, %v4487_v25  ;;  %v5505_v63 = vmul.f32 -1.442695, %v4489_v48 }
 0xae6   :  { %v5504_v3 = vmul.f32 -1.442695, %v4488_v52  ;;  %v5506_v50 = vmul.f32 -1.442695, %v4490_v40  ;;  %v9240_v25 = vld [vmem:[#allocation168_spill] sm:$0xff]  ;;  %v9242_v40 = vld [vmem:[#allocation170_spill] sm:$0xff] }
 0xae7   :  { %5867 = vpow2.f32 %v5503_v44  ;;  %v9243_v4 = vld [vmem:[#allocation209_spill] sm:$0xff] }
 0xae8   :  { %5869 = vpow2.f32 %v5505_v63 }
 0xae9   :  { %5871 = vpow2.f32 %v5504_v3 }
 0xaea   :  { %5873 = vpow2.f32 %v5506_v50 }
 0xaf1   :  { %v5868_v5 = vpop.eup %5867 }
 0xaf2   :  { %v5870_v33 = vpop.eup %5869  ;;  %v4501_v21 = vadd.f32 1.0, %v5868_v5 }
 0xaf3   :  { %v5872_v8 = vpop.eup %5871  ;;  %v4513_v36 = vadd.f32 1.0, %v5870_v33 }
 0xaf4   :  { %v5874_v62 = vpop.eup %5873  ;;  %v4502_v7 = vadd.f32 1.0, %v5872_v8  ;;  %5875 = vrcp.f32 %v4501_v21 }
 0xaf5   :  { %v4514_v54 = vadd.f32 1.0, %v5874_v62  ;;  %5877 = vrcp.f32 %v4513_v36 }
 0xaf6   :  { %5879 = vrcp.f32 %v4502_v7 }
 0xaf7   :  { %5881 = vrcp.f32 %v4514_v54 }
 0xafe   :  { %v5876_v36 = vpop.eup %5875 }
 0xaff   :  { %v5878_v7 = vpop.eup %5877 }
 0xb22   :  { %v4439_v60 = vpop.f32.mrb[100].mxu1  ;;  %v4480_v49 = vpop.f32.mrb[88].mxu0 }
 0xb23   :  { %v4491_v48 = vadd.f32 %v4439_v60, %v9240_v25  ;;  %v4493_v44 = vadd.f32 %v4480_v49, %v9241_v39  ;;  %v4441_v52 = vpop.f32.mrb[101].mxu1  ;;  %v4482_v3 = vpop.f32.mrb[89].mxu0  ;;  %v4533_v39 = vmul.f32 %v5878_v7, %v7881_v28 }
 0xb24   :  { %v4492_v46 = vadd.f32 %v4441_v52, %v9242_v40  ;;  %v4494_v63 = vadd.f32 %v4482_v3, %v9243_v4  ;;  %v4443_v50 = vpop.f32.mrb[102].mxu1  ;;  %v4484_v5 = vpop.f32.mrb[90].mxu0 }
 0xb25   :  { %5883 = vtanh.f32 %v4491_v48  ;;  %v5507_v33 = vmul.f32 -1.442695, %v4493_v44  ;;  %v4444_v21 = vpop.f32.mrb[103].mxu1  ;;  %v4485_v8 = vpop.f32.mrb[91].mxu0 }
 0xb26   :  { %5885 = vtanh.f32 %v4492_v46  ;;  %v5508_v62 = vmul.f32 -1.442695, %v4494_v63  ;;  %v5880_v60 = vpop.eup %5879 }
 0xb27   :  { %5887 = vpow2.f32 %v5507_v33  ;;  %v5882_v49 = vpop.eup %5881 }
 0xb28   :  { %5889 = vpow2.f32 %v5508_v62  ;;  %v4534_v40 = vmul.f32 %v5882_v49, %v7883_v29 }
 0xb2f   :  { %v5884_v25 = vpop.eup %5883 }
 0xb30   :  { %v5886_v54 = vpop.eup %5885  ;;  %v4535_v52 = vmul.f32 %v5884_v25, %v5876_v36 }
 0xb31   :  { %v5888_v3 = vpop.eup %5887  ;;  %v4536_v48 = vmul.f32 %v5886_v54, %v5880_v60 }
 0xb32   :  { %v5890_v44 = vpop.eup %5889  ;;  %v8031_v4 = vadd.f32 %v4535_v52, %v4533_v39  ;;  %v4527_v46 = vadd.f32 1.0, %v5888_v3 }
 0xb33   :  { %v8033_v63 = vadd.f32 %v4536_v48, %v4534_v40  ;;  %v4528_v50 = vadd.f32 1.0, %v5890_v44  ;;  %v9269_v44 = vld [vmem:[#allocation173_spill] sm:$0xff] }
 0xb34   :  { %5891 = vtanh.f32 %v8031_v4 }
 0xb35   :  { %5893 = vrcp.f32 %v4527_v46 }
 0xb36   :  { %5895 = vtanh.f32 %v8033_v63 }
 0xb37   :  { %5897 = vrcp.f32 %v4528_v50  ;;  %v9270_v50 = vld [vmem:[#allocation210_spill] sm:$0xff] }
 0xb3e   :  { %v5892_v5 = vpop.eup %5891 }
 0xb3f   :  { %v5894_v28 = vpop.eup %5893 }
 0xb40   :  { %v5896_v33 = vpop.eup %5895  ;;  %v4541_v8 = vmul.f32 %v5894_v28, %v5892_v5 }
 0xb41   :  { %v5898_v21 = vpop.eup %5897 }
 0xb42   :  { %v4542_v29 = vmul.f32 %v5898_v21, %v5896_v33  ;;  %v8037_v36 = vpack.c.bf16 %v4541_v8, %v4541_v8  ;;  %v9271_v21 = vld [vmem:[#allocation176_spill] sm:$0xff] }
 0xb44   :  { %v4552_v62 = vpack.c.bf16 %v4542_v29, %v4542_v29  ;;  %v9272_v29 = vld [vmem:[#allocation211_spill] sm:$0xff] }
 0xb46   :  { %4585 = vmatprep.mubr.bf16.mxu1 %v4552_v62  ;;  %4626 = vmatprep.mubr.bf16.mxu0 %v4552_v62 }
 0xb47   :  { %4586 = vmatmul.mubr.bf16.vlgmr.msra.gmra.mrb[104].mxu1 %v8037_v36  ;;  %4627 = vmatmul.mubr.bf16.vlgmr.msra.gmra.mrb[92].mxu0 %v8037_v36 }
 0xb48   :  { %4636 = vmatpush1.bf16.msra.mxu1 %v8668_v32  ;;  %4677 = vmatpush1.bf16.msra.mxu0 %v8669_v9  ;;  %v9244_v32 = vld [vmem:[#allocation81_spill] sm:$0xff]  ;;  %v9245_v9 = vld [vmem:[#allocation162_spill] sm:$0xff] }
 0xb49   :  { %4667 = vmatprep.mubr.bf16.mxu1 %v4552_v62  ;;  %4708 = vmatprep.mubr.bf16.mxu0 %v4552_v62 }
 0xb4a   :  { %4637 = vmatprep.subr.bf16.mxu1 %v8670_v35  ;;  %4678 = vmatprep.subr.bf16.mxu0 %v8671_v10  ;;  %v9246_v35 = vld [vmem:[#allocation83_spill] sm:$0xff]  ;;  %v9247_v10 = vld [vmem:[#allocation165_spill] sm:$0xff] }
 0xb4c   :  { %4638 = vmatpush1.bf16.msra.mxu1 %v8672_v19  ;;  %4679 = vmatpush1.bf16.msra.mxu0 %v8673_v37  ;;  %v9248_v19 = vld [vmem:[#allocation85_spill] sm:$0xff]  ;;  %v9249_v37 = vld [vmem:[#allocation166_spill] sm:$0xff] }
 0xb4d   :  { %4639 = vmatprep.subr.bf16.mxu1 %v8674_v30  ;;  %4680 = vmatprep.subr.bf16.mxu0 %v8675_v27  ;;  %v9250_v30 = vld [vmem:[#allocation87_spill] sm:$0xff] }
 0xb4e   :  { %v9251_v27 = vld [vmem:[#allocation171_spill] sm:$0xff] }
 0xb50   :  { %4640 = vmatpush1.bf16.msra.mxu1 %v8676_v43  ;;  %4681 = vmatpush1.bf16.msra.mxu0 %v8677_v34  ;;  %v9252_v43 = vld [vmem:[#allocation89_spill] sm:$0xff]  ;;  %v9253_v34 = vld [vmem:[#allocation174_spill] sm:$0xff] }
 0xb51   :  { %4641 = vmatprep.subr.bf16.mxu1 %v8678_v45  ;;  %4682 = vmatprep.subr.bf16.mxu0 %v8679_v16  ;;  %v9254_v45 = vld [vmem:[#allocation91_spill] sm:$0xff]  ;;  %v9255_v16 = vld [vmem:[#allocation177_spill] sm:$0xff] }
 0xb54   :  { %4642 = vmatpush1.bf16.msra.mxu1 %v8680_v13  ;;  %4683 = vmatpush1.bf16.msra.mxu0 %v8681_v57  ;;  %v9256_v13 = vld [vmem:[#allocation93_spill] sm:$0xff]  ;;  %v9257_v57 = vld [vmem:[#allocation178_spill] sm:$0xff] }
 0xb55   :  { %4643 = vmatprep.subr.bf16.mxu1 %v8682_v2  ;;  %4684 = vmatprep.subr.bf16.mxu0 %v8683_v1  ;;  %v9258_v2 = vld [vmem:[#allocation95_spill] sm:$0xff]  ;;  %v9259_v1 = vld [vmem:[#allocation181_spill] sm:$0xff] }
 0xb58   :  { %4644 = vmatpush1.bf16.msra.mxu1 %v8769_v59  ;;  %4685 = vmatpush1.bf16.msra.mxu0 %v8685_v22  ;;  %v9260_v22 = vld [vmem:[#allocation97_spill] sm:$0xff]  ;;  %v9263_v59 = vld [vmem:[#allocation183_spill] sm:$0xff] }
 0xb59   :  { %4645 = vmatprep.subr.bf16.mxu1 %v8770_v55  ;;  %4686 = vmatprep.subr.bf16.mxu0 %v8687_v15  ;;  %v9261_v15 = vld [vmem:[#allocation182_spill] sm:$0xff]  ;;  %v9264_v55 = vld [vmem:[#allocation101_spill] sm:$0xff] }
 0xb5c   :  { %4646 = vmatpush1.bf16.msra.mxu1 %v8771_v14  ;;  %4687 = vmatpush1.bf16.msra.mxu0 %v8688_v31  ;;  %v9262_v31 = vld [vmem:[#allocation99_spill] sm:$0xff] }
 0xb5d   :  { %4647 = vmatprep.subr.bf16.mxu1 %v8772_v0  ;;  %4688 = vmatprep.subr.bf16.mxu0 %v8773_v61  ;;  %v9265_v61 = vld [vmem:[#allocation172_spill] sm:$0xff] }
 0xb60   :  { %4648 = vmatpush1.bf16.msra.mxu1 %v8774_v11  ;;  %4689 = vmatpush1.bf16.msra.mxu0 %v8775_v23  ;;  %v9266_v23 = vld [vmem:[#allocation196_spill] sm:$0xff] }
 0xb61   :  { %4649 = vmatprep.subr.bf16.mxu1 %v8776_v6  ;;  %4690 = vmatprep.subr.bf16.mxu0 %v8777_v17 }
 0xb64   :  { %4650 = vmatpush1.bf16.msra.mxu1 %v8778_v51  ;;  %4691 = vmatpush1.bf16.msra.mxu0 %v8779_v18  ;;  %v9267_v18 = vld [vmem:[#allocation175_spill] sm:$0xff] }
 0xb65   :  { %4651 = vmatprep.subr.bf16.mxu1 %v8780_v26  ;;  %4692 = vmatprep.subr.bf16.mxu0 %v8781_v47  ;;  %v9268_v47 = vld [vmem:[#allocation197_spill] sm:$0xff] }
 0xb68   :  { %4652 = vmatpush1.bf16.msra.mxu1 %v8782_v24  ;;  %4693 = vmatpush1.bf16.msra.mxu0 %v8864_v56 }
 0xb69   :  { %4653 = vmatprep.subr.bf16.mxu1 %v8783_v41  ;;  %4694 = vmatprep.subr.bf16.mxu0 %v8865_v53 }
 0xb6c   :  { %4654 = vmatpush1.bf16.msra.mxu1 %v8785_v58  ;;  %4695 = vmatpush1.bf16.msra.mxu0 %v8866_v42 }
 0xb6d   :  { %4655 = vmatprep.subr.bf16.mxu1 %v8786_v38  ;;  %4696 = vmatprep.subr.bf16.mxu0 %v8867_v20 }
 0xb70   :  { %4656 = vmatpush1.bf16.msra.mxu1 %v8787_v12  ;;  %4697 = vmatpush1.bf16.msra.mxu0 %v9244_v32 }
 0xb71   :  { %4657 = vmatprep.subr.bf16.mxu1 %v9245_v9  ;;  %4698 = vmatprep.subr.bf16.mxu0 %v9246_v35 }
 0xb74   :  { %4658 = vmatpush1.bf16.msra.mxu1 %v9247_v10  ;;  %4699 = vmatpush1.bf16.msra.mxu0 %v9248_v19 }
 0xb75   :  { %4659 = vmatprep.subr.bf16.mxu1 %v9249_v37  ;;  %4700 = vmatprep.subr.bf16.mxu0 %v9250_v30 }
 0xb78   :  { %4660 = vmatpush1.bf16.msra.mxu1 %v9251_v27  ;;  %4701 = vmatpush1.bf16.msra.mxu0 %v9252_v43 }
 0xb79   :  { %4661 = vmatprep.subr.bf16.mxu1 %v9253_v34  ;;  %4702 = vmatprep.subr.bf16.mxu0 %v9254_v45 }
 0xb7c   :  { %4662 = vmatpush1.bf16.msra.mxu1 %v9255_v16  ;;  %4703 = vmatpush1.bf16.msra.mxu0 %v9256_v13 }
 0xb7d   :  { %4663 = vmatprep.subr.bf16.mxu1 %v9257_v57  ;;  %4704 = vmatprep.subr.bf16.mxu0 %v9258_v2 }
 0xb80   :  { %4664 = vmatpush1.bf16.msra.mxu1 %v9259_v1  ;;  %4705 = vmatpush1.bf16.msra.mxu0 %v9260_v22 }
 0xb81   :  { %4665 = vmatprep.subr.bf16.mxu1 %v9261_v15  ;;  %4706 = vmatprep.subr.bf16.mxu0 %v9262_v31 }
 0xb84   :  { %4666 = vmatpush1.bf16.msra.mxu1 %v9263_v59  ;;  %4707 = vmatpush1.bf16.msra.mxu0 %v9264_v55 }
 0xb87   :  { %4668 = vmatmul.mubr.bf16.vlgmr.msra.gmra.mrb[108].mxu1 %v8037_v36  ;;  %4709 = vmatmul.mubr.bf16.vlgmr.msra.gmra.mrb[96].mxu0 %v8037_v36 }
 0xc1a   :  { %v4587_v14 = vpop.f32.mrb[104].mxu1  ;;  %v4628_v0 = vpop.f32.mrb[92].mxu0 }
 0xc1b   :  { %v4717_v11 = vadd.f32 %v4587_v14, %v9265_v61  ;;  %v4719_v6 = vadd.f32 %v4628_v0, %v9266_v23  ;;  %v4589_v17 = vpop.f32.mrb[105].mxu1  ;;  %v4630_v51 = vpop.f32.mrb[93].mxu0  ;;  %v2034_v14 = vld [vmem:[%s8163_s7] sm:$0x3] }
 0xc1c   :  { %v4718_v26 = vadd.f32 %v4589_v17, %v9267_v18  ;;  %v4720_v24 = vadd.f32 %v4630_v51, %v9268_v47  ;;  %v4591_v41 = vpop.f32.mrb[106].mxu1  ;;  %v4632_v58 = vpop.f32.mrb[94].mxu0  ;;  %v9273_v0 = vld [vmem:[#allocation130_spill] sm:$0xff]  ;;  %v9275_v17 = vld [vmem:[#allocation179_spill] sm:$0xff]  ;;  %v9276_v47 = vld [vmem:[#allocation180_spill] sm:$0xff] }
 0xc1d   :  { %v4592_v38 = vpop.f32.mrb[107].mxu1  ;;  %v4633_v12 = vpop.f32.mrb[95].mxu0  ;;  %v5509_v56 = vmul.f32 -1.442695, %v4717_v11  ;;  %v5511_v53 = vmul.f32 -1.442695, %v4719_v6 }
 0xc1e   :  { %v5510_v42 = vmul.f32 -1.442695, %v4718_v26  ;;  %v5512_v20 = vmul.f32 -1.442695, %v4720_v24  ;;  %v9274_v11 = vld [vmem:[#allocation131_spill] sm:$0xff] }
 0xc1f   :  { %5899 = vpow2.f32 %v5509_v56  ;;  %v2043_v23 = vrot.slane %v2034_v14, %v9274_v11 }
 0xc20   :  { %5901 = vpow2.f32 %v5511_v53 }
 0xc21   :  { %5903 = vpow2.f32 %v5510_v42  ;;  %v2163_v24 = vadd.f32 %v9276_v47, %v2043_v23 }
 0xc22   :  { %5905 = vpow2.f32 %v5512_v20 }
 0xc29   :  { %v5900_v7 = vpop.eup %5899 }
 0xc2a   :  { %v5902_v60 = vpop.eup %5901  ;;  %v4731_v54 = vadd.f32 1.0, %v5900_v7 }
 0xc2b   :  { %v5904_v49 = vpop.eup %5903  ;;  %v4743_v39 = vadd.f32 1.0, %v5902_v60 }
 0xc2c   :  { %v5906_v25 = vpop.eup %5905  ;;  %v4732_v52 = vadd.f32 1.0, %v5904_v49  ;;  %5907 = vrcp.f32 %v4731_v54 }
 0xc2d   :  { %v4744_v3 = vadd.f32 1.0, %v5906_v25  ;;  %5909 = vrcp.f32 %v4743_v39 }
 0xc2e   :  { %5911 = vrcp.f32 %v4732_v52 }
 0xc2f   :  { %5913 = vrcp.f32 %v4744_v3 }
 0xc36   :  { %v5908_v37 = vpop.eup %5907 }
 0xc37   :  { %v5910_v30 = vpop.eup %5909 }
 0xc38   :  { %v5912_v27 = vpop.eup %5911  ;;  %v4763_v16 = vmul.f32 %v5910_v30, %v8031_v4  ;;  %v2039_v4 = vrot.slane %v2034_v14, %v9273_v0 }
 0xc39   :  { %v5914_v43 = vpop.eup %5913 }
 0xc3a   :  { %v4764_v2 = vmul.f32 %v5914_v43, %v8033_v63  ;;  %v2161_v51 = vadd.f32 %v9275_v17, %v2039_v4 }
 0xc5a   :  { %v4669_v40 = vpop.f32.mrb[108].mxu1  ;;  %v4710_v48 = vpop.f32.mrb[96].mxu0 }
 0xc5b   :  { %v4721_v46 = vadd.f32 %v4669_v40, %v9269_v44  ;;  %v4723_v5 = vadd.f32 %v4710_v48, %v9270_v50  ;;  %v4671_v28 = vpop.f32.mrb[109].mxu1  ;;  %v4712_v33 = vpop.f32.mrb[97].mxu0 }
 0xc5c   :  { %v4722_v8 = vadd.f32 %v4671_v28, %v9271_v21  ;;  %v4724_v62 = vadd.f32 %v4712_v33, %v9272_v29  ;;  %v4673_v36 = vpop.f32.mrb[110].mxu1  ;;  %v4714_v32 = vpop.f32.mrb[98].mxu0 }
 0xc5d   :  { %5915 = vtanh.f32 %v4721_v46  ;;  %v5513_v9 = vmul.f32 -1.442695, %v4723_v5  ;;  %v4674_v35 = vpop.f32.mrb[111].mxu1  ;;  %v4715_v10 = vpop.f32.mrb[99].mxu0 }
 0xc5e   :  { %5917 = vtanh.f32 %v4722_v8  ;;  %v5514_v19 = vmul.f32 -1.442695, %v4724_v62 }
 0xc5f   :  { %5919 = vpow2.f32 %v5513_v9 }
 0xc60   :  { %5921 = vpow2.f32 %v5514_v19 }
 0xc67   :  { %v5916_v34 = vpop.eup %5915 }
 0xc68   :  { %v5918_v45 = vpop.eup %5917  ;;  %v4765_v13 = vmul.f32 %v5916_v34, %v5908_v37 }
 0xc69   :  { %v5920_v57 = vpop.eup %5919  ;;  %v4766_v1 = vmul.f32 %v5918_v45, %v5912_v27 }
 0xc6a   :  { %v5922_v22 = vpop.eup %5921  ;;  %v4767_v15 = vadd.f32 %v4765_v13, %v4763_v16  ;;  %v4757_v31 = vadd.f32 1.0, %v5920_v57 }
 0xc6b   :  { %v4768_v59 = vadd.f32 %v4766_v1, %v4764_v2  ;;  %v4758_v55 = vadd.f32 1.0, %v5922_v22 }
 0xc6c   :  { %5923 = vtanh.f32 %v4767_v15 }
 0xc6d   :  { %5925 = vrcp.f32 %v4757_v31 }
 0xc6e   :  { %5927 = vtanh.f32 %v4768_v59 }
 0xc6f   :  { %5929 = vrcp.f32 %v4758_v55 }
 0xc76   :  { %v5924_v61 = vpop.eup %5923 }
 0xc77   :  { %v5926_v63 = vpop.eup %5925 }
 0xc78   :  { %v5928_v6 = vpop.eup %5927  ;;  %v4771_v18 = vmul.f32 %v5926_v63, %v5924_v61 }
 0xc79   :  { %v5930_v26 = vpop.eup %5929 }
 0xc7a   :  { %v8122_v41 = vadd.f32 %v4771_v18, %v2161_v51  ;;  %v4772_v58 = vmul.f32 %v5930_v26, %v5928_v6 }
 0xc7c   :  { %v4774_v38 = vadd.f32 %v4772_v58, %v2163_v24 }
 0xc7d   :  { %6025 = dma.done.wait [#allocation5], 4096 }
 0xc7e   :  { %6026 = vsyncadd [#allocation5], 4294963200  ;;  %v4780_v12 = vpack.c.bf16 %v4774_v38, %v4774_v38  ;;  %v4782_v56 = vld [vmem:[#allocation3 + $0x8] sm:$0xff]  ;;  %v4781_v53 = vld [vmem:[#allocation3] sm:$0xff]  ;;  %v4779_v27 = vpack.c.bf16 %v8122_v41, %v8122_v41 }
 0xc7f   :  { %v4784_v42 = vld [vmem:[#allocation3 + $0x18] sm:$0xff]  ;;  %4825 = vmatprep.subr.bf16.mxu1 %v4782_v56  ;;  %v4783_v20 = vld [vmem:[#allocation3 + $0x10] sm:$0xff]  ;;  %v4786_v7 = vld [vmem:[#allocation3 + $0x28] sm:$0xff] }
 0xc80   :  { %4857 = vmatprep.mubr.bf16.mxu1 %v4780_v12  ;;  %4826 = vmatpush1.bf16.msra.mxu1 %v4781_v53  ;;  %v4785_v60 = vld [vmem:[#allocation3 + $0x20] sm:$0xff]  ;;  %v4788_v49 = vld [vmem:[#allocation3 + $0x38] sm:$0xff]  ;;  %v4787_v25 = vld [vmem:[#allocation3 + $0x30] sm:$0xff] }
 0xc81   :  { %4827 = vmatprep.subr.bf16.mxu1 %v4784_v42  ;;  %v4790_v54 = vld [vmem:[#allocation3 + $0x48] sm:$0xff]  ;;  %v4789_v39 = vld [vmem:[#allocation3 + $0x40] sm:$0xff]  ;;  %v4792_v52 = vld [vmem:[#allocation3 + $0x58] sm:$0xff] }
 0xc82   :  { %v4791_v3 = vld [vmem:[#allocation3 + $0x50] sm:$0xff]  ;;  %v4794_v40 = vld [vmem:[#allocation3 + $0x68] sm:$0xff]  ;;  %v4793_v48 = vld [vmem:[#allocation3 + $0x60] sm:$0xff] }
 0xc83   :  { %v4796_v44 = vld [vmem:[#allocation3 + $0x78] sm:$0xff]  ;;  %v4795_v46 = vld [vmem:[#allocation3 + $0x70] sm:$0xff]  ;;  %v4798_v50 = vld [vmem:[#allocation3 + $0x88] sm:$0xff] }
 0xc84   :  { %4828 = vmatpush1.bf16.msra.mxu1 %v4783_v20  ;;  %v4797_v5 = vld [vmem:[#allocation3 + $0x80] sm:$0xff]  ;;  %v4800_v28 = vld [vmem:[#allocation3 + $0x98] sm:$0xff]  ;;  %v4799_v33 = vld [vmem:[#allocation3 + $0x90] sm:$0xff] }
 0xc85   :  { %4829 = vmatprep.subr.bf16.mxu1 %v4786_v7  ;;  %v4802_v21 = vld [vmem:[#allocation3 + $0xa8] sm:$0xff]  ;;  %v4801_v8 = vld [vmem:[#allocation3 + $0xa0] sm:$0xff]  ;;  %v4804_v29 = vld [vmem:[#allocation3 + $0xb8] sm:$0xff] }
 0xc86   :  { %v4803_v62 = vld [vmem:[#allocation3 + $0xb0] sm:$0xff]  ;;  %v4806_v36 = vld [vmem:[#allocation3 + $0xc8] sm:$0xff]  ;;  %v4805_v32 = vld [vmem:[#allocation3 + $0xc0] sm:$0xff] }
 0xc87   :  { %v4808_v9 = vld [vmem:[#allocation3 + $0xd8] sm:$0xff]  ;;  %v4807_v35 = vld [vmem:[#allocation3 + $0xd0] sm:$0xff]  ;;  %v4810_v10 = vld [vmem:[#allocation3 + $0xe8] sm:$0xff] }
 0xc88   :  { %4830 = vmatpush1.bf16.msra.mxu1 %v4785_v60  ;;  %v4809_v19 = vld [vmem:[#allocation3 + $0xe0] sm:$0xff]  ;;  %v4812_v37 = vld [vmem:[#allocation3 + $0xf8] sm:$0xff]  ;;  %v4811_v30 = vld [vmem:[#allocation3 + $0xf0] sm:$0xff] }
 0xc89   :  { %4831 = vmatprep.subr.bf16.mxu1 %v4788_v49  ;;  %v4813_v43 = vld [vmem:[%s8165_s9] sm:$0x3] }
 0xc8a   :  { %v4818_v34 = vrot.slane %v4813_v43, %v9273_v0  ;;  %v4822_v45 = vrot.slane %v4813_v43, %v9274_v11 }
 0xc8c   :  { %4832 = vmatpush1.bf16.msra.mxu1 %v4787_v25 }
 0xc8d   :  { %4833 = vmatprep.subr.bf16.mxu1 %v4790_v54 }
 0xc90   :  { %4834 = vmatpush1.bf16.msra.mxu1 %v4789_v39 }
 0xc91   :  { %4835 = vmatprep.subr.bf16.mxu1 %v4792_v52 }
 0xc94   :  { %4836 = vmatpush1.bf16.msra.mxu1 %v4791_v3 }
 0xc95   :  { %4837 = vmatprep.subr.bf16.mxu1 %v4794_v40 }
 0xc98   :  { %4838 = vmatpush1.bf16.msra.mxu1 %v4793_v48 }
 0xc99   :  { %4839 = vmatprep.subr.bf16.mxu1 %v4796_v44 }
 0xc9c   :  { %4840 = vmatpush1.bf16.msra.mxu1 %v4795_v46 }
 0xc9d   :  { %4841 = vmatprep.subr.bf16.mxu1 %v4798_v50 }
 0xca0   :  { %4842 = vmatpush1.bf16.msra.mxu1 %v4797_v5 }
 0xca1   :  { %4843 = vmatprep.subr.bf16.mxu1 %v4800_v28 }
 0xca4   :  { %4844 = vmatpush1.bf16.msra.mxu1 %v4799_v33 }
 0xca5   :  { %4845 = vmatprep.subr.bf16.mxu1 %v4802_v21 }
 0xca8   :  { %4846 = vmatpush1.bf16.msra.mxu1 %v4801_v8 }
 0xca9   :  { %4847 = vmatprep.subr.bf16.mxu1 %v4804_v29 }
 0xcac   :  { %4848 = vmatpush1.bf16.msra.mxu1 %v4803_v62 }
 0xcad   :  { %4849 = vmatprep.subr.bf16.mxu1 %v4806_v36 }
 0xcb0   :  { %4850 = vmatpush1.bf16.msra.mxu1 %v4805_v32 }
 0xcb1   :  { %4851 = vmatprep.subr.bf16.mxu1 %v4808_v9 }
 0xcb4   :  { %4852 = vmatpush1.bf16.msra.mxu1 %v4807_v35 }
 0xcb5   :  { %4853 = vmatprep.subr.bf16.mxu1 %v4810_v10 }
 0xcb8   :  { %4854 = vmatpush1.bf16.msra.mxu1 %v4809_v19 }
 0xcb9   :  { %4855 = vmatprep.subr.bf16.mxu1 %v4812_v37 }
 0xcbc   :  { %4856 = vmatpush1.bf16.msra.mxu1 %v4811_v30 }
 0xcbf   :  { %4858 = vmatmul.mubr.bf16.vlgmr.msra.gmra.mrb[112].mxu1 %v4779_v27 }
 0xd92   :  { %v4859_v16 = vpop.f32.mrb[112].mxu1 }
 0xd93   :  { %v8131_v13 = vadd.f32 %v4859_v16, %v4818_v34  ;;  %v4861_v57 = vpop.f32.mrb[113].mxu1 }
 0xd94   :  { %v4862_v2 = vadd.f32 %v4861_v57, %v4822_v45  ;;  %v4863_v1 = vpop.f32.mrb[114].mxu1 }
 0xd95   :  { %v4864_v22 = vpop.f32.mrb[115].mxu1 }
 0xd96   :  { %6027 = dma.done.wait [#allocation5 + $0x1], 8192 }
 0xd97   :  { %6028 = vsyncadd [#allocation5 + $0x1], 4294959104  ;;  %v4870_v15 = vpack.c.bf16 %v4862_v2, %v4862_v2  ;;  %v4872_v31 = vld [vmem:[#allocation4 + $0x8] sm:$0xff]  ;;  %v4874_v59 = vld [vmem:[#allocation4 + $0x18] sm:$0xff] }
 0xd98   :  { %v4871_v55 = vld [vmem:[#allocation4] sm:$0xff]  ;;  %4957 = vmatprep.subr.bf16.mxu0 %v4872_v31  ;;  %4998 = vmatprep.subr.bf16.mxu1 %v4874_v59  ;;  %v4873_v14 = vld [vmem:[#allocation4 + $0x10] sm:$0xff]  ;;  %v4876_v4 = vld [vmem:[#allocation4 + $0x28] sm:$0xff] }
 0xd99   :  { %4989 = vmatprep.mubr.bf16.mxu0 %v4870_v15  ;;  %5030 = vmatprep.mubr.bf16.mxu1 %v4870_v15  ;;  %v4878_v61 = vld [vmem:[#allocation4 + $0x38] sm:$0xff]  ;;  %v4875_v23 = vld [vmem:[#allocation4 + $0x20] sm:$0xff]  ;;  %v4877_v63 = vld [vmem:[#allocation4 + $0x30] sm:$0xff] }
 0xd9a   :  { %4958 = vmatpush1.bf16.msra.mxu0 %v4871_v55  ;;  %4999 = vmatpush1.bf16.msra.mxu1 %v4873_v14  ;;  %v4880_v6 = vld [vmem:[#allocation4 + $0x48] sm:$0xff]  ;;  %v4882_v17 = vld [vmem:[#allocation4 + $0x58] sm:$0xff]  ;;  %v4879_v51 = vld [vmem:[#allocation4 + $0x40] sm:$0xff]  ;;  %v4869_v14 = vpack.c.bf16 %v8131_v13, %v8131_v13 }
 0xd9b   :  { %4959 = vmatprep.subr.bf16.mxu0 %v4876_v4  ;;  %5000 = vmatprep.subr.bf16.mxu1 %v4878_v61  ;;  %v4881_v18 = vld [vmem:[#allocation4 + $0x50] sm:$0xff]  ;;  %v4884_v26 = vld [vmem:[#allocation4 + $0x68] sm:$0xff]  ;;  %v4886_v47 = vld [vmem:[#allocation4 + $0x78] sm:$0xff] }
 0xd9c   :  { %v4883_v24 = vld [vmem:[#allocation4 + $0x60] sm:$0xff]  ;;  %v4885_v41 = vld [vmem:[#allocation4 + $0x70] sm:$0xff]  ;;  %v4888_v58 = vld [vmem:[#allocation4 + $0x88] sm:$0xff] }
 0xd9d   :  { %v4890_v38 = vld [vmem:[#allocation4 + $0x98] sm:$0xff]  ;;  %v4887_v12 = vld [vmem:[#allocation4 + $0x80] sm:$0xff]  ;;  %v4889_v56 = vld [vmem:[#allocation4 + $0x90] sm:$0xff] }
 0xd9e   :  { %4960 = vmatpush1.bf16.msra.mxu0 %v4875_v23  ;;  %5001 = vmatpush1.bf16.msra.mxu1 %v4877_v63  ;;  %v4892_v53 = vld [vmem:[#allocation4 + $0xa8] sm:$0xff]  ;;  %v4894_v42 = vld [vmem:[#allocation4 + $0xb8] sm:$0xff]  ;;  %v4891_v20 = vld [vmem:[#allocation4 + $0xa0] sm:$0xff] }
 0xd9f   :  { %4961 = vmatprep.subr.bf16.mxu0 %v4880_v6  ;;  %5002 = vmatprep.subr.bf16.mxu1 %v4882_v17  ;;  %v4893_v7 = vld [vmem:[#allocation4 + $0xb0] sm:$0xff]  ;;  %v4896_v60 = vld [vmem:[#allocation4 + $0xc8] sm:$0xff]  ;;  %v4898_v49 = vld [vmem:[#allocation4 + $0xd8] sm:$0xff] }
 0xda0   :  { %v4895_v25 = vld [vmem:[#allocation4 + $0xc0] sm:$0xff]  ;;  %v4897_v54 = vld [vmem:[#allocation4 + $0xd0] sm:$0xff]  ;;  %v4900_v39 = vld [vmem:[#allocation4 + $0xe8] sm:$0xff] }
 0xda1   :  { %v4902_v52 = vld [vmem:[#allocation4 + $0xf8] sm:$0xff]  ;;  %v4899_v3 = vld [vmem:[#allocation4 + $0xe0] sm:$0xff]  ;;  %v4901_v40 = vld [vmem:[#allocation4 + $0xf0] sm:$0xff] }
 0xda2   :  { %4962 = vmatpush1.bf16.msra.mxu0 %v4879_v51  ;;  %5003 = vmatpush1.bf16.msra.mxu1 %v4881_v18  ;;  %v4904_v48 = vld [vmem:[#allocation4 + $0x108] sm:$0xff]  ;;  %v4906_v44 = vld [vmem:[#allocation4 + $0x118] sm:$0xff]  ;;  %v4903_v46 = vld [vmem:[#allocation4 + $0x100] sm:$0xff] }
 0xda3   :  { %4963 = vmatprep.subr.bf16.mxu0 %v4884_v26  ;;  %5004 = vmatprep.subr.bf16.mxu1 %v4886_v47  ;;  %v4905_v50 = vld [vmem:[#allocation4 + $0x110] sm:$0xff]  ;;  %v4908_v5 = vld [vmem:[#allocation4 + $0x128] sm:$0xff]  ;;  %v4910_v28 = vld [vmem:[#allocation4 + $0x138] sm:$0xff] }
 0xda4   :  { %v4907_v33 = vld [vmem:[#allocation4 + $0x120] sm:$0xff]  ;;  %v4909_v21 = vld [vmem:[#allocation4 + $0x130] sm:$0xff]  ;;  %v4912_v8 = vld [vmem:[#allocation4 + $0x148] sm:$0xff] }
 0xda5   :  { %v4914_v29 = vld [vmem:[#allocation4 + $0x158] sm:$0xff]  ;;  %v4911_v62 = vld [vmem:[#allocation4 + $0x140] sm:$0xff]  ;;  %v4913_v36 = vld [vmem:[#allocation4 + $0x150] sm:$0xff] }
 0xda6   :  { %4964 = vmatpush1.bf16.msra.mxu0 %v4883_v24  ;;  %5005 = vmatpush1.bf16.msra.mxu1 %v4885_v41  ;;  %v4916_v32 = vld [vmem:[#allocation4 + $0x168] sm:$0xff]  ;;  %v4918_v9 = vld [vmem:[#allocation4 + $0x178] sm:$0xff]  ;;  %v4915_v35 = vld [vmem:[#allocation4 + $0x160] sm:$0xff] }
 0xda7   :  { %4965 = vmatprep.subr.bf16.mxu0 %v4888_v58  ;;  %5006 = vmatprep.subr.bf16.mxu1 %v4890_v38  ;;  %v4917_v10 = vld [vmem:[#allocation4 + $0x170] sm:$0xff]  ;;  %v4920_v19 = vld [vmem:[#allocation4 + $0x188] sm:$0xff]  ;;  %v4922_v37 = vld [vmem:[#allocation4 + $0x198] sm:$0xff] }
 0xda8   :  { %v4919_v30 = vld [vmem:[#allocation4 + $0x180] sm:$0xff]  ;;  %v4921_v27 = vld [vmem:[#allocation4 + $0x190] sm:$0xff]  ;;  %v4924_v43 = vld [vmem:[#allocation4 + $0x1a8] sm:$0xff] }
 0xda9   :  { %v4926_v34 = vld [vmem:[#allocation4 + $0x1b8] sm:$0xff]  ;;  %v4923_v45 = vld [vmem:[#allocation4 + $0x1a0] sm:$0xff]  ;;  %v4925_v16 = vld [vmem:[#allocation4 + $0x1b0] sm:$0xff] }
 0xdaa   :  { %4966 = vmatpush1.bf16.msra.mxu0 %v4887_v12  ;;  %5007 = vmatpush1.bf16.msra.mxu1 %v4889_v56  ;;  %v4928_v57 = vld [vmem:[#allocation4 + $0x1c8] sm:$0xff]  ;;  %v4930_v2 = vld [vmem:[#allocation4 + $0x1d8] sm:$0xff]  ;;  %v4927_v1 = vld [vmem:[#allocation4 + $0x1c0] sm:$0xff] }
 0xdab   :  { %4967 = vmatprep.subr.bf16.mxu0 %v4892_v53  ;;  %5008 = vmatprep.subr.bf16.mxu1 %v4894_v42  ;;  %v4929_v22 = vld [vmem:[#allocation4 + $0x1d0] sm:$0xff]  ;;  %v4932_v15 = vld [vmem:[#allocation4 + $0x1e8] sm:$0xff]  ;;  %v4934_v31 = vld [vmem:[#allocation4 + $0x1f8] sm:$0xff] }
 0xdac   :  { %v4931_v59 = vld [vmem:[#allocation4 + $0x1e0] sm:$0xff]  ;;  %v4933_v55 = vld [vmem:[#allocation4 + $0x1f0] sm:$0xff]  ;;  %v9277_v23 = vld [vmem:[#allocation127_spill] sm:$0xff] }
 0xdad   :  { %v4935_v4 = vld [vmem:[%s8167_s11] sm:$0xf]  ;;  %v9278_v63 = vsub.s32 2, %v9277_v23  ;;  %v9279_v51 = vsub.s32 3, %v9277_v23 }
 0xdae   :  { %4968 = vmatpush1.bf16.msra.mxu0 %v4891_v20  ;;  %5009 = vmatpush1.bf16.msra.mxu1 %v4893_v7  ;;  %v4940_v61 = vrot.slane %v4935_v4, %v9273_v0  ;;  %v4944_v17 = vrot.slane %v4935_v4, %v9274_v11 }
 0xdaf   :  { %4969 = vmatprep.subr.bf16.mxu0 %v4896_v60  ;;  %5010 = vmatprep.subr.bf16.mxu1 %v4898_v49  ;;  %v4948_v6 = vrot.slane %v4935_v4, %v9278_v63  ;;  %v4952_v18 = vrot.slane %v4935_v4, %v9279_v51 }
 0xdb2   :  { %4970 = vmatpush1.bf16.msra.mxu0 %v4895_v25  ;;  %5011 = vmatpush1.bf16.msra.mxu1 %v4897_v54 }
 0xdb3   :  { %4971 = vmatprep.subr.bf16.mxu0 %v4900_v39  ;;  %5012 = vmatprep.subr.bf16.mxu1 %v4902_v52 }
 0xdb6   :  { %4972 = vmatpush1.bf16.msra.mxu0 %v4899_v3  ;;  %5013 = vmatpush1.bf16.msra.mxu1 %v4901_v40 }
 0xdb7   :  { %4973 = vmatprep.subr.bf16.mxu0 %v4904_v48  ;;  %5014 = vmatprep.subr.bf16.mxu1 %v4906_v44 }
 0xdba   :  { %4974 = vmatpush1.bf16.msra.mxu0 %v4903_v46  ;;  %5015 = vmatpush1.bf16.msra.mxu1 %v4905_v50 }
 0xdbb   :  { %4975 = vmatprep.subr.bf16.mxu0 %v4908_v5  ;;  %5016 = vmatprep.subr.bf16.mxu1 %v4910_v28 }
 0xdbe   :  { %4976 = vmatpush1.bf16.msra.mxu0 %v4907_v33  ;;  %5017 = vmatpush1.bf16.msra.mxu1 %v4909_v21 }
 0xdbf   :  { %4977 = vmatprep.subr.bf16.mxu0 %v4912_v8  ;;  %5018 = vmatprep.subr.bf16.mxu1 %v4914_v29 }
 0xdc2   :  { %4978 = vmatpush1.bf16.msra.mxu0 %v4911_v62  ;;  %5019 = vmatpush1.bf16.msra.mxu1 %v4913_v36 }
 0xdc3   :  { %4979 = vmatprep.subr.bf16.mxu0 %v4916_v32  ;;  %5020 = vmatprep.subr.bf16.mxu1 %v4918_v9 }
 0xdc6   :  { %4980 = vmatpush1.bf16.msra.mxu0 %v4915_v35  ;;  %5021 = vmatpush1.bf16.msra.mxu1 %v4917_v10 }
 0xdc7   :  { %4981 = vmatprep.subr.bf16.mxu0 %v4920_v19  ;;  %5022 = vmatprep.subr.bf16.mxu1 %v4922_v37 }
 0xdca   :  { %4982 = vmatpush1.bf16.msra.mxu0 %v4919_v30  ;;  %5023 = vmatpush1.bf16.msra.mxu1 %v4921_v27 }
 0xdcb   :  { %4983 = vmatprep.subr.bf16.mxu0 %v4924_v43  ;;  %5024 = vmatprep.subr.bf16.mxu1 %v4926_v34 }
 0xdce   :  { %4984 = vmatpush1.bf16.msra.mxu0 %v4923_v45  ;;  %5025 = vmatpush1.bf16.msra.mxu1 %v4925_v16 }
 0xdcf   :  { %4985 = vmatprep.subr.bf16.mxu0 %v4928_v57  ;;  %5026 = vmatprep.subr.bf16.mxu1 %v4930_v2 }
 0xdd2   :  { %4986 = vmatpush1.bf16.msra.mxu0 %v4927_v1  ;;  %5027 = vmatpush1.bf16.msra.mxu1 %v4929_v22 }
 0xdd3   :  { %4987 = vmatprep.subr.bf16.mxu0 %v4932_v15  ;;  %5028 = vmatprep.subr.bf16.mxu1 %v4934_v31 }
 0xdd6   :  { %4988 = vmatpush1.bf16.msra.mxu0 %v4931_v59  ;;  %5029 = vmatpush1.bf16.msra.mxu1 %v4933_v55 }
 0xdd9   :  { %4990 = vmatmul.mubr.bf16.vlgmr.msra.gmra.mrb[100].mxu0 %v4869_v14  ;;  %5031 = vmatmul.mubr.bf16.vlgmr.msra.gmra.mrb[116].mxu1 %v4869_v14 }
 0xeac   :  { %v4991_v26 = vpop.f32.mrb[100].mxu0  ;;  %v5032_v13 = vpop.f32.mrb[116].mxu1 }
 0xead   :  { %v4992_v47 = vadd.f32 %v4991_v26, %v4940_v61  ;;  %v5033_v24 = vadd.f32 %v5032_v13, %v4948_v6  ;;  %v4993_v41 = vpop.f32.mrb[101].mxu0  ;;  %v5034_v58 = vpop.f32.mrb[117].mxu1 }
 0xeae   :  { %v4994_v38 = vadd.f32 %v4993_v41, %v4944_v17  ;;  %v5035_v12 = vadd.f32 %v5034_v58, %v4952_v18  ;;  %v4995_v56 = vpop.f32.mrb[102].mxu0  ;;  %v5036_v53 = vpop.f32.mrb[118].mxu1 }
 0xeaf   :  { %5039 = vst [vmem:[%s8168_s12] sm:$0xff] %v4992_v47  ;;  %5041 = vst [vmem:[%s8168_s12 + $0x10] sm:$0xff] %v5033_v24  ;;  %v4996_v0 = vpop.f32.mrb[103].mxu0  ;;  %v5037_v11 = vpop.f32.mrb[119].mxu1 }
 0xeb0   :  { %5040 = vst [vmem:[%s8168_s12 + $0x8] sm:$0xff] %v4994_v38  ;;  %5042 = vst [vmem:[%s8168_s12 + $0x18] sm:$0xff] %v5035_v12 }
 0xeb1   :  { %5047 = vsyncpa [#allocation7], 1 }
 0xeb2   :  { %5048 = vsyncpa [#allocation9], 1 }
 0xeb3   :  { %5049 = vsyncpa [#allocation12], 1 }
 0xeb4   :  { %5050 = vsyncmov [#allocation5] }
 0xeb7   :  { %s5051_s2 = vpop.sfrf %5050 }
 0xeb8   :  { %p5515_p4 = scmp.ne.s32.totalorder %s5051_s2, 0 }
 0xeba   :  { %5055 = shalt.err (%p5515_p4)  }
 0xebb   :  { %5057 = vsyncmov [#allocation5 + $0x1] }
 0xebe   :  { %s5058_s24 = vpop.sfrf %5057 }
 0xebf   :  { %p5516_p5 = scmp.ne.s32.totalorder %s5058_s24, 0 }
 0xec1   :  { %5062 = shalt.err (%p5516_p5)  }

</bundles_post_ra>
